<compile_context>
chip_gen: v5e
topology: v5e:2x2
jax: 0.10.0
libtpu: 0.0.40
codegen_flags: <defaults>
</compile_context>

<pallas_src>
import functools
import math

import jax
import jax.numpy as jnp
from jax import lax
from jax.experimental import pallas as pl
from jax.experimental.pallas import tpu as pltpu

SIZES = (1, 2, 3, 6)
BN_EPS = 1e-5
LANE = 128


# ----------------------------- padding / layout helpers -----------------------------

def _round_up(x, m=LANE):
    return ((x + m - 1) // m) * m


def _pad_dim(a, axis, target):
    pad = target - a.shape[axis]
    if pad == 0:
        return a
    cfg = [(0, 0)] * a.ndim
    cfg[axis] = (0, pad)
    return jnp.pad(a, cfg)


def _pad_last(a, target):
    return _pad_dim(a, a.ndim - 1, target)


def _split_rows(w, c1, c1p):
    """Scatter real leading-dim channels into the 'split' padded layout:
    channels [0:c1) -> rows [0:c1), channels [c1:C) -> rows [c1p:c1p+C-c1), zeros elsewhere.
    Output leading dim = 2*c1p."""
    c = w.shape[0]
    c2 = c - c1
    trail = w.shape[1:]
    z1 = jnp.zeros((c1p - c1,) + trail, w.dtype)
    z2 = jnp.zeros((c1p - c2,) + trail, w.dtype)
    return jnp.concatenate([w[:c1], z1, w[c1:], z2], axis=0)


def _pick_tq(n):
    for t in (512, 256, 128):
        if n % t == 0:
            return t
    return n  # TODO(synk): pad/mask ragged N so very large non-multiple maps still q-tile


# ----------------------------- Pallas kernels ------------------------------

def _bottleneck_kernel(x_ref, w1_ref, s1_ref, sh1_ref, wdw_ref, s2_ref, sh2_ref,
                       o_ref, xp_ref, *, H, W):
    """Fused GhostModule bottleneck: 1x1 conv+BN+ReLU, depthwise 3x3+BN+ReLU, concat.

    x_ref : (1, H*W, Cin_p) f32     w1_ref : (Cin_p, C1p) bf16
    s*/sh*: (1, C1p) f32            wdw_ref: (9, C1p) f32 (3x3 taps, row = 3*dy+dx)
    o_ref : (1, H*W, 2*C1p) f32     xp_ref : VMEM (H+2, W+2, C1p) f32 scratch
    """
    C1p = xp_ref.shape[-1]

    # primary 1x1 conv as bf16 MXU matmul, f32 accumulation, fused BN + ReLU
    x16 = x_ref[0].astype(jnp.bfloat16)                      # (H*W, Cin_p)
    y = jnp.dot(x16, w1_ref[...], preferred_element_type=jnp.float32)
    x1 = jnp.maximum(y * s1_ref[...] + sh1_ref[...], 0.0)    # (H*W, C1p) f32

    # zero-padded copy of x1 for 'same' depthwise 3x3 -- lives entirely in VMEM
    xp_ref[...] = jnp.zeros_like(xp_ref)
    xp_ref[1:H + 1, 1:W + 1, :] = x1.reshape(H, W, C1p)
    xp = xp_ref[...]                                         # (H+2, W+2, C1p)

    # depthwise 3x3 (+ fused BN + ReLU), f32 VPU math on 128-wide lanes
    wdw = wdw_ref[...]                                       # (9, C1p)
    acc = jnp.zeros((H, W, C1p), jnp.float32)
    for dy in range(3):
        row = xp[dy:dy + H]                                  # (H, W+2, C1p)
        for dx in range(3):
            acc = acc + row[:, dx:dx + W, :] * wdw[3 * dy + dx]
    x2 = jnp.maximum(acc * s2_ref[...] + sh2_ref[...], 0.0)  # (H, W, C1p)

    # GhostModule concat written as two 128-lane-aligned slabs (split layout)
    o_ref[0, :, :C1p] = x1.astype(o_ref.dtype)
    o_ref[0, :, C1p:] = x2.reshape(H * W, C1p).astype(o_ref.dtype)


def ghost_bottleneck(x_flat, w1p, s1, sh1, wdwp, s2, sh2, *, B, H, W):
    HW = H * W
    Cin_p = x_flat.shape[-1]
    C1p = w1p.shape[-1]
    kernel = functools.partial(_bottleneck_kernel, H=H, W=W)
    return pl.pallas_call(
        kernel,
        out_shape=jax.ShapeDtypeStruct((B, HW, 2 * C1p), jnp.float32),
        grid=(B,),
        in_specs=[
            pl.BlockSpec((1, HW, Cin_p), lambda b: (b, 0, 0)),
            pl.BlockSpec((Cin_p, C1p), lambda b: (0, 0)),
            pl.BlockSpec((1, C1p), lambda b: (0, 0)),
            pl.BlockSpec((1, C1p), lambda b: (0, 0)),
            pl.BlockSpec((9, C1p), lambda b: (0, 0)),
            pl.BlockSpec((1, C1p), lambda b: (0, 0)),
            pl.BlockSpec((1, C1p), lambda b: (0, 0)),
        ],
        out_specs=pl.BlockSpec((1, HW, 2 * C1p), lambda b: (b, 0, 0)),
        scratch_shapes=[pltpu.VMEM((H + 2, W + 2, C1p), jnp.float32)],
        compiler_params=pltpu.CompilerParams(
            dimension_semantics=("parallel",),
            vmem_limit_bytes=32 * 1024 * 1024),
    )(x_flat, w1p, s1, sh1, wdwp, s2, sh2)


def _attn_kernel(gamma_ref, x_ref, wq_ref, bq_ref, wk_ref, bk_ref, wv_ref, bv_ref,
                 o_ref, kT_sc, v_sc, *, tq):
    """Fused q/k/v projections + spatial self-attention + residual + ReLU.

    x_ref : (1, N, Cp) f32 (split-padded bottleneck output, also the residual)
    wq/wk : (Cp, Cqp) bf16, wv: (Cp, Cp) bf16; biases f32 (1, Cqp)/(1, Cp)
    kT_sc : VMEM (Cqp, N) bf16 scratch (K pre-transposed), v_sc: VMEM (N, Cp) bf16
    o_ref : (1, tq, Cp) f32 (query-row tile of the output)
    """
    qi = pl.program_id(1)

    # K / V (and K^T) are batch-level: compute once per batch (qi == 0), cache in VMEM.
    @pl.when(qi == 0)
    def _():
        xb = x_ref[0].astype(jnp.bfloat16)                       # (N, Cp)
        kf = jnp.dot(xb, wk_ref[...], preferred_element_type=jnp.float32) + bk_ref[...]
        vf = jnp.dot(xb, wv_ref[...], preferred_element_type=jnp.float32) + bv_ref[...]
        kT_sc[...] = kf.T.astype(jnp.bfloat16)                   # (Cqp, N)
        v_sc[...] = vf.astype(jnp.bfloat16)                      # (N, Cp)

    row0 = pl.multiple_of(qi * tq, tq)
    xq = x_ref[0, pl.ds(row0, tq), :]                            # (tq, Cp) f32
    q = jnp.dot(xq.astype(jnp.bfloat16), wq_ref[...],
                preferred_element_type=jnp.float32) + bq_ref[...]    # (tq, Cqp)

    # energy[i, j] = <q_i, k_j>, contraction depth = Cqp (>= 128)
    energy = jnp.dot(q.astype(jnp.bfloat16), kT_sc[...],
                     preferred_element_type=jnp.float32)             # (tq, N)
    energy = energy - jnp.max(energy, axis=-1, keepdims=True)
    p = jnp.exp(energy)
    attn = p * pl.reciprocal(jnp.sum(p, axis=-1, keepdims=True), approx=True)

    out = jnp.dot(attn.astype(jnp.bfloat16), v_sc[...],
                  preferred_element_type=jnp.float32)                # (tq, Cp)
    res = gamma_ref[0] * out + xq
    o_ref[0] = jnp.maximum(res, 0.0).astype(o_ref.dtype)             # final ReLU


def fused_qkv_attention(xb, wq, bq, wk, bk, wv, bv, gamma, *, tq):
    B, N, Cp = xb.shape
    Cqp = wq.shape[-1]
    nq = N // tq
    kernel = functools.partial(_attn_kernel, tq=tq)
    return pl.pallas_call(
        kernel,
        out_shape=jax.ShapeDtypeStruct((B, N, Cp), jnp.float32),
        grid=(B, nq),
        in_specs=[
            pl.BlockSpec(memory_space=pltpu.MemorySpace.SMEM),       # gamma (1,)
            pl.BlockSpec((1, N, Cp), lambda b, i: (b, 0, 0)),        # xb (same block per b)
            pl.BlockSpec((Cp, Cqp), lambda b, i: (0, 0)),            # wq
            pl.BlockSpec((1, Cqp), lambda b, i: (0, 0)),             # bq
            pl.BlockSpec((Cp, Cqp), lambda b, i: (0, 0)),            # wk
            pl.BlockSpec((1, Cqp), lambda b, i: (0, 0)),             # bk
            pl.BlockSpec((Cp, Cp), lambda b, i: (0, 0)),             # wv
            pl.BlockSpec((1, Cp), lambda b, i: (0, 0)),              # bv
        ],
        out_specs=pl.BlockSpec((1, tq, Cp), lambda b, i: (b, i, 0)),
        scratch_shapes=[pltpu.VMEM((Cqp, N), jnp.bfloat16),          # K^T cache
                        pltpu.VMEM((N, Cp), jnp.bfloat16)],          # V cache
        compiler_params=pltpu.CompilerParams(
            dimension_semantics=("parallel", "arbitrary"),
            vmem_limit_bytes=32 * 1024 * 1024),
    )(gamma, xb, wq, bq, wk, bk, wv, bv)


# ------------------------------ JAX glue ------------------------------------

def swish(x):
    return x * jax.nn.sigmoid(x)


def bn_eval_nchw(x, bn):
    sh = (1, -1, 1, 1)
    scale = bn["gamma"] / jnp.sqrt(bn["var"] + BN_EPS)
    return (x - bn["mean"].reshape(sh)) * scale.reshape(sh) + bn["beta"].reshape(sh)


def bn_fuse(bn):
    scale = bn["gamma"] / jnp.sqrt(bn["var"] + BN_EPS)
    shift = bn["beta"] - bn["mean"] * scale
    return scale, shift


def adaptive_avg_pool2d(x, s):
    # matches torch AdaptiveAvgPool2d bin boundaries: [floor(i*H/s), ceil((i+1)*H/s))
    B, C, H, W = x.shape
    rows = []
    for i in range(s):
        h0, h1 = (i * H) // s, -((-(i + 1) * H) // s)
        cols = []
        for j in range(s):
            w0, w1 = (j * W) // s, -((-(j + 1) * W) // s)
            cols.append(jnp.mean(x[:, :, h0:h1, w0:w1], axis=(2, 3)))
        rows.append(jnp.stack(cols, axis=-1))
    return jnp.stack(rows, axis=-2)  # (B, C, s, s)


def upsample_bilinear_align_corners(x, out_h, out_w):
    B, C, h, w = x.shape

    def coords(n_in, n_out):
        if n_in == 1:
            z = jnp.zeros((n_out,), jnp.int32)
            return z, z, jnp.zeros((n_out,), jnp.float32)
        src = jnp.arange(n_out, dtype=jnp.float32) * ((n_in - 1) / (n_out - 1))
        i0 = jnp.clip(jnp.floor(src).astype(jnp.int32), 0, n_in - 1)
        i1 = jnp.minimum(i0 + 1, n_in - 1)
        return i0, i1, src - i0.astype(jnp.float32)

    y0, y1, fy = coords(h, out_h)
    x0, x1, fx = coords(w, out_w)
    top = x[:, :, y0, :]
    bot = x[:, :, y1, :]
    vert = top * (1.0 - fy)[None, None, :, None] + bot * fy[None, None, :, None]
    left = vert[:, :, :, x0]
    right = vert[:, :, :, x1]
    return left * (1.0 - fx)[None, None, None, :] + right * fx[None, None, None, :]


def stage_ghost(x, p, oup, act_fn):
    # GhostModule(features, features, kernel_size=3, dw_size=5, activation=Swish)
    y = lax.conv_general_dilated(x, p["primary_w"], (1, 1), [(1, 1), (1, 1)],
                                 dimension_numbers=("NCHW", "OIHW", "NCHW"))
    y = act_fn(bn_eval_nchw(y, p["primary_bn"]))
    init_c = y.shape[1]
    z = lax.conv_general_dilated(y, p["cheap_w"], (1, 1), [(2, 2), (2, 2)],
                                 dimension_numbers=("NCHW", "OIHW", "NCHW"),
                                 feature_group_count=init_c)
    z = act_fn(bn_eval_nchw(z, p["cheap_bn"]))
    return jnp.concatenate([y, z], axis=1)[:, :oup]


# ------------------------------ Forward --------------------------------------

def attention_psp_forward(feats, params, out_features):
    B, F_, H, W = feats.shape
    N = H * W
    C = out_features
    C1 = math.ceil(C / 2)            # GhostModule init_channels (ratio=2)
    C1p = _round_up(C1)              # lane-padded
    Cp = 2 * C1p                     # split-padded channel slab [x1 | x2]
    Cq = max(C // 8, 1)
    Cqp = _round_up(Cq)

    # PSP pyramid (glue: tiny pooled maps <= 6x6)
    priors = []
    for s, sp in zip(SIZES, params["stages"]):
        pooled = adaptive_avg_pool2d(feats, s)
        g = stage_ghost(pooled, sp, oup=F_, act_fn=swish)
        priors.append(upsample_bilinear_align_corners(g, H, W))
    priors.append(feats)
    xcat = jnp.concatenate(priors, axis=1)                            # (B, 5F, H, W)

    Cin = xcat.shape[1]
    Cin_p = _round_up(Cin)
    x_flat = jnp.transpose(xcat, (0, 2, 3, 1)).reshape(B, N, Cin)
    x_flat = _pad_last(x_flat, Cin_p)                                 # (B, N, Cin_p)

    # ---- fused bottleneck GhostModule (Pallas) ----
    bp = params["bottleneck"]
    w1 = jnp.transpose(bp["primary_w"].reshape(C1, Cin))              # (Cin, C1)
    w1p = _pad_last(_pad_dim(w1, 0, Cin_p), C1p).astype(jnp.bfloat16)
    s1, sh1 = bn_fuse(bp["primary_bn"])
    s1p = _pad_last(s1.reshape(1, -1), C1p)
    sh1p = _pad_last(sh1.reshape(1, -1), C1p)
    wdw = jnp.transpose(bp["cheap_w"][:, 0], (1, 2, 0)).reshape(9, C1)  # (9, C1)
    wdwp = _pad_last(wdw, C1p)
    s2, sh2 = bn_fuse(bp["cheap_bn"])
    s2p = _pad_last(s2.reshape(1, -1), C1p)
    sh2p = _pad_last(sh2.reshape(1, -1), C1p)

    # (B, N, 2*C1p), split-padded layout: x1 @ [0:C1), x2 @ [C1p:C1p+C1)
    xb = ghost_bottleneck(x_flat, w1p, s1p, sh1p, wdwp, s2p, sh2p, B=B, H=H, W=W)

    # ---- fused q/k/v + spatial self-attention + residual + ReLU (Pallas) ----
    def conv1x1_rows(w_oihw):           # (Cout, C, 1, 1) -> (Cp, Cout) split input rows
        w2 = jnp.transpose(w_oihw.reshape(w_oihw.shape[0], C))        # (C, Cout)
        return _split_rows(w2, C1, C1p)

    wq = _pad_last(conv1x1_rows(params["query"]["w"]), Cqp).astype(jnp.bfloat16)
    wk = _pad_last(conv1x1_rows(params["key"]["w"]), Cqp).astype(jnp.bfloat16)
    wv_rows = conv1x1_rows(params["value"]["w"])                      # (Cp, C)
    wv = _split_rows(wv_rows.T, C1, C1p).T.astype(jnp.bfloat16)       # (Cp, Cp)
    bq = _pad_last(params["query"]["b"].reshape(1, -1), Cqp)
    bk = _pad_last(params["key"]["b"].reshape(1, -1), Cqp)
    bv = _split_rows(params["value"]["b"], C1, C1p).reshape(1, -1)    # (1, Cp)

    tq = _pick_tq(N)
    out = fused_qkv_attention(xb, wq, bq, wk, bk, wv, bv, params["gamma"], tq=tq)

    # drop the lane padding (split layout -> real C channels), back to NCHW
    real = jnp.concatenate([out[..., :C1], out[..., C1p:C1p + (C - C1)]], axis=-1)
    return jnp.transpose(real.reshape(B, H, W, C), (0, 3, 1, 2))


# ------------------------------ Parameters ------------------------------------

def make_params(key, features, out_features, sizes):
    keys = jax.random.split(key, 64)
    ki = iter(keys)

    def conv_w(shape):
        return 0.02 * jax.random.normal(next(ki), shape, jnp.float32)

    def bn_params(c):
        return dict(gamma=1.0 + 0.02 * jax.random.normal(next(ki), (c,), jnp.float32),
                    beta=jnp.zeros((c,), jnp.float32),
                    mean=jnp.zeros((c,), jnp.float32),
                    var=jnp.ones((c,), jnp.float32))

    init_c = math.ceil(features / 2)          # stage GhostModule (ratio=2)
    stages = []
    for _ in sizes:
        stages.append(dict(
            primary_w=conv_w((init_c, features, 3, 3)),
            primary_bn=bn_params(init_c),
            cheap_w=conv_w((init_c, 1, 5, 5)),        # depthwise, groups=init_c
            cheap_bn=bn_params(init_c),
        ))

    b_init = math.ceil(out_features / 2)      # bottleneck GhostModule
    bottleneck = dict(
        primary_w=conv_w((b_init, features * (len(sizes) + 1), 1, 1)),
        primary_bn=bn_params(b_init),
        cheap_w=conv_w((b_init, 1, 3, 3)),            # depthwise, groups=b_init
        cheap_bn=bn_params(b_init),
    )

    cq = out_features // 8
    return dict(
        stages=stages,
        bottleneck=bottleneck,
        query=dict(w=conv_w((cq, out_features, 1, 1)), b=jnp.zeros((cq,), jnp.float32)),
        key=dict(w=conv_w((cq, out_features, 1, 1)), b=jnp.zeros((cq,), jnp.float32)),
        value=dict(w=conv_w((out_features, out_features, 1, 1)),
                   b=jnp.zeros((out_features,), jnp.float32)),
        # Reference __init__ zero-inits gamma (attention branch would be a no-op);
        # use 0.5 here so the attention path actually contributes (synthetic init).
        gamma=jnp.array([0.5], jnp.float32),
    )


# --------------------------------- main ---------------------------------------

if __name__ == "__main__":
    FEATURES, OUT_FEATURES = 4, 32          # out_features // 8 = 4 query/key channels
    B, H, W = 2, 16, 16

    key = jax.random.PRNGKey(0)
    pkey, xkey = jax.random.split(key)
    params = make_params(pkey, FEATURES, OUT_FEATURES, SIZES)
    feats = jax.random.normal(xkey, (B, FEATURES, H, W), jnp.float32)

    fwd = jax.jit(functools.partial(attention_psp_forward, out_features=OUT_FEATURES))
    out = fwd(feats, params)
    out = jax.block_until_ready(out)

    assert out.shape == (B, OUT_FEATURES, H, W), out.shape
    assert bool(jnp.all(jnp.isfinite(out)))
    print("KERNEL_OK")
</pallas_src>

<mosaic_0001>
module attributes {stable_mosaic.version = 11 : i64} {
  func.func @_bottleneck_kernel(%arg0: i32, %arg1: memref<1x256x128xf32, #tpu.memory_space<vmem>>, %arg2: memref<128x128xbf16, #tpu.memory_space<vmem>>, %arg3: memref<1x128xf32, #tpu.memory_space<vmem>>, %arg4: memref<1x128xf32, #tpu.memory_space<vmem>>, %arg5: memref<9x128xf32, #tpu.memory_space<vmem>>, %arg6: memref<1x128xf32, #tpu.memory_space<vmem>>, %arg7: memref<1x128xf32, #tpu.memory_space<vmem>>, %arg8: memref<1x256x256xf32, #tpu.memory_space<vmem>>, %arg9: memref<18x18x128xf32, #tpu.memory_space<vmem>>) attributes {dimension_semantics = [#tpu.dimension_semantics<parallel>], iteration_bounds = array<i64: 2>, scalar_prefetch = 0 : i64, scratch_operands = 1 : i64, tpu.core_type = #tpu.core_type<tc>, window_params = [{transform_indices = @transform_0, window_bounds = array<i64: 1, 256, 128>}, {pipeline_mode = #tpu.pipeline_mode<synchronous>, transform_indices = @transform_1, window_bounds = array<i64: 128, 128>}, {pipeline_mode = #tpu.pipeline_mode<synchronous>, transform_indices = @transform_2, window_bounds = array<i64: 1, 128>}, {pipeline_mode = #tpu.pipeline_mode<synchronous>, transform_indices = @transform_3, window_bounds = array<i64: 1, 128>}, {pipeline_mode = #tpu.pipeline_mode<synchronous>, transform_indices = @transform_4, window_bounds = array<i64: 9, 128>}, {pipeline_mode = #tpu.pipeline_mode<synchronous>, transform_indices = @transform_5, window_bounds = array<i64: 1, 128>}, {pipeline_mode = #tpu.pipeline_mode<synchronous>, transform_indices = @transform_6, window_bounds = array<i64: 1, 128>}, {transform_indices = @transform_7, window_bounds = array<i64: 1, 256, 256>}]} {
    %c0 = arith.constant 0 : index
    %c0_0 = arith.constant 0 : index
    %c0_1 = arith.constant 0 : index
    %0 = vector.load %arg1[%c0, %c0_0, %c0_1] : memref<1x256x128xf32, #tpu.memory_space<vmem>>, vector<1x256x128xf32>
    %1 = vector.shape_cast %0 : vector<1x256x128xf32> to vector<256x128xf32>
    %2 = arith.truncf %1 : vector<256x128xf32> to vector<256x128xbf16>
    %c0_2 = arith.constant 0 : index
    %c0_3 = arith.constant 0 : index
    %3 = vector.load %arg2[%c0_2, %c0_3] : memref<128x128xbf16, #tpu.memory_space<vmem>>, vector<128x128xbf16>
    %cst = arith.constant dense<0.000000e+00> : vector<256x128xf32>
    %4 = tpu.matmul %2, %3, %cst {dimension_numbers = #tpu.dot_dimension_numbers<[1], [0], [0], [1], [0, 0, 1, 1], [], []>} : vector<256x128xbf16>, vector<128x128xbf16>, vector<256x128xf32> -> vector<256x128xf32>
    %c0_4 = arith.constant 0 : index
    %c0_5 = arith.constant 0 : index
    %5 = vector.load %arg3[%c0_4, %c0_5] : memref<1x128xf32, #tpu.memory_space<vmem>>, vector<1x128xf32>
    %6 = vector.broadcast %5 : vector<1x128xf32> to vector<256x128xf32>
    %7 = arith.mulf %4, %6 : vector<256x128xf32>
    %c0_6 = arith.constant 0 : index
    %c0_7 = arith.constant 0 : index
    %8 = vector.load %arg4[%c0_6, %c0_7] : memref<1x128xf32, #tpu.memory_space<vmem>>, vector<1x128xf32>
    %9 = vector.broadcast %8 : vector<1x128xf32> to vector<256x128xf32>
    %10 = arith.addf %7, %9 : vector<256x128xf32>
    %cst_8 = arith.constant 0.000000e+00 : f32
    %11 = vector.broadcast %cst_8 : f32 to vector<256x128xf32>
    %12 = arith.maximumf %10, %11 : vector<256x128xf32>
    %cst_9 = arith.constant 0.000000e+00 : f32
    %13 = vector.broadcast %cst_9 : f32 to vector<18x18x128xf32>
    %c0_10 = arith.constant 0 : index
    %c0_11 = arith.constant 0 : index
    %c0_12 = arith.constant 0 : index
    %14 = vector.load %arg9[%c0_10, %c0_11, %c0_12] : memref<18x18x128xf32, #tpu.memory_space<vmem>>, vector<18x18x128xf32>
    tpu.vector_store %arg9[%c0_10, %c0_11, %c0_12], %13 {strides = array<i32>} : memref<18x18x128xf32, #tpu.memory_space<vmem>>, vector<18x18x128xf32>,
    %15 = vector.shape_cast %12 : vector<256x128xf32> to vector<16x16x128xf32>
    %c1 = arith.constant 1 : index
    %c1_13 = arith.constant 1 : index
    %c0_14 = arith.constant 0 : index
    %16 = vector.load %arg9[%c1, %c1_13, %c0_14] : memref<18x18x128xf32, #tpu.memory_space<vmem>>, vector<16x16x128xf32>
    tpu.vector_store %arg9[%c1, %c1_13, %c0_14], %15 {strides = array<i32>} : memref<18x18x128xf32, #tpu.memory_space<vmem>>, vector<16x16x128xf32>,
    %c0_15 = arith.constant 0 : index
    %c0_16 = arith.constant 0 : index
    %c0_17 = arith.constant 0 : index
    %17 = vector.load %arg9[%c0_15, %c0_16, %c0_17] : memref<18x18x128xf32, #tpu.memory_space<vmem>>, vector<18x18x128xf32>
    %c0_18 = arith.constant 0 : index
    %c0_19 = arith.constant 0 : index
    %18 = vector.load %arg5[%c0_18, %c0_19] : memref<9x128xf32, #tpu.memory_space<vmem>>, vector<9x128xf32>
    %cst_20 = arith.constant 0.000000e+00 : f32
    %19 = vector.broadcast %cst_20 : f32 to vector<16x16x128xf32>
    %20 = vector.extract_strided_slice %17 {offsets = [0, 0, 0], sizes = [16, 18, 128], strides = [1, 1, 1]} : vector<18x18x128xf32> to vector<16x18x128xf32>
    %21 = vector.extract_strided_slice %20 {offsets = [0, 0, 0], sizes = [16, 16, 128], strides = [1, 1, 1]} : vector<16x18x128xf32> to vector<16x16x128xf32>
    %22 = vector.extract_strided_slice %18 {offsets = [0, 0], sizes = [1, 128], strides = [1, 1]} : vector<9x128xf32> to vector<1x128xf32>
    %23 = vector.shape_cast %22 : vector<1x128xf32> to vector<128xf32>
    %24 = vector.shape_cast %23 : vector<128xf32> to vector<1x1x128xf32>
    %25 = vector.broadcast %24 : vector<1x1x128xf32> to vector<16x16x128xf32>
    %26 = arith.mulf %21, %25 : vector<16x16x128xf32>
    %27 = arith.addf %19, %26 : vector<16x16x128xf32>
    %28 = vector.extract_strided_slice %20 {offsets = [0, 1, 0], sizes = [16, 16, 128], strides = [1, 1, 1]} : vector<16x18x128xf32> to vector<16x16x128xf32>
    %29 = vector.extract_strided_slice %18 {offsets = [1, 0], sizes = [1, 128], strides = [1, 1]} : vector<9x128xf32> to vector<1x128xf32>
    %30 = vector.shape_cast %29 : vector<1x128xf32> to vector<128xf32>
    %31 = vector.shape_cast %30 : vector<128xf32> to vector<1x1x128xf32>
    %32 = vector.broadcast %31 : vector<1x1x128xf32> to vector<16x16x128xf32>
    %33 = arith.mulf %28, %32 : vector<16x16x128xf32>
    %34 = arith.addf %27, %33 : vector<16x16x128xf32>
    %35 = vector.extract_strided_slice %20 {offsets = [0, 2, 0], sizes = [16, 16, 128], strides = [1, 1, 1]} : vector<16x18x128xf32> to vector<16x16x128xf32>
    %36 = vector.extract_strided_slice %18 {offsets = [2, 0], sizes = [1, 128], strides = [1, 1]} : vector<9x128xf32> to vector<1x128xf32>
    %37 = vector.shape_cast %36 : vector<1x128xf32> to vector<128xf32>
    %38 = vector.shape_cast %37 : vector<128xf32> to vector<1x1x128xf32>
    %39 = vector.broadcast %38 : vector<1x1x128xf32> to vector<16x16x128xf32>
    %40 = arith.mulf %35, %39 : vector<16x16x128xf32>
    %41 = arith.addf %34, %40 : vector<16x16x128xf32>
    %42 = vector.extract_strided_slice %17 {offsets = [1, 0, 0], sizes = [16, 18, 128], strides = [1, 1, 1]} : vector<18x18x128xf32> to vector<16x18x128xf32>
    %43 = vector.extract_strided_slice %42 {offsets = [0, 0, 0], sizes = [16, 16, 128], strides = [1, 1, 1]} : vector<16x18x128xf32> to vector<16x16x128xf32>
    %44 = vector.extract_strided_slice %18 {offsets = [3, 0], sizes = [1, 128], strides = [1, 1]} : vector<9x128xf32> to vector<1x128xf32>
    %45 = vector.shape_cast %44 : vector<1x128xf32> to vector<128xf32>
    %46 = vector.shape_cast %45 : vector<128xf32> to vector<1x1x128xf32>
    %47 = vector.broadcast %46 : vector<1x1x128xf32> to vector<16x16x128xf32>
    %48 = arith.mulf %43, %47 : vector<16x16x128xf32>
    %49 = arith.addf %41, %48 : vector<16x16x128xf32>
    %50 = vector.extract_strided_slice %42 {offsets = [0, 1, 0], sizes = [16, 16, 128], strides = [1, 1, 1]} : vector<16x18x128xf32> to vector<16x16x128xf32>
    %51 = vector.extract_strided_slice %18 {offsets = [4, 0], sizes = [1, 128], strides = [1, 1]} : vector<9x128xf32> to vector<1x128xf32>
    %52 = vector.shape_cast %51 : vector<1x128xf32> to vector<128xf32>
    %53 = vector.shape_cast %52 : vector<128xf32> to vector<1x1x128xf32>
    %54 = vector.broadcast %53 : vector<1x1x128xf32> to vector<16x16x128xf32>
    %55 = arith.mulf %50, %54 : vector<16x16x128xf32>
    %56 = arith.addf %49, %55 : vector<16x16x128xf32>
    %57 = vector.extract_strided_slice %42 {offsets = [0, 2, 0], sizes = [16, 16, 128], strides = [1, 1, 1]} : vector<16x18x128xf32> to vector<16x16x128xf32>
    %58 = vector.extract_strided_slice %18 {offsets = [5, 0], sizes = [1, 128], strides = [1, 1]} : vector<9x128xf32> to vector<1x128xf32>
    %59 = vector.shape_cast %58 : vector<1x128xf32> to vector<128xf32>
    %60 = vector.shape_cast %59 : vector<128xf32> to vector<1x1x128xf32>
    %61 = vector.broadcast %60 : vector<1x1x128xf32> to vector<16x16x128xf32>
    %62 = arith.mulf %57, %61 : vector<16x16x128xf32>
    %63 = arith.addf %56, %62 : vector<16x16x128xf32>
    %64 = vector.extract_strided_slice %17 {offsets = [2, 0, 0], sizes = [16, 18, 128], strides = [1, 1, 1]} : vector<18x18x128xf32> to vector<16x18x128xf32>
    %65 = vector.extract_strided_slice %64 {offsets = [0, 0, 0], sizes = [16, 16, 128], strides = [1, 1, 1]} : vector<16x18x128xf32> to vector<16x16x128xf32>
    %66 = vector.extract_strided_slice %18 {offsets = [6, 0], sizes = [1, 128], strides = [1, 1]} : vector<9x128xf32> to vector<1x128xf32>
    %67 = vector.shape_cast %66 : vector<1x128xf32> to vector<128xf32>
    %68 = vector.shape_cast %67 : vector<128xf32> to vector<1x1x128xf32>
    %69 = vector.broadcast %68 : vector<1x1x128xf32> to vector<16x16x128xf32>
    %70 = arith.mulf %65, %69 : vector<16x16x128xf32>
    %71 = arith.addf %63, %70 : vector<16x16x128xf32>
    %72 = vector.extract_strided_slice %64 {offsets = [0, 1, 0], sizes = [16, 16, 128], strides = [1, 1, 1]} : vector<16x18x128xf32> to vector<16x16x128xf32>
    %73 = vector.extract_strided_slice %18 {offsets = [7, 0], sizes = [1, 128], strides = [1, 1]} : vector<9x128xf32> to vector<1x128xf32>
    %74 = vector.shape_cast %73 : vector<1x128xf32> to vector<128xf32>
    %75 = vector.shape_cast %74 : vector<128xf32> to vector<1x1x128xf32>
    %76 = vector.broadcast %75 : vector<1x1x128xf32> to vector<16x16x128xf32>
    %77 = arith.mulf %72, %76 : vector<16x16x128xf32>
    %78 = arith.addf %71, %77 : vector<16x16x128xf32>
    %79 = vector.extract_strided_slice %64 {offsets = [0, 2, 0], sizes = [16, 16, 128], strides = [1, 1, 1]} : vector<16x18x128xf32> to vector<16x16x128xf32>
    %80 = vector.extract_strided_slice %18 {offsets = [8, 0], sizes = [1, 128], strides = [1, 1]} : vector<9x128xf32> to vector<1x128xf32>
    %81 = vector.shape_cast %80 : vector<1x128xf32> to vector<128xf32>
    %82 = vector.shape_cast %81 : vector<128xf32> to vector<1x1x128xf32>
    %83 = vector.broadcast %82 : vector<1x1x128xf32> to vector<16x16x128xf32>
    %84 = arith.mulf %79, %83 : vector<16x16x128xf32>
    %85 = arith.addf %78, %84 : vector<16x16x128xf32>
    %c0_21 = arith.constant 0 : index
    %c0_22 = arith.constant 0 : index
    %86 = vector.load %arg6[%c0_21, %c0_22] : memref<1x128xf32, #tpu.memory_space<vmem>>, vector<1x128xf32>
    %87 = vector.shape_cast %86 : vector<1x128xf32> to vector<1x1x128xf32>
    %88 = vector.broadcast %87 : vector<1x1x128xf32> to vector<16x16x128xf32>
    %89 = arith.mulf %85, %88 : vector<16x16x128xf32>
    %c0_23 = arith.constant 0 : index
    %c0_24 = arith.constant 0 : index
    %90 = vector.load %arg7[%c0_23, %c0_24] : memref<1x128xf32, #tpu.memory_space<vmem>>, vector<1x128xf32>
    %91 = vector.shape_cast %90 : vector<1x128xf32> to vector<1x1x128xf32>
    %92 = vector.broadcast %91 : vector<1x1x128xf32> to vector<16x16x128xf32>
    %93 = arith.addf %89, %92 : vector<16x16x128xf32>
    %cst_25 = arith.constant 0.000000e+00 : f32
    %94 = vector.broadcast %cst_25 : f32 to vector<16x16x128xf32>
    %95 = arith.maximumf %93, %94 : vector<16x16x128xf32>
    %c0_26 = arith.constant 0 : index
    %c0_27 = arith.constant 0 : index
    %c0_28 = arith.constant 0 : index
    %96 = vector.load %arg8[%c0_26, %c0_27, %c0_28] : memref<1x256x256xf32, #tpu.memory_space<vmem>>, vector<1x256x128xf32>
    %97 = vector.shape_cast %96 : vector<1x256x128xf32> to vector<256x128xf32>
    %98 = vector.shape_cast %12 : vector<256x128xf32> to vector<1x256x128xf32>
    tpu.vector_store %arg8[%c0_26, %c0_27, %c0_28], %98 {strides = array<i32>} : memref<1x256x256xf32, #tpu.memory_space<vmem>>, vector<1x256x128xf32>,
    %99 = vector.shape_cast %95 : vector<16x16x128xf32> to vector<256x128xf32>
    %c0_29 = arith.constant 0 : index
    %c0_30 = arith.constant 0 : index
    %c128 = arith.constant 128 : index
    %100 = vector.load %arg8[%c0_29, %c0_30, %c128] : memref<1x256x256xf32, #tpu.memory_space<vmem>>, vector<1x256x128xf32>
    %101 = vector.shape_cast %100 : vector<1x256x128xf32> to vector<256x128xf32>
    %102 = vector.shape_cast %99 : vector<256x128xf32> to vector<1x256x128xf32>
    tpu.vector_store %arg8[%c0_29, %c0_30, %c128], %102 {strides = array<i32>} : memref<1x256x256xf32, #tpu.memory_space<vmem>>, vector<1x256x128xf32>,
    return
  }
  func.func @transform_0(%arg0: i32) -> (i32, i32, i32) {
    %c0_i32 = arith.constant 0 : i32
    %c0_i32_0 = arith.constant 0 : i32
    %c0_i32_1 = arith.constant 0 : i32
    return %arg0, %c0_i32, %c0_i32_0 : i32, i32, i32
  }
  func.func @transform_1(%arg0: i32) -> (i32, i32) {
    %c0_i32 = arith.constant 0 : i32
    %c0_i32_0 = arith.constant 0 : i32
    %c0_i32_1 = arith.constant 0 : i32
    return %c0_i32, %c0_i32_0 : i32, i32
  }
  func.func @transform_2(%arg0: i32) -> (i32, i32) {
    %c0_i32 = arith.constant 0 : i32
    %c0_i32_0 = arith.constant 0 : i32
    %c0_i32_1 = arith.constant 0 : i32
    return %c0_i32, %c0_i32_0 : i32, i32
  }
  func.func @transform_3(%arg0: i32) -> (i32, i32) {
    %c0_i32 = arith.constant 0 : i32
    %c0_i32_0 = arith.constant 0 : i32
    %c0_i32_1 = arith.constant 0 : i32
    return %c0_i32, %c0_i32_0 : i32, i32
  }
  func.func @transform_4(%arg0: i32) -> (i32, i32) {
    %c0_i32 = arith.constant 0 : i32
    %c0_i32_0 = arith.constant 0 : i32
    %c0_i32_1 = arith.constant 0 : i32
    return %c0_i32, %c0_i32_0 : i32, i32
  }
  func.func @transform_5(%arg0: i32) -> (i32, i32) {
    %c0_i32 = arith.constant 0 : i32
    %c0_i32_0 = arith.constant 0 : i32
    %c0_i32_1 = arith.constant 0 : i32
    return %c0_i32, %c0_i32_0 : i32, i32
  }
  func.func @transform_6(%arg0: i32) -> (i32, i32) {
    %c0_i32 = arith.constant 0 : i32
    %c0_i32_0 = arith.constant 0 : i32
    %c0_i32_1 = arith.constant 0 : i32
    return %c0_i32, %c0_i32_0 : i32, i32
  }
  func.func @transform_7(%arg0: i32) -> (i32, i32, i32) {
    %c0_i32 = arith.constant 0 : i32
    %c0_i32_0 = arith.constant 0 : i32
    %c0_i32_1 = arith.constant 0 : i32
    return %arg0, %c0_i32, %c0_i32_0 : i32, i32, i32
  }
}

module attributes {stable_mosaic.version = 11 : i64} {
  func.func @_attn_kernel(%arg0: i32, %arg1: i32, %arg2: memref<1xf32, #tpu.memory_space<smem>>, %arg3: memref<1x256x256xf32, #tpu.memory_space<vmem>>, %arg4: memref<256x128xbf16, #tpu.memory_space<vmem>>, %arg5: memref<1x128xf32, #tpu.memory_space<vmem>>, %arg6: memref<256x128xbf16, #tpu.memory_space<vmem>>, %arg7: memref<1x128xf32, #tpu.memory_space<vmem>>, %arg8: memref<256x256xbf16, #tpu.memory_space<vmem>>, %arg9: memref<1x256xf32, #tpu.memory_space<vmem>>, %arg10: memref<1x256x256xf32, #tpu.memory_space<vmem>>, %arg11: memref<128x256xbf16, #tpu.memory_space<vmem>>, %arg12: memref<256x256xbf16, #tpu.memory_space<vmem>>) attributes {dimension_semantics = [#tpu.dimension_semantics<parallel>, #tpu.dimension_semantics<arbitrary>], iteration_bounds = array<i64: 2, 1>, scalar_prefetch = 0 : i64, scratch_operands = 2 : i64, tpu.core_type = #tpu.core_type<tc>, window_params = [{transform_indices = @transform_0, window_bounds = array<i64: 1>}, {transform_indices = @transform_1, window_bounds = array<i64: 1, 256, 256>}, {pipeline_mode = #tpu.pipeline_mode<synchronous>, transform_indices = @transform_2, window_bounds = array<i64: 256, 128>}, {pipeline_mode = #tpu.pipeline_mode<synchronous>, transform_indices = @transform_3, window_bounds = array<i64: 1, 128>}, {pipeline_mode = #tpu.pipeline_mode<synchronous>, transform_indices = @transform_4, window_bounds = array<i64: 256, 128>}, {pipeline_mode = #tpu.pipeline_mode<synchronous>, transform_indices = @transform_5, window_bounds = array<i64: 1, 128>}, {pipeline_mode = #tpu.pipeline_mode<synchronous>, transform_indices = @transform_6, window_bounds = array<i64: 256, 256>}, {pipeline_mode = #tpu.pipeline_mode<synchronous>, transform_indices = @transform_7, window_bounds = array<i64: 1, 256>}, {transform_indices = @transform_8, window_bounds = array<i64: 1, 256, 256>}]} {
    %c0_i32 = arith.constant 0 : i32
    %0 = arith.cmpi eq, %arg1, %c0_i32 : i32
    %1 = arith.extui %0 : i1 to i32
    %c0_i32_0 = arith.constant 0 : i32
    %2 = arith.cmpi ne, %1, %c0_i32_0 : i32
    scf.if %2 {
      %c0_19 = arith.constant 0 : index
      %c0_20 = arith.constant 0 : index
      %c0_21 = arith.constant 0 : index
      %39 = vector.load %arg3[%c0_19, %c0_20, %c0_21] : memref<1x256x256xf32, #tpu.memory_space<vmem>>, vector<1x256x256xf32>
      %40 = vector.shape_cast %39 : vector<1x256x256xf32> to vector<256x256xf32>
      %41 = arith.truncf %40 : vector<256x256xf32> to vector<256x256xbf16>
      %c0_22 = arith.constant 0 : index
      %c0_23 = arith.constant 0 : index
      %42 = vector.load %arg6[%c0_22, %c0_23] : memref<256x128xbf16, #tpu.memory_space<vmem>>, vector<256x128xbf16>
      %cst_24 = arith.constant dense<0.000000e+00> : vector<256x128xf32>
      %43 = tpu.matmul %41, %42, %cst_24 {dimension_numbers = #tpu.dot_dimension_numbers<[1], [0], [0], [1], [0, 0, 1, 1], [], []>} : vector<256x256xbf16>, vector<256x128xbf16>, vector<256x128xf32> -> vector<256x128xf32>
      %c0_25 = arith.constant 0 : index
      %c0_26 = arith.constant 0 : index
      %44 = vector.load %arg7[%c0_25, %c0_26] : memref<1x128xf32, #tpu.memory_space<vmem>>, vector<1x128xf32>
      %45 = vector.broadcast %44 : vector<1x128xf32> to vector<256x128xf32>
      %46 = arith.addf %43, %45 : vector<256x128xf32>
      %c0_27 = arith.constant 0 : index
      %c0_28 = arith.constant 0 : index
      %47 = vector.load %arg8[%c0_27, %c0_28] : memref<256x256xbf16, #tpu.memory_space<vmem>>, vector<256x256xbf16>
      %cst_29 = arith.constant dense<0.000000e+00> : vector<256x256xf32>
      %48 = tpu.matmul %41, %47, %cst_29 {dimension_numbers = #tpu.dot_dimension_numbers<[1], [0], [0], [1], [0, 0, 1, 1], [], []>} : vector<256x256xbf16>, vector<256x256xbf16>, vector<256x256xf32> -> vector<256x256xf32>
      %c0_30 = arith.constant 0 : index
      %c0_31 = arith.constant 0 : index
      %49 = vector.load %arg9[%c0_30, %c0_31] : memref<1x256xf32, #tpu.memory_space<vmem>>, vector<1x256xf32>
      %50 = vector.broadcast %49 : vector<1x256xf32> to vector<256x256xf32>
      %51 = arith.addf %48, %50 : vector<256x256xf32>
      %52 = tpu.transpose %46, [1, 0] : vector<256x128xf32> -> vector<128x256xf32>
      %53 = arith.truncf %52 : vector<128x256xf32> to vector<128x256xbf16>
      %c0_32 = arith.constant 0 : index
      %c0_33 = arith.constant 0 : index
      %54 = vector.load %arg11[%c0_32, %c0_33] : memref<128x256xbf16, #tpu.memory_space<vmem>>, vector<128x256xbf16>
      tpu.vector_store %arg11[%c0_32, %c0_33], %53 {strides = array<i32>} : memref<128x256xbf16, #tpu.memory_space<vmem>>, vector<128x256xbf16>,
      %55 = arith.truncf %51 : vector<256x256xf32> to vector<256x256xbf16>
      %c0_34 = arith.constant 0 : index
      %c0_35 = arith.constant 0 : index
      %56 = vector.load %arg12[%c0_34, %c0_35] : memref<256x256xbf16, #tpu.memory_space<vmem>>, vector<256x256xbf16>
      tpu.vector_store %arg12[%c0_34, %c0_35], %55 {strides = array<i32>} : memref<256x256xbf16, #tpu.memory_space<vmem>>, vector<256x256xbf16>,
    } else {
    }
    %c256_i32 = arith.constant 256 : i32
    %3 = arith.muli %arg1, %c256_i32 : i32
    %4 = tpu.assume_multiple %3, 256 : i32
    %c0 = arith.constant 0 : index
    %5 = arith.index_cast %4 : i32 to index
    %c0_1 = arith.constant 0 : index
    %6 = vector.load %arg3[%c0, %5, %c0_1] : memref<1x256x256xf32, #tpu.memory_space<vmem>>, vector<1x256x256xf32>
    %7 = vector.shape_cast %6 : vector<1x256x256xf32> to vector<256x256xf32>
    %8 = arith.truncf %7 : vector<256x256xf32> to vector<256x256xbf16>
    %c0_2 = arith.constant 0 : index
    %c0_3 = arith.constant 0 : index
    %9 = vector.load %arg4[%c0_2, %c0_3] : memref<256x128xbf16, #tpu.memory_space<vmem>>, vector<256x128xbf16>
    %cst = arith.constant dense<0.000000e+00> : vector<256x128xf32>
    %10 = tpu.matmul %8, %9, %cst {dimension_numbers = #tpu.dot_dimension_numbers<[1], [0], [0], [1], [0, 0, 1, 1], [], []>} : vector<256x256xbf16>, vector<256x128xbf16>, vector<256x128xf32> -> vector<256x128xf32>
    %c0_4 = arith.constant 0 : index
    %c0_5 = arith.constant 0 : index
    %11 = vector.load %arg5[%c0_4, %c0_5] : memref<1x128xf32, #tpu.memory_space<vmem>>, vector<1x128xf32>
    %12 = vector.broadcast %11 : vector<1x128xf32> to vector<256x128xf32>
    %13 = arith.addf %10, %12 : vector<256x128xf32>
    %14 = arith.truncf %13 : vector<256x128xf32> to vector<256x128xbf16>
    %c0_6 = arith.constant 0 : index
    %c0_7 = arith.constant 0 : index
    %15 = vector.load %arg11[%c0_6, %c0_7] : memref<128x256xbf16, #tpu.memory_space<vmem>>, vector<128x256xbf16>
    %cst_8 = arith.constant dense<0.000000e+00> : vector<256x256xf32>
    %16 = tpu.matmul %14, %15, %cst_8 {dimension_numbers = #tpu.dot_dimension_numbers<[1], [0], [0], [1], [0, 0, 1, 1], [], []>} : vector<256x128xbf16>, vector<128x256xbf16>, vector<256x256xf32> -> vector<256x256xf32>
    %cst_9 = arith.constant dense<0xFF800000> : vector<256xf32>
    %17 = vector.multi_reduction <maximumf>, %16, %cst_9 [1] : vector<256x256xf32> to vector<256xf32>
    %18 = vector.shape_cast %17 : vector<256xf32> to vector<256x1xf32>
    %19 = vector.broadcast %18 : vector<256x1xf32> to vector<256x256xf32>
    %20 = arith.subf %16, %19 : vector<256x256xf32>
    %21 = math.exp %20 : vector<256x256xf32>
    %cst_10 = arith.constant dense<0.000000e+00> : vector<256xf32>
    %22 = vector.multi_reduction <add>, %21, %cst_10 [1] : vector<256x256xf32> to vector<256xf32>
    %23 = vector.shape_cast %22 : vector<256xf32> to vector<256x1xf32>
    %24 = tpu.reciprocal %23 {approx = true} : vector<256x1xf32> -> vector<256x1xf32>
    %25 = vector.broadcast %24 : vector<256x1xf32> to vector<256x256xf32>
    %26 = arith.mulf %21, %25 : vector<256x256xf32>
    %27 = arith.truncf %26 : vector<256x256xf32> to vector<256x256xbf16>
    %c0_11 = arith.constant 0 : index
    %c0_12 = arith.constant 0 : index
    %28 = vector.load %arg12[%c0_11, %c0_12] : memref<256x256xbf16, #tpu.memory_space<vmem>>, vector<256x256xbf16>
    %cst_13 = arith.constant dense<0.000000e+00> : vector<256x256xf32>
    %29 = tpu.matmul %27, %28, %cst_13 {dimension_numbers = #tpu.dot_dimension_numbers<[1], [0], [0], [1], [0, 0, 1, 1], [], []>} : vector<256x256xbf16>, vector<256x256xbf16>, vector<256x256xf32> -> vector<256x256xf32>
    %c0_14 = arith.constant 0 : index
    %30 = memref.load %arg2[%c0_14] : memref<1xf32, #tpu.memory_space<smem>>
    %31 = vector.broadcast %30 : f32 to vector<256x256xf32>
    %32 = arith.mulf %31, %29 : vector<256x256xf32>
    %33 = arith.addf %32, %7 : vector<256x256xf32>
    %cst_15 = arith.constant 0.000000e+00 : f32
    %34 = vector.broadcast %cst_15 : f32 to vector<256x256xf32>
    %35 = arith.maximumf %33, %34 : vector<256x256xf32>
    %c0_16 = arith.constant 0 : index
    %c0_17 = arith.constant 0 : index
    %c0_18 = arith.constant 0 : index
    %36 = vector.load %arg10[%c0_16, %c0_17, %c0_18] : memref<1x256x256xf32, #tpu.memory_space<vmem>>, vector<1x256x256xf32>
    %37 = vector.shape_cast %36 : vector<1x256x256xf32> to vector<256x256xf32>
    %38 = vector.shape_cast %35 : vector<256x256xf32> to vector<1x256x256xf32>
    tpu.vector_store %arg10[%c0_16, %c0_17, %c0_18], %38 {strides = array<i32>} : memref<1x256x256xf32, #tpu.memory_space<vmem>>, vector<1x256x256xf32>,
    return
  }
  func.func @transform_0(%arg0: i32, %arg1: i32) -> i32 {
    %c0_i32 = arith.constant 0 : i32
    %c0_i32_0 = arith.constant 0 : i32
    return %c0_i32 : i32
  }
  func.func @transform_1(%arg0: i32, %arg1: i32) -> (i32, i32, i32) {
    %c0_i32 = arith.constant 0 : i32
    %c0_i32_0 = arith.constant 0 : i32
    %c0_i32_1 = arith.constant 0 : i32
    return %arg0, %c0_i32, %c0_i32_0 : i32, i32, i32
  }
  func.func @transform_2(%arg0: i32, %arg1: i32) -> (i32, i32) {
    %c0_i32 = arith.constant 0 : i32
    %c0_i32_0 = arith.constant 0 : i32
    %c0_i32_1 = arith.constant 0 : i32
    return %c0_i32, %c0_i32_0 : i32, i32
  }
  func.func @transform_3(%arg0: i32, %arg1: i32) -> (i32, i32) {
    %c0_i32 = arith.constant 0 : i32
    %c0_i32_0 = arith.constant 0 : i32
    %c0_i32_1 = arith.constant 0 : i32
    return %c0_i32, %c0_i32_0 : i32, i32
  }
  func.func @transform_4(%arg0: i32, %arg1: i32) -> (i32, i32) {
    %c0_i32 = arith.constant 0 : i32
    %c0_i32_0 = arith.constant 0 : i32
    %c0_i32_1 = arith.constant 0 : i32
    return %c0_i32, %c0_i32_0 : i32, i32
  }
  func.func @transform_5(%arg0: i32, %arg1: i32) -> (i32, i32) {
    %c0_i32 = arith.constant 0 : i32
    %c0_i32_0 = arith.constant 0 : i32
    %c0_i32_1 = arith.constant 0 : i32
    return %c0_i32, %c0_i32_0 : i32, i32
  }
  func.func @transform_6(%arg0: i32, %arg1: i32) -> (i32, i32) {
    %c0_i32 = arith.constant 0 : i32
    %c0_i32_0 = arith.constant 0 : i32
    %c0_i32_1 = arith.constant 0 : i32
    return %c0_i32, %c0_i32_0 : i32, i32
  }
  func.func @transform_7(%arg0: i32, %arg1: i32) -> (i32, i32) {
    %c0_i32 = arith.constant 0 : i32
    %c0_i32_0 = arith.constant 0 : i32
    %c0_i32_1 = arith.constant 0 : i32
    return %c0_i32, %c0_i32_0 : i32, i32
  }
  func.func @transform_8(%arg0: i32, %arg1: i32) -> (i32, i32, i32) {
    %c0_i32 = arith.constant 0 : i32
    %c0_i32_0 = arith.constant 0 : i32
    return %arg0, %arg1, %c0_i32 : i32, i32, i32
  }
}

</mosaic_0001>

<bundles_post_ra>
// kernel: reverse
= control target key start
LH: loop header
LB: loop body
LE: loop exit
PB: predicated region body
PF: predicated region fallthrough
CT: control target
= control target key end

     0   :  { %s125_s0 = inlined_call_operand.vmem [shape: f32[2,4,3,3], index: 0, kind: input, shape index: {}]   ;;  %s126_s1 = inlined_call_operand.vmem [shape: bf16[2,4,3,3], index: 1, kind: output, shape index: {}]  }
   0x1   :  { %v45_v0 = vld [vmem:[%s125_s0 + $0x10] sm:$0x3]  ;;  %v46_v1 = vld [vmem:[%s125_s0 + $0xa] sm:$0x3]  ;;  %v48_v2 = vld [vmem:[%s125_s0 + $0x4] sm:$0x3] }
   0x2   :  { %v4_v3 = vpack.c.bf16 0.0, %v45_v0  ;;  %v9_v4 = vpack.c.bf16 0.0, %v46_v1  ;;  %v14_v5 = vpack.c.bf16 0.0, %v48_v2  ;;  %v50_v6 = vld [vmem:[%s125_s0 + $0xe] sm:$0x3] }
   0x3   :  { %v19_v7 = vpack.c.bf16 0.0, %v50_v6  ;;  %v52_v8 = vld [vmem:[%s125_s0 + $0x8] sm:$0x3]  ;;  %v54_v9 = vld [vmem:[%s125_s0 + $0x2] sm:$0x3] }
   0x4   :  { %5 = vst [vmem:[%s126_s1] sm:$0x1] %v4_v3  ;;  %v24_v10 = vpack.c.bf16 0.0, %v52_v8  ;;  %v56_v11 = vld [vmem:[%s125_s0 + $0xc] sm:$0x3]  ;;  %v29_v12 = vpack.c.bf16 0.0, %v54_v9 }
   0x5   :  { %47 = vst [vmem:[%s126_s1 + $0x3] sm:$0x1] %v9_v4  ;;  %v58_v13 = vld [vmem:[%s125_s0 + $0x6] sm:$0x3]  ;;  %v34_v14 = vpack.c.bf16 0.0, %v56_v11 }
   0x6   :  { %49 = vst [vmem:[%s126_s1 + $0x6] sm:$0x1] %v14_v5  ;;  %v41_v15 = vld [vmem:[%s125_s0] sm:$0x3]  ;;  %v39_v16 = vpack.c.bf16 0.0, %v58_v13 }
   0x7   :  { %51 = vst [vmem:[%s126_s1 + $0x1] sm:$0x1] %v19_v7  ;;  %v43_v17 = vpack.c.bf16 0.0, %v41_v15 }
   0x8   :  { %53 = vst [vmem:[%s126_s1 + $0x4] sm:$0x1] %v24_v10 }
   0x9   :  { %55 = vst [vmem:[%s126_s1 + $0x7] sm:$0x1] %v29_v12 }
   0xa   :  { %57 = vst [vmem:[%s126_s1 + $0x2] sm:$0x1] %v34_v14 }
   0xb   :  { %59 = vst [vmem:[%s126_s1 + $0x5] sm:$0x1] %v39_v16 }
   0xc   :  { %60 = vst [vmem:[%s126_s1 + $0x8] sm:$0x1] %v43_v17 }

// kernel: attention_psp_forward.2
= control target key start
LH: loop header
LB: loop body
LE: loop exit
PB: predicated region body
PF: predicated region fallthrough
CT: control target
= control target key end

     0   :  { %s2748_s24 = smov 0   ;;  %s4817_s0 = inlined_call_operand.vmem [shape: f32[2,256,128], index: 0, kind: input, shape index: {}]   ;;  %s4818_s1 = inlined_call_operand.vmem [shape: bf16[128,128], index: 1, kind: input, shape index: {}]   ;;  %s4819_s2 = inlined_call_operand.vmem [shape: f32[1,128], index: 2, kind: input, shape index: {}]   ;;  %s4820_s3 = inlined_call_operand.vmem [shape: f32[1,128], index: 3, kind: input, shape index: {}]   ;;  %s4821_s4 = inlined_call_operand.vmem [shape: f32[9,128], index: 4, kind: input, shape index: {}]   ;;  %s4822_s5 = inlined_call_operand.vmem [shape: f32[1,128], index: 5, kind: input, shape index: {}]   ;;  %s4823_s6 = inlined_call_operand.vmem [shape: f32[1,128], index: 6, kind: input, shape index: {}]   ;;  %s4824_s7 = inlined_call_operand.vmem [shape: f32[2,256,256], index: 7, kind: output, shape index: {}]  }
   0x1 LB: > { %s2593_s25 = sadd.s32 4294967295, %s2705_s24   ;;  %p2597_p0 = scmp.ge.s32.totalorder %s2705_s24, 1  ;;  %s2705_s24 = sphi %s2748_s24, %s17_s24  }
   0x2   : > { %p237_p1 = scmp.lt.s32.totalorder %s2705_s24, 3 }
   0x4   : > { %p238_p2 = pnand %p2597_p0, %p237_p1 }
   0x6   : > { %241 = sbr.rel (%p238_p2) target bundleno = 530 (0x212), region = 48 }
   0xb   : > { %v2645_v0 = vld [vmem:[%s4818_s1 + $0x38] sm:$0xff]  ;;  %v2644_v1 = vld [vmem:[%s4818_s1 + $0x30] sm:$0xff]  ;;  %v2643_v2 = vld [vmem:[%s4818_s1 + $0x28] sm:$0xff]  ;;  %p269_p3 = scmp.lt.s32.totalorder %s2593_s25, 1  ;;  %v2707_v56 = vmov 0.0   ;;  %vm889_vm0 = vcmask 1046528  }
   0xc   : > { %391 = vmatpush.bf16.msra.mxu0 %v2645_v0  ;;  %2646 = vmatpush.bf16.msra.mxu1 %v2645_v0  ;;  %v2642_v3 = vld [vmem:[%s4818_s1 + $0x20] sm:$0xff]  ;;  %v2641_v4 = vld [vmem:[%s4818_s1 + $0x18] sm:$0xff]  ;;  %v2640_v5 = vld [vmem:[%s4818_s1 + $0x10] sm:$0xff]  ;;  %584 = vst [vmem:[#allocation2] sm:$0xff] %v2707_v56  ;;  %vm1131_vm1 = vcmask 1045504  }
   0xd   : > { %2647 = vmatpush.bf16.msra.mxu2 %v2645_v0  ;;  %2648 = vmatpush.bf16.msra.mxu3 %v2645_v0  ;;  %s5101_s25 = smov (!%p269_p3, %s2593_s25), 1  ;;  %v2639_v6 = vld [vmem:[%s4818_s1 + $0x8] sm:$0xff]  ;;  %v2638_v7 = vld [vmem:[%s4818_s1] sm:$0xff]  ;;  %587 = vst [vmem:[#allocation2 + $0x18] sm:$0xff] %v2707_v56 }
   0xe   : > { %s2636_s15 = sshll.u32 %s5101_s25, 8  ;;  %588 = vst [vmem:[#allocation2 + $0x20] sm:$0xff] %v2707_v56  ;;  %v2845_v57 = vld [vmem:[%s4819_s2] ss:$0 sm:$0xff]  ;;  %s2637_s29 = sshll.u32 %s5101_s25, 9 }
   0xf   : > { %s2783_s20 = scalar_lea.vmem %s4817_s0, %s2636_s15  ;;  %586 = vst [vmem:[#allocation2 + $0x10] sm:$0x3] %v2707_v56  ;;  %v2852_v58 = vld [vmem:[%s4820_s3] ss:$0 sm:$0xff]  ;;  %s2866_s9 = scalar_lea.vmem %s4824_s7, %s2637_s29 }
  0x10   : > { %392 = vmatpush.bf16.msra.mxu0 %v2644_v1  ;;  %2649 = vmatpush.bf16.msra.mxu1 %v2644_v1  ;;  %v279_v8 = vld [vmem:[%s2783_s20] sm:$0xff]  ;;  %v280_v9 = vld [vmem:[%s2783_s20 + $0x8] sm:$0xff]  ;;  %v281_v20 = vld [vmem:[%s2783_s20 + $0x10] sm:$0xff]  ;;  %589 = vst [vmem:[#allocation2 + $0x28] sm:$0x3] %v2707_v56 }
  0x11   : > { %2650 = vmatpush.bf16.msra.mxu2 %v2644_v1  ;;  %2651 = vmatpush.bf16.msra.mxu3 %v2644_v1  ;;  %v287_v10 = vld [vmem:[%s2783_s20 + $0x40] sm:$0xff]  ;;  %v288_v11 = vld [vmem:[%s2783_s20 + $0x48] sm:$0xff]  ;;  %v311_v16 = vpack.c.bf16 %v280_v9, %v279_v8  ;;  %v282_v21 = vld [vmem:[%s2783_s20 + $0x18] sm:$0xff]  ;;  %590 = vst [vmem:[#allocation2 + $0x30] sm:$0xff] %v2707_v56 }
  0x12   : > { %v295_v12 = vld [vmem:[%s2783_s20 + $0x80] sm:$0xff]  ;;  %v296_v13 = vld [vmem:[%s2783_s20 + $0x88] sm:$0xff]  ;;  %v315_v17 = vpack.c.bf16 %v288_v11, %v287_v10  ;;  %v289_v22 = vld [vmem:[%s2783_s20 + $0x50] sm:$0xff]  ;;  %v312_v28 = vpack.c.bf16 %v282_v21, %v281_v20  ;;  %591 = vst [vmem:[#allocation2 + $0x38] sm:$0xff] %v2707_v56 }
  0x13   : > { %v303_v14 = vld [vmem:[%s2783_s20 + $0xc0] sm:$0xff]  ;;  %v304_v15 = vld [vmem:[%s2783_s20 + $0xc8] sm:$0xff]  ;;  %v319_v18 = vpack.c.bf16 %v296_v13, %v295_v12  ;;  %v290_v23 = vld [vmem:[%s2783_s20 + $0x58] sm:$0xff]  ;;  %592 = vst [vmem:[#allocation2 + $0x40] sm:$0x3] %v2707_v56 }
  0x14   : > { %393 = vmatpush.bf16.msra.mxu0 %v2643_v2  ;;  %2652 = vmatpush.bf16.msra.mxu1 %v2643_v2  ;;  %v323_v19 = vpack.c.bf16 %v304_v15, %v303_v14  ;;  %v297_v24 = vld [vmem:[%s2783_s20 + $0x90] sm:$0xff]  ;;  %v298_v25 = vld [vmem:[%s2783_s20 + $0x98] sm:$0xff]  ;;  %v316_v29 = vpack.c.bf16 %v290_v23, %v289_v22  ;;  %v283_v32 = vld [vmem:[%s2783_s20 + $0x20] sm:$0xff]  ;;  %593 = vst [vmem:[#allocation2 + $0x48] sm:$0xff] %v2707_v56 }
  0x15   : > { %2653 = vmatpush.bf16.msra.mxu2 %v2643_v2  ;;  %2654 = vmatpush.bf16.msra.mxu3 %v2643_v2  ;;  %v305_v26 = vld [vmem:[%s2783_s20 + $0xd0] sm:$0xff]  ;;  %v306_v27 = vld [vmem:[%s2783_s20 + $0xd8] sm:$0xff]  ;;  %v320_v30 = vpack.c.bf16 %v298_v25, %v297_v24  ;;  %v284_v33 = vld [vmem:[%s2783_s20 + $0x28] sm:$0xff]  ;;  %594 = vst [vmem:[#allocation2 + $0x50] sm:$0xff] %v2707_v56 }
  0x16   : > { %v324_v31 = vpack.c.bf16 %v306_v27, %v305_v26  ;;  %v291_v34 = vld [vmem:[%s2783_s20 + $0x60] sm:$0xff]  ;;  %v292_v35 = vld [vmem:[%s2783_s20 + $0x68] sm:$0xff]  ;;  %v313_v40 = vpack.c.bf16 %v284_v33, %v283_v32  ;;  %v285_v44 = vld [vmem:[%s2783_s20 + $0x30] sm:$0xff]  ;;  %595 = vst [vmem:[#allocation2 + $0x58] sm:$0x3] %v2707_v56 }
  0x17   : > { %v299_v36 = vld [vmem:[%s2783_s20 + $0xa0] sm:$0xff]  ;;  %v300_v37 = vld [vmem:[%s2783_s20 + $0xa8] sm:$0xff]  ;;  %v317_v41 = vpack.c.bf16 %v292_v35, %v291_v34  ;;  %v286_v45 = vld [vmem:[%s2783_s20 + $0x38] sm:$0xff]  ;;  %596 = vst [vmem:[#allocation2 + $0x60] sm:$0xff] %v2707_v56 }
  0x18   : > { %394 = vmatpush.bf16.msra.mxu0 %v2642_v3  ;;  %2655 = vmatpush.bf16.msra.mxu1 %v2642_v3  ;;  %v307_v38 = vld [vmem:[%s2783_s20 + $0xe0] sm:$0xff]  ;;  %v308_v39 = vld [vmem:[%s2783_s20 + $0xe8] sm:$0xff]  ;;  %v321_v42 = vpack.c.bf16 %v300_v37, %v299_v36  ;;  %v293_v46 = vld [vmem:[%s2783_s20 + $0x70] sm:$0xff]  ;;  %v314_v52 = vpack.c.bf16 %v286_v45, %v285_v44  ;;  %597 = vst [vmem:[#allocation2 + $0x68] sm:$0xff] %v2707_v56 }
  0x19   : > { %2656 = vmatpush.bf16.msra.mxu2 %v2642_v3  ;;  %2657 = vmatpush.bf16.msra.mxu3 %v2642_v3  ;;  %v325_v43 = vpack.c.bf16 %v308_v39, %v307_v38  ;;  %v294_v47 = vld [vmem:[%s2783_s20 + $0x78] sm:$0xff]  ;;  %v301_v48 = vld [vmem:[%s2783_s20 + $0xb0] sm:$0xff]  ;;  %598 = vst [vmem:[#allocation2 + $0x70] sm:$0x3] %v2707_v56  ;;  %v2909_v25 = vld [vmem:[%s4821_s4] sm:$0xff] }
  0x1a   : > { %v302_v49 = vld [vmem:[%s2783_s20 + $0xb8] sm:$0xff]  ;;  %v309_v50 = vld [vmem:[%s2783_s20 + $0xf0] sm:$0xff]  ;;  %v318_v53 = vpack.c.bf16 %v294_v47, %v293_v46  ;;  %599 = vst [vmem:[#allocation2 + $0x78] sm:$0xff] %v2707_v56  ;;  %v2914_v27 = vperm.slane %v2909_v25, 1  ;;  %v2924_v32 = vperm.slane %v2909_v25, 2 }
  0x1b   : > { %v310_v51 = vld [vmem:[%s2783_s20 + $0xf8] sm:$0xff]  ;;  %v322_v54 = vpack.c.bf16 %v302_v49, %v301_v48  ;;  %600 = vst [vmem:[#allocation2 + $0x80] sm:$0xff] %v2707_v56  ;;  %v673_v35 = vld [vmem:[#allocation2 + $0x10] sm:$0x3] }
  0x1c   : > { %395 = vmatpush.bf16.msra.mxu0 %v2641_v4  ;;  %2658 = vmatpush.bf16.msra.mxu1 %v2641_v4  ;;  %v326_v55 = vpack.c.bf16 %v310_v51, %v309_v50  ;;  %601 = vst [vmem:[#allocation2 + $0x88] sm:$0x3] %v2707_v56 }
  0x1d   : > { %2659 = vmatpush.bf16.msra.mxu2 %v2641_v4  ;;  %2660 = vmatpush.bf16.msra.mxu3 %v2641_v4  ;;  %602 = vst [vmem:[#allocation2 + $0x90] sm:$0xff] %v2707_v56 }
  0x1e   : > { %603 = vst [vmem:[#allocation2 + $0x98] sm:$0xff] %v2707_v56 }
  0x1f   : > { %604 = vst [vmem:[#allocation2 + $0xa0] sm:$0x3] %v2707_v56 }
  0x20   : > { %396 = vmatpush.bf16.msra.mxu0 %v2640_v5  ;;  %2661 = vmatpush.bf16.msra.mxu1 %v2640_v5  ;;  %605 = vst [vmem:[#allocation2 + $0xa8] sm:$0xff] %v2707_v56 }
  0x21   : > { %2662 = vmatpush.bf16.msra.mxu2 %v2640_v5  ;;  %2663 = vmatpush.bf16.msra.mxu3 %v2640_v5  ;;  %606 = vst [vmem:[#allocation2 + $0xb0] sm:$0xff] %v2707_v56 }
  0x22   : > { %607 = vst [vmem:[#allocation2 + $0xb8] sm:$0x3] %v2707_v56 }
  0x23   : > { %608 = vst [vmem:[#allocation2 + $0xc0] sm:$0xff] %v2707_v56 }
  0x24   : > { %397 = vmatpush.bf16.msra.mxu0 %v2639_v6  ;;  %2664 = vmatpush.bf16.msra.mxu1 %v2639_v6  ;;  %609 = vst [vmem:[#allocation2 + $0xc8] sm:$0xff] %v2707_v56 }
  0x25   : > { %2665 = vmatpush.bf16.msra.mxu2 %v2639_v6  ;;  %2666 = vmatpush.bf16.msra.mxu3 %v2639_v6  ;;  %610 = vst [vmem:[#allocation2 + $0xd0] sm:$0x3] %v2707_v56 }
  0x26   : > { %611 = vst [vmem:[#allocation2 + $0xd8] sm:$0xff] %v2707_v56 }
  0x27   : > { %612 = vst [vmem:[#allocation2 + $0xe0] sm:$0xff] %v2707_v56 }
  0x28   : > { %398 = vmatpush.bf16.msra.mxu0 %v2638_v7  ;;  %2667 = vmatpush.bf16.msra.mxu1 %v2638_v7  ;;  %613 = vst [vmem:[#allocation2 + $0xe8] sm:$0x3] %v2707_v56 }
  0x29   : > { %2668 = vmatpush.bf16.msra.mxu2 %v2638_v7  ;;  %2669 = vmatpush.bf16.msra.mxu3 %v2638_v7  ;;  %614 = vst [vmem:[#allocation2 + $0xf0] sm:$0xff] %v2707_v56 }
  0x2a   : > { %615 = vst [vmem:[#allocation2 + $0xf8] sm:$0xff] %v2707_v56 }
  0x2b   : > { %399 = vmatmul.bf16.vlgmr.msra.gmra.mxu0 %v311_v16  ;;  %419 = vmatmul.bf16.vlgmr.msra.gmra.mxu1 %v315_v17  ;;  %616 = vst [vmem:[#allocation2 + $0x100] sm:$0x3] %v2707_v56 }
  0x2c   : > { %439 = vmatmul.bf16.vlgmr.msra.gmra.mxu2 %v319_v18  ;;  %459 = vmatmul.bf16.vlgmr.msra.gmra.mxu3 %v323_v19  ;;  %617 = vst [vmem:[#allocation2 + $0x108] sm:$0xff] %v2707_v56 }
  0x2d   : > { %618 = vst [vmem:[#allocation2 + $0x110] sm:$0xff] %v2707_v56 }
  0x2e   : > { %619 = vst [vmem:[#allocation2 + $0x118] sm:$0x3] %v2707_v56 }
  0x2f   : > { %620 = vst [vmem:[#allocation2 + $0x120] sm:$0xff] %v2707_v56 }
  0x30   : > { %621 = vst [vmem:[#allocation2 + $0x128] sm:$0xff] %v2707_v56 }
  0x31   : > { %622 = vst [vmem:[#allocation2 + $0x130] sm:$0x3] %v2707_v56 }
  0x32   : > { %623 = vst [vmem:[#allocation2 + $0x138] sm:$0xff] %v2707_v56 }
  0x33   : > { %624 = vst [vmem:[#allocation2 + $0x140] sm:$0xff] %v2707_v56 }
  0x34   : > { %625 = vst [vmem:[#allocation2 + $0x148] sm:$0x3] %v2707_v56 }
  0x35   : > { %626 = vst [vmem:[#allocation2 + $0x150] sm:$0xff] %v2707_v56 }
  0x36   : > { %627 = vst [vmem:[#allocation2 + $0x158] sm:$0xff] %v2707_v56 }
  0x37   : > { %628 = vst [vmem:[#allocation2 + $0x160] sm:$0x3] %v2707_v56 }
  0x38   : > { %629 = vst [vmem:[#allocation2 + $0x168] sm:$0xff] %v2707_v56 }
  0x39   : > { %630 = vst [vmem:[#allocation2 + $0x170] sm:$0xff] %v2707_v56 }
  0x3a   : > { %631 = vst [vmem:[#allocation2 + $0x178] sm:$0x3] %v2707_v56 }
  0x3b   : > { %404 = vmatmul.bf16.gmra.mxu0 %v312_v28  ;;  %424 = vmatmul.bf16.gmra.mxu1 %v316_v29  ;;  %632 = vst [vmem:[#allocation2 + $0x180] sm:$0xff] %v2707_v56  ;;  %v793_v29 = vmul.f32 0.0, %v2914_v27 }
  0x3c   : > { %444 = vmatmul.bf16.gmra.mxu2 %v320_v30  ;;  %464 = vmatmul.bf16.gmra.mxu3 %v324_v31  ;;  %633 = vst [vmem:[#allocation2 + $0x188] sm:$0xff] %v2707_v56  ;;  %v2921_v31 = vperm.slane %v2909_v25, 0 }
  0x3d   : > { %634 = vst [vmem:[#allocation2 + $0x190] sm:$0x3] %v2707_v56  ;;  %v890_v34 = vrot.slane %v793_v29, 1 }
  0x3e   : > { %637 = vst [vmem:[#allocation2 + $0x1a8] sm:$0x3] %v2707_v56  ;;  %v728_v39 = vmul.f32 0.0, %v2921_v31 }
  0x4b   : > { %409 = vmatmul.bf16.gmra.mxu0 %v313_v40  ;;  %429 = vmatmul.bf16.gmra.mxu1 %v317_v41  ;;  %v1035_v40 = vmul.f32 0.0, %v2924_v32  ;;  %v795_v41 = vmul.f32 %v2914_v27, %v673_v35 }
  0x4c   : > { %449 = vmatmul.bf16.gmra.mxu2 %v321_v42  ;;  %469 = vmatmul.bf16.gmra.mxu3 %v325_v43 }
  0x5b   : > { %414 = vmatmul.bf16.gmra.mxu0 %v314_v52  ;;  %434 = vmatmul.bf16.gmra.mxu1 %v318_v53  ;;  %v1132_v52 = vrot.slane %v1035_v40, 2 }
  0x5c   : > { %454 = vmatmul.bf16.gmra.mxu2 %v322_v54  ;;  %474 = vmatmul.bf16.gmra.mxu3 %v326_v55  ;;  %v893_v55 = vrot.slane %v795_v41, 1 }
  0xa8   : > { %v400_v59 = vpop.f32.mrf.mxu0  ;;  %v420_v63 = vpop.f32.mrf.mxu1 }
  0xa9   : > { %v484_v60 = vmul.f32 %v2845_v57, %v400_v59  ;;  %v492_v1 = vmul.f32 %v2845_v57, %v420_v63  ;;  %v1037_v63 = vmul.f32 %v2924_v32, %v673_v35 }
  0xab   : > { %v520_v61 = vadd.f32 %v2852_v58, %v484_v60  ;;  %v528_v5 = vadd.f32 %v2852_v58, %v492_v1  ;;  %v1002_v1 = vadd.f32 %v890_v34, %v728_v39 }
  0xad   : > { %v552_v62 = vmax.f32 %v520_v61, 0.0  ;;  %v560_v11 = vmax.f32 %v528_v5, 0.0  ;;  %v2959_v5 = vperm.slane %v2909_v25, 4 }
  0xaf   : > { %639 = vst [vmem:[#allocation2 + $0x19] sm:$0xff] %v552_v62  ;;  %v440_v0 = vpop.f32.mrf.mxu2  ;;  %v460_v2 = vpop.f32.mrf.mxu3 }
  0xb0   : > { %2474 = vst [vmem:[%s2866_s9] sm:$0xff] %v552_v62  ;;  %v500_v3 = vmul.f32 %v2845_v57, %v440_v0  ;;  %v402_v4 = vpop.f32.mrf.mxu0  ;;  %v508_v6 = vmul.f32 %v2845_v57, %v460_v2  ;;  %v422_v7 = vpop.f32.mrf.mxu1 }
  0xb1   : > { %v485_v9 = vmul.f32 %v2845_v57, %v402_v4  ;;  %v493_v13 = vmul.f32 %v2845_v57, %v422_v7  ;;  %647 = vst [vmem:[#allocation2 + $0x79] sm:$0xff] %v560_v11  ;;  %v2956_v4 = vperm.slane %v2909_v25, 3  ;;  %v894_v7 = vsel %vm889_vm0, %v890_v34, %v893_v55 }
  0xb2   : > { %v536_v8 = vadd.f32 %v2852_v58, %v500_v3  ;;  %v544_v12 = vadd.f32 %v2852_v58, %v508_v6  ;;  %2482 = vst [vmem:[%s2866_s9 + $0x80] sm:$0xff] %v560_v11  ;;  %v2962_v6 = vperm.slane %v2909_v25, 5 }
  0xb3   : > { %v521_v15 = vadd.f32 %v2852_v58, %v485_v9  ;;  %v529_v19 = vadd.f32 %v2852_v58, %v493_v13  ;;  %v1244_v9 = vadd.f32 %v1132_v52, %v1002_v1 }
  0xb4   : > { %v568_v14 = vmax.f32 %v536_v8, 0.0  ;;  %v576_v18 = vmax.f32 %v544_v12, 0.0  ;;  %v1135_v8 = vrot.slane %v1037_v63, 2 }
  0xb5   : > { %v553_v21 = vmax.f32 %v521_v15, 0.0  ;;  %v561_v23 = vmax.f32 %v529_v19, 0.0  ;;  %v2973_v15 = vperm.slane %v2909_v25, 7 }
  0xb6   : > { %655 = vst [vmem:[#allocation2 + $0xd9] sm:$0xff] %v568_v14  ;;  %v674_v30 = vld [vmem:[#allocation2 + $0x18] sm:$0xff] }
  0xb7   : > { %v442_v10 = vpop.f32.mrf.mxu2  ;;  %v462_v17 = vpop.f32.mrf.mxu3  ;;  %2490 = vst [vmem:[%s2866_s9 + $0x100] sm:$0xff] %v568_v14  ;;  %v796_v33 = vmul.f32 %v2914_v27, %v674_v30  ;;  %v1038_v38 = vmul.f32 %v2924_v32, %v674_v30  ;;  %v730_v51 = vmul.f32 %v2921_v31, %v674_v30  ;;  %v2967_v11 = vmul.f32 %v2959_v5, %v674_v30 }
  0xb8   : > { %v501_v16 = vmul.f32 %v2845_v57, %v442_v10  ;;  %v509_v20 = vmul.f32 %v2845_v57, %v462_v17  ;;  %663 = vst [vmem:[#allocation2 + $0x139] sm:$0xff] %v576_v18  ;;  %v1277_v10 = vmul.f32 %v2956_v4, %v674_v30  ;;  %v2970_v12 = vmul.f32 %v2962_v6, %v674_v30  ;;  %v686_v13 = vld [vmem:[#allocation2 + $0x78] sm:$0xff] }
  0xb9   : > { %2498 = vst [vmem:[%s2866_s9 + $0x180] sm:$0xff] %v576_v18  ;;  %v895_v45 = vrot.slane %v796_v33, 1  ;;  %v1137_v47 = vrot.slane %v1038_v38, 2  ;;  %v1003_v14 = vadd.f32 %v894_v7, %v728_v39  ;;  %v2977_v17 = vperm.slane %v2909_v25, 6  ;;  %v2982_v18 = vld [vmem:[%s4821_s4 + $0x8] ss:$0 sm:$0xff] }
  0xba   : > { %v537_v22 = vadd.f32 %v2852_v58, %v501_v16  ;;  %v545_v24 = vadd.f32 %v2852_v58, %v509_v20  ;;  %640 = vst [vmem:[#allocation2 + $0x21] sm:$0xff] %v553_v21  ;;  %v1136_v16 = vsel %vm1131_vm1, %v1132_v52, %v1135_v8  ;;  %v2985_v19 = vmul.f32 %v2914_v27, %v686_v13 }
  0xbb   : > { %2475 = vst [vmem:[%s2866_s9 + $0x10] sm:$0xff] %v553_v21  ;;  %v2988_v20 = vmul.f32 %v2924_v32, %v686_v13  ;;  %v1245_v25 = vadd.f32 %v1136_v16, %v1003_v14  ;;  %v3001_v29 = vmul.f32 %v2962_v6, %v686_v13  ;;  %v3004_v30 = vmul.f32 %v2973_v15, %v686_v13 }
  0xbc   : > { %v569_v26 = vmax.f32 %v537_v22, 0.0  ;;  %648 = vst [vmem:[#allocation2 + $0x81] sm:$0xff] %v561_v23  ;;  %v577_v28 = vmax.f32 %v545_v24, 0.0  ;;  %v2990_v22 = vadd.f32 %v1277_v10, %v1244_v9  ;;  %v3007_v33 = vmul.f32 %v2956_v4, %v686_v13 }
  0xbd   : > { %2483 = vst [vmem:[%s2866_s9 + $0x90] sm:$0xff] %v561_v23  ;;  %v698_v21 = vld [vmem:[#allocation2 + $0xd8] sm:$0xff]  ;;  %v1438_v23 = vrot.slane %v2967_v11, 1  ;;  %v3010_v34 = vmul.f32 %v2977_v17, %v686_v13  ;;  %v3013_v35 = vmul.f32 %v2982_v18, %v686_v13  ;;  %v915_v39 = vrot.slane %v2985_v19, 1 }
  0xbe   : > { %656 = vst [vmem:[#allocation2 + $0xe1] sm:$0xff] %v569_v26  ;;  %v3016_v38 = vmul.f32 %v2914_v27, %v698_v21  ;;  %v3021_v41 = vmul.f32 %v2924_v32, %v698_v21  ;;  %v3048_v55 = vmul.f32 %v2982_v18, %v698_v21 }
  0xbf   : > { %2491 = vst [vmem:[%s2866_s9 + $0x110] sm:$0xff] %v569_v26  ;;  %v2995_v26 = vmul.f32 %v2921_v31, %v686_v13 }
  0xc0   : > { %664 = vst [vmem:[#allocation2 + $0x141] sm:$0xff] %v577_v28 }
  0xc1   : > { %2499 = vst [vmem:[%s2866_s9 + $0x190] sm:$0xff] %v577_v28  ;;  %v2927_v36 = vld [vmem:[#allocation2 + $0x20] sm:$0xff]  ;;  %v2929_v37 = vld [vmem:[#allocation2 + $0x28] sm:$0x3]  ;;  %v2998_v28 = vmul.f32 %v2959_v5, %v686_v13 }
  0xc2   : > { %v797_v42 = vmul.f32 %v2914_v27, %v2927_v36  ;;  %v798_v43 = vmul.f32 %v2914_v27, %v2929_v37  ;;  %v1039_v44 = vmul.f32 %v2924_v32, %v2927_v36  ;;  %v1040_v46 = vmul.f32 %v2924_v32, %v2929_v37  ;;  %4857 = vst [vmem:[#allocation3_spill] sm:$0xff] %v3007_v33 }
  0xc3   : > { %v731_v53 = vmul.f32 %v2921_v31, %v2927_v36  ;;  %4858 = vst [vmem:[#allocation4_spill] sm:$0xff] %v3010_v34  ;;  %v1278_v63 = vmul.f32 %v2956_v4, %v2927_v36  ;;  %v4864_v33 = vrot.slane %v2970_v12, 2 }
  0xc4   : > { %v896_v48 = vrot.slane %v797_v42, 1  ;;  %v898_v49 = vrot.slane %v798_v43, 1  ;;  %v1138_v50 = vrot.slane %v1039_v44, 2  ;;  %v1140_v54 = vrot.slane %v1040_v46, 2 }
  0xc5   : > { %v3024_v42 = vmul.f32 %v2959_v5, %v698_v21  ;;  %v3027_v43 = vmul.f32 %v2921_v31, %v698_v21  ;;  %v3030_v44 = vmul.f32 %v2962_v6, %v698_v21  ;;  %v1344_v46 = vmul.f32 %v2959_v5, %v2929_v37 }
  0xc6   : > { %v897_v56 = vsel %vm889_vm0, %v895_v45, %v896_v48  ;;  %v899_v59 = vsel %vm889_vm0, %v896_v48, %v898_v49  ;;  %v1139_v60 = vsel %vm1131_vm1, %v1137_v47, %v1138_v50  ;;  %v1141_v0 = vsel %vm1131_vm1, %v1138_v50, %v1140_v54 }
  0xc7   : > { %v1004_v61 = vadd.f32 %v897_v56, %v730_v51  ;;  %v1005_v62 = vadd.f32 %v899_v59, %v731_v53  ;;  %v1343_v45 = vmul.f32 %v2959_v5, %v2927_v36  ;;  %v3040_v50 = vmul.f32 %v2973_v15, %v698_v21  ;;  %v710_v51 = vld [vmem:[#allocation2 + $0x138] sm:$0xff]  ;;  %v3050_v56 = vld [vmem:[#allocation2 + $0x80] sm:$0xff]  ;;  %v3052_v59 = vld [vmem:[#allocation2 + $0x88] sm:$0x3]  ;;  %v405_v53 = vpop.f32.mrf.mxu0 }
  0xc8   : > { %v3045_v54 = vmul.f32 %v2956_v4, %v698_v21  ;;  %v3063_v1 = vmul.f32 %v2921_v31, %v710_v51  ;;  %v1441_v8 = vrot.slane %v1344_v46, 1  ;;  %v3067_v10 = vmul.f32 %v2914_v27, %v710_v51 }
  0xc9   : > { %v2951_v2 = vadd.f32 %v1139_v60, %v1004_v61  ;;  %v2953_v3 = vadd.f32 %v1141_v0, %v1005_v62  ;;  %v3057_v62 = vmul.f32 %v2977_v17, %v698_v21  ;;  %v1439_v7 = vrot.slane %v1343_v45, 1 }
  0xca   : > { %4859 = vst [vmem:[#allocation5_spill] sm:$0xff] %v3045_v54  ;;  %v809_v11 = vmul.f32 %v2914_v27, %v3050_v56  ;;  %v810_v13 = vmul.f32 %v2914_v27, %v3052_v59  ;;  %v3075_v16 = vmul.f32 %v2924_v32, %v710_v51  ;;  %v3078_v19 = vmul.f32 %v2956_v4, %v710_v51 }
  0xcb   : > { %4860 = vst [vmem:[#allocation6_spill] sm:$0xff] %v3057_v62  ;;  %v1584_v21 = vmul.f32 %v2962_v6, %v2927_v36  ;;  %v3083_v45 = vmul.f32 %v2959_v5, %v710_v51  ;;  %v3086_v46 = vmul.f32 %v2962_v6, %v710_v51  ;;  %v1310_v9 = vadd.f32 %v1278_v63, %v1245_v25 }
  0xcc   : > { %4861 = vst [vmem:[#allocation7_spill] sm:$0xff] %v3078_v19  ;;  %v1585_v0 = vmul.f32 %v2962_v6, %v2929_v37  ;;  %v1440_v14 = vsel %vm889_vm0, %v1438_v23, %v1439_v7  ;;  %v1442_v61 = vsel %vm889_vm0, %v1439_v7, %v1441_v8  ;;  %v1051_v60 = vmul.f32 %v2924_v32, %v3050_v56  ;;  %v425_v37 = vpop.f32.mrf.mxu1 }
  0xcd   : > { %v1052_v36 = vmul.f32 %v2924_v32, %v3052_v59  ;;  %v916_v52 = vrot.slane %v809_v11, 1  ;;  %v918_v49 = vrot.slane %v810_v13, 1  ;;  %v1355_v48 = vmul.f32 %v2959_v5, %v3050_v56 }
  0xce   : > { %v1356_v25 = vmul.f32 %v2959_v5, %v3052_v59  ;;  %v3103_v7 = vmul.f32 %v2977_v17, %v710_v51  ;;  %v1680_v8 = vrot.slane %v1584_v21, 2  ;;  %v3106_v47 = vmul.f32 %v2973_v15, %v710_v51 }
  0xcf   : > { %v3109_v11 = vmul.f32 %v2982_v18, %v710_v51  ;;  %v1550_v13 = vadd.f32 %v1440_v14, %v2990_v22  ;;  %v1682_v40 = vrot.slane %v1585_v0, 2  ;;  %v1551_v19 = vadd.f32 %v1442_v61, %v1310_v9  ;;  %v445_v14 = vpop.f32.mrf.mxu2 }
  0xd0   : > { %4862 = vst [vmem:[#allocation8_spill] sm:$0xff] %v3103_v7  ;;  %v1158_v62 = vrot.slane %v1051_v60, 2  ;;  %v1160_v23 = vrot.slane %v1052_v36, 2  ;;  %v917_v63 = vsel %vm889_vm0, %v915_v39, %v916_v52  ;;  %v919_v54 = vsel %vm889_vm0, %v916_v52, %v918_v49 }
  0xd1   : > { %4863 = vst [vmem:[#allocation9_spill] sm:$0xff] %v3109_v11  ;;  %v1459_v7 = vrot.slane %v1355_v48, 1  ;;  %v1461_v21 = vrot.slane %v1356_v25, 1  ;;  %v1681_v51 = vsel %vm1131_vm1, %v4864_v33, %v1680_v8  ;;  %v739_v22 = vmul.f32 %v2921_v31, %v3050_v56 }
  0xd2   : > { %v1596_v61 = vmul.f32 %v2962_v6, %v3050_v56  ;;  %v1683_v49 = vsel %vm1131_vm1, %v1680_v8, %v1682_v40  ;;  %v3126_v48 = vadd.f32 %v1681_v51, %v1550_v13  ;;  %v1012_v12 = vadd.f32 %v917_v63, %v2995_v26  ;;  %v407_v8 = vpop.f32.mrf.mxu0 }
  0xd3   : > { %v3128_v52 = vadd.f32 %v1683_v49, %v1551_v19  ;;  %v1013_v0 = vadd.f32 %v919_v54, %v739_v22  ;;  %v4865_v33 = vrot.slane %v2988_v20, 2  ;;  %v1161_v36 = vsel %vm1131_vm1, %v1158_v62, %v1160_v23  ;;  %v3143_v19 = vld [vmem:[#allocation2 + $0xe0] sm:$0xff]  ;;  %v465_v54 = vpop.f32.mrf.mxu3  ;;  %v3150_v23 = vld [vmem:[#allocation2 + $0xe8] sm:$0x3] }
  0xd4   : > { %v4866_v25 = vrot.slane %v2998_v28, 1  ;;  %v3141_v40 = vsel %vm889_vm0, %v1459_v7, %v1461_v21  ;;  %v486_v26 = vmul.f32 %v2845_v57, %v405_v53  ;;  %v1597_v20 = vmul.f32 %v2962_v6, %v3052_v59  ;;  %v427_v51 = vpop.f32.mrf.mxu1 }
  0xd5   : > { %v1159_v9 = vsel %vm1131_vm1, %v4865_v33, %v1158_v62  ;;  %4868 = vst [vmem:[#allocation11_spill] sm:$0xff] %v3141_v40  ;;  %v1700_v63 = vrot.slane %v1596_v61, 2  ;;  %v1899_v62 = vmul.f32 %v2973_v15, %v3050_v56  ;;  %v494_v28 = vmul.f32 %v2845_v57, %v425_v37 }
  0xd6   : > { %v3138_v39 = vsel %vm889_vm0, %v4866_v25, %v1459_v7  ;;  %v1900_v7 = vmul.f32 %v2973_v15, %v3052_v59  ;;  %v2140_v13 = vmul.f32 %v2982_v18, %v3050_v56  ;;  %v522_v53 = vadd.f32 %v2852_v58, %v486_v26 }
  0xd7   : > { %4867 = vst [vmem:[#allocation10_spill] sm:$0xff] %v3138_v39  ;;  %v502_v21 = vmul.f32 %v2845_v57, %v445_v14  ;;  %v2141_v22 = vmul.f32 %v2982_v18, %v3052_v59  ;;  %v821_v61 = vmul.f32 %v2914_v27, %v3143_v19  ;;  %v530_v37 = vadd.f32 %v2852_v58, %v494_v28 }
  0xd8   : > { %v510_v49 = vmul.f32 %v2845_v57, %v465_v54  ;;  %v822_v33 = vmul.f32 %v2914_v27, %v3150_v23  ;;  %v554_v25 = vmax.f32 %v522_v53, 0.0  ;;  %v487_v14 = vmul.f32 %v2845_v57, %v407_v8 }
  0xd9   : > { %v538_v56 = vadd.f32 %v2852_v58, %v502_v21  ;;  %v1702_v26 = vrot.slane %v1597_v20, 2  ;;  %v562_v60 = vmax.f32 %v530_v37, 0.0  ;;  %v495_v34 = vmul.f32 %v2845_v57, %v427_v51 }
  0xda   : > { %v546_v59 = vadd.f32 %v2852_v58, %v510_v49  ;;  %v2001_v24 = vrot.slane %v1899_v62, 1  ;;  %v2003_v40 = vrot.slane %v1900_v7, 1  ;;  %641 = vst [vmem:[#allocation2 + $0x31] sm:$0xff] %v554_v25  ;;  %v523_v54 = vadd.f32 %v2852_v58, %v487_v14 }
  0xdb   : > { %v570_v28 = vmax.f32 %v538_v56, 0.0  ;;  %v3172_v39 = vadd.f32 %v1159_v9, %v1012_v12  ;;  %v2242_v53 = vrot.slane %v2140_v13, 2  ;;  %v2244_v11 = vrot.slane %v2141_v22, 2  ;;  %2476 = vst [vmem:[%s2866_s9 + $0x20] sm:$0xff] %v554_v25  ;;  %v3222_v25 = vld [vmem:[#allocation2 + $0x148] sm:$0x3] }
  0xdc   : > { %v936_v21 = vrot.slane %v821_v61, 1  ;;  %v3175_v8 = vadd.f32 %v1161_v36, %v1013_v0  ;;  %v938_v20 = vrot.slane %v822_v33, 1  ;;  %649 = vst [vmem:[#allocation2 + $0x91] sm:$0xff] %v562_v60  ;;  %v578_v37 = vmax.f32 %v546_v59, 0.0 }
  0xdd   : > { %v531_v51 = vadd.f32 %v2852_v58, %v495_v34  ;;  %v4870_v62 = vrot.slane %v3001_v29, 2  ;;  %v3184_v12 = vsel %vm1131_vm1, %v1700_v63, %v1702_v26  ;;  %v747_v9 = vmul.f32 %v2921_v31, %v3143_v19  ;;  %2484 = vst [vmem:[%s2866_s9 + $0xa0] sm:$0xff] %v562_v60 }
  0xde   : > { %4869 = vst [vmem:[#allocation12_spill] sm:$0xff] %v3175_v8  ;;  %v1063_v0 = vmul.f32 %v2924_v32, %v3143_v19  ;;  %v4873_v36 = vrot.slane %v3004_v30, 1  ;;  %v3197_v29 = vsel %vm889_vm0, %v2001_v24, %v2003_v40  ;;  %v1064_v13 = vmul.f32 %v2924_v32, %v3150_v23  ;;  %v3214_v40 = vld [vmem:[#allocation2 + $0x140] sm:$0xff] }
  0xdf   : > { %v3181_v7 = vsel %vm1131_vm1, %v4870_v62, %v1700_v63  ;;  %4872 = vst [vmem:[#allocation14_spill] sm:$0xff] %v3184_v12  ;;  %v555_v63 = vmax.f32 %v523_v54, 0.0  ;;  %v4876_v22 = vrot.slane %v3013_v35, 2  ;;  %v3207_v60 = vsel %vm1131_vm1, %v2242_v53, %v2244_v11 }
  0xe0   : > { %4871 = vst [vmem:[#allocation13_spill] sm:$0xff] %v3181_v7  ;;  %v3194_v34 = vsel %vm889_vm0, %v4873_v36, %v2001_v24  ;;  %v4879_v30 = vrot.slane %v3016_v38, 1  ;;  %v1367_v24 = vmul.f32 %v2959_v5, %v3143_v19  ;;  %v939_v33 = vsel %vm889_vm0, %v936_v21, %v938_v20 }
  0xe1   : > { %4874 = vst [vmem:[#allocation15_spill] sm:$0xff] %v3194_v34  ;;  %v3204_v61 = vsel %vm1131_vm1, %v4876_v22, %v2242_v53  ;;  %v1368_v35 = vmul.f32 %v2959_v5, %v3150_v23  ;;  %v1608_v11 = vmul.f32 %v2962_v6, %v3143_v19  ;;  %v563_v38 = vmax.f32 %v531_v51, 0.0 }
  0xe2   : > { %4875 = vst [vmem:[#allocation16_spill] sm:$0xff] %v3197_v29  ;;  %v937_v49 = vsel %vm889_vm0, %v4879_v30, %v936_v21  ;;  %v1178_v56 = vrot.slane %v1063_v0, 2  ;;  %v1609_v14 = vmul.f32 %v2962_v6, %v3150_v23  ;;  %v1911_v26 = vmul.f32 %v2973_v15, %v3143_v19 }
  0xe3   : > { %657 = vst [vmem:[#allocation2 + $0xf1] sm:$0xff] %v570_v28  ;;  %v1912_v59 = vmul.f32 %v2973_v15, %v3150_v23  ;;  %v1180_v54 = vrot.slane %v1064_v13, 2  ;;  %v2152_v53 = vmul.f32 %v2982_v18, %v3143_v19  ;;  %v833_v21 = vmul.f32 %v2914_v27, %v3214_v40 }
  0xe4   : > { %4877 = vst [vmem:[#allocation17_spill] sm:$0xff] %v3204_v61  ;;  %v1020_v51 = vadd.f32 %v937_v49, %v3027_v43  ;;  %v1021_v62 = vadd.f32 %v939_v33, %v747_v9  ;;  %v2153_v0 = vmul.f32 %v2982_v18, %v3150_v23  ;;  %v1479_v36 = vrot.slane %v1367_v24, 1 }
  0xe5   : > { %4878 = vst [vmem:[#allocation18_spill] sm:$0xff] %v3207_v60  ;;  %v1481_v13 = vrot.slane %v1368_v35, 1  ;;  %v1720_v19 = vrot.slane %v1608_v11, 2  ;;  %v4880_v30 = vrot.slane %v3021_v41, 2  ;;  %v1722_v43 = vrot.slane %v1609_v14, 2 }
  0xe6   : > { %2492 = vst [vmem:[%s2866_s9 + $0x120] sm:$0xff] %v570_v28  ;;  %v677_v28 = vld [vmem:[#allocation2 + $0x30] sm:$0xff]  ;;  %v2021_v9 = vrot.slane %v1911_v26, 1  ;;  %v2023_v49 = vrot.slane %v1912_v59, 1  ;;  %v1181_v23 = vsel %vm1131_vm1, %v1178_v56, %v1180_v54  ;;  %v2262_v33 = vrot.slane %v2152_v53, 2 }
  0xe7   : > { %665 = vst [vmem:[#allocation2 + $0x151] sm:$0xff] %v578_v37  ;;  %v1279_v20 = vmul.f32 %v2956_v4, %v677_v28  ;;  %v1179_v60 = vsel %vm1131_vm1, %v4880_v30, %v1178_v56  ;;  %v956_v61 = vrot.slane %v833_v21, 1  ;;  %v1076_v41 = vmul.f32 %v2924_v32, %v3222_v25 }
  0xe8   : > { %2500 = vst [vmem:[%s2866_s9 + $0x1a0] sm:$0xff] %v578_v37  ;;  %v834_v37 = vmul.f32 %v2914_v27, %v3222_v25  ;;  %v3252_v24 = vadd.f32 %v1179_v60, %v1020_v51  ;;  %v3256_v11 = vadd.f32 %v1181_v23, %v1021_v62  ;;  %v4882_v14 = vrot.slane %v3024_v42, 1 }
  0xe9   : > { %642 = vst [vmem:[#allocation2 + $0x39] sm:$0xff] %v555_v63  ;;  %v3243_v22 = vadd.f32 %v1279_v20, %v2951_v2  ;;  %v2264_v2 = vrot.slane %v2153_v0, 2  ;;  %v3264_v56 = vsel %vm889_vm0, %v1479_v36, %v1481_v13  ;;  %v4885_v26 = vrot.slane %v3030_v44, 2 }
  0xea   : > { %2477 = vst [vmem:[%s2866_s9 + $0x30] sm:$0xff] %v555_v63  ;;  %v1075_v63 = vmul.f32 %v2924_v32, %v3214_v40  ;;  %v958_v35 = vrot.slane %v834_v37, 1  ;;  %v3272_v59 = vsel %vm1131_vm1, %v1720_v19, %v1722_v43  ;;  %v4888_v54 = vrot.slane %v3040_v50, 1 }
  0xeb   : > { %650 = vst [vmem:[#allocation2 + $0x99] sm:$0xff] %v563_v38  ;;  %v3269_v60 = vsel %vm1131_vm1, %v4885_v26, %v1720_v19  ;;  %v3280_v42 = vsel %vm889_vm0, %v2021_v9, %v2023_v49  ;;  %v755_v21 = vmul.f32 %v2921_v31, %v3214_v40  ;;  %v4891_v20 = vrot.slane %v3048_v55, 2 }
  0xec   : > { %2485 = vst [vmem:[%s2866_s9 + $0xb0] sm:$0xff] %v563_v38  ;;  %v3261_v38 = vsel %vm889_vm0, %v4882_v14, %v1479_v36  ;;  %v3277_v53 = vsel %vm889_vm0, %v4888_v54, %v2021_v9  ;;  %v4893_v51 = vrot.slane %v3067_v10, 1  ;;  %v1198_v0 = vrot.slane %v1075_v63, 2 }
  0xed   : > { %4881 = vst [vmem:[#allocation19_spill] sm:$0xff] %v3256_v11  ;;  %v3287_v44 = vsel %vm1131_vm1, %v4891_v20, %v2262_v33  ;;  %v3294_v50 = vmul.f32 %v2959_v5, %v3214_v40  ;;  %v3297_v37 = vsel %vm1131_vm1, %v2262_v33, %v2264_v2  ;;  %v959_v36 = vsel %vm889_vm0, %v956_v61, %v958_v35  ;;  %v3318_v33 = vld [vmem:[#allocation2 + $0x90] sm:$0xff] }
  0xee   : > { %4883 = vst [vmem:[#allocation20_spill] sm:$0xff] %v3261_v38  ;;  %v957_v62 = vsel %vm889_vm0, %v4893_v51, %v956_v61  ;;  %v1200_v13 = vrot.slane %v1076_v41, 2  ;;  %v799_v55 = vmul.f32 %v2914_v27, %v677_v28  ;;  %v1041_v19 = vmul.f32 %v2924_v32, %v677_v28 }
  0xef   : > { %4884 = vst [vmem:[#allocation21_spill] sm:$0xff] %v3264_v56  ;;  %v1345_v30 = vmul.f32 %v2959_v5, %v677_v28  ;;  %v1586_v10 = vmul.f32 %v2962_v6, %v677_v28  ;;  %v1824_v43 = vmul.f32 %v2977_v17, %v677_v28  ;;  %v3306_v9 = vadd.f32 %v957_v62, %v3063_v1 }
  0xf0   : > { %4886 = vst [vmem:[#allocation22_spill] sm:$0xff] %v3269_v60  ;;  %v3310_v49 = vmul.f32 %v2959_v5, %v3222_v25  ;;  %v3313_v61 = vmul.f32 %v2973_v15, %v677_v28  ;;  %v3316_v23 = vmul.f32 %v2982_v18, %v677_v28  ;;  %v3320_v63 = vadd.f32 %v959_v36, %v755_v21  ;;  %v679_v20 = vld [vmem:[#allocation2 + $0x40] sm:$0x3] }
  0xf1   : > { %4887 = vst [vmem:[#allocation23_spill] sm:$0xff] %v3272_v59  ;;  %v4895_v2 = vrot.slane %v3075_v16, 2  ;;  %v3330_v41 = vmul.f32 %v2914_v27, %v3318_v33  ;;  %v3333_v14 = vsel %vm1131_vm1, %v1198_v0, %v1200_v13  ;;  %v3337_v26 = vmul.f32 %v2962_v6, %v3214_v40  ;;  %v678_v16 = vld [vmem:[#allocation2 + $0x38] sm:$0xff] }
  0xf2   : > { %4889 = vst [vmem:[#allocation24_spill] sm:$0xff] %v3277_v53  ;;  %v732_v54 = vmul.f32 %v2921_v31, %v677_v28  ;;  %v900_v21 = vrot.slane %v799_v55, 1  ;;  %v1142_v51 = vrot.slane %v1041_v19, 2  ;;  %v1443_v62 = vrot.slane %v1345_v30, 1 }
  0xf3   : > { %4890 = vst [vmem:[#allocation25_spill] sm:$0xff] %v3280_v42  ;;  %v3325_v35 = vsel %vm1131_vm1, %v4895_v2, %v1198_v0  ;;  %v1684_v36 = vrot.slane %v1586_v10, 2  ;;  %v1856_v2 = vadd.f32 %v1824_v43, %v3126_v48  ;;  %v1985_v1 = vrot.slane %v3313_v61, 1 }
  0xf4   : > { %4892 = vst [vmem:[#allocation26_spill] sm:$0xff] %v3287_v44  ;;  %v3345_v0 = vmul.f32 %v2921_v31, %v3318_v33  ;;  %v3349_v13 = vmul.f32 %v2924_v32, %v3318_v33  ;;  %v733_v55 = vmul.f32 %v2921_v31, %v678_v16  ;;  %v800_v19 = vmul.f32 %v2914_v27, %v678_v16 }
  0xf5   : > { %4894 = vst [vmem:[#allocation27_spill] sm:$0xff] %v3297_v37  ;;  %v801_v48 = vmul.f32 %v2914_v27, %v679_v20  ;;  %v1042_v30 = vmul.f32 %v2924_v32, %v678_v16  ;;  %v1043_v10 = vmul.f32 %v2924_v32, %v679_v20  ;;  %v1280_v43 = vmul.f32 %v2956_v4, %v678_v16 }
  0xf6   : > { %v1346_v61 = vmul.f32 %v2959_v5, %v678_v16  ;;  %v901_v37 = vrot.slane %v800_v19, 1  ;;  %v1347_v42 = vmul.f32 %v2959_v5, %v679_v20  ;;  %v1587_v28 = vmul.f32 %v2962_v6, %v678_v16 }
  0xf7   : > { %v903_v44 = vrot.slane %v801_v48, 1  ;;  %v1143_v53 = vrot.slane %v1042_v30, 2  ;;  %v1145_v59 = vrot.slane %v1043_v10, 2  ;;  %v1312_v60 = vadd.f32 %v1280_v43, %v2953_v3 }
  0xf8   : > { %v1444_v56 = vrot.slane %v1346_v61, 1  ;;  %v902_v38 = vsel %vm889_vm0, %v900_v21, %v901_v37  ;;  %v1446_v34 = vrot.slane %v1347_v42, 1  ;;  %v1588_v12 = vmul.f32 %v2962_v6, %v679_v20 }
  0xf9   : > { %v904_v29 = vsel %vm889_vm0, %v901_v37, %v903_v44  ;;  %v1006_v7 = vadd.f32 %v902_v38, %v732_v54  ;;  %v1144_v19 = vsel %vm1131_vm1, %v1142_v51, %v1143_v53  ;;  %v1146_v48 = vsel %vm1131_vm1, %v1143_v53, %v1145_v59  ;;  %v3378_v53 = vld [vmem:[#allocation2 + $0x98] sm:$0xff] }
  0xfa   : > { %v1007_v11 = vadd.f32 %v904_v29, %v733_v55  ;;  %v1445_v8 = vsel %vm889_vm0, %v1443_v62, %v1444_v56  ;;  %v1447_v30 = vsel %vm889_vm0, %v1444_v56, %v1446_v34  ;;  %v1685_v10 = vrot.slane %v1587_v28, 2  ;;  %v3380_v34 = vld [vmem:[#allocation2 + $0xa0] sm:$0x3] }
  0xfb   : > { %v1687_v3 = vrot.slane %v1588_v12, 2  ;;  %v3369_v43 = vadd.f32 %v1144_v19, %v1006_v7  ;;  %v1552_v42 = vadd.f32 %v1445_v8, %v3243_v22  ;;  %v1553_v44 = vadd.f32 %v1447_v30, %v1312_v60  ;;  %v3404_v19 = vld [vmem:[%s4822_s5] ss:$0 sm:$0xff] }
  0xfc   : > { %v3371_v21 = vadd.f32 %v1146_v48, %v1007_v11  ;;  %v1686_v38 = vsel %vm1131_vm1, %v1684_v36, %v1685_v10  ;;  %v1825_v37 = vmul.f32 %v2977_v17, %v678_v16  ;;  %v1890_v59 = vmul.f32 %v2973_v15, %v678_v16 }
  0xfd   : > { %v1688_v29 = vsel %vm1131_vm1, %v1685_v10, %v1687_v3  ;;  %v3382_v12 = vadd.f32 %v1686_v38, %v1552_v42  ;;  %v1891_v11 = vmul.f32 %v2973_v15, %v679_v20  ;;  %v2131_v8 = vmul.f32 %v2982_v18, %v678_v16 }
  0xfe   : > { %v3384_v7 = vadd.f32 %v1688_v29, %v1553_v44  ;;  %v1162_v22 = vrot.slane %v3349_v13, 2  ;;  %v1857_v56 = vadd.f32 %v1825_v37, %v3128_v52  ;;  %v1986_v60 = vrot.slane %v1890_v59, 1 }
  0xff   : > { %v2132_v54 = vmul.f32 %v2982_v18, %v679_v20  ;;  %v1988_v51 = vrot.slane %v1891_v11, 1  ;;  %v2227_v62 = vrot.slane %v2131_v8, 2  ;;  %v812_v36 = vmul.f32 %v2914_v27, %v3378_v53 }
 0x100   : > { %v813_v28 = vmul.f32 %v2914_v27, %v3380_v34  ;;  %v1987_v55 = vsel %vm889_vm0, %v1985_v1, %v1986_v60  ;;  %v1054_v16 = vmul.f32 %v2924_v32, %v3378_v53  ;;  %v1055_v52 = vmul.f32 %v2924_v32, %v3380_v34 }
 0x101   : > { %v2229_v61 = vrot.slane %v2132_v54, 2  ;;  %v1989_v13 = vsel %vm889_vm0, %v1986_v60, %v1988_v51  ;;  %v2097_v20 = vadd.f32 %v1987_v55, %v1856_v2  ;;  %v741_v48 = vmul.f32 %v2921_v31, %v3378_v53  ;;  %v3415_v2 = vld [vmem:[%s4823_s6] ss:$0 sm:$0xff]  ;;  %v447_v54 = vpop.f32.mrf.mxu2  ;;  %v467_v51 = vpop.f32.mrf.mxu3 }
 0x102   : > { %v921_v30 = vrot.slane %v812_v36, 1  ;;  %v2098_v1 = vadd.f32 %v1989_v13, %v1857_v56  ;;  %v4896_v10 = vrot.slane %v3316_v23, 2  ;;  %v923_v42 = vrot.slane %v813_v28, 1 }
 0x103   : > { %v1163_v44 = vrot.slane %v1054_v16, 2  ;;  %v2230_v38 = vsel %vm1131_vm1, %v2227_v62, %v2229_v61  ;;  %v4897_v37 = vrot.slane %v3330_v41, 1  ;;  %v1165_v11 = vrot.slane %v1055_v52, 2 }
 0x104   : > { %v2228_v3 = vsel %vm1131_vm1, %v4896_v10, %v2227_v62  ;;  %v2339_v8 = vadd.f32 %v2230_v38, %v2098_v1  ;;  %v924_v23 = vsel %vm889_vm0, %v921_v30, %v923_v42  ;;  %v3425_v62 = vadd.f32 %v3325_v35, %v3306_v9 }
 0x105   : > { %v2338_v29 = vadd.f32 %v2228_v3, %v2097_v20  ;;  %v922_v59 = vsel %vm889_vm0, %v4897_v37, %v921_v30  ;;  %v1164_v60 = vsel %vm1131_vm1, %v1162_v22, %v1163_v44  ;;  %v1015_v28 = vadd.f32 %v924_v23, %v741_v48  ;;  %v410_v3 = vpop.f32.mrf.mxu0 }
 0x106   : > { %v1014_v56 = vadd.f32 %v922_v59, %v3345_v0  ;;  %v1166_v41 = vsel %vm1131_vm1, %v1163_v44, %v1165_v11  ;;  %v1621_v55 = vmul.f32 %v2962_v6, %v3222_v25  ;;  %v3433_v61 = vmul.f32 %v2973_v15, %v3214_v40 }
 0x107   : > { %v2374_v36 = vmul.f32 %v3404_v19, %v2338_v29  ;;  %v2375_v0 = vmul.f32 %v3404_v19, %v2339_v8  ;;  %v3440_v9 = vmul.f32 %v2973_v15, %v3222_v25  ;;  %v1901_v35 = vmul.f32 %v2973_v15, %v3318_v33 }
 0x108   : > { %v3436_v22 = vadd.f32 %v1164_v60, %v1014_v56  ;;  %v3445_v52 = vadd.f32 %v1166_v41, %v1015_v28  ;;  %v3449_v13 = vadd.f32 %v3333_v14, %v3320_v63  ;;  %v4898_v20 = vrot.slane %v3294_v50, 1  ;;  %v430_v60 = vpop.f32.mrf.mxu1 }
 0x109   : > { %v2410_v16 = vadd.f32 %v3415_v2, %v2374_v36  ;;  %v4899_v48 = vrot.slane %v3083_v45, 1  ;;  %v1501_v1 = vrot.slane %v3310_v49, 1  ;;  %v2411_v10 = vadd.f32 %v3415_v2, %v2375_v0 }
 0x10a   : > { %v3462_v42 = vmul.f32 %v2982_v18, %v3214_v40  ;;  %v2142_v63 = vmul.f32 %v2982_v18, %v3318_v33  ;;  %v1902_v45 = vmul.f32 %v2973_v15, %v3378_v53  ;;  %v1740_v44 = vrot.slane %v3337_v26, 2 }
 0x10b   : > { %v3456_v30 = vsel %vm889_vm0, %v4899_v48, %v4898_v20  ;;  %v2442_v14 = vmax.f32 %v2410_v16, 0.0  ;;  %v1742_v38 = vrot.slane %v1621_v55, 2  ;;  %v2443_v29 = vmax.f32 %v2411_v10, 0.0  ;;  %v470_v16 = vpop.f32.mrf.mxu3 }
 0x10c   : > { %4900 = vst [vmem:[#allocation28_spill] sm:$0xff] %v3456_v30  ;;  %v1903_v49 = vmul.f32 %v2973_v15, %v3380_v34  ;;  %v2041_v37 = vrot.slane %v3433_v61, 1  ;;  %v2043_v59 = vrot.slane %v3440_v9, 1  ;;  %v2165_v40 = vmul.f32 %v2982_v18, %v3222_v25 }
 0x10d   : > { %v2005_v11 = vrot.slane %v1901_v35, 1  ;;  %2506 = vst [vmem:[%s2866_s9 + $0x8] sm:$0xff] %v2442_v14  ;;  %v2006_v8 = vrot.slane %v1902_v45, 1  ;;  %v2143_v26 = vmul.f32 %v2982_v18, %v3378_v53  ;;  %v2144_v56 = vmul.f32 %v2982_v18, %v3380_v34  ;;  %v450_v35 = vpop.f32.mrf.mxu2 }
 0x10e   : > { %2507 = vst [vmem:[%s2866_s9 + $0x18] sm:$0xff] %v2443_v29  ;;  %v2008_v23 = vrot.slane %v1903_v49, 1  ;;  %v2282_v36 = vrot.slane %v3462_v42, 2  ;;  %v2246_v28 = vrot.slane %v2142_v63, 2  ;;  %v503_v41 = vmul.f32 %v2845_v57, %v447_v54 }
 0x10f   : > { %v511_v55 = vmul.f32 %v2845_v57, %v467_v51  ;;  %v3485_v25 = vsel %vm889_vm0, %v2005_v11, %v2006_v8  ;;  %v2247_v0 = vrot.slane %v2143_v26, 2  ;;  %v2249_v9 = vrot.slane %v2144_v56, 2 }
 0x110   : > { %4901 = vst [vmem:[#allocation29_spill] sm:$0xff] %v3485_v25  ;;  %v3488_v61 = vsel %vm889_vm0, %v2006_v8, %v2008_v23  ;;  %v539_v20 = vadd.f32 %v2852_v58, %v503_v41  ;;  %v488_v10 = vmul.f32 %v2845_v57, %v410_v3  ;;  %v496_v54 = vmul.f32 %v2845_v57, %v430_v60  ;;  %v701_v60 = vld [vmem:[#allocation2 + $0xf0] sm:$0xff] }
 0x111   : > { %4902 = vst [vmem:[#allocation30_spill] sm:$0xff] %v3488_v61  ;;  %v547_v48 = vadd.f32 %v2852_v58, %v511_v55  ;;  %v3495_v51 = vsel %vm1131_vm1, %v2246_v28, %v2247_v0  ;;  %v3498_v42 = vsel %vm1131_vm1, %v2247_v0, %v2249_v9  ;;  %v504_v63 = vmul.f32 %v2845_v57, %v450_v35  ;;  %v412_v28 = vpop.f32.mrf.mxu0  ;;  %v4913_v35 = vld [vmem:[#allocation9_spill] sm:$0xff] }
 0x112   : > { %4903 = vst [vmem:[#allocation31_spill] sm:$0xff] %v3495_v51  ;;  %v512_v14 = vmul.f32 %v2845_v57, %v470_v16  ;;  %v571_v45 = vmax.f32 %v539_v20, 0.0  ;;  %v524_v49 = vadd.f32 %v2852_v58, %v488_v10  ;;  %v532_v11 = vadd.f32 %v2852_v58, %v496_v54 }
 0x113   : > { %4904 = vst [vmem:[#allocation32_spill] sm:$0xff] %v3498_v42  ;;  %v579_v29 = vmax.f32 %v547_v48, 0.0  ;;  %v4905_v3 = vrot.slane %v3294_v50, 1  ;;  %v4907_v23 = vrot.slane %v3086_v46, 2  ;;  %v3515_v56 = vsel %vm1131_vm1, %v1740_v44, %v1742_v38 }
 0x114   : > { %4909 = vst [vmem:[#allocation35_spill] sm:$0xff] %v3515_v56  ;;  %v2284_v57 = vrot.slane %v2165_v40, 2  ;;  %v1287_v58 = vmul.f32 %v2956_v4, %v3318_v33  ;;  %v556_v50 = vmax.f32 %v524_v49, 0.0  ;;  %v4910_v40 = vrot.slane %v3106_v47, 1 }
 0x115   : > { %v3507_v8 = vsel %vm889_vm0, %v4905_v3, %v1501_v1  ;;  %v3512_v26 = vsel %vm1131_vm1, %v4907_v23, %v1740_v44  ;;  %658 = vst [vmem:[#allocation2 + $0xf9] sm:$0xff] %v571_v45  ;;  %v3522_v1 = vld [vmem:[%s4820_s3] ss:$0 sm:$0xff]  ;;  %v3537_v55 = vsel %vm889_vm0, %v2041_v37, %v2043_v59  ;;  %v3541_v0 = vmul.f32 %v2959_v5, %v3318_v33 }
 0x116   : > { %4906 = vst [vmem:[#allocation33_spill] sm:$0xff] %v3507_v8  ;;  %v540_v46 = vadd.f32 %v3522_v1, %v504_v63  ;;  %v3528_v44 = vld [vmem:[%s4819_s2] ss:$0 sm:$0xff]  ;;  %v3534_v41 = vsel %vm889_vm0, %v4910_v40, %v2041_v37  ;;  %v3545_v9 = vmul.f32 %v2962_v6, %v3318_v33  ;;  %v4914_v16 = vrot.slane %v4913_v35, 2 }
 0x117   : > { %4908 = vst [vmem:[#allocation34_spill] sm:$0xff] %v3512_v26  ;;  %v489_v38 = vmul.f32 %v3528_v44, %v412_v28  ;;  %v823_v47 = vmul.f32 %v2914_v27, %v701_v60  ;;  %v564_v48 = vmax.f32 %v532_v11, 0.0  ;;  %v548_v37 = vadd.f32 %v3522_v1, %v512_v14 }
 0x118   : > { %4911 = vst [vmem:[#allocation36_spill] sm:$0xff] %v3534_v41  ;;  %v3551_v20 = vsel %vm1131_vm1, %v4914_v16, %v2282_v36  ;;  %v3556_v59 = vsel %vm1131_vm1, %v2282_v36, %v2284_v57  ;;  %v1065_v10 = vmul.f32 %v2924_v32, %v701_v60  ;;  %v1295_v54 = vmul.f32 %v2956_v4, %v701_v60  ;;  %v713_v16 = vld [vmem:[#allocation2 + $0x150] sm:$0xff] }
 0x119   : > { %4912 = vst [vmem:[#allocation37_spill] sm:$0xff] %v3537_v55  ;;  %v3561_v63 = vmul.f32 %v2959_v5, %v701_v60  ;;  %v3569_v49 = vmul.f32 %v2977_v17, %v3318_v33  ;;  %v572_v14 = vmax.f32 %v540_v46, 0.0  ;;  %v525_v36 = vadd.f32 %v3522_v1, %v489_v38 }
 0x11a   : > { %2493 = vst [vmem:[%s2866_s9 + $0x130] sm:$0xff] %v571_v45  ;;  %v3565_v45 = vadd.f32 %v1287_v58, %v3172_v39  ;;  %v3575_v23 = vmul.f32 %v2962_v6, %v701_v60  ;;  %v748_v39 = vmul.f32 %v2921_v31, %v701_v60  ;;  %v940_v33 = vrot.slane %v823_v47, 1 }
 0x11b   : > { %4915 = vst [vmem:[#allocation9_spill] sm:$0xff] %v3551_v20  ;;  %v3583_v57 = vmul.f32 %v2982_v18, %v701_v60  ;;  %v580_v28 = vmax.f32 %v548_v37, 0.0  ;;  %v1182_v58 = vrot.slane %v1065_v10, 2  ;;  %v3586_v46 = vadd.f32 %v1295_v54, %v3252_v24 }
 0x11c   : > { %666 = vst [vmem:[#allocation2 + $0x159] sm:$0xff] %v579_v29  ;;  %v3590_v40 = vmul.f32 %v2977_v17, %v701_v60  ;;  %v3592_v35 = vld [vmem:[#allocation2 + $0xf8] sm:$0xff]  ;;  %v557_v10 = vmax.f32 %v525_v36, 0.0  ;;  %v3606_v3 = vmul.f32 %v2921_v31, %v713_v16  ;;  %v3613_v36 = vmul.f32 %v2914_v27, %v713_v16 }
 0x11d   : > { %4916 = vst [vmem:[#allocation38_spill] sm:$0xff] %v3556_v59  ;;  %v824_v47 = vmul.f32 %v2914_v27, %v3592_v35  ;;  %v1066_v24 = vmul.f32 %v2924_v32, %v3592_v35  ;;  %v2266_v38 = vrot.slane %v3583_v57, 2  ;;  %v3620_v41 = vmul.f32 %v2924_v32, %v713_v16 }
 0x11e   : > { %2501 = vst [vmem:[%s2866_s9 + $0x1b0] sm:$0xff] %v579_v29  ;;  %v3578_v29 = vmul.f32 %v2973_v15, %v701_v60  ;;  %v1303_v60 = vmul.f32 %v2956_v4, %v713_v16 }
 0x11f   : > { %4917 = vst [vmem:[#allocation39_spill] sm:$0xff] %v3569_v49  ;;  %v941_v11 = vrot.slane %v824_v47, 1  ;;  %v1183_v20 = vrot.slane %v1066_v24, 2 }
 0x120   : > { %643 = vst [vmem:[#allocation2 + $0x49] sm:$0xff] %v556_v50  ;;  %v2025_v54 = vrot.slane %v3578_v29, 1  ;;  %v749_v29 = vmul.f32 %v2921_v31, %v3592_v35 }
 0x121   : > { %2478 = vst [vmem:[%s2866_s9 + $0x40] sm:$0xff] %v556_v50  ;;  %v3594_v50 = vld [vmem:[#allocation2 + $0x100] sm:$0x3]  ;;  %v1184_v47 = vsel %vm1131_vm1, %v1182_v58, %v1183_v20 }
 0x122   : > { %651 = vst [vmem:[#allocation2 + $0xa9] sm:$0xff] %v564_v48  ;;  %v825_v37 = vmul.f32 %v2914_v27, %v3594_v50  ;;  %v1612_v49 = vmul.f32 %v2962_v6, %v3594_v50 }
 0x123   : > { %4918 = vst [vmem:[#allocation40_spill] sm:$0xff] %v3590_v40  ;;  %v3651_v58 = vld [vmem:[#allocation2 + $0x158] sm:$0xff] }
 0x124   : > { %4919 = vst [vmem:[#allocation41_spill] sm:$0xff] %v3592_v35  ;;  %v943_v59 = vrot.slane %v825_v37, 1  ;;  %v3626_v37 = vmul.f32 %v2959_v5, %v713_v16  ;;  %v3677_v8 = vmul.f32 %v2914_v27, %v3651_v58 }
 0x125   : > { %2486 = vst [vmem:[%s2866_s9 + $0xc0] sm:$0xff] %v564_v48  ;;  %v1067_v48 = vmul.f32 %v2924_v32, %v3594_v50 }
 0x126   : > { %659 = vst [vmem:[#allocation2 + $0x109] sm:$0xff] %v572_v14  ;;  %v944_v57 = vsel %vm889_vm0, %v941_v11, %v943_v59  ;;  %v1358_v59 = vmul.f32 %v2959_v5, %v3378_v53 }
 0x127   : > { %4920 = vst [vmem:[#allocation42_spill] sm:$0xff] %v3606_v3  ;;  %v1185_v55 = vrot.slane %v1067_v48, 2  ;;  %v1023_v56 = vadd.f32 %v944_v57, %v749_v29  ;;  %v3634_v48 = vmul.f32 %v2977_v17, %v713_v16  ;;  %v1359_v29 = vmul.f32 %v2959_v5, %v3380_v34 }
 0x128   : > { %2494 = vst [vmem:[%s2866_s9 + $0x140] sm:$0xff] %v572_v14  ;;  %v942_v14 = vsel %vm889_vm0, %v940_v33, %v941_v11  ;;  %v3637_v33 = vmul.f32 %v2973_v15, %v713_v16  ;;  %v3642_v11 = vadd.f32 %v1303_v60, %v3425_v62  ;;  %v1915_v62 = vmul.f32 %v2973_v15, %v3594_v50 }
 0x129   : > { %667 = vst [vmem:[#allocation2 + $0x169] sm:$0xff] %v580_v28  ;;  %v1022_v24 = vadd.f32 %v942_v14, %v748_v39  ;;  %v1186_v26 = vsel %vm1131_vm1, %v1183_v20, %v1185_v55  ;;  %v3645_v39 = vmul.f32 %v2982_v18, %v713_v16  ;;  %v1914_v14 = vmul.f32 %v2973_v15, %v3592_v35 }
 0x12a   : > { %4921 = vst [vmem:[#allocation43_spill] sm:$0xff] %v3613_v36  ;;  %v3649_v20 = vadd.f32 %v1186_v26, %v1023_v56  ;;  %v3665_v26 = vmul.f32 %v2962_v6, %v3378_v53  ;;  %v3669_v56 = vmul.f32 %v2962_v6, %v3380_v34  ;;  %v2155_v60 = vmul.f32 %v2982_v18, %v3592_v35 }
 0x12b   : > { %2502 = vst [vmem:[%s2866_s9 + $0x1c0] sm:$0xff] %v580_v28  ;;  %v3631_v28 = vmul.f32 %v2962_v6, %v713_v16  ;;  %v3647_v55 = vadd.f32 %v1184_v47, %v1022_v24  ;;  %v3661_v16 = vld [vmem:[#allocation2 + $0x160] sm:$0x3]  ;;  %v2156_v57 = vmul.f32 %v2982_v18, %v3594_v50  ;;  %v1464_v47 = vrot.slane %v1358_v59, 1 }
 0x12c   : > { %4922 = vst [vmem:[#allocation44_spill] sm:$0xff] %v3620_v41  ;;  %v2026_v24 = vrot.slane %v1914_v14, 1  ;;  %v2267_v30 = vrot.slane %v2155_v60, 2  ;;  %v837_v40 = vmul.f32 %v2914_v27, %v3661_v16  ;;  %v3683_v34 = vmul.f32 %v2924_v32, %v3651_v58 }
 0x12d   : > { %644 = vst [vmem:[#allocation2 + $0x51] sm:$0xff] %v557_v10  ;;  %v2286_v14 = vrot.slane %v3645_v39, 2  ;;  %v1705_v39 = vrot.slane %v3665_v26, 2  ;;  %v4939_v3 = vrot.slane %v3561_v63, 1  ;;  %v3771_v63 = vld [vmem:[#allocation2 + $0xa8] sm:$0xff] }
 0x12e   : > { %2479 = vst [vmem:[%s2866_s9 + $0x50] sm:$0xff] %v557_v10  ;;  %v1288_v10 = vmul.f32 %v2956_v4, %v3378_v53  ;;  %v2269_v53 = vrot.slane %v2156_v57, 2  ;;  %v3686_v42 = vsel %vm889_vm0, %v2025_v54, %v2026_v24  ;;  %v3695_v60 = vsel %vm1131_vm1, %v2266_v38, %v2267_v30 }
 0x12f   : > { %4923 = vst [vmem:[#allocation45_spill] sm:$0xff] %v3634_v48  ;;  %v2028_v48 = vrot.slane %v1915_v62, 1  ;;  %v1079_v62 = vmul.f32 %v2924_v32, %v3661_v16  ;;  %v963_v51 = vrot.slane %v837_v40, 1  ;;  %v4826_v61 = vrot.slane %v3683_v34, 2 }
 0x130   : > { %4924 = vst [vmem:[#allocation46_spill] sm:$0xff] %v3651_v58  ;;  %v3698_v57 = vsel %vm1131_vm1, %v2267_v30, %v2269_v53  ;;  %v1503_v54 = vrot.slane %v3626_v37, 1  ;;  %v1466_v38 = vrot.slane %v1359_v29, 1  ;;  %v4933_v40 = vrot.slane %v3541_v0, 1 }
 0x131   : > { %4925 = vst [vmem:[#allocation47_spill] sm:$0xff] %v3677_v8  ;;  %v3689_v59 = vsel %vm889_vm0, %v2026_v24, %v2028_v48  ;;  %v757_v48 = vmul.f32 %v2921_v31, %v3651_v58  ;;  %v1205_v24 = vrot.slane %v1079_v62, 2  ;;  %v1370_v37 = vmul.f32 %v2959_v5, %v3592_v35 }
 0x132   : > { %4926 = vst [vmem:[#allocation48_spill] sm:$0xff] %v3683_v34  ;;  %v1465_v53 = vsel %vm889_vm0, %v4933_v40, %v1464_v47  ;;  %v1371_v29 = vmul.f32 %v2959_v5, %v3594_v50  ;;  %v1467_v26 = vsel %vm889_vm0, %v1464_v47, %v1466_v38  ;;  %v4937_v34 = vld [vmem:[#allocation19_spill] sm:$0xff] }
 0x133   : > { %4927 = vst [vmem:[#allocation49_spill] sm:$0xff] %v3686_v42  ;;  %v2045_v42 = vrot.slane %v3637_v33, 1  ;;  %v1206_v62 = vsel %vm1131_vm1, %v4826_v61, %v1205_v24  ;;  %v1296_v24 = vmul.f32 %v2956_v4, %v3592_v35  ;;  %v1484_v40 = vrot.slane %v1370_v37, 1 }
 0x134   : > { %4928 = vst [vmem:[#allocation50_spill] sm:$0xff] %v3689_v59  ;;  %v4931_v59 = vld [vmem:[#allocation12_spill] sm:$0xff]  ;;  %v2168_v61 = vmul.f32 %v2982_v18, %v3661_v16 }
 0x135   : > { %4929 = vst [vmem:[#allocation51_spill] sm:$0xff] %v3695_v60  ;;  %v1320_v25 = vadd.f32 %v1288_v10, %v4931_v59  ;;  %v4932_v60 = vrot.slane %v3677_v8, 1  ;;  %v1707_v10 = vrot.slane %v3669_v56, 2  ;;  %v1382_v59 = vmul.f32 %v2959_v5, %v3651_v58 }
 0x136   : > { %4930 = vst [vmem:[#allocation52_spill] sm:$0xff] %v3698_v57  ;;  %v1560_v56 = vadd.f32 %v1465_v53, %v3565_v45  ;;  %v1486_v57 = vrot.slane %v1371_v29, 1  ;;  %v1383_v45 = vmul.f32 %v2959_v5, %v3661_v16 }
 0x137   : > { %v964_v30 = vsel %vm889_vm0, %v4932_v60, %v963_v51  ;;  %v1926_v51 = vmul.f32 %v2973_v15, %v3651_v58  ;;  %v1927_v60 = vmul.f32 %v2973_v15, %v3661_v16  ;;  %v1504_v38 = vrot.slane %v1382_v59, 1 }
 0x138   : > { %v1031_v33 = vadd.f32 %v964_v30, %v757_v48  ;;  %v2167_v48 = vmul.f32 %v2982_v18, %v3651_v58  ;;  %v1611_v30 = vmul.f32 %v2962_v6, %v3592_v35  ;;  %v1328_v18 = vadd.f32 %v1296_v24, %v4937_v34 }
 0x139   : > { %v1304_v34 = vmul.f32 %v2956_v4, %v3651_v58  ;;  %v1708_v24 = vsel %vm1131_vm1, %v1705_v39, %v1707_v10 }
 0x13a   : > { %v3724_v0 = vadd.f32 %v1206_v62, %v1031_v33  ;;  %v2046_v33 = vrot.slane %v1926_v51, 1  ;;  %v2048_v62 = vrot.slane %v1927_v60, 1  ;;  %v2287_v47 = vrot.slane %v2167_v48, 2 }
 0x13b   : > { %v2289_v51 = vrot.slane %v2168_v61, 2  ;;  %v1561_v60 = vadd.f32 %v1467_v26, %v1320_v25  ;;  %v1485_v48 = vsel %vm889_vm0, %v4939_v3, %v1484_v40  ;;  %v1725_v59 = vrot.slane %v1611_v30, 2 }
 0x13c   : > { %4934 = vst [vmem:[#allocation12_spill] sm:$0xff] %v3724_v0  ;;  %v680_v0 = vld [vmem:[#allocation2 + $0x48] sm:$0xff]  ;;  %v3745_v53 = vsel %vm889_vm0, %v2045_v42, %v2046_v33  ;;  %v3748_v37 = vsel %vm889_vm0, %v2046_v33, %v2048_v62  ;;  %v3752_v29 = vsel %vm1131_vm1, %v2286_v14, %v2287_v47  ;;  %v3760_v42 = vmul.f32 %v2962_v6, %v3651_v58 }
 0x13d   : > { %4935 = vst [vmem:[#allocation53_spill] sm:$0xff] %v3745_v53  ;;  %v1281_v50 = vmul.f32 %v2956_v4, %v680_v0  ;;  %v3763_v33 = vsel %vm1131_vm1, %v2287_v47, %v2289_v51  ;;  %v1487_v25 = vsel %vm889_vm0, %v1484_v40, %v1486_v57  ;;  %v1727_v61 = vrot.slane %v1612_v49, 2 }
 0x13e   : > { %4936 = vst [vmem:[#allocation54_spill] sm:$0xff] %v3748_v37  ;;  %v4942_v3 = vrot.slane %v3545_v9, 2  ;;  %v1505_v30 = vsel %vm889_vm0, %v1503_v54, %v1504_v38  ;;  %v1506_v62 = vrot.slane %v1383_v45, 1  ;;  %v1744_v57 = vrot.slane %v3631_v28, 2 }
 0x13f   : > { %4938 = vst [vmem:[#allocation19_spill] sm:$0xff] %v3752_v29  ;;  %v3769_v14 = vadd.f32 %v1281_v50, %v3369_v43  ;;  %v3781_v40 = vadd.f32 %v1708_v24, %v1561_v60  ;;  %v1568_v43 = vadd.f32 %v1485_v48, %v3586_v46  ;;  %v1569_v47 = vadd.f32 %v1487_v25, %v1328_v18  ;;  %v3797_v46 = vld [vmem:[#allocation2 + $0x108] sm:$0xff] }
 0x140   : > { %4940 = vst [vmem:[#allocation55_spill] sm:$0xff] %v3760_v42  ;;  %v1706_v26 = vsel %vm1131_vm1, %v4942_v3, %v1705_v39  ;;  %v4943_v51 = vrot.slane %v3575_v23, 2  ;;  %v4828_v50 = vrot.slane %v3760_v42, 2  ;;  %v1289_v39 = vmul.f32 %v2956_v4, %v3771_v63 }
 0x141   : > { %4941 = vst [vmem:[#allocation56_spill] sm:$0xff] %v3763_v33  ;;  %v3779_v49 = vadd.f32 %v1706_v26, %v1560_v56  ;;  %v1728_v54 = vsel %vm1131_vm1, %v1725_v59, %v1727_v61  ;;  %v1336_v28 = vadd.f32 %v1304_v34, %v3449_v13  ;;  %v1576_v10 = vadd.f32 %v1505_v30, %v3642_v11 }
 0x142   : > { %v1726_v9 = vsel %vm1131_vm1, %v4943_v51, %v1725_v59  ;;  %v3795_v56 = vmul.f32 %v2962_v6, %v3661_v16  ;;  %v1507_v23 = vsel %vm889_vm0, %v1504_v38, %v1506_v62  ;;  %v802_v45 = vmul.f32 %v2914_v27, %v680_v0  ;;  %v681_v51 = vld [vmem:[#allocation2 + $0x50] sm:$0xff] }
 0x143   : > { %v1044_v60 = vmul.f32 %v2924_v32, %v680_v0  ;;  %v3803_v18 = vadd.f32 %v1289_v39, %v3436_v22  ;;  %v3805_v48 = vadd.f32 %v1726_v9, %v1568_v43  ;;  %v1348_v13 = vmul.f32 %v2959_v5, %v680_v0  ;;  %v3819_v22 = vld [vmem:[%s4821_s4 + $0x8] ss:$0 sm:$0xff]  ;;  %v682_v9 = vld [vmem:[#allocation2 + $0x58] sm:$0x3] }
 0x144   : > { %4944 = vst [vmem:[#allocation57_spill] sm:$0xff] %v3795_v56  ;;  %v1589_v11 = vmul.f32 %v2962_v6, %v680_v0  ;;  %v1826_v16 = vmul.f32 %v2977_v17, %v680_v0  ;;  %v1746_v59 = vsel %vm1131_vm1, %v1744_v57, %v4828_v50  ;;  %v3814_v38 = vmul.f32 %v2973_v15, %v680_v0 }
 0x145   : > { %v3822_v25 = vmul.f32 %v3819_v22, %v680_v0  ;;  %v1297_v61 = vmul.f32 %v2956_v4, %v3797_v46  ;;  %v3826_v34 = vadd.f32 %v1728_v54, %v1569_v47  ;;  %v3828_v3 = vadd.f32 %v1507_v23, %v1336_v28 }
 0x146   : > { %v3831_v24 = vadd.f32 %v1746_v59, %v1576_v10  ;;  %v734_v30 = vmul.f32 %v2921_v31, %v680_v0  ;;  %v905_v62 = vrot.slane %v802_v45, 1  ;;  %v1147_v57 = vrot.slane %v1044_v60, 2 }
 0x147   : > { %4945 = vst [vmem:[#allocation58_spill] sm:$0xff] %v3828_v3  ;;  %v3835_v43 = vadd.f32 %v1297_v61, %v3647_v55  ;;  %v1448_v39 = vrot.slane %v1348_v13, 1  ;;  %v1689_v50 = vrot.slane %v1589_v11, 2  ;;  %v1858_v47 = vadd.f32 %v1826_v16, %v3382_v12 }
 0x148   : > { %4946 = vst [vmem:[#allocation59_spill] sm:$0xff] %v3831_v24  ;;  %v3840_v54 = vmul.f32 %v2921_v31, %v3771_v63  ;;  %v1990_v28 = vrot.slane %v3814_v38, 1  ;;  %v3846_v0 = vmul.f32 %v2914_v27, %v3771_v63  ;;  %v3850_v55 = vmul.f32 %v2924_v32, %v3771_v63 }
 0x149   : > { %v3854_v23 = vmul.f32 %v2959_v5, %v3771_v63  ;;  %v803_v12 = vmul.f32 %v2914_v27, %v681_v51  ;;  %v804_v45 = vmul.f32 %v2914_v27, %v682_v9  ;;  %v1045_v60 = vmul.f32 %v2924_v32, %v681_v51 }
 0x14a   : > { %v3861_v13 = vmul.f32 %v2962_v6, %v3771_v63  ;;  %v3865_v11 = vmul.f32 %v2977_v17, %v3771_v63  ;;  %v735_v16 = vmul.f32 %v2921_v31, %v681_v51  ;;  %v1046_v59 = vmul.f32 %v2924_v32, %v682_v9 }
 0x14b   : > { %v906_v38 = vrot.slane %v803_v12, 1  ;;  %v908_v61 = vrot.slane %v804_v45, 1  ;;  %v1148_v26 = vrot.slane %v1045_v60, 2  ;;  %v1282_v10 = vmul.f32 %v2956_v4, %v681_v51 }
 0x14c   : > { %v1150_v33 = vrot.slane %v1046_v59, 2  ;;  %v1349_v29 = vmul.f32 %v2959_v5, %v681_v51  ;;  %v1350_v37 = vmul.f32 %v2959_v5, %v682_v9  ;;  %v1590_v53 = vmul.f32 %v2962_v6, %v681_v51 }
 0x14d   : > { %v907_v8 = vsel %vm889_vm0, %v905_v62, %v906_v38  ;;  %v909_v58 = vsel %vm889_vm0, %v906_v38, %v908_v61  ;;  %v1149_v35 = vsel %vm1131_vm1, %v1147_v57, %v1148_v26  ;;  %v1314_v24 = vadd.f32 %v1282_v10, %v3371_v21  ;;  %v432_v21 = vpop.f32.mrf.mxu1  ;;  %v472_v61 = vpop.f32.mrf.mxu3 }
 0x14e   : > { %v1008_v12 = vadd.f32 %v907_v8, %v734_v30  ;;  %v1009_v45 = vadd.f32 %v909_v58, %v735_v16  ;;  %v1151_v60 = vsel %vm1131_vm1, %v1148_v26, %v1150_v33  ;;  %v1449_v3 = vrot.slane %v1349_v29, 1  ;;  %v452_v30 = vpop.f32.mrf.mxu2 }
 0x14f   : > { %v1451_v59 = vrot.slane %v1350_v37, 1  ;;  %v1591_v42 = vmul.f32 %v2962_v6, %v682_v9  ;;  %v1690_v56 = vrot.slane %v1590_v53, 2  ;;  %v1827_v41 = vmul.f32 %v2977_v17, %v681_v51 }
 0x150   : > { %v3880_v36 = vadd.f32 %v1149_v35, %v1008_v12  ;;  %v3882_v62 = vadd.f32 %v1151_v60, %v1009_v45  ;;  %v1450_v38 = vsel %vm889_vm0, %v1448_v39, %v1449_v3  ;;  %v1893_v57 = vmul.f32 %v2973_v15, %v681_v51 }
 0x151   : > { %v1452_v8 = vsel %vm889_vm0, %v1449_v3, %v1451_v59  ;;  %v1554_v58 = vadd.f32 %v1450_v38, %v3769_v14  ;;  %v1691_v37 = vsel %vm1131_vm1, %v1689_v50, %v1690_v56  ;;  %v1692_v29 = vrot.slane %v1591_v42, 2 }
 0x152   : > { %v1555_v33 = vadd.f32 %v1452_v8, %v1314_v24  ;;  %v1859_v53 = vadd.f32 %v1827_v41, %v3384_v7  ;;  %v1894_v35 = vmul.f32 %v2973_v15, %v682_v9  ;;  %v1991_v26 = vrot.slane %v1893_v57, 1 }
 0x153   : > { %v1693_v10 = vsel %vm1131_vm1, %v1690_v56, %v1692_v29  ;;  %v3892_v39 = vadd.f32 %v1691_v37, %v1554_v58  ;;  %v2134_v16 = vmul.f32 %v3819_v22, %v681_v51  ;;  %v2135_v3 = vmul.f32 %v3819_v22, %v682_v9  ;;  %v415_v29 = vpop.f32.mrf.mxu0 }
 0x154   : > { %v3896_v14 = vadd.f32 %v1693_v10, %v1555_v33  ;;  %v1992_v42 = vsel %vm889_vm0, %v1990_v28, %v1991_v26  ;;  %v1993_v50 = vrot.slane %v1894_v35, 1  ;;  %v497_v7 = vmul.f32 %v3528_v44, %v432_v21 }
 0x155   : > { %v2099_v41 = vadd.f32 %v1992_v42, %v1858_v47  ;;  %v2232_v24 = vrot.slane %v2134_v16, 2  ;;  %v2234_v12 = vrot.slane %v2135_v3, 2  ;;  %v505_v45 = vmul.f32 %v3528_v44, %v452_v30  ;;  %v435_v3 = vpop.f32.mrf.mxu1 }
 0x156   : > { %v925_v56 = vrot.slane %v3846_v0, 1  ;;  %v1994_v60 = vsel %vm889_vm0, %v1991_v26, %v1993_v50  ;;  %v533_v51 = vadd.f32 %v3522_v1, %v497_v7  ;;  %v513_v9 = vmul.f32 %v3528_v44, %v472_v61 }
 0x157   : > { %v1167_v59 = vrot.slane %v3850_v55, 2  ;;  %v2100_v38 = vadd.f32 %v1994_v60, %v1859_v53  ;;  %v4947_v28 = vrot.slane %v3822_v25, 2  ;;  %v541_v47 = vadd.f32 %v3522_v1, %v505_v45 }
 0x158   : > { %v2235_v21 = vsel %vm1131_vm1, %v2232_v24, %v2234_v12  ;;  %v565_v58 = vmax.f32 %v533_v51, 0.0  ;;  %v549_v37 = vadd.f32 %v3522_v1, %v513_v9  ;;  %v3914_v33 = vmul.f32 %v2973_v15, %v3771_v63 }
 0x159   : > { %v2233_v57 = vsel %vm1131_vm1, %v4947_v28, %v2232_v24  ;;  %v2341_v35 = vadd.f32 %v2235_v21, %v2100_v38  ;;  %v573_v53 = vmax.f32 %v541_v47, 0.0  ;;  %v490_v25 = vmul.f32 %v3528_v44, %v415_v29 }
 0x15a   : > { %v2340_v8 = vadd.f32 %v2233_v57, %v2099_v41  ;;  %v1468_v26 = vrot.slane %v3854_v23, 1  ;;  %v3920_v30 = vmul.f32 %v3819_v22, %v3771_v63  ;;  %652 = vst [vmem:[#allocation2 + $0xb1] sm:$0xff] %v565_v58  ;;  %v581_v16 = vmax.f32 %v549_v37, 0.0 }
 0x15b   : > { %v3925_v61 = vmul.f32 %v2914_v27, %v3797_v46  ;;  %v2377_v42 = vmul.f32 %v3404_v19, %v2341_v35  ;;  %2487 = vst [vmem:[%s2866_s9 + $0xd0] sm:$0xff] %v565_v58  ;;  %v526_v50 = vadd.f32 %v3522_v1, %v490_v25  ;;  %v498_v7 = vmul.f32 %v3528_v44, %v435_v3 }
 0x15c   : > { %v2376_v10 = vmul.f32 %v3404_v19, %v2340_v8  ;;  %v3933_v63 = vmul.f32 %v2924_v32, %v3797_v46  ;;  %v3937_v41 = vmul.f32 %v2959_v5, %v3797_v46  ;;  %v3941_v24 = vmul.f32 %v2962_v6, %v3797_v46  ;;  %660 = vst [vmem:[#allocation2 + $0x111] sm:$0xff] %v573_v53 }
 0x15d   : > { %v1842_v45 = vmul.f32 %v2977_v17, %v3797_v46  ;;  %v3948_v44 = vmul.f32 %v2973_v15, %v3797_v46  ;;  %v2413_v60 = vadd.f32 %v3415_v2, %v2377_v42  ;;  %2495 = vst [vmem:[%s2866_s9 + $0x150] sm:$0xff] %v573_v53  ;;  %v534_v51 = vadd.f32 %v3522_v1, %v498_v7 }
 0x15e   : > { %v2412_v12 = vadd.f32 %v3415_v2, %v2376_v10  ;;  %v1709_v9 = vrot.slane %v3861_v13, 2  ;;  %v3956_v38 = vadd.f32 %v3865_v11, %v3779_v49  ;;  %668 = vst [vmem:[#allocation2 + $0x171] sm:$0xff] %v581_v16  ;;  %v558_v57 = vmax.f32 %v526_v50, 0.0 }
 0x15f   : > { %v2010_v47 = vrot.slane %v3914_v33, 1  ;;  %v2251_v21 = vrot.slane %v3920_v30, 2  ;;  %v3962_v8 = vmul.f32 %v2921_v31, %v3797_v46  ;;  %v2445_v58 = vmax.f32 %v2413_v60, 0.0  ;;  %2503 = vst [vmem:[%s2866_s9 + $0x1d0] sm:$0xff] %v581_v16 }
 0x160   : > { %v2444_v28 = vmax.f32 %v2412_v12, 0.0  ;;  %v566_v11 = vmax.f32 %v534_v51, 0.0  ;;  %v3971_v29 = vadd.f32 %v1842_v45, %v3805_v48  ;;  %v3976_v53 = vmul.f32 %v3819_v22, %v3797_v46  ;;  %645 = vst [vmem:[#allocation2 + $0x61] sm:$0xff] %v558_v57 }
 0x161   : > { %2509 = vst [vmem:[%s2866_s9 + $0x38] sm:$0xff] %v2445_v58  ;;  %v693_v25 = vld [vmem:[#allocation2 + $0xb0] sm:$0xff]  ;;  %v694_v10 = vld [vmem:[#allocation2 + $0xb8] sm:$0x3] }
 0x162   : > { %2508 = vst [vmem:[%s2866_s9 + $0x28] sm:$0xff] %v2444_v28  ;;  %v743_v16 = vmul.f32 %v2921_v31, %v693_v25  ;;  %v815_v3 = vmul.f32 %v2914_v27, %v693_v25  ;;  %v816_v42 = vmul.f32 %v2914_v27, %v694_v10  ;;  %v1057_v50 = vmul.f32 %v2924_v32, %v693_v25 }
 0x163   : > { %v1058_v48 = vmul.f32 %v2924_v32, %v694_v10  ;;  %v1290_v7 = vmul.f32 %v2956_v4, %v693_v25  ;;  %v1361_v12 = vmul.f32 %v2959_v5, %v693_v25  ;;  %v1362_v46 = vmul.f32 %v2959_v5, %v694_v10  ;;  %2480 = vst [vmem:[%s2866_s9 + $0x60] sm:$0xff] %v558_v57 }
 0x164   : > { %v926_v45 = vrot.slane %v815_v3, 1  ;;  %v928_v60 = vrot.slane %v816_v42, 1  ;;  %v1168_v51 = vrot.slane %v1057_v50, 2  ;;  %v1602_v28 = vmul.f32 %v2962_v6, %v693_v25  ;;  %653 = vst [vmem:[#allocation2 + $0xc1] sm:$0xff] %v566_v11 }
 0x165   : > { %v1170_v58 = vrot.slane %v1058_v48, 2  ;;  %v1322_v35 = vadd.f32 %v1290_v7, %v3445_v52  ;;  %v1469_v37 = vrot.slane %v1361_v12, 1  ;;  %v1471_v49 = vrot.slane %v1362_v46, 1  ;;  %2488 = vst [vmem:[%s2866_s9 + $0xe0] sm:$0xff] %v566_v11 }
 0x166   : > { %v927_v13 = vsel %vm889_vm0, %v925_v56, %v926_v45  ;;  %v929_v1 = vsel %vm889_vm0, %v926_v45, %v928_v60  ;;  %v1169_v57 = vsel %vm1131_vm1, %v1167_v59, %v1168_v51  ;;  %v1603_v3 = vmul.f32 %v2962_v6, %v694_v10 }
 0x167   : > { %v1016_v42 = vadd.f32 %v927_v13, %v3840_v54  ;;  %v1017_v50 = vadd.f32 %v929_v1, %v743_v16  ;;  %v1171_v52 = vsel %vm1131_vm1, %v1168_v51, %v1170_v58  ;;  %v1470_v0 = vsel %vm889_vm0, %v1468_v26, %v1469_v37  ;;  %v4011_v1 = vld [vmem:[#allocation2 + $0x110] sm:$0xff] }
 0x168   : > { %v1472_v56 = vsel %vm889_vm0, %v1469_v37, %v1471_v49  ;;  %v1562_v48 = vadd.f32 %v1470_v0, %v3803_v18  ;;  %v1710_v7 = vrot.slane %v1602_v28, 2  ;;  %v1712_v55 = vrot.slane %v1603_v3, 2  ;;  %v4017_v18 = vld [vmem:[#allocation2 + $0x118] sm:$0x3] }
 0x169   : > { %v4006_v12 = vadd.f32 %v1169_v57, %v1016_v42  ;;  %v4008_v59 = vadd.f32 %v1171_v52, %v1017_v50  ;;  %v1563_v11 = vadd.f32 %v1472_v56, %v1322_v35  ;;  %v1835_v54 = vmul.f32 %v2977_v17, %v693_v25 }
 0x16a   : > { %v1711_v13 = vsel %vm1131_vm1, %v1709_v9, %v1710_v7  ;;  %v1713_v23 = vsel %vm1131_vm1, %v1710_v7, %v1712_v55  ;;  %v1905_v26 = vmul.f32 %v2973_v15, %v693_v25  ;;  %v1906_v49 = vmul.f32 %v2973_v15, %v694_v10 }
 0x16b   : > { %v4019_v37 = vadd.f32 %v1711_v13, %v1562_v48  ;;  %v4021_v16 = vadd.f32 %v1713_v23, %v1563_v11  ;;  %v1867_v35 = vadd.f32 %v1835_v54, %v3781_v40  ;;  %v2146_v46 = vmul.f32 %v3819_v22, %v693_v25 }
 0x16c   : > { %v2011_v45 = vrot.slane %v1905_v26, 1  ;;  %v2013_v60 = vrot.slane %v1906_v49, 1  ;;  %v2147_v9 = vmul.f32 %v3819_v22, %v694_v10  ;;  %v751_v51 = vmul.f32 %v2921_v31, %v4011_v1 }
 0x16d   : > { %v2252_v28 = vrot.slane %v2146_v46, 2  ;;  %v827_v58 = vmul.f32 %v2914_v27, %v4011_v1  ;;  %v828_v57 = vmul.f32 %v2914_v27, %v4017_v18  ;;  %v1069_v3 = vmul.f32 %v2924_v32, %v4011_v1 }
 0x16e   : > { %v2012_v40 = vsel %vm889_vm0, %v2010_v47, %v2011_v45  ;;  %v2014_v25 = vsel %vm889_vm0, %v2011_v45, %v2013_v60  ;;  %v2254_v10 = vrot.slane %v2147_v9, 2  ;;  %v1070_v42 = vmul.f32 %v2924_v32, %v4017_v18 }
 0x16f   : > { %v2107_v50 = vadd.f32 %v2012_v40, %v3956_v38  ;;  %v2108_v52 = vadd.f32 %v2014_v25, %v1867_v35  ;;  %v2253_v0 = vsel %vm1131_vm1, %v2251_v21, %v2252_v28  ;;  %v946_v56 = vrot.slane %v827_v58, 1 }
 0x170   : > { %v2255_v48 = vsel %vm1131_vm1, %v2252_v28, %v2254_v10  ;;  %v948_v7 = vrot.slane %v828_v57, 1  ;;  %v1188_v33 = vrot.slane %v1069_v3, 2  ;;  %v1190_v55 = vrot.slane %v1070_v42, 2 }
 0x171   : > { %v2348_v47 = vadd.f32 %v2253_v0, %v2107_v50  ;;  %v2349_v11 = vadd.f32 %v2255_v48, %v2108_v52  ;;  %v4948_v54 = vrot.slane %v3925_v61, 1  ;;  %v1298_v38 = vmul.f32 %v2956_v4, %v4011_v1  ;;  %v4078_v52 = vld [vmem:[#allocation2 + $0x168] sm:$0xff] }
 0x172   : > { %v949_v23 = vsel %vm889_vm0, %v946_v56, %v948_v7  ;;  %v4949_v21 = vrot.slane %v3933_v63, 2  ;;  %v1191_v49 = vsel %vm1131_vm1, %v1188_v33, %v1190_v55  ;;  %v1373_v9 = vmul.f32 %v2959_v5, %v4011_v1 }
 0x173   : > { %v947_v13 = vsel %vm889_vm0, %v4948_v54, %v946_v56  ;;  %v2384_v35 = vmul.f32 %v3404_v19, %v2348_v47  ;;  %v2385_v46 = vmul.f32 %v3404_v19, %v2349_v11  ;;  %v1025_v61 = vadd.f32 %v949_v23, %v751_v51 }
 0x174   : > { %v1024_v30 = vadd.f32 %v947_v13, %v3962_v8  ;;  %v1189_v26 = vsel %vm1131_vm1, %v4949_v21, %v1188_v33  ;;  %v1330_v45 = vadd.f32 %v1298_v38, %v3649_v20  ;;  %v1374_v8 = vmul.f32 %v2959_v5, %v4017_v18 }
 0x175   : > { %v1614_v63 = vmul.f32 %v2962_v6, %v4011_v1  ;;  %v2420_v28 = vadd.f32 %v3415_v2, %v2384_v35  ;;  %v2421_v58 = vadd.f32 %v3415_v2, %v2385_v46  ;;  %v4069_v19 = vadd.f32 %v1191_v49, %v1025_v61  ;;  %v4955_v35 = vld [vmem:[#allocation43_spill] sm:$0xff] }
 0x176   : > { %v4059_v60 = vadd.f32 %v1189_v26, %v1024_v30  ;;  %v1615_v20 = vmul.f32 %v2962_v6, %v4017_v18  ;;  %v1489_v51 = vrot.slane %v1373_v9, 1  ;;  %v1491_v57 = vrot.slane %v1374_v8, 1  ;;  %v4114_v9 = vld [vmem:[#allocation2 + $0x170] sm:$0xff]  ;;  %v4957_v8 = vld [vmem:[#allocation44_spill] sm:$0xff] }
 0x177   : > { %4950 = vst [vmem:[#allocation60_spill] sm:$0xff] %v4069_v19  ;;  %v1730_v3 = vrot.slane %v1614_v63, 2  ;;  %v1843_v40 = vmul.f32 %v2977_v17, %v4011_v1  ;;  %v2452_v25 = vmax.f32 %v2420_v28, 0.0  ;;  %v2453_v10 = vmax.f32 %v2421_v58, 0.0  ;;  %v4958_v28 = vld [vmem:[#allocation57_spill] sm:$0xff]  ;;  %v4977_v63 = vld [vmem:[#allocation48_spill] sm:$0xff]  ;;  %v437_v19 = vpop.f32.mrf.mxu1 }
 0x178   : > { %v1732_v42 = vrot.slane %v1615_v20, 2  ;;  %v1917_v50 = vmul.f32 %v2973_v15, %v4011_v1  ;;  %v2271_v2 = vrot.slane %v3976_v53, 2  ;;  %v4951_v0 = vrot.slane %v3937_v41, 1  ;;  %4956 = vst [vmem:[#allocation43_spill] sm:$0xff] %v4114_v9 }
 0x179   : > { %v1492_v48 = vsel %vm889_vm0, %v1489_v51, %v1491_v57  ;;  %v4952_v7 = vrot.slane %v3941_v24, 2  ;;  %2516 = vst [vmem:[%s2866_s9 + $0xa8] sm:$0xff] %v2452_v25  ;;  %v1918_v53 = vmul.f32 %v2973_v15, %v4017_v18  ;;  %v1875_v41 = vadd.f32 %v1843_v40, %v3826_v34  ;;  %v718_v40 = vld [vmem:[#allocation2 + $0x178] sm:$0x3] }
 0x17a   : > { %v1490_v56 = vsel %vm889_vm0, %v4951_v0, %v1489_v51  ;;  %v1571_v47 = vadd.f32 %v1492_v48, %v1330_v45  ;;  %v1733_v11 = vsel %vm1131_vm1, %v1730_v3, %v1732_v42  ;;  %2517 = vst [vmem:[%s2866_s9 + $0xb8] sm:$0xff] %v2453_v10  ;;  %v2031_v54 = vrot.slane %v1917_v50, 1  ;;  %v2687_v25 = vld [vmem:[#allocation2 + $0x98] sm:$0xff]  ;;  %v4962_v42 = vld [vmem:[#allocation58_spill] sm:$0xff] }
 0x17b   : > { %v1731_v33 = vsel %vm1131_vm1, %v4952_v7, %v1730_v3  ;;  %v1570_v55 = vadd.f32 %v1490_v56, %v3835_v43  ;;  %v2158_v13 = vmul.f32 %v3819_v22, %v4011_v1  ;;  %v2159_v24 = vmul.f32 %v3819_v22, %v4017_v18  ;;  %v4963_v56 = vld [vmem:[#allocation59_spill] sm:$0xff] }
 0x17c   : > { %v1850_v38 = vmul.f32 %v2977_v17, %v4078_v52  ;;  %v4102_v23 = vadd.f32 %v1733_v11, %v1571_v47  ;;  %v2033_v30 = vrot.slane %v1918_v53, 1  ;;  %v1928_v21 = vmul.f32 %v2973_v15, %v4078_v52 }
 0x17d   : > { %v4100_v43 = vadd.f32 %v1731_v33, %v1570_v55  ;;  %v4954_v34 = vrot.slane %v3948_v44, 1  ;;  %v2272_v49 = vrot.slane %v2158_v13, 2  ;;  %v2274_v1 = vrot.slane %v2159_v24, 2  ;;  %v4960_v44 = vld [vmem:[#allocation55_spill] sm:$0xff] }
 0x17e   : > { %4953 = vst [vmem:[#allocation61_spill] sm:$0xff] %v4102_v23  ;;  %v960_v46 = vrot.slane %v4955_v35, 1  ;;  %v2169_v18 = vmul.f32 %v3819_v22, %v4078_v52  ;;  %v2034_v61 = vsel %vm889_vm0, %v2031_v54, %v2033_v30  ;;  %v4959_v58 = vrot.slane %v4958_v28, 2  ;;  %v4150_v30 = vld [vmem:[%s4823_s6] ss:$0 sm:$0xff]  ;;  %v417_v23 = vpop.f32.mrf.mxu0 }
 0x17f   : > { %v2032_v26 = vsel %vm889_vm0, %v4954_v34, %v2031_v54  ;;  %v4961_v20 = vrot.slane %v4960_v44, 2  ;;  %v2116_v57 = vadd.f32 %v2034_v61, %v1875_v41  ;;  %v2273_v3 = vsel %vm1131_vm1, %v2271_v2, %v2272_v49  ;;  %v4134_v2 = vld [vmem:[%s4822_s5] ss:$0 sm:$0xff] }
 0x180   : > { %v2115_v45 = vadd.f32 %v2032_v26, %v3971_v29  ;;  %v4124_v10 = vmul.f32 %v2687_v25, %v2977_v17  ;;  %v2275_v50 = vsel %vm1131_vm1, %v2272_v49, %v2274_v1  ;;  %v1882_v48 = vadd.f32 %v1850_v38, %v4963_v56 }
 0x181   : > { %v1748_v51 = vsel %vm1131_vm1, %v4961_v20, %v4959_v58  ;;  %v2050_v7 = vrot.slane %v1928_v21, 1  ;;  %v2357_v33 = vadd.f32 %v2275_v50, %v2116_v57  ;;  %v1851_v55 = vmul.f32 %v2977_v17, %v4114_v9 }
 0x182   : > { %v1818_v29 = vadd.f32 %v1748_v51, %v4962_v42  ;;  %v2356_v0 = vadd.f32 %v2273_v3, %v2115_v45  ;;  %v2291_v47 = vrot.slane %v2169_v18, 2  ;;  %v1929_v53 = vmul.f32 %v2973_v15, %v4114_v9  ;;  %v4964_v51 = vld [vmem:[#allocation41_spill] sm:$0xff] }
 0x183   : > { %v1930_v41 = vmul.f32 %v2973_v15, %v718_v40  ;;  %v2393_v54 = vmul.f32 %v4134_v2, %v2357_v33  ;;  %v4143_v13 = vmul.f32 %v2914_v27, %v4114_v9  ;;  %v2170_v38 = vmul.f32 %v3819_v22, %v4114_v9  ;;  %v4966_v33 = vld [vmem:[#allocation46_spill] sm:$0xff] }
 0x184   : > { %v2392_v11 = vmul.f32 %v4134_v2, %v2356_v0  ;;  %v1883_v24 = vadd.f32 %v1851_v55, %v1818_v29  ;;  %v840_v34 = vmul.f32 %v2914_v27, %v718_v40  ;;  %v2051_v26 = vrot.slane %v1929_v53, 1 }
 0x185   : > { %v2053_v49 = vrot.slane %v1930_v41, 1  ;;  %v2429_v1 = vadd.f32 %v4150_v30, %v2393_v54  ;;  %v4157_v18 = vmul.f32 %v2959_v5, %v4114_v9  ;;  %v2171_v61 = vmul.f32 %v3819_v22, %v718_v40 }
 0x186   : > { %v2428_v21 = vadd.f32 %v4150_v30, %v2392_v11  ;;  %v2292_v45 = vrot.slane %v2170_v38, 2  ;;  %v1386_v58 = vmul.f32 %v2959_v5, %v718_v40  ;;  %v2052_v44 = vsel %vm889_vm0, %v2050_v7, %v2051_v26 }
 0x187   : > { %v2054_v20 = vsel %vm889_vm0, %v2051_v26, %v2053_v49  ;;  %v4165_v57 = vmul.f32 %v2977_v17, %v4964_v51  ;;  %v2461_v3 = vmax.f32 %v2429_v1, 0.0  ;;  %v2123_v25 = vadd.f32 %v2052_v44, %v1882_v48  ;;  %v2690_v26 = vld [vmem:[#allocation2 + $0x80] sm:$0xff] }
 0x188   : > { %v2460_v28 = vmax.f32 %v2428_v21, 0.0  ;;  %v2124_v42 = vadd.f32 %v2054_v20, %v1883_v24  ;;  %v4837_v29 = vrot.slane %v4143_v13, 1  ;;  %v968_v50 = vrot.slane %v840_v34, 1  ;;  %v683_v24 = vld [vmem:[#allocation2 + $0x60] sm:$0xff] }
 0x189   : > { %4965 = vst [vmem:[#allocation44_spill] sm:$0xff] %v4165_v57  ;;  %v2293_v0 = vsel %vm1131_vm1, %v2291_v47, %v2292_v45  ;;  %v2294_v56 = vrot.slane %v2171_v61, 2  ;;  %v4172_v55 = vmul.f32 %v2977_v17, %v4966_v33  ;;  %v4176_v7 = vmul.f32 %v2914_v27, %v4078_v52  ;;  %v695_v51 = vld [vmem:[#allocation2 + $0xc0] sm:$0xff] }
 0x18a   : > { %2524 = vst [vmem:[%s2866_s9 + $0x128] sm:$0xff] %v2460_v28  ;;  %v4180_v11 = vmul.f32 %v2924_v32, %v718_v40  ;;  %v2364_v48 = vadd.f32 %v2293_v0, %v2123_v25  ;;  %v4836_v53 = vrot.slane %v4157_v18, 1  ;;  %v1511_v41 = vrot.slane %v1386_v58, 1 }
 0x18b   : > { %4967 = vst [vmem:[#allocation57_spill] sm:$0xff] %v4172_v55  ;;  %v4184_v54 = vmul.f32 %v2962_v6, %v718_v40  ;;  %v2295_v47 = vsel %vm1131_vm1, %v2292_v45, %v2294_v56  ;;  %v4189_v38 = vmul.f32 %v2959_v5, %v4078_v52  ;;  %v4193_v49 = vmul.f32 %v2690_v26, %v2956_v4 }
 0x18c   : > { %2525 = vst [vmem:[%s2866_s9 + $0x138] sm:$0xff] %v2461_v3  ;;  %v2365_v21 = vadd.f32 %v2295_v47, %v2124_v42  ;;  %v2400_v34 = vmul.f32 %v4134_v2, %v2364_v48  ;;  %v4198_v1 = vsel %vm889_vm0, %v4837_v29, %v968_v50  ;;  %v4201_v40 = vmul.f32 %v2914_v27, %v683_v24  ;;  %v455_v50 = vpop.f32.mrf.mxu2  ;;  %v475_v47 = vpop.f32.mrf.mxu3 }
 0x18d   : > { %4968 = vst [vmem:[#allocation55_spill] sm:$0xff] %v4180_v11  ;;  %v4204_v61 = vmul.f32 %v2924_v32, %v683_v24  ;;  %v4207_v45 = vmul.f32 %v2690_v26, %v2977_v17  ;;  %v1283_v44 = vmul.f32 %v2956_v4, %v683_v24  ;;  %v4213_v20 = vmul.f32 %v2959_v5, %v683_v24 }
 0x18e   : > { %4969 = vst [vmem:[#allocation58_spill] sm:$0xff] %v4184_v54  ;;  %v2401_v28 = vmul.f32 %v4134_v2, %v2365_v21  ;;  %v2436_v58 = vadd.f32 %v4150_v30, %v2400_v34  ;;  %v4219_v3 = vsel %vm889_vm0, %v4836_v53, %v1511_v41  ;;  %v4223_v42 = vmul.f32 %v2962_v6, %v683_v24  ;;  %v4246_v53 = vld [vmem:[%s4819_s2] ss:$0 sm:$0xff] }
 0x18f   : > { %4970 = vst [vmem:[#allocation59_spill] sm:$0xff] %v4198_v1  ;;  %v1828_v33 = vmul.f32 %v2977_v17, %v683_v24  ;;  %v4228_v48 = vmul.f32 %v2973_v15, %v683_v24  ;;  %v4231_v21 = vmul.f32 %v2921_v31, %v683_v24  ;;  %v4236_v26 = vmul.f32 %v3819_v22, %v683_v24  ;;  %v4270_v34 = vld [vmem:[%s4820_s3] ss:$0 sm:$0xff] }
 0x190   : > { %4971 = vst [vmem:[#allocation41_spill] sm:$0xff] %v4219_v3  ;;  %v2437_v0 = vadd.f32 %v4150_v30, %v2401_v28  ;;  %v2468_v56 = vmax.f32 %v2436_v58, 0.0  ;;  %v4240_v28 = vadd.f32 %v1283_v44, %v3880_v36  ;;  %v506_v41 = vmul.f32 %v4246_v53, %v455_v50 }
 0x191   : > { %v4251_v24 = vmul.f32 %v2914_v27, %v695_v51  ;;  %v4261_v58 = vadd.f32 %v1828_v33, %v3892_v39  ;;  %v4265_v50 = vmul.f32 %v2924_v32, %v695_v51  ;;  %4974 = vst [vmem:[#allocation46_spill] sm:$0xff] %v4270_v34  ;;  %v4282_v29 = vmul.f32 %v2924_v32, %v4114_v9 }
 0x192   : > { %v2469_v25 = vmax.f32 %v2437_v0, 0.0  ;;  %2532 = vst [vmem:[%s2866_s9 + $0x1a8] sm:$0xff] %v2468_v56  ;;  %v514_v0 = vmul.f32 %v4246_v53, %v475_v47  ;;  %v4972_v56 = vld [vmem:[#allocation47_spill] sm:$0xff]  ;;  %v542_v47 = vadd.f32 %v4270_v34, %v506_v41  ;;  %v4978_v55 = vrot.slane %v4977_v63, 2 }
 0x193   : > { %v4973_v36 = vrot.slane %v4972_v56, 1  ;;  %v1291_v56 = vmul.f32 %v2956_v4, %v695_v51  ;;  %4976 = vst [vmem:[#allocation47_spill] sm:$0xff] %v4282_v29  ;;  %v4979_v41 = vrot.slane %v4957_v8, 2  ;;  %v1836_v54 = vmul.f32 %v2977_v17, %v695_v51 }
 0x194   : > { %2533 = vst [vmem:[%s2866_s9 + $0x1b8] sm:$0xff] %v2469_v25  ;;  %v550_v39 = vadd.f32 %v4270_v34, %v514_v0  ;;  %v4975_v25 = vld [vmem:[#allocation42_spill] sm:$0xff]  ;;  %v965_v8 = vrot.slane %v4176_v7, 1  ;;  %v491_v0 = vmul.f32 %v4246_v53, %v417_v23  ;;  %v4308_v3 = vmul.f32 %v3819_v22, %v695_v51 }
 0x195   : > { %v962_v44 = vsel %vm889_vm0, %v960_v46, %v4973_v36  ;;  %v4275_v46 = vmul.f32 %v2921_v31, %v695_v51  ;;  %v574_v36 = vmax.f32 %v542_v47, 0.0  ;;  %v1204_v35 = vsel %vm1131_vm1, %v4979_v41, %v4978_v55 }
 0x196   : > { %v1030_v33 = vadd.f32 %v962_v44, %v4975_v25  ;;  %v4291_v44 = vmul.f32 %v2959_v5, %v695_v51  ;;  %v4294_v25 = vmul.f32 %v2962_v6, %v695_v51  ;;  %v582_v47 = vmax.f32 %v550_v39, 0.0 }
 0x197   : > { %661 = vst [vmem:[#allocation2 + $0x121] sm:$0xff] %v574_v36  ;;  %v4300_v55 = vmul.f32 %v2973_v15, %v695_v51  ;;  %v1080_v41 = vmul.f32 %v2924_v32, %v4078_v52  ;;  %v499_v39 = vmul.f32 %v4246_v53, %v437_v19  ;;  %v4980_v11 = vrot.slane %v4143_v13, 1 }
 0x198   : > { %v1272_v63 = vadd.f32 %v1204_v35, %v1030_v33  ;;  %2496 = vst [vmem:[%s2866_s9 + $0x160] sm:$0xff] %v574_v36  ;;  %v1305_v33 = vmul.f32 %v2956_v4, %v4078_v52  ;;  %v1508_v36 = vrot.slane %v4189_v38, 1  ;;  %v4319_v23 = vmul.f32 %v2962_v6, %v4114_v9 }
 0x199   : > { %669 = vst [vmem:[#allocation2 + $0x181] sm:$0xff] %v582_v47  ;;  %v967_v7 = vsel %vm889_vm0, %v965_v8, %v4980_v11  ;;  %v527_v19 = vadd.f32 %v4270_v34, %v491_v0  ;;  %v535_v51 = vadd.f32 %v4270_v34, %v499_v39  ;;  %v4325_v13 = vadd.f32 %v1291_v56, %v4006_v12  ;;  %v2694_v34 = vld [vmem:[#allocation2 + $0x140] sm:$0xff] }
 0x19a   : > { %4981 = vst [vmem:[#allocation42_spill] sm:$0xff] %v4319_v23  ;;  %v758_v8 = vmul.f32 %v2921_v31, %v4078_v52  ;;  %v1625_v38 = vmul.f32 %v2962_v6, %v4078_v52  ;;  %v1207_v35 = vrot.slane %v1080_v41, 2  ;;  %v4982_v1 = vrot.slane %v4157_v18, 1 }
 0x19b   : > { %2504 = vst [vmem:[%s2866_s9 + $0x1e0] sm:$0xff] %v582_v47  ;;  %v559_v9 = vmax.f32 %v527_v19, 0.0  ;;  %v567_v0 = vmax.f32 %v535_v51, 0.0  ;;  %v4337_v12 = vadd.f32 %v1836_v54, %v4019_v37  ;;  %v1337_v11 = vadd.f32 %v1305_v33, %v1272_v63 }
 0x19c   : > { %v1510_v47 = vsel %vm889_vm0, %v1508_v36, %v4982_v1  ;;  %v1032_v56 = vadd.f32 %v967_v7, %v758_v8  ;;  %v4983_v41 = vrot.slane %v4282_v29, 2  ;;  %v4846_v1 = vrot.slane %v4319_v23, 2 }
 0x19d   : > { %646 = vst [vmem:[#allocation2 + $0x69] sm:$0xff] %v559_v9  ;;  %v1578_v54 = vadd.f32 %v1510_v47, %v1337_v11  ;;  %v1749_v63 = vrot.slane %v1625_v38, 2  ;;  %v4381_v39 = vmul.f32 %v2694_v34, %v2956_v4 }
 0x19e   : > { %v707_v52 = vld [vmem:[#allocation2 + $0x120] sm:$0xff]  ;;  %v1209_v18 = vsel %vm1131_vm1, %v1207_v35, %v4983_v41  ;;  %2481 = vst [vmem:[%s2866_s9 + $0x70] sm:$0xff] %v559_v9 }
 0x19f   : > { %v4346_v36 = vmul.f32 %v2914_v27, %v707_v52  ;;  %v4349_v37 = vmul.f32 %v2924_v32, %v707_v52  ;;  %v1299_v7 = vmul.f32 %v2956_v4, %v707_v52  ;;  %v4354_v33 = vmul.f32 %v2959_v5, %v707_v52  ;;  %654 = vst [vmem:[#allocation2 + $0xc9] sm:$0xff] %v567_v0  ;;  %v2693_v9 = vld [vmem:[#allocation2 + $0xe0] sm:$0xff] }
 0x1a0   : > { %v4357_v35 = vmul.f32 %v2962_v6, %v707_v52  ;;  %v1844_v19 = vmul.f32 %v2977_v17, %v707_v52  ;;  %v4361_v51 = vmul.f32 %v2973_v15, %v707_v52  ;;  %v4364_v8 = vmul.f32 %v3819_v22, %v707_v52  ;;  %2489 = vst [vmem:[%s2866_s9 + $0xf0] sm:$0xff] %v567_v0  ;;  %v4372_v47 = vld [vmem:[#allocation2 + $0x180] sm:$0xff] }
 0x1a1   : > { %4984 = vst [vmem:[#allocation48_spill] sm:$0xff] %v4346_v36  ;;  %v4366_v11 = vadd.f32 %v1209_v18, %v1032_v56  ;;  %v4369_v38 = vmul.f32 %v2693_v9, %v2956_v4  ;;  %v1751_v41 = vsel %vm1131_vm1, %v1749_v63, %v4846_v1  ;;  %v4378_v57 = vmul.f32 %v2693_v9, %v2977_v17  ;;  %v457_v63 = vpop.f32.mrf.mxu2 }
 0x1a2   : > { %4985 = vst [vmem:[#allocation62_spill] sm:$0xff] %v4349_v37  ;;  %v4384_v56 = vmul.f32 %v2694_v34, %v2977_v17  ;;  %v4387_v18 = vmul.f32 %v2921_v31, %v707_v52  ;;  %v4391_v23 = vadd.f32 %v1751_v41, %v1578_v54  ;;  %v4394_v9 = vadd.f32 %v1299_v7, %v4059_v60 }
 0x1a3   : > { %4986 = vst [vmem:[#allocation63_spill] sm:$0xff] %v4354_v33  ;;  %v4399_v34 = vadd.f32 %v1844_v19, %v4100_v43  ;;  %v4405_v29 = vmul.f32 %v2956_v4, %v4372_v47  ;;  %v4409_v54 = vmul.f32 %v2959_v5, %v4372_v47  ;;  %v4413_v41 = vmul.f32 %v2962_v6, %v4372_v47 }
 0x1a4   : > { %4987 = vst [vmem:[#allocation64_spill] sm:$0xff] %v4357_v35  ;;  %v684_v60 = vld [vmem:[#allocation2 + $0x68] sm:$0xff]  ;;  %v685_v7 = vld [vmem:[#allocation2 + $0x70] sm:$0x3]  ;;  %v4417_v43 = vmul.f32 %v2977_v17, %v4372_v47 }
 0x1a5   : > { %4988 = vst [vmem:[#allocation65_spill] sm:$0xff] %v4361_v51  ;;  %v737_v19 = vmul.f32 %v2921_v31, %v684_v60  ;;  %v806_v52 = vmul.f32 %v2914_v27, %v684_v60  ;;  %v1048_v1 = vmul.f32 %v2924_v32, %v684_v60  ;;  %v1049_v0 = vmul.f32 %v2924_v32, %v685_v7 }
 0x1a6   : > { %4989 = vst [vmem:[#allocation66_spill] sm:$0xff] %v4364_v8  ;;  %v1284_v8 = vmul.f32 %v2956_v4, %v684_v60  ;;  %v1353_v51 = vmul.f32 %v2959_v5, %v685_v7  ;;  %v1593_v35 = vmul.f32 %v2962_v6, %v684_v60 }
 0x1a7   : > { %4990 = vst [vmem:[#allocation67_spill] sm:$0xff] %v4366_v11  ;;  %v5003_v11 = vrot.slane %v4204_v61, 2 }
 0x1a8   : > { %4991 = vst [vmem:[#allocation68_spill] sm:$0xff] %v4372_v47  ;;  %v1316_v37 = vadd.f32 %v1284_v8, %v3882_v62  ;;  %v5004_v62 = vrot.slane %v4213_v20, 1 }
 0x1a9   : > { %4992 = vst [vmem:[#allocation69_spill] sm:$0xff] %v4381_v39  ;;  %v807_v39 = vmul.f32 %v2914_v27, %v685_v7 }
 0x1aa   : > { %4993 = vst [vmem:[#allocation70_spill] sm:$0xff] %v4384_v56  ;;  %v4421_v56 = vmul.f32 %v4246_v53, %v457_v63  ;;  %v1153_v63 = vrot.slane %v1048_v1, 2 }
 0x1ab   : > { %4994 = vst [vmem:[#allocation71_spill] sm:$0xff] %v4387_v18  ;;  %v913_v33 = vrot.slane %v807_v39, 1  ;;  %v1155_v18 = vrot.slane %v1049_v0, 2 }
 0x1ac   : > { %4995 = vst [vmem:[#allocation72_spill] sm:$0xff] %v4391_v23  ;;  %v1594_v23 = vmul.f32 %v2962_v6, %v685_v7  ;;  %v1154_v47 = vsel %vm1131_vm1, %v5003_v11, %v1153_v63  ;;  %v1829_v11 = vmul.f32 %v2977_v17, %v684_v60 }
 0x1ad   : > { %4996 = vst [vmem:[#allocation73_spill] sm:$0xff] %v4394_v9  ;;  %v911_v9 = vrot.slane %v806_v52, 1  ;;  %v1156_v39 = vsel %vm1131_vm1, %v1153_v63, %v1155_v18  ;;  %v1695_v52 = vrot.slane %v1593_v35, 2  ;;  %v1896_v18 = vmul.f32 %v2973_v15, %v684_v60  ;;  %v5007_v63 = vld [vmem:[#allocation10_spill] sm:$0xff] }
 0x1ae   : > { %4997 = vst [vmem:[#allocation74_spill] sm:$0xff] %v4399_v34  ;;  %v1352_v34 = vmul.f32 %v2959_v5, %v684_v60 }
 0x1af   : > { %4998 = vst [vmem:[#allocation75_spill] sm:$0xff] %v4405_v29  ;;  %v914_v29 = vsel %vm889_vm0, %v911_v9, %v913_v33  ;;  %v1697_v33 = vrot.slane %v1594_v23, 2 }
 0x1b0   : > { %4999 = vst [vmem:[#allocation76_spill] sm:$0xff] %v4409_v54  ;;  %v1454_v36 = vrot.slane %v1352_v34, 1  ;;  %v1011_v0 = vadd.f32 %v914_v29, %v737_v19 }
 0x1b1   : > { %5000 = vst [vmem:[#allocation77_spill] sm:$0xff] %v4413_v41  ;;  %v5002_v41 = vrot.slane %v4201_v40, 1  ;;  %v1698_v20 = vsel %vm1131_vm1, %v1695_v52, %v1697_v33 }
 0x1b2   : > { %5001 = vst [vmem:[#allocation78_spill] sm:$0xff] %v4417_v43  ;;  %v1456_v43 = vrot.slane %v1353_v51, 1  ;;  %v1455_v51 = vsel %vm889_vm0, %v5004_v62, %v1454_v36  ;;  %v1253_v61 = vadd.f32 %v1156_v39, %v1011_v0  ;;  %v5009_v62 = vld [vmem:[#allocation4_spill] sm:$0xff] }
 0x1b3   : > { %v912_v54 = vsel %vm889_vm0, %v5002_v41, %v911_v9  ;;  %v1556_v40 = vadd.f32 %v1455_v51, %v4240_v28  ;;  %v5006_v28 = vld [vmem:[#allocation3_spill] sm:$0xff]  ;;  %v1861_v41 = vadd.f32 %v1829_v11, %v3896_v14  ;;  %v4470_v11 = vld [vmem:[#allocation2 + $0xc8] sm:$0xff] }
 0x1b4   : > { %v1010_v1 = vadd.f32 %v912_v54, %v4231_v21  ;;  %v1457_v8 = vsel %vm889_vm0, %v1454_v36, %v1456_v43  ;;  %v5005_v21 = vrot.slane %v4223_v42, 2  ;;  %v1897_v54 = vmul.f32 %v2973_v15, %v685_v7 }
 0x1b5   : > { %v1557_v34 = vadd.f32 %v1457_v8, %v1316_v37  ;;  %v2137_v36 = vmul.f32 %v3819_v22, %v684_v60  ;;  %v1318_v23 = vadd.f32 %v4193_v49, %v1253_v61  ;;  %v1996_v43 = vrot.slane %v1896_v18, 1  ;;  %v5013_v18 = vld [vmem:[#allocation15_spill] sm:$0xff] }
 0x1b6   : > { %v1252_v9 = vadd.f32 %v1154_v47, %v1010_v1  ;;  %v1696_v29 = vsel %vm1131_vm1, %v5005_v21, %v1695_v52  ;;  %v1998_v19 = vrot.slane %v1897_v54, 1  ;;  %v2138_v42 = vmul.f32 %v3819_v22, %v685_v7  ;;  %v5008_v1 = vld [vmem:[#allocation11_spill] sm:$0xff]  ;;  %v5011_v52 = vld [vmem:[#allocation13_spill] sm:$0xff] }
 0x1b7   : > { %v1797_v35 = vadd.f32 %v1696_v29, %v1556_v40  ;;  %v1798_v47 = vadd.f32 %v1698_v20, %v1557_v34  ;;  %v1559_v0 = vadd.f32 %v5008_v1, %v1318_v23  ;;  %v5010_v8 = vrot.slane %v4228_v48, 1  ;;  %v5020_v1 = vld [vmem:[#allocation30_spill] sm:$0xff] }
 0x1b8   : > { %v1317_v37 = vadd.f32 %v5006_v28, %v1252_v9  ;;  %v1999_v40 = vsel %vm889_vm0, %v1996_v43, %v1998_v19  ;;  %v2237_v34 = vrot.slane %v2137_v36, 2  ;;  %v2239_v14 = vrot.slane %v2138_v42, 2  ;;  %v5012_v9 = vld [vmem:[#allocation14_spill] sm:$0xff]  ;;  %v5016_v36 = vld [vmem:[#allocation39_spill] sm:$0xff] }
 0x1b9   : > { %v1862_v51 = vadd.f32 %v5009_v62, %v1797_v35  ;;  %v1863_v60 = vadd.f32 %v4207_v45, %v1798_v47  ;;  %v1997_v49 = vsel %vm889_vm0, %v5010_v8, %v1996_v43  ;;  %v1800_v22 = vadd.f32 %v5012_v9, %v1559_v0  ;;  %v5014_v45 = vld [vmem:[#allocation16_spill] sm:$0xff]  ;;  %v5017_v47 = vld [vmem:[#allocation17_spill] sm:$0xff]  ;;  %v5018_v43 = vld [vmem:[#allocation18_spill] sm:$0xff] }
 0x1ba   : > { %v1558_v39 = vadd.f32 %v5007_v63, %v1317_v37  ;;  %v2101_v7 = vadd.f32 %v1997_v49, %v4261_v58  ;;  %v2102_v61 = vadd.f32 %v1999_v40, %v1861_v41  ;;  %v5015_v48 = vrot.slane %v4236_v26, 2  ;;  %v4480_v58 = vld [vmem:[#allocation2 + $0xd0] sm:$0x3]  ;;  %v5019_v63 = vld [vmem:[#allocation29_spill] sm:$0xff] }
 0x1bb   : > { %v2103_v21 = vadd.f32 %v5013_v18, %v1862_v51  ;;  %v2104_v29 = vadd.f32 %v5014_v45, %v1863_v60  ;;  %v2240_v54 = vsel %vm1131_vm1, %v2237_v34, %v2239_v14  ;;  %v1865_v37 = vadd.f32 %v4124_v10, %v1800_v22  ;;  %v5021_v40 = vld [vmem:[#allocation31_spill] sm:$0xff]  ;;  %v5022_v14 = vld [vmem:[#allocation32_spill] sm:$0xff] }
 0x1bc   : > { %v1799_v33 = vadd.f32 %v5011_v52, %v1558_v39  ;;  %v2238_v20 = vsel %vm1131_vm1, %v5015_v48, %v2237_v34  ;;  %v2343_v35 = vadd.f32 %v2240_v54, %v2102_v61  ;;  %v745_v42 = vmul.f32 %v2921_v31, %v4470_v11 }
 0x1bd   : > { %v2342_v23 = vadd.f32 %v2238_v20, %v2101_v7  ;;  %v2344_v41 = vadd.f32 %v5017_v47, %v2103_v21  ;;  %v2345_v19 = vadd.f32 %v5018_v43, %v2104_v29  ;;  %v818_v26 = vmul.f32 %v2914_v27, %v4470_v11 }
 0x1be   : > { %v1864_v28 = vadd.f32 %v5016_v36, %v1799_v33  ;;  %v2106_v0 = vadd.f32 %v5020_v1, %v1865_v37  ;;  %v2379_v62 = vmul.f32 %v4134_v2, %v2343_v35  ;;  %v819_v8 = vmul.f32 %v2914_v27, %v4480_v58 }
 0x1bf   : > { %v2378_v10 = vmul.f32 %v4134_v2, %v2342_v23  ;;  %v2380_v51 = vmul.f32 %v4134_v2, %v2344_v41  ;;  %v2381_v60 = vmul.f32 %v4134_v2, %v2345_v19  ;;  %v931_v49 = vrot.slane %v818_v26, 1 }
 0x1c0   : > { %v2105_v39 = vadd.f32 %v5019_v63, %v1864_v28  ;;  %v2347_v52 = vadd.f32 %v5022_v14, %v2106_v0  ;;  %v2415_v9 = vadd.f32 %v4150_v30, %v2379_v62  ;;  %v5023_v61 = vrot.slane %v4251_v24, 1 }
 0x1c1   : > { %v2414_v33 = vadd.f32 %v4150_v30, %v2378_v10  ;;  %v2416_v22 = vadd.f32 %v4150_v30, %v2380_v51  ;;  %v2417_v7 = vadd.f32 %v4150_v30, %v2381_v60  ;;  %v933_v21 = vrot.slane %v819_v8, 1 }
 0x1c2   : > { %v2346_v34 = vadd.f32 %v5021_v40, %v2105_v39  ;;  %v932_v18 = vsel %vm889_vm0, %v5023_v61, %v931_v49  ;;  %v2383_v29 = vmul.f32 %v4134_v2, %v2347_v52  ;;  %v2447_v20 = vmax.f32 %v2415_v9, 0.0 }
 0x1c3   : > { %v2446_v48 = vmax.f32 %v2414_v33, 0.0  ;;  %v2448_v54 = vmax.f32 %v2416_v22, 0.0  ;;  %v2449_v36 = vmax.f32 %v2417_v7, 0.0  ;;  %v934_v28 = vsel %vm889_vm0, %v931_v49, %v933_v21 }
 0x1c4   : > { %v2382_v45 = vmul.f32 %v4134_v2, %v2346_v34  ;;  %v1018_v37 = vadd.f32 %v932_v18, %v4275_v46  ;;  %v2419_v23 = vadd.f32 %v4150_v30, %v2383_v29  ;;  %v1019_v35 = vadd.f32 %v934_v28, %v745_v42  ;;  %2511 = vst [vmem:[%s2866_s9 + $0x58] sm:$0xff] %v2447_v20  ;;  %v5027_v18 = vld [vmem:[#allocation5_spill] sm:$0xff] }
 0x1c5   : > { %2510 = vst [vmem:[%s2866_s9 + $0x48] sm:$0xff] %v2446_v48  ;;  %v1060_v47 = vmul.f32 %v2924_v32, %v4470_v11  ;;  %v1061_v41 = vmul.f32 %v2924_v32, %v4480_v58  ;;  %v1292_v43 = vmul.f32 %v2956_v4, %v4470_v11  ;;  %v1364_v46 = vmul.f32 %v2959_v5, %v4470_v11 }
 0x1c6   : > { %v2418_v24 = vadd.f32 %v4150_v30, %v2382_v45  ;;  %v1365_v19 = vmul.f32 %v2959_v5, %v4480_v58  ;;  %v2451_v42 = vmax.f32 %v2419_v23, 0.0  ;;  %2512 = vst [vmem:[%s2866_s9 + $0x68] sm:$0xff] %v2448_v54  ;;  %v1605_v39 = vmul.f32 %v2962_v6, %v4470_v11 }
 0x1c7   : > { %v1173_v63 = vrot.slane %v1060_v47, 2  ;;  %2513 = vst [vmem:[%s2866_s9 + $0x78] sm:$0xff] %v2449_v36  ;;  %v1175_v1 = vrot.slane %v1061_v41, 2  ;;  %v1324_v0 = vadd.f32 %v1292_v43, %v4008_v59  ;;  %v1474_v10 = vrot.slane %v1364_v46, 1  ;;  %v5028_v36 = vld [vmem:[#allocation20_spill] sm:$0xff]  ;;  %v5030_v47 = vld [vmem:[#allocation6_spill] sm:$0xff] }
 0x1c8   : > { %v2450_v26 = vmax.f32 %v2418_v24, 0.0  ;;  %v1476_v62 = vrot.slane %v1365_v19, 1  ;;  %v5024_v51 = vrot.slane %v4265_v50, 2  ;;  %v1606_v8 = vmul.f32 %v2962_v6, %v4480_v58  ;;  %2515 = vst [vmem:[%s2866_s9 + $0x98] sm:$0xff] %v2451_v42  ;;  %v5029_v24 = vld [vmem:[#allocation21_spill] sm:$0xff]  ;;  %v5031_v46 = vld [vmem:[#allocation22_spill] sm:$0xff] }
 0x1c9   : > { %v1715_v49 = vrot.slane %v1605_v39, 2  ;;  %v1837_v40 = vmul.f32 %v2977_v17, %v4470_v11  ;;  %v1176_v34 = vsel %vm1131_vm1, %v1173_v63, %v1175_v1  ;;  %v5025_v59 = vrot.slane %v4291_v44, 1  ;;  %v5033_v39 = vld [vmem:[#allocation23_spill] sm:$0xff] }
 0x1ca   : > { %2514 = vst [vmem:[%s2866_s9 + $0x88] sm:$0xff] %v2450_v26  ;;  %v1174_v60 = vsel %vm1131_vm1, %v5024_v51, %v1173_v63  ;;  %v1477_v33 = vsel %vm889_vm0, %v1474_v10, %v1476_v62  ;;  %v1261_v50 = vadd.f32 %v1176_v34, %v1019_v35  ;;  %v5026_v7 = vrot.slane %v4294_v25, 2  ;;  %v4556_v25 = vld [vmem:[%s4821_s4 + $0x8] ss:$0 sm:$0xff]  ;;  %v5034_v62 = vld [vmem:[#allocation40_spill] sm:$0xff]  ;;  %v477_v34 = vpop.f32.mrf.mxu3 }
 0x1cb   : > { %v1260_v14 = vadd.f32 %v1174_v60, %v1018_v37  ;;  %v1475_v52 = vsel %vm889_vm0, %v5025_v59, %v1474_v10  ;;  %v1565_v22 = vadd.f32 %v1477_v33, %v1324_v0  ;;  %v1717_v45 = vrot.slane %v1606_v8, 2  ;;  %v5035_v8 = vld [vmem:[#allocation24_spill] sm:$0xff] }
 0x1cc   : > { %v1564_v9 = vadd.f32 %v1475_v52, %v4325_v13  ;;  %v1716_v61 = vsel %vm1131_vm1, %v5026_v7, %v1715_v49  ;;  %v1869_v29 = vadd.f32 %v1837_v40, %v4021_v16  ;;  %v1908_v44 = vmul.f32 %v2973_v15, %v4470_v11  ;;  %v5038_v52 = vld [vmem:[#allocation25_spill] sm:$0xff]  ;;  %v5040_v7 = vld [vmem:[#allocation26_spill] sm:$0xff] }
 0x1cd   : > { %v1325_v21 = vadd.f32 %v5027_v18, %v1260_v14  ;;  %v1326_v48 = vadd.f32 %v4369_v38, %v1261_v50  ;;  %v1909_v54 = vmul.f32 %v2973_v15, %v4480_v58  ;;  %v2149_v13 = vmul.f32 %v4556_v25, %v4470_v11  ;;  %v5037_v14 = vld [vmem:[#allocation44_spill] sm:$0xff]  ;;  %v5041_v18 = vld [vmem:[#allocation46_spill] sm:$0xff] }
 0x1ce   : > { %v1805_v20 = vadd.f32 %v1716_v61, %v1564_v9  ;;  %v1718_v16 = vsel %vm1131_vm1, %v1715_v49, %v1717_v45  ;;  %v2016_v37 = vrot.slane %v1908_v44, 1  ;;  %v2150_v38 = vmul.f32 %v4556_v25, %v4480_v58  ;;  %v5039_v9 = vld [vmem:[#allocation49_spill] sm:$0xff]  ;;  %v5042_v45 = vld [vmem:[#allocation50_spill] sm:$0xff] }
 0x1cf   : > { %v1566_v28 = vadd.f32 %v5028_v36, %v1325_v21  ;;  %v1567_v23 = vadd.f32 %v5029_v24, %v1326_v48  ;;  %v1806_v35 = vadd.f32 %v1718_v16, %v1565_v22  ;;  %v2018_v43 = vrot.slane %v1909_v54, 1  ;;  %v5044_v54 = vld [vmem:[#allocation51_spill] sm:$0xff] }
 0x1d0   : > { %v1870_v41 = vadd.f32 %v5030_v47, %v1805_v20  ;;  %v5032_v26 = vrot.slane %v4300_v55, 1  ;;  %v2257_v42 = vrot.slane %v2149_v13, 2  ;;  %v2259_v63 = vrot.slane %v2150_v38, 2 }
 0x1d1   : > { %v1807_v19 = vadd.f32 %v5031_v46, %v1566_v28  ;;  %v1808_v1 = vadd.f32 %v5033_v39, %v1567_v23  ;;  %v1871_v0 = vadd.f32 %v4378_v57, %v1806_v35  ;;  %v2019_v58 = vsel %vm889_vm0, %v2016_v37, %v2018_v43  ;;  %v5047_v43 = vld [vmem:[#allocation43_spill] sm:$0xff] }
 0x1d2   : > { %v2017_v11 = vsel %vm889_vm0, %v5032_v26, %v2016_v37  ;;  %v2110_v60 = vadd.f32 %v2019_v58, %v1869_v29  ;;  %v2111_v49 = vadd.f32 %v5035_v8, %v1870_v41  ;;  %v5036_v40 = vrot.slane %v4308_v3, 2  ;;  %v5043_v29 = vld [vmem:[#allocation27_spill] sm:$0xff]  ;;  %v5045_v37 = vld [vmem:[#allocation68_spill] sm:$0xff] }
 0x1d3   : > { %v2109_v10 = vadd.f32 %v2017_v11, %v4337_v12  ;;  %v1872_v51 = vadd.f32 %v5034_v62, %v1807_v19  ;;  %v1873_v59 = vadd.f32 %v5037_v14, %v1808_v1  ;;  %v2112_v33 = vadd.f32 %v5038_v52, %v1871_v0  ;;  %v5048_v0 = vld [vmem:[#allocation59_spill] sm:$0xff]  ;;  %v5052_v14 = vld [vmem:[#allocation77_spill] sm:$0xff] }
 0x1d4   : > { %v2258_v55 = vsel %vm1131_vm1, %v5036_v40, %v2257_v42  ;;  %v2260_v57 = vsel %vm1131_vm1, %v2257_v42, %v2259_v63  ;;  %v2352_v61 = vadd.f32 %v5040_v7, %v2111_v49  ;;  %v543_v21 = vadd.f32 %v5041_v18, %v4421_v56  ;;  %v5046_v56 = vld [vmem:[#allocation52_spill] sm:$0xff]  ;;  %v5049_v8 = vld [vmem:[#allocation67_spill] sm:$0xff] }
 0x1d5   : > { %v2350_v50 = vadd.f32 %v2258_v55, %v2109_v10  ;;  %v2113_v22 = vadd.f32 %v5039_v9, %v1872_v51  ;;  %v2351_v12 = vadd.f32 %v2260_v57, %v2110_v60  ;;  %v2114_v3 = vadd.f32 %v5042_v45, %v1873_v59  ;;  %v5050_v49 = vld [vmem:[#allocation75_spill] sm:$0xff]  ;;  %v5051_v55 = vld [vmem:[#allocation76_spill] sm:$0xff] }
 0x1d6   : > { %v2353_v44 = vadd.f32 %v5043_v29, %v2112_v33  ;;  %v515_v20 = vmul.f32 %v4246_v53, %v477_v34  ;;  %v2388_v28 = vmul.f32 %v4134_v2, %v2352_v61  ;;  %v575_v16 = vmax.f32 %v543_v21, 0.0  ;;  %v4626_v33 = vld [vmem:[#allocation2 + $0x1a8] sm:$0x3]  ;;  %v5053_v9 = vld [vmem:[#allocation55_spill] sm:$0xff]  ;;  %v5058_v45 = vld [vmem:[#allocation72_spill] sm:$0xff] }
 0x1d7   : > { %v2386_v48 = vmul.f32 %v4134_v2, %v2350_v50  ;;  %v2354_v13 = vadd.f32 %v5044_v54, %v2113_v22  ;;  %v2387_v36 = vmul.f32 %v4134_v2, %v2351_v12  ;;  %v4595_v38 = vmul.f32 %v2973_v15, %v5045_v37  ;;  %v5055_v12 = vld [vmem:[#allocation47_spill] sm:$0xff] }
 0x1d8   : > { %v2355_v24 = vadd.f32 %v5046_v56, %v2114_v3  ;;  %v2389_v23 = vmul.f32 %v4134_v2, %v2353_v44  ;;  %v2424_v41 = vadd.f32 %v4150_v30, %v2388_v28  ;;  %662 = vst [vmem:[#allocation2 + $0x129] sm:$0xff] %v575_v16  ;;  %v759_v46 = vmul.f32 %v2921_v31, %v5047_v43  ;;  %v5059_v3 = vld [vmem:[#allocation78_spill] sm:$0xff]  ;;  %v5064_v56 = vld [vmem:[#allocation41_spill] sm:$0xff] }
 0x1d9   : > { %v2422_v35 = vadd.f32 %v4150_v30, %v2386_v48  ;;  %v2390_v53 = vmul.f32 %v4134_v2, %v2354_v13  ;;  %v2423_v47 = vadd.f32 %v4150_v30, %v2387_v36  ;;  %2497 = vst [vmem:[%s2866_s9 + $0x170] sm:$0xff] %v575_v16  ;;  %v551_v42 = vadd.f32 %v5041_v18, %v515_v20  ;;  %v5057_v18 = vld [vmem:[#allocation12_spill] sm:$0xff]  ;;  %v5060_v20 = vld [vmem:[#allocation58_spill] sm:$0xff] }
 0x1da   : > { %v2391_v19 = vmul.f32 %v4134_v2, %v2355_v24  ;;  %v2425_v26 = vadd.f32 %v4150_v30, %v2389_v23  ;;  %v2456_v1 = vmax.f32 %v2424_v41, 0.0  ;;  %v1033_v58 = vadd.f32 %v5048_v0, %v759_v46  ;;  %v5062_v13 = vld [vmem:[#allocation42_spill] sm:$0xff]  ;;  %v4654_v23 = vld [vmem:[#allocation2] sm:$0xff] }
 0x1db   : > { %v2454_v11 = vmax.f32 %v2422_v35, 0.0  ;;  %v2426_v63 = vadd.f32 %v4150_v30, %v2390_v53  ;;  %v2455_v39 = vmax.f32 %v2423_v47, 0.0  ;;  %v4613_v10 = vmul.f32 %v4556_v25, %v5045_v37 }
 0x1dc   : > { %v2427_v62 = vadd.f32 %v4150_v30, %v2391_v19  ;;  %v2457_v51 = vmax.f32 %v2425_v26, 0.0  ;;  %v1306_v60 = vmul.f32 %v2956_v4, %v5047_v43  ;;  %v4621_v40 = vadd.f32 %v5050_v49, %v5049_v8  ;;  %2520 = vst [vmem:[%s2866_s9 + $0xe8] sm:$0xff] %v2456_v1  ;;  %v5066_v8 = vld [vmem:[#allocation48_spill] sm:$0xff] }
 0x1dd   : > { %2518 = vst [vmem:[%s2866_s9 + $0xc8] sm:$0xff] %v2454_v11  ;;  %v1513_v34 = vrot.slane %v5051_v55, 1  ;;  %v1754_v59 = vrot.slane %v5052_v14, 2  ;;  %v2458_v52 = vmax.f32 %v2426_v63, 0.0  ;;  %v583_v50 = vmax.f32 %v551_v42, 0.0 }
 0x1de   : > { %2519 = vst [vmem:[%s2866_s9 + $0xd8] sm:$0xff] %v2455_v39  ;;  %v2459_v57 = vmax.f32 %v2427_v62, 0.0  ;;  %v5054_v22 = vrot.slane %v5053_v9, 2  ;;  %v5056_v7 = vrot.slane %v5055_v12, 2  ;;  %v1338_v21 = vadd.f32 %v1306_v60, %v5057_v18  ;;  %v5065_v62 = vld [vmem:[#allocation60_spill] sm:$0xff] }
 0x1df   : > { %v4637_v29 = vadd.f32 %v5059_v3, %v5058_v45  ;;  %v2055_v44 = vrot.slane %v4595_v38, 1  ;;  %2521 = vst [vmem:[%s2866_s9 + $0xf8] sm:$0xff] %v2457_v51  ;;  %v5061_v54 = vrot.slane %v5060_v20, 2  ;;  %v5063_v36 = vrot.slane %v5062_v13, 2  ;;  %v708_v16 = vld [vmem:[#allocation2 + $0x128] sm:$0xff] }
 0x1e0   : > { %v1211_v61 = vsel %vm1131_vm1, %v5056_v7, %v5054_v22  ;;  %2522 = vst [vmem:[%s2866_s9 + $0x108] sm:$0xff] %v2458_v52  ;;  %v709_v37 = vld [vmem:[#allocation2 + $0x130] sm:$0x3]  ;;  %v4652_v24 = vadd.f32 %v5064_v56, %v1338_v21  ;;  %v4658_v35 = vmul.f32 %v4654_v23, %v2977_v17  ;;  %v4662_v53 = vmul.f32 %v4654_v23, %v2973_v15 }
 0x1e1   : > { %v4641_v48 = vadd.f32 %v1211_v61, %v1033_v58  ;;  %v4648_v28 = vsel %vm1131_vm1, %v5063_v36, %v5061_v54  ;;  %v4666_v47 = vmul.f32 %v2973_v15, %v4626_v33  ;;  %2523 = vst [vmem:[%s2866_s9 + $0x118] sm:$0xff] %v2459_v57  ;;  %v753_v41 = vmul.f32 %v2921_v31, %v708_v16  ;;  %v5068_v57 = vld [vmem:[#allocation62_spill] sm:$0xff]  ;;  %v5070_v7 = vld [vmem:[#allocation71_spill] sm:$0xff]  ;;  %v5073_v54 = vld [vmem:[#allocation73_spill] sm:$0xff] }
 0x1e2   : > { %v830_v43 = vmul.f32 %v2914_v27, %v708_v16  ;;  %v831_v46 = vmul.f32 %v2914_v27, %v709_v37  ;;  %v1072_v19 = vmul.f32 %v2924_v32, %v708_v16  ;;  %v1073_v26 = vmul.f32 %v2924_v32, %v709_v37  ;;  %670 = vst [vmem:[#allocation2 + $0x189] sm:$0xff] %v583_v50  ;;  %v5071_v21 = vld [vmem:[#allocation63_spill] sm:$0xff] }
 0x1e3   : > { %v1300_v11 = vmul.f32 %v2956_v4, %v708_v16  ;;  %v1376_v42 = vmul.f32 %v2959_v5, %v708_v16  ;;  %v1377_v63 = vmul.f32 %v2959_v5, %v709_v37  ;;  %v1617_v31 = vmul.f32 %v2962_v6, %v708_v16  ;;  %2505 = vst [vmem:[%s2866_s9 + $0x1f0] sm:$0xff] %v583_v50 }
 0x1e4   : > { %v951_v39 = vrot.slane %v830_v43, 1  ;;  %v953_v1 = vrot.slane %v831_v46, 1  ;;  %v1193_v0 = vrot.slane %v1072_v19, 2  ;;  %v1195_v58 = vrot.slane %v1073_v26, 2 }
 0x1e5   : > { %v1332_v27 = vadd.f32 %v1300_v11, %v5065_v62  ;;  %v1494_v51 = vrot.slane %v1376_v42, 1  ;;  %v1496_v60 = vrot.slane %v1377_v63, 1  ;;  %v5067_v32 = vrot.slane %v5066_v8, 1  ;;  %v5074_v11 = vld [vmem:[#allocation64_spill] sm:$0xff]  ;;  %v5077_v62 = vld [vmem:[#allocation69_spill] sm:$0xff] }
 0x1e6   : > { %v954_v52 = vsel %vm889_vm0, %v951_v39, %v953_v1  ;;  %v5069_v9 = vrot.slane %v5068_v57, 2  ;;  %v1618_v12 = vmul.f32 %v2962_v6, %v709_v37  ;;  %v1196_v18 = vsel %vm1131_vm1, %v1193_v0, %v1195_v58  ;;  %v5078_v8 = vld [vmem:[#allocation61_spill] sm:$0xff]  ;;  %v5079_v57 = vld [vmem:[#allocation28_spill] sm:$0xff] }
 0x1e7   : > { %v952_v49 = vsel %vm889_vm0, %v5067_v32, %v951_v39  ;;  %v1027_v50 = vadd.f32 %v954_v52, %v753_v41  ;;  %v5072_v45 = vrot.slane %v5071_v21, 1  ;;  %v1497_v20 = vsel %vm889_vm0, %v1494_v51, %v1496_v60  ;;  %v5083_v21 = vld [vmem:[#allocation65_spill] sm:$0xff] }
 0x1e8   : > { %v1194_v22 = vsel %vm1131_vm1, %v5069_v9, %v1193_v0  ;;  %v1026_v61 = vadd.f32 %v952_v49, %v5070_v7  ;;  %v1735_v36 = vrot.slane %v1617_v31, 2  ;;  %v1737_v56 = vrot.slane %v1618_v12, 2  ;;  %v5076_v0 = vld [vmem:[#allocation7_spill] sm:$0xff]  ;;  %v5081_v7 = vld [vmem:[#allocation8_spill] sm:$0xff] }
 0x1e9   : > { %v1495_v3 = vsel %vm889_vm0, %v5072_v45, %v1494_v51  ;;  %v1269_v46 = vadd.f32 %v1196_v18, %v1027_v50  ;;  %v1573_v19 = vadd.f32 %v1497_v20, %v1332_v27  ;;  %v1845_v26 = vmul.f32 %v2977_v17, %v708_v16  ;;  %v5082_v50 = vld [vmem:[#allocation70_spill] sm:$0xff] }
 0x1ea   : > { %v1572_v13 = vadd.f32 %v1495_v3, %v5073_v54  ;;  %v1268_v43 = vadd.f32 %v1194_v22, %v1026_v61  ;;  %v5075_v42 = vrot.slane %v5074_v11, 2  ;;  %v1738_v63 = vsel %vm1131_vm1, %v1735_v36, %v1737_v56  ;;  %v5080_v22 = vld [vmem:[#allocation33_spill] sm:$0xff] }
 0x1eb   : > { %v1920_v39 = vmul.f32 %v2973_v15, %v708_v16  ;;  %v1921_v1 = vmul.f32 %v2973_v15, %v709_v37  ;;  %v1334_v31 = vadd.f32 %v5077_v62, %v1269_v46  ;;  %v1814_v60 = vadd.f32 %v1738_v63, %v1573_v19  ;;  %v5087_v19 = vld [vmem:[#allocation74_spill] sm:$0xff]  ;;  %v5089_v63 = vld [vmem:[#allocation37_spill] sm:$0xff] }
 0x1ec   : > { %v1736_v41 = vsel %vm1131_vm1, %v5075_v42, %v1735_v36  ;;  %v1333_v58 = vadd.f32 %v5076_v0, %v1268_v43  ;;  %v1877_v27 = vadd.f32 %v1845_v26, %v5078_v8  ;;  %v2161_v52 = vmul.f32 %v4556_v25, %v708_v16  ;;  %v4715_v36 = vld [vmem:[#allocation2 + $0x188] sm:$0xff]  ;;  %v5086_v43 = vld [vmem:[#allocation35_spill] sm:$0xff]  ;;  %v5088_v42 = vld [vmem:[#allocation36_spill] sm:$0xff] }
 0x1ed   : > { %v1813_v51 = vadd.f32 %v1736_v41, %v1572_v13  ;;  %v2036_v32 = vrot.slane %v1920_v39, 1  ;;  %v2038_v49 = vrot.slane %v1921_v1, 1  ;;  %v1575_v12 = vadd.f32 %v5080_v22, %v1334_v31  ;;  %v5085_v16 = vld [vmem:[#allocation34_spill] sm:$0xff] }
 0x1ee   : > { %v1574_v9 = vadd.f32 %v5079_v57, %v1333_v58  ;;  %v1879_v18 = vadd.f32 %v5082_v50, %v1814_v60  ;;  %v5084_v45 = vrot.slane %v5083_v21, 1  ;;  %v2162_v54 = vmul.f32 %v4556_v25, %v709_v37  ;;  %v5090_v1 = vld [vmem:[#allocation66_spill] sm:$0xff]  ;;  %v5092_v37 = vld [vmem:[#allocation45_spill] sm:$0xff] }
 0x1ef   : > { %v1878_v61 = vadd.f32 %v5081_v7, %v1813_v51  ;;  %v2039_v20 = vsel %vm889_vm0, %v2036_v32, %v2038_v49  ;;  %v2277_v13 = vrot.slane %v2161_v52, 2  ;;  %v1816_v46 = vadd.f32 %v5086_v43, %v1575_v12  ;;  %v5093_v51 = vld [vmem:[#allocation57_spill] sm:$0xff]  ;;  %v5097_v50 = vld [vmem:[#allocation54_spill] sm:$0xff] }
 0x1f0   : > { %v2037_v3 = vsel %vm889_vm0, %v5084_v45, %v2036_v32  ;;  %v1815_v56 = vadd.f32 %v5085_v16, %v1574_v9  ;;  %v2118_v11 = vadd.f32 %v2039_v20, %v1877_v27  ;;  %v2120_v39 = vadd.f32 %v5089_v63, %v1879_v18  ;;  %v4727_v32 = vld [vmem:[#allocation2 + $0x190] sm:$0x3]  ;;  %v5094_v52 = vld [vmem:[#allocation9_spill] sm:$0xff]  ;;  %v5095_v9 = vld [vmem:[#allocation38_spill] sm:$0xff] }
 0x1f1   : > { %v2117_v26 = vadd.f32 %v2037_v3, %v5087_v19  ;;  %v2119_v41 = vadd.f32 %v5088_v42, %v1878_v61  ;;  %v5091_v0 = vrot.slane %v5090_v1, 2  ;;  %v2279_v62 = vrot.slane %v2162_v54, 2  ;;  %v5096_v7 = vld [vmem:[#allocation53_spill] sm:$0xff] }
 0x1f2   : > { %v1880_v31 = vadd.f32 %v5092_v37, %v1815_v56  ;;  %v1881_v60 = vadd.f32 %v5093_v51, %v1816_v46  ;;  %v1308_v49 = vmul.f32 %v2956_v4, %v4715_v36  ;;  %v2361_v22 = vadd.f32 %v5095_v9, %v2120_v39  ;;  %v5099_v56 = vld [vmem:[#allocation56_spill] sm:$0xff] }
 0x1f3   : > { %v2278_v58 = vsel %vm1131_vm1, %v5091_v0, %v2277_v13  ;;  %v2280_v27 = vsel %vm1131_vm1, %v2277_v13, %v2279_v62  ;;  %v2360_v57 = vadd.f32 %v5094_v52, %v2119_v41  ;;  %v1388_v12 = vmul.f32 %v2959_v5, %v4715_v36  ;;  %v5098_v13 = vld [vmem:[#allocation19_spill] sm:$0xff] }
 0x1f4   : > { %v2358_v8 = vadd.f32 %v2278_v58, %v2117_v26  ;;  %v2121_v61 = vadd.f32 %v5096_v7, %v1880_v31  ;;  %v2122_v18 = vadd.f32 %v5097_v50, %v1881_v60  ;;  %v2359_v21 = vadd.f32 %v2280_v27, %v2118_v11 }
 0x1f5   : > { %v2396_v3 = vmul.f32 %v4134_v2, %v2360_v57  ;;  %v2397_v4 = vmul.f32 %v4134_v2, %v2361_v22  ;;  %v1340_v20 = vadd.f32 %v1308_v49, %v4641_v48  ;;  %v1389_v54 = vmul.f32 %v2959_v5, %v4727_v32 }
 0x1f6   : > { %v2394_v45 = vmul.f32 %v4134_v2, %v2358_v8  ;;  %v2362_v16 = vadd.f32 %v5098_v13, %v2121_v61  ;;  %v2363_v43 = vadd.f32 %v5099_v56, %v2122_v18  ;;  %v2395_v46 = vmul.f32 %v4134_v2, %v2359_v21 }
 0x1f7   : > { %v2432_v26 = vadd.f32 %v4150_v30, %v2396_v3  ;;  %v2433_v11 = vadd.f32 %v4150_v30, %v2397_v4  ;;  %v1514_v42 = vrot.slane %v1388_v12, 1  ;;  %v1516_v41 = vrot.slane %v1389_v54, 1 }
 0x1f8   : > { %v2430_v19 = vadd.f32 %v4150_v30, %v2394_v45  ;;  %v2398_v48 = vmul.f32 %v4134_v2, %v2362_v16  ;;  %v2399_v5 = vmul.f32 %v4134_v2, %v2363_v43  ;;  %v2431_v63 = vadd.f32 %v4150_v30, %v2395_v46 }
 0x1f9   : > { %v2464_v1 = vmax.f32 %v2432_v26, 0.0  ;;  %v2465_v0 = vmax.f32 %v2433_v11, 0.0  ;;  %v1515_v58 = vsel %vm889_vm0, %v1513_v34, %v1514_v42  ;;  %v1517_v62 = vsel %vm889_vm0, %v1514_v42, %v1516_v41  ;;  %v2698_v42 = vld [vmem:[%s4823_s6] ss:$0 sm:$0xff] }
 0x1fa   : > { %v2462_v39 = vmax.f32 %v2430_v19, 0.0  ;;  %v2434_v37 = vadd.f32 %v4150_v30, %v2398_v48  ;;  %v2435_v31 = vadd.f32 %v4150_v30, %v2399_v5  ;;  %v2463_v51 = vmax.f32 %v2431_v63, 0.0 }
 0x1fb   : > { %v1580_v2 = vadd.f32 %v1515_v58, %v4621_v40  ;;  %2528 = vst [vmem:[%s2866_s9 + $0x168] sm:$0xff] %v2464_v1  ;;  %v1581_v60 = vadd.f32 %v1517_v62, %v1340_v20  ;;  %v1629_v8 = vmul.f32 %v2962_v6, %v4715_v36  ;;  %v1630_v55 = vmul.f32 %v2962_v6, %v4727_v32 }
 0x1fc   : > { %2526 = vst [vmem:[%s2866_s9 + $0x148] sm:$0xff] %v2462_v39  ;;  %v1820_v34 = vadd.f32 %v4648_v28, %v4652_v24  ;;  %v2466_v49 = vmax.f32 %v2434_v37, 0.0  ;;  %v2467_v27 = vmax.f32 %v2435_v31, 0.0  ;;  %v1853_v30 = vmul.f32 %v2977_v17, %v4715_v36 }
 0x1fd   : > { %2527 = vst [vmem:[%s2866_s9 + $0x158] sm:$0xff] %v2463_v51  ;;  %v1932_v40 = vmul.f32 %v2973_v15, %v4715_v36  ;;  %v1755_v52 = vrot.slane %v1629_v8, 2  ;;  %v1757_v57 = vrot.slane %v1630_v55, 2  ;;  %v1933_v9 = vmul.f32 %v2973_v15, %v4727_v32 }
 0x1fe   : > { %2529 = vst [vmem:[%s2866_s9 + $0x178] sm:$0xff] %v2465_v0  ;;  %v2060_v6 = vrot.slane %v4662_v53, 1  ;;  %v1885_v28 = vadd.f32 %v1853_v30, %v1820_v34  ;;  %v2063_v22 = vrot.slane %v4666_v47, 1  ;;  %v2173_v12 = vmul.f32 %v4556_v25, %v4715_v36 }
 0x1ff   : > { %2530 = vst [vmem:[%s2866_s9 + $0x188] sm:$0xff] %v2466_v49  ;;  %v2056_v24 = vrot.slane %v1932_v40, 1  ;;  %v1756_v17 = vsel %vm1131_vm1, %v1754_v59, %v1755_v52  ;;  %v1758_v7 = vsel %vm1131_vm1, %v1755_v52, %v1757_v57  ;;  %v2058_v61 = vrot.slane %v1933_v9, 1 }
 0x200   : > { %2531 = vst [vmem:[%s2866_s9 + $0x198] sm:$0xff] %v2467_v27  ;;  %v1821_v50 = vadd.f32 %v1756_v17, %v1580_v2  ;;  %v1822_v15 = vadd.f32 %v1758_v7, %v1581_v60  ;;  %v2064_v18 = vsel %vm889_vm0, %v2060_v6, %v2063_v22  ;;  %v2174_v14 = vmul.f32 %v4556_v25, %v4727_v32 }
 0x201   : > { %v2057_v53 = vsel %vm889_vm0, %v2055_v44, %v2056_v24  ;;  %v2059_v47 = vsel %vm889_vm0, %v2056_v24, %v2058_v61  ;;  %v2175_v59 = vmul.f32 %v4654_v23, %v4556_v25  ;;  %v2177_v38 = vmul.f32 %v4556_v25, %v4626_v33  ;;  %v2697_v25 = vld [vmem:[%s4822_s5] ss:$0 sm:$0xff] }
 0x202   : > { %v2125_v36 = vadd.f32 %v2057_v53, %v4637_v29  ;;  %v1886_v21 = vadd.f32 %v4658_v35, %v1821_v50  ;;  %v1887_v45 = vadd.f32 %v4658_v35, %v1822_v15  ;;  %v2126_v3 = vadd.f32 %v2059_v47, %v1885_v28 }
 0x203   : > { %v2296_v44 = vrot.slane %v4613_v10, 2  ;;  %v2297_v4 = vrot.slane %v2173_v12, 2  ;;  %v2299_v20 = vrot.slane %v2174_v14, 2  ;;  %v2301_v54 = vrot.slane %v2175_v59, 2 }
 0x204   : > { %v2127_v29 = vadd.f32 %v2060_v6, %v1886_v21  ;;  %v2128_v13 = vadd.f32 %v2064_v18, %v1887_v45  ;;  %v2304_v16 = vrot.slane %v2177_v38, 2 }
 0x205   : > { %v2298_v32 = vsel %vm1131_vm1, %v2296_v44, %v2297_v4  ;;  %v2300_v23 = vsel %vm1131_vm1, %v2297_v4, %v2299_v20 }
 0x206   : > { %v2305_v56 = vsel %vm1131_vm1, %v2301_v54, %v2304_v16  ;;  %v2366_v43 = vadd.f32 %v2298_v32, %v2125_v36  ;;  %v2367_v35 = vadd.f32 %v2300_v23, %v2126_v3  ;;  %v2368_v46 = vadd.f32 %v2301_v54, %v2127_v29 }
 0x207   : > { %v2369_v19 = vadd.f32 %v2305_v56, %v2128_v13 }
 0x208   : > { %v2402_v10 = vmul.f32 %v2697_v25, %v2366_v43  ;;  %v2403_v33 = vmul.f32 %v2697_v25, %v2367_v35  ;;  %v2404_v26 = vmul.f32 %v2697_v25, %v2368_v46 }
 0x209   : > { %v2405_v11 = vmul.f32 %v2697_v25, %v2369_v19 }
 0x20a   : > { %v2438_v41 = vadd.f32 %v2698_v42, %v2402_v10  ;;  %v2439_v48 = vadd.f32 %v2698_v42, %v2403_v33  ;;  %v2440_v5 = vadd.f32 %v2698_v42, %v2404_v26 }
 0x20b   : > { %v2441_v63 = vadd.f32 %v2698_v42, %v2405_v11 }
 0x20c   : > { %v2470_v39 = vmax.f32 %v2438_v41, 0.0  ;;  %v2471_v1 = vmax.f32 %v2439_v48, 0.0  ;;  %v2472_v0 = vmax.f32 %v2440_v5, 0.0 }
 0x20d   : > { %v2473_v58 = vmax.f32 %v2441_v63, 0.0 }
 0x20e   : > { %2534 = vst [vmem:[%s2866_s9 + $0x1c8] sm:$0xff] %v2470_v39 }
 0x20f   : > { %2535 = vst [vmem:[%s2866_s9 + $0x1d8] sm:$0xff] %v2471_v1 }
 0x210   : > { %2536 = vst [vmem:[%s2866_s9 + $0x1e8] sm:$0xff] %v2472_v0 }
 0x211   : > { %2537 = vst [vmem:[%s2866_s9 + $0x1f8] sm:$0xff] %v2473_v58 }
 0x212 PF: > { %s17_s24 = sadd.s32 1, %s2705_s24  }
 0x213   : > { %p14_p4 = scmp.ge.s32.totalorder %s17_s24, 4  }
 0x215   :  { %16 = sbr.rel (!%p14_p4) target bundleno = 1 (0x1), region = 79 }

// kernel: attention_psp_forward.3
= control target key start
LH: loop header
LB: loop body
LE: loop exit
PB: predicated region body
PF: predicated region fallthrough
CT: control target
= control target key end

     0   :  { %s4620_s29 = smov 0   ;;  %s4622_s30 = smov 0   ;;  %s6095_s0 = inlined_call_operand.<no memory space> [shape: f32[1], index: 0, kind: input, shape index: {}]   ;;  %s6096_s1 = inlined_call_operand.vmem [shape: f32[2,256,256], index: 1, kind: input, shape index: {}]   ;;  %s6097_s2 = inlined_call_operand.vmem [shape: bf16[256,128], index: 2, kind: input, shape index: {}]   ;;  %s6098_s3 = inlined_call_operand.vmem [shape: f32[1,128], index: 3, kind: input, shape index: {}]   ;;  %s6099_s4 = inlined_call_operand.vmem [shape: bf16[256,128], index: 4, kind: input, shape index: {}]   ;;  %s6100_s5 = inlined_call_operand.vmem [shape: f32[1,128], index: 5, kind: input, shape index: {}]   ;;  %s6101_s6 = inlined_call_operand.vmem [shape: bf16[256,256], index: 6, kind: input, shape index: {}]   ;;  %s6102_s7 = inlined_call_operand.vmem [shape: f32[1,256], index: 7, kind: input, shape index: {}]   ;;  %s6103_s8 = inlined_call_operand.vmem [shape: f32[2,256,256], index: 8, kind: output, shape index: {}]  }
   0x1   :  { %13 = sst [smem:[#allocation4]] %s6095_s0  ;;  %s4624_s9 = smov 0  }
   0x2 LB: > { %s31_s0 = sadd.s32 1, %s4566_s30  ;;  %p3569_p0 = scmp.ge.s32.totalorder %s4570_s9, 1  ;;  %s4570_s9 = sphi %s4624_s9, %s19_s9   ;;  %s4566_s30 = sphi %s4622_s30, %s6114_s30   ;;  %s4562_s29 = sphi %s4620_s29, %s6113_s29  }
   0x3   : > { %p33_p1 = scmp.ge.s32.totalorder %s31_s0, 2  ;;  %p277_p2 = scmp.lt.s32.totalorder %s4570_s9, 3 }
   0x5   : > { %s6116_s0 = smov (%p33_p1, %s31_s0), 0  ;;  %p278_p3 = pnand %p3569_p0, %p277_p2 }
   0x7   : > { %281 = sbr.rel (%p278_p3) target bundleno = 1579 (0x62b), region = 52 }
   0xc   : > { %v4033_v0 = vld [vmem:[%s6099_s4 + $0x38] sm:$0xff]  ;;  %v4032_v2 = vld [vmem:[%s6099_s4 + $0x30] sm:$0xff]  ;;  %v4031_v4 = vld [vmem:[%s6099_s4 + $0x28] sm:$0xff]  ;;  %p316_p4 = scmp.lt.s32.totalorder %s4562_s29, 1  ;;  %s3218_s23 = sld [smem:[#allocation4]] }
   0xd   : > { %v4041_v1 = vld [vmem:[%s6099_s4 + $0x78] sm:$0xff]  ;;  %564 = vmatpush.bf16.msra.mxu0 %v4033_v0  ;;  %4138 = vmatpush.bf16.msra.mxu2 %v4033_v0  ;;  %v4040_v3 = vld [vmem:[%s6099_s4 + $0x70] sm:$0xff]  ;;  %v4039_v5 = vld [vmem:[%s6099_s4 + $0x68] sm:$0xff] }
   0xe   : > { %653 = vmatpush.bf16.msra.mxu1 %v4041_v1  ;;  %4146 = vmatpush.bf16.msra.mxu3 %v4041_v1  ;;  %v4030_v6 = vld [vmem:[%s6099_s4 + $0x20] sm:$0xff]  ;;  %v4029_v8 = vld [vmem:[%s6099_s4 + $0x18] sm:$0xff]  ;;  %s6118_s29 = smov (!%p316_p4, %s4562_s29), 1  ;;  %v4028_v10 = vld [vmem:[%s6099_s4 + $0x10] sm:$0xff] }
   0xf   : > { %v4038_v7 = vld [vmem:[%s6099_s4 + $0x60] sm:$0xff]  ;;  %v4037_v9 = vld [vmem:[%s6099_s4 + $0x58] sm:$0xff]  ;;  %v4036_v11 = vld [vmem:[%s6099_s4 + $0x50] sm:$0xff]  ;;  %s4024_s15 = sshll.u32 %s6118_s29, 9 }
  0x10   : > { %v4027_v12 = vld [vmem:[%s6099_s4 + $0x8] sm:$0xff]  ;;  %s4692_s22 = scalar_lea.vmem %s6096_s1, %s4024_s15  ;;  %v4026_v14 = vld [vmem:[%s6099_s4] sm:$0xff]  ;;  %s5704_s26 = scalar_lea.vmem %s6103_s8, %s4024_s15 }
  0x11   : > { %565 = vmatpush.bf16.msra.mxu0 %v4032_v2  ;;  %4139 = vmatpush.bf16.msra.mxu2 %v4032_v2  ;;  %v4035_v13 = vld [vmem:[%s6099_s4 + $0x48] sm:$0xff]  ;;  %v4034_v15 = vld [vmem:[%s6099_s4 + $0x40] sm:$0xff]  ;;  %v338_v17 = vld [vmem:[%s4692_s22 + $0x10] sm:$0xff] }
  0x12   : > { %654 = vmatpush.bf16.msra.mxu1 %v4040_v3  ;;  %4147 = vmatpush.bf16.msra.mxu3 %v4040_v3  ;;  %v336_v16 = vld [vmem:[%s4692_s22] sm:$0xff]  ;;  %v370_v19 = vld [vmem:[%s4692_s22 + $0x110] sm:$0xff]  ;;  %v337_v20 = vld [vmem:[%s4692_s22 + $0x8] sm:$0xff] }
  0x13   : > { %v368_v18 = vld [vmem:[%s4692_s22 + $0x100] sm:$0xff]  ;;  %v339_v21 = vld [vmem:[%s4692_s22 + $0x18] sm:$0xff]  ;;  %v369_v22 = vld [vmem:[%s4692_s22 + $0x108] sm:$0xff]  ;;  %v4708_v24 = vpack.c.bf16 %v338_v17, %v336_v16 }
  0x14   : > { %v371_v23 = vld [vmem:[%s4692_s22 + $0x118] sm:$0xff]  ;;  %v4710_v25 = vpack.c.bf16 %v370_v19, %v368_v18  ;;  %v4712_v26 = vpack.c.bf16 %v339_v21, %v337_v20  ;;  %v340_v28 = vld [vmem:[%s4692_s22 + $0x20] sm:$0xff]  ;;  %v342_v29 = vld [vmem:[%s4692_s22 + $0x30] sm:$0xff] }
  0x15   : > { %566 = vmatpush.bf16.msra.mxu0 %v4031_v4  ;;  %4140 = vmatpush.bf16.msra.mxu2 %v4031_v4  ;;  %v4714_v27 = vpack.c.bf16 %v371_v23, %v369_v22  ;;  %v372_v30 = vld [vmem:[%s4692_s22 + $0x120] sm:$0xff]  ;;  %v374_v31 = vld [vmem:[%s4692_s22 + $0x130] sm:$0xff]  ;;  %v373_v32 = vld [vmem:[%s4692_s22 + $0x128] sm:$0xff]  ;;  %v4728_v36 = vpack.c.bf16 %v342_v29, %v340_v28 }
  0x16   : > { %655 = vmatpush.bf16.msra.mxu1 %v4039_v5  ;;  %4148 = vmatpush.bf16.msra.mxu3 %v4039_v5  ;;  %v341_v33 = vld [vmem:[%s4692_s22 + $0x28] sm:$0xff]  ;;  %v343_v34 = vld [vmem:[%s4692_s22 + $0x38] sm:$0xff]  ;;  %v4730_v37 = vpack.c.bf16 %v374_v31, %v372_v30  ;;  %v344_v40 = vld [vmem:[%s4692_s22 + $0x40] sm:$0xff] }
  0x17   : > { %v375_v35 = vld [vmem:[%s4692_s22 + $0x138] sm:$0xff]  ;;  %v4732_v38 = vpack.c.bf16 %v343_v34, %v341_v33  ;;  %v346_v41 = vld [vmem:[%s4692_s22 + $0x50] sm:$0xff]  ;;  %v376_v42 = vld [vmem:[%s4692_s22 + $0x140] sm:$0xff] }
  0x18   : > { %v4734_v39 = vpack.c.bf16 %v375_v35, %v373_v32  ;;  %v378_v43 = vld [vmem:[%s4692_s22 + $0x150] sm:$0xff]  ;;  %v377_v44 = vld [vmem:[%s4692_s22 + $0x148] sm:$0xff]  ;;  %v347_v46 = vld [vmem:[%s4692_s22 + $0x58] sm:$0xff]  ;;  %v4748_v48 = vpack.c.bf16 %v346_v41, %v344_v40 }
  0x19   : > { %567 = vmatpush.bf16.msra.mxu0 %v4030_v6  ;;  %4141 = vmatpush.bf16.msra.mxu2 %v4030_v6  ;;  %v345_v45 = vld [vmem:[%s4692_s22 + $0x48] sm:$0xff]  ;;  %v379_v47 = vld [vmem:[%s4692_s22 + $0x158] sm:$0xff]  ;;  %v4750_v49 = vpack.c.bf16 %v378_v43, %v376_v42  ;;  %v348_v52 = vld [vmem:[%s4692_s22 + $0x60] sm:$0xff] }
  0x1a   : > { %656 = vmatpush.bf16.msra.mxu1 %v4038_v7  ;;  %4149 = vmatpush.bf16.msra.mxu3 %v4038_v7  ;;  %v4752_v50 = vpack.c.bf16 %v347_v46, %v345_v45  ;;  %v4754_v51 = vpack.c.bf16 %v379_v47, %v377_v44  ;;  %v350_v53 = vld [vmem:[%s4692_s22 + $0x70] sm:$0xff]  ;;  %v380_v54 = vld [vmem:[%s4692_s22 + $0x160] sm:$0xff]  ;;  %v381_v56 = vld [vmem:[%s4692_s22 + $0x168] sm:$0xff] }
  0x1b   : > { %v382_v55 = vld [vmem:[%s4692_s22 + $0x170] sm:$0xff]  ;;  %v349_v57 = vld [vmem:[%s4692_s22 + $0x68] sm:$0xff]  ;;  %v351_v58 = vld [vmem:[%s4692_s22 + $0x78] sm:$0xff]  ;;  %v4768_v60 = vpack.c.bf16 %v350_v53, %v348_v52 }
  0x1c   : > { %v383_v59 = vld [vmem:[%s4692_s22 + $0x178] sm:$0xff]  ;;  %v4770_v61 = vpack.c.bf16 %v382_v55, %v380_v54  ;;  %v4772_v62 = vpack.c.bf16 %v351_v58, %v349_v57  ;;  %v352_v0 = vld [vmem:[%s4692_s22 + $0x80] sm:$0xff]  ;;  %v354_v1 = vld [vmem:[%s4692_s22 + $0x90] sm:$0xff] }
  0x1d   : > { %568 = vmatpush.bf16.msra.mxu0 %v4029_v8  ;;  %4142 = vmatpush.bf16.msra.mxu2 %v4029_v8  ;;  %v4774_v63 = vpack.c.bf16 %v383_v59, %v381_v56  ;;  %v384_v2 = vld [vmem:[%s4692_s22 + $0x180] sm:$0xff]  ;;  %v386_v3 = vld [vmem:[%s4692_s22 + $0x190] sm:$0xff]  ;;  %v385_v4 = vld [vmem:[%s4692_s22 + $0x188] sm:$0xff]  ;;  %v4788_v8 = vpack.c.bf16 %v354_v1, %v352_v0 }
  0x1e   : > { %657 = vmatpush.bf16.msra.mxu1 %v4037_v9  ;;  %4150 = vmatpush.bf16.msra.mxu3 %v4037_v9  ;;  %v353_v5 = vld [vmem:[%s4692_s22 + $0x88] sm:$0xff]  ;;  %v355_v6 = vld [vmem:[%s4692_s22 + $0x98] sm:$0xff]  ;;  %v4790_v9 = vpack.c.bf16 %v386_v3, %v384_v2  ;;  %v3688_v17 = vld [vmem:[%s6101_s6 + $0x60] sm:$0xf] }
  0x1f   : > { %v387_v7 = vld [vmem:[%s4692_s22 + $0x198] sm:$0xff]  ;;  %v4055_v18 = vld [vmem:[%s6101_s6 + $0x64] sm:$0xf0]  ;;  %v3752_v21 = vld [vmem:[%s6101_s6 + $0xe0] sm:$0xf] }
  0x20   : > { %v4073_v16 = vld [vmem:[%s6101_s6 + $0xf4] sm:$0xf0]  ;;  %v3689_v20 = vor.u32 %v4055_v18, %v3688_v17  ;;  %v4071_v22 = vld [vmem:[%s6101_s6 + $0xe4] sm:$0xf0]  ;;  %v3680_v23 = vld [vmem:[%s6101_s6 + $0x50] sm:$0xf] }
  0x21   : > { %569 = vmatpush.bf16.msra.mxu0 %v4028_v10  ;;  %4143 = vmatpush.bf16.msra.mxu2 %v4028_v10  ;;  %v4792_v10 = vpack.c.bf16 %v355_v6, %v353_v5  ;;  %v4053_v28 = vld [vmem:[%s6101_s6 + $0x54] sm:$0xf0]  ;;  %v3753_v29 = vor.u32 %v4071_v22, %v3752_v21  ;;  %v3744_v30 = vld [vmem:[%s6101_s6 + $0xd0] sm:$0xf]  ;;  %v3672_v33 = vld [vmem:[%s6101_s6 + $0x40] sm:$0xf] }
  0x22   : > { %658 = vmatpush.bf16.msra.mxu1 %v4036_v11  ;;  %4151 = vmatpush.bf16.msra.mxu3 %v4036_v11  ;;  %v4794_v11 = vpack.c.bf16 %v387_v7, %v385_v4  ;;  %v4069_v31 = vld [vmem:[%s6101_s6 + $0xd4] sm:$0xf0]  ;;  %v3681_v32 = vor.u32 %v4053_v28, %v3680_v23  ;;  %v4056_v34 = vld [vmem:[%s6101_s6 + $0x74] sm:$0xf]  ;;  %v3698_v35 = vld [vmem:[%s6101_s6 + $0x78] sm:$0xf0] }
  0x23   : > { %v356_v40 = vld [vmem:[%s4692_s22 + $0xa0] sm:$0xff]  ;;  %v358_v41 = vld [vmem:[%s4692_s22 + $0xb0] sm:$0xff]  ;;  %v4051_v42 = vld [vmem:[%s6101_s6 + $0x44] sm:$0xf0]  ;;  %v3701_v43 = vor.u32 %v4056_v34, %v3698_v35  ;;  %v3745_v53 = vor.u32 %v4069_v31, %v3744_v30 }
  0x24   : > { %v4072_v44 = vld [vmem:[%s6101_s6 + $0xf4] sm:$0xf]  ;;  %v3762_v45 = vld [vmem:[%s6101_s6 + $0xf8] sm:$0xf0]  ;;  %v388_v46 = vld [vmem:[%s4692_s22 + $0x1a0] sm:$0xff]  ;;  %v3673_v0 = vor.u32 %v4051_v42, %v3672_v33  ;;  %v4880_v6 = vpack.c.bf16 %v358_v41, %v356_v40 }
  0x25   : > { %570 = vmatpush.bf16.msra.mxu0 %v4027_v12  ;;  %4144 = vmatpush.bf16.msra.mxu2 %v4027_v12  ;;  %v3696_v12 = vld [vmem:[%s6101_s6 + $0x70] sm:$0xf]  ;;  %v389_v52 = vld [vmem:[%s4692_s22 + $0x1a8] sm:$0xff]  ;;  %v3765_v54 = vor.u32 %v4072_v44, %v3762_v45  ;;  %v391_v55 = vld [vmem:[%s4692_s22 + $0x1b8] sm:$0xff] }
  0x26   : > { %659 = vmatpush.bf16.msra.mxu1 %v4035_v13  ;;  %4152 = vmatpush.bf16.msra.mxu3 %v4035_v13  ;;  %v4057_v13 = vld [vmem:[%s6101_s6 + $0x74] sm:$0xf0]  ;;  %v390_v47 = vld [vmem:[%s4692_s22 + $0x1b0] sm:$0xff]  ;;  %v4054_v56 = vld [vmem:[%s6101_s6 + $0x64] sm:$0xf] }
  0x27   : > { %v3690_v57 = vld [vmem:[%s6101_s6 + $0x68] sm:$0xf0]  ;;  %v359_v59 = vld [vmem:[%s4692_s22 + $0xb8] sm:$0xff]  ;;  %v3736_v1 = vld [vmem:[%s6101_s6 + $0xc0] sm:$0xf]  ;;  %v4882_v7 = vpack.c.bf16 %v390_v47, %v388_v46 }
  0x28   : > { %v357_v58 = vld [vmem:[%s4692_s22 + $0xa8] sm:$0xff]  ;;  %v3693_v2 = vor.u32 %v4054_v56, %v3690_v57  ;;  %v4070_v4 = vld [vmem:[%s6101_s6 + $0xe4] sm:$0xf]  ;;  %v3664_v18 = vld [vmem:[%s6101_s6 + $0x30] sm:$0xf] }
  0x29   : > { %571 = vmatpush.bf16.msra.mxu0 %v4026_v14  ;;  %4145 = vmatpush.bf16.msra.mxu2 %v4026_v14  ;;  %v3697_v14 = vor.u32 %v4057_v13, %v3696_v12  ;;  %v4067_v3 = vld [vmem:[%s6101_s6 + $0xc4] sm:$0xf0]  ;;  %v3754_v5 = vld [vmem:[%s6101_s6 + $0xe8] sm:$0xf0]  ;;  %v4884_v13 = vpack.c.bf16 %v359_v59, %v357_v58  ;;  %v3728_v22 = vld [vmem:[%s6101_s6 + $0xb0] sm:$0xf] }
  0x2a   : > { %660 = vmatpush.bf16.msra.mxu1 %v4034_v15  ;;  %4153 = vmatpush.bf16.msra.mxu3 %v4034_v15  ;;  %v3760_v15 = vld [vmem:[%s6101_s6 + $0xf0] sm:$0xf]  ;;  %v3757_v12 = vor.u32 %v4070_v4, %v3754_v5  ;;  %v3737_v17 = vor.u32 %v4067_v3, %v3736_v1  ;;  %v4065_v23 = vld [vmem:[%s6101_s6 + $0xb4] sm:$0xf0]  ;;  %v3656_v28 = vld [vmem:[%s6101_s6 + $0x20] sm:$0xf] }
  0x2b   : > { %v3761_v19 = vor.u32 %v4073_v16, %v3760_v15  ;;  %v4052_v15 = vld [vmem:[%s6101_s6 + $0x54] sm:$0xf]  ;;  %v3682_v16 = vld [vmem:[%s6101_s6 + $0x58] sm:$0xf0]  ;;  %v3729_v30 = vor.u32 %v4065_v23, %v3728_v22  ;;  %v4063_v33 = vld [vmem:[%s6101_s6 + $0xa4] sm:$0xf0] }
  0x2c   : > { %572 = vmatmul.bf16.vlgmr.msra.gmra.mxu0 %v4708_v24  ;;  %612 = vmatmul.bf16.vlgmr.msra.gmra.mxu2 %v4710_v25  ;;  %v3648_v34 = vld [vmem:[%s6101_s6 + $0x10] sm:$0xf]  ;;  %v4045_v35 = vld [vmem:[%s6101_s6 + $0x14] sm:$0xf0]  ;;  %v4068_v40 = vld [vmem:[%s6101_s6 + $0xd4] sm:$0xf] }
  0x2d   : > { %661 = vmatmul.bf16.vlgmr.msra.gmra.mxu1 %v4712_v26  ;;  %701 = vmatmul.bf16.vlgmr.msra.gmra.mxu3 %v4714_v27  ;;  %v3746_v41 = vld [vmem:[%s6101_s6 + $0xd8] sm:$0xf0]  ;;  %v3674_v44 = vld [vmem:[%s6101_s6 + $0x48] sm:$0xf0]  ;;  %v4066_v45 = vld [vmem:[%s6101_s6 + $0xc4] sm:$0xf]  ;;  %v3649_v47 = vor.u32 %v4045_v35, %v3648_v34 }
  0x2e   : > { %940 = vmatpush.bf16.msrb.mxu2 %v3697_v14  ;;  %1029 = vmatpush.bf16.msrb.mxu3 %v3761_v19  ;;  %v4886_v14 = vpack.c.bf16 %v391_v55, %v389_v52  ;;  %v4049_v19 = vld [vmem:[%s6101_s6 + $0x34] sm:$0xf0]  ;;  %v3749_v42 = vor.u32 %v4068_v40, %v3746_v41  ;;  %v3666_v55 = vld [vmem:[%s6101_s6 + $0x38] sm:$0xf0]  ;;  %v360_v56 = vld [vmem:[%s4692_s22 + $0xc0] sm:$0xff] }
  0x2f   : > { %1118 = vmatpush.bf16.msrb.mxu0 %v3701_v43  ;;  %1207 = vmatpush.bf16.msrb.mxu1 %v3765_v54  ;;  %v3665_v21 = vor.u32 %v4049_v19, %v3664_v18  ;;  %v4050_v43 = vld [vmem:[%s6101_s6 + $0x44] sm:$0xf]  ;;  %v4048_v54 = vld [vmem:[%s6101_s6 + $0x34] sm:$0xf]  ;;  %v3712_v59 = vld [vmem:[%s6101_s6 + $0x90] sm:$0xf] }
  0x30   : > { %v3677_v52 = vor.u32 %v4050_v43, %v3674_v44  ;;  %v362_v57 = vld [vmem:[%s4692_s22 + $0xd0] sm:$0xff]  ;;  %v392_v58 = vld [vmem:[%s4692_s22 + $0x1c0] sm:$0xff]  ;;  %v3669_v3 = vor.u32 %v4048_v54, %v3666_v55  ;;  %v3730_v5 = vld [vmem:[%s6101_s6 + $0xb8] sm:$0xf0] }
  0x31   : > { %v4064_v4 = vld [vmem:[%s6101_s6 + $0xb4] sm:$0xf]  ;;  %v4046_v19 = vld [vmem:[%s6101_s6 + $0x24] sm:$0xf]  ;;  %v4043_v22 = vld [vmem:[%s6101_s6 + $0x4] sm:$0xf0] }
  0x32   : > { %941 = vmatpush.bf16.msrb.mxu2 %v3689_v20  ;;  %1030 = vmatpush.bf16.msrb.mxu3 %v3753_v29  ;;  %v3685_v20 = vor.u32 %v4052_v15, %v3682_v16  ;;  %v4047_v29 = vld [vmem:[%s6101_s6 + $0x24] sm:$0xf0]  ;;  %v395_v16 = vld [vmem:[%s4692_s22 + $0x1d8] sm:$0xff]  ;;  %v3704_v23 = vld [vmem:[%s6101_s6 + $0x80] sm:$0xf] }
  0x33   : > { %1119 = vmatpush.bf16.msrb.mxu0 %v3693_v2  ;;  %1208 = vmatpush.bf16.msrb.mxu1 %v3757_v12  ;;  %v3657_v31 = vor.u32 %v4047_v29, %v3656_v28  ;;  %v394_v2 = vld [vmem:[%s4692_s22 + $0x1d0] sm:$0xff]  ;;  %v361_v12 = vld [vmem:[%s4692_s22 + $0xc8] sm:$0xff]  ;;  %v3733_v28 = vor.u32 %v4064_v4, %v3730_v5  ;;  %v4987_v29 = vpack.c.bf16 %v362_v57, %v360_v56  ;;  %v4042_v54 = vld [vmem:[%s6101_s6 + $0x4] sm:$0xf] }
  0x34   : > { %v393_v15 = vld [vmem:[%s4692_s22 + $0x1c8] sm:$0xff]  ;;  %v4044_v44 = vld [vmem:[%s6101_s6 + $0x14] sm:$0xf]  ;;  %v4058_v56 = vld [vmem:[%s6101_s6 + $0x84] sm:$0xf] }
  0x35   : > { %v3722_v34 = vld [vmem:[%s6101_s6 + $0xa8] sm:$0xf0]  ;;  %v5002_v40 = vpack.c.bf16 %v395_v16, %v393_v15  ;;  %v399_v15 = vld [vmem:[%s4692_s22 + $0x1f8] sm:$0xff] }
  0x36   : > { %942 = vmatpush.bf16.msrb.mxu2 %v3681_v32  ;;  %1031 = vmatpush.bf16.msrb.mxu3 %v3745_v53  ;;  %v3720_v32 = vld [vmem:[%s6101_s6 + $0xa0] sm:$0xf]  ;;  %v3738_v53 = vld [vmem:[%s6101_s6 + $0xc8] sm:$0xf0] }
  0x37   : > { %1120 = vmatpush.bf16.msrb.mxu0 %v3685_v20  ;;  %v3721_v46 = vor.u32 %v4063_v33, %v3720_v32  ;;  %1209 = vmatpush.bf16.msrb.mxu1 %v3749_v42  ;;  %v3741_v1 = vor.u32 %v4066_v45, %v3738_v53  ;;  %v3658_v20 = vld [vmem:[%s6101_s6 + $0x28] sm:$0xf0]  ;;  %v4059_v32 = vld [vmem:[%s6101_s6 + $0x84] sm:$0xf0]  ;;  %v4062_v33 = vld [vmem:[%s6101_s6 + $0xa4] sm:$0xf] }
  0x38   : > { %v3705_v41 = vor.u32 %v4059_v32, %v3704_v23  ;;  %v3661_v42 = vor.u32 %v4046_v19, %v3658_v20  ;;  %v3725_v43 = vor.u32 %v4062_v33, %v3722_v34  ;;  %v3650_v45 = vld [vmem:[%s6101_s6 + $0x18] sm:$0xf0]  ;;  %v3642_v55 = vld [vmem:[%s6101_s6 + $0x8] sm:$0xf0]  ;;  %v5055_v20 = vld [vmem:[%s6100_s5] ss:$0 sm:$0xff] }
  0x39   : > { %v3706_v57 = vld [vmem:[%s6101_s6 + $0x88] sm:$0xf0] }
  0x3a   : > { %943 = vmatpush.bf16.msrb.mxu2 %v3673_v0  ;;  %1032 = vmatpush.bf16.msrb.mxu3 %v3737_v17  ;;  %v4061_v0 = vld [vmem:[%s6101_s6 + $0x94] sm:$0xf0]  ;;  %v397_v4 = vld [vmem:[%s4692_s22 + $0x1e8] sm:$0xff] }
  0x3b   : > { %1121 = vmatpush.bf16.msrb.mxu0 %v3677_v52  ;;  %v363_v17 = vld [vmem:[%s4692_s22 + $0xd8] sm:$0xff]  ;;  %v3713_v18 = vor.u32 %v4061_v0, %v3712_v59  ;;  %1210 = vmatpush.bf16.msrb.mxu1 %v3741_v1  ;;  %v3653_v52 = vor.u32 %v4044_v44, %v3650_v45  ;;  %v3709_v59 = vor.u32 %v4058_v56, %v3706_v57  ;;  %v364_v0 = vld [vmem:[%s4692_s22 + $0xe0] sm:$0xff]  ;;  %v366_v1 = vld [vmem:[%s4692_s22 + $0xf0] sm:$0xff] }
  0x3c   : > { %577 = vmatmul.bf16.gmra.mxu0 %v4728_v36  ;;  %617 = vmatmul.bf16.gmra.mxu2 %v4730_v37  ;;  %v5000_v35 = vpack.c.bf16 %v363_v17, %v361_v12  ;;  %v365_v5 = vld [vmem:[%s4692_s22 + $0xe8] sm:$0xff]  ;;  %v367_v12 = vld [vmem:[%s4692_s22 + $0xf8] sm:$0xff]  ;;  %v5040_v16 = vpack.c.bf16 %v366_v1, %v364_v0  ;;  %v5046_v19 = vpack.c.bf16 %v399_v15, %v397_v4 }
  0x3d   : > { %666 = vmatmul.bf16.gmra.mxu1 %v4732_v38  ;;  %706 = vmatmul.bf16.gmra.mxu3 %v4734_v39 }
  0x3e   : > { %944 = vmatpush.bf16.msrb.mxu2 %v3665_v21  ;;  %1033 = vmatpush.bf16.msrb.mxu3 %v3729_v30  ;;  %v3640_v21 = vld [vmem:[%s6101_s6] sm:$0xf]  ;;  %v4989_v30 = vpack.c.bf16 %v394_v2, %v392_v58  ;;  %v3645_v58 = vor.u32 %v4042_v54, %v3642_v55 }
  0x3f   : > { %1122 = vmatpush.bf16.msrb.mxu0 %v3669_v3  ;;  %1211 = vmatpush.bf16.msrb.mxu1 %v3733_v28  ;;  %v396_v2 = vld [vmem:[%s4692_s22 + $0x1e0] sm:$0xff]  ;;  %v398_v3 = vld [vmem:[%s4692_s22 + $0x1f0] sm:$0xff] }
  0x40   : > { %v5042_v17 = vpack.c.bf16 %v398_v3, %v396_v2 }
  0x42   : > { %945 = vmatpush.bf16.msrb.mxu2 %v3657_v31  ;;  %1034 = vmatpush.bf16.msrb.mxu3 %v3721_v46  ;;  %v3641_v31 = vor.u32 %v4043_v22, %v3640_v21  ;;  %v4060_v46 = vld [vmem:[%s6101_s6 + $0x94] sm:$0xf] }
  0x43   : > { %1123 = vmatpush.bf16.msrb.mxu0 %v3661_v42  ;;  %1212 = vmatpush.bf16.msrb.mxu1 %v3725_v43 }
  0x46   : > { %946 = vmatpush.bf16.msrb.mxu2 %v3649_v47  ;;  %1035 = vmatpush.bf16.msrb.mxu3 %v3713_v18  ;;  %v3714_v47 = vld [vmem:[%s6101_s6 + $0x98] sm:$0xf0]  ;;  %v5044_v18 = vpack.c.bf16 %v367_v12, %v365_v5 }
  0x47   : > { %v3717_v53 = vor.u32 %v4060_v46, %v3714_v47  ;;  %1124 = vmatpush.bf16.msrb.mxu0 %v3653_v52 }
  0x49   : > { %1213 = vmatpush.bf16.msrb.mxu1 %v3717_v53 }
  0x4a   : > { %947 = vmatpush.bf16.msrb.mxu2 %v3641_v31  ;;  %1036 = vmatpush.bf16.msrb.mxu3 %v3705_v41 }
  0x4b   : > { %1125 = vmatpush.bf16.msrb.mxu0 %v3645_v58 }
  0x4c   : > { %582 = vmatmul.bf16.gmra.mxu0 %v4748_v48  ;;  %622 = vmatmul.bf16.gmra.mxu2 %v4750_v49 }
  0x4d   : > { %671 = vmatmul.bf16.gmra.mxu1 %v4752_v50  ;;  %711 = vmatmul.bf16.gmra.mxu3 %v4754_v51 }
  0x4e   : > { %1214 = vmatpush.bf16.msrb.mxu1 %v3709_v59 }
  0x5c   : > { %587 = vmatmul.bf16.gmra.mxu0 %v4768_v60  ;;  %627 = vmatmul.bf16.gmra.mxu2 %v4770_v61 }
  0x5d   : > { %676 = vmatmul.bf16.gmra.mxu1 %v4772_v62  ;;  %716 = vmatmul.bf16.gmra.mxu3 %v4774_v63 }
  0x6c   : > { %592 = vmatmul.bf16.gmra.mxu0 %v4788_v8  ;;  %632 = vmatmul.bf16.gmra.mxu2 %v4790_v9 }
  0x6d   : > { %681 = vmatmul.bf16.gmra.mxu1 %v4792_v10  ;;  %721 = vmatmul.bf16.gmra.mxu3 %v4794_v11 }
  0x7c   : > { %597 = vmatmul.bf16.gmra.mxu0 %v4880_v6  ;;  %637 = vmatmul.bf16.gmra.mxu2 %v4882_v7 }
  0x7d   : > { %686 = vmatmul.bf16.gmra.mxu1 %v4884_v13  ;;  %726 = vmatmul.bf16.gmra.mxu3 %v4886_v14 }
  0x8c   : > { %602 = vmatmul.bf16.gmra.mxu0 %v4987_v29  ;;  %642 = vmatmul.bf16.gmra.mxu2 %v4989_v30 }
  0x8d   : > { %691 = vmatmul.bf16.gmra.mxu1 %v5000_v35  ;;  %731 = vmatmul.bf16.gmra.mxu3 %v5002_v40 }
  0x9c   : > { %607 = vmatmul.bf16.gmra.mxu0 %v5040_v16  ;;  %647 = vmatmul.bf16.gmra.mxu2 %v5042_v17 }
  0x9d   : > { %696 = vmatmul.bf16.gmra.mxu1 %v5044_v18  ;;  %736 = vmatmul.bf16.gmra.mxu3 %v5046_v19 }
  0xa9   : > { %v573_v21 = vpop.f32.mrf.mxu0 }
  0xaa   : > { %v662_v22 = vpop.f32.mrf.mxu1  ;;  %v574_v23 = vadd.f32 %v5055_v20, %v573_v21 }
  0xac   : > { %948 = vmatmul.bf16.vlgmr.msrb.gmra.mxu2 %v4708_v24  ;;  %1126 = vmatmul.bf16.vlgmr.msrb.gmra.mxu0 %v4708_v24  ;;  %v663_v31 = vadd.f32 %v662_v22, %v574_v23 }
  0xad   : > { %1037 = vmatmul.bf16.vlgmr.msrb.gmra.mxu3 %v4712_v26  ;;  %1215 = vmatmul.bf16.vlgmr.msrb.gmra.mxu1 %v4712_v26 }
  0xaf   : > { %v613_v28 = vpop.f32.mrf.mxu2 }
  0xb0   : > { %v614_v32 = vadd.f32 %v5055_v20, %v613_v28  ;;  %v702_v33 = vpop.f32.mrf.mxu3 }
  0xb1   : > { %v575_v34 = vpop.f32.mrf.mxu0 }
  0xb2   : > { %v703_v41 = vadd.f32 %v702_v33, %v614_v32  ;;  %v664_v42 = vpop.f32.mrf.mxu1  ;;  %v576_v43 = vadd.f32 %v5055_v20, %v575_v34 }
  0xb4   : > { %v4178_v44 = vpack.i.bf16 %v703_v41, %v663_v31  ;;  %v665_v46 = vadd.f32 %v664_v42, %v576_v43 }
  0xb6   : > { %4179 = vxpose.xlu0.b32.start [1/16] %v4178_v44, 128 }
  0xb7   : > { %v615_v45 = vpop.f32.mrf.mxu2 }
  0xb8   : > { %v616_v24 = vadd.f32 %v5055_v20, %v615_v45  ;;  %v704_v47 = vpop.f32.mrf.mxu3 }
  0xb9   : > { %v578_v52 = vpop.f32.mrf.mxu0 }
  0xba   : > { %v705_v53 = vadd.f32 %v704_v47, %v616_v24  ;;  %v667_v26 = vpop.f32.mrf.mxu1  ;;  %v579_v54 = vadd.f32 %v5055_v20, %v578_v52 }
  0xbc   : > { %953 = vmatmul.bf16.gmra.mxu2 %v4728_v36  ;;  %v4180_v55 = vpack.i.bf16 %v705_v53, %v665_v46  ;;  %1131 = vmatmul.bf16.gmra.mxu0 %v4728_v36  ;;  %v668_v57 = vadd.f32 %v667_v26, %v579_v54 }
  0xbd   : > { %1042 = vmatmul.bf16.gmra.mxu3 %v4732_v38  ;;  %1220 = vmatmul.bf16.gmra.mxu1 %v4732_v38 }
  0xbe   : > { %4181 = vxpose.xlu0.b32.cont [2/16] %v4180_v55, 128 }
  0xbf   : > { %v618_v56 = vpop.f32.mrf.mxu2 }
  0xc0   : > { %v619_v58 = vadd.f32 %v5055_v20, %v618_v56  ;;  %v707_v59 = vpop.f32.mrf.mxu3 }
  0xc1   : > { %v580_v0 = vpop.f32.mrf.mxu0 }
  0xc2   : > { %v708_v1 = vadd.f32 %v707_v59, %v619_v58  ;;  %v669_v2 = vpop.f32.mrf.mxu1  ;;  %v581_v3 = vadd.f32 %v5055_v20, %v580_v0 }
  0xc4   : > { %v4182_v4 = vpack.i.bf16 %v708_v1, %v668_v57  ;;  %v670_v12 = vadd.f32 %v669_v2, %v581_v3 }
  0xc6   : > { %4183 = vxpose.xlu0.b32.cont [3/16] %v4182_v4, 128 }
  0xc7   : > { %v620_v5 = vpop.f32.mrf.mxu2 }
  0xc8   : > { %v621_v36 = vadd.f32 %v5055_v20, %v620_v5  ;;  %v709_v15 = vpop.f32.mrf.mxu3 }
  0xc9   : > { %v583_v21 = vpop.f32.mrf.mxu0 }
  0xca   : > { %v710_v38 = vadd.f32 %v709_v15, %v621_v36  ;;  %v672_v22 = vpop.f32.mrf.mxu1  ;;  %v584_v23 = vadd.f32 %v5055_v20, %v583_v21 }
  0xcc   : > { %958 = vmatmul.bf16.gmra.mxu2 %v4748_v48  ;;  %v4184_v28 = vpack.i.bf16 %v710_v38, %v670_v12  ;;  %1136 = vmatmul.bf16.gmra.mxu0 %v4748_v48  ;;  %v673_v32 = vadd.f32 %v672_v22, %v584_v23 }
  0xcd   : > { %1047 = vmatmul.bf16.gmra.mxu3 %v4752_v50  ;;  %1225 = vmatmul.bf16.gmra.mxu1 %v4752_v50 }
  0xce   : > { %4185 = vxpose.xlu0.b32.cont [4/16] %v4184_v28, 128 }
  0xcf   : > { %v623_v31 = vpop.f32.mrf.mxu2 }
  0xd0   : > { %v624_v33 = vadd.f32 %v5055_v20, %v623_v31  ;;  %v712_v34 = vpop.f32.mrf.mxu3 }
  0xd1   : > { %v585_v41 = vpop.f32.mrf.mxu0 }
  0xd2   : > { %v713_v42 = vadd.f32 %v712_v34, %v624_v33  ;;  %v674_v43 = vpop.f32.mrf.mxu1  ;;  %v586_v44 = vadd.f32 %v5055_v20, %v585_v41 }
  0xd4   : > { %v4186_v45 = vpack.i.bf16 %v713_v42, %v673_v32  ;;  %v675_v24 = vadd.f32 %v674_v43, %v586_v44 }
  0xd6   : > { %4187 = vxpose.xlu0.b32.cont [5/16] %v4186_v45, 128 }
  0xd7   : > { %v625_v46 = vpop.f32.mrf.mxu2 }
  0xd8   : > { %v626_v48 = vadd.f32 %v5055_v20, %v625_v46  ;;  %v714_v47 = vpop.f32.mrf.mxu3 }
  0xd9   : > { %v588_v52 = vpop.f32.mrf.mxu0 }
  0xda   : > { %v715_v50 = vadd.f32 %v714_v47, %v626_v48  ;;  %v677_v53 = vpop.f32.mrf.mxu1  ;;  %v589_v26 = vadd.f32 %v5055_v20, %v588_v52 }
  0xdc   : > { %963 = vmatmul.bf16.gmra.mxu2 %v4768_v60  ;;  %v4188_v54 = vpack.i.bf16 %v715_v50, %v675_v24  ;;  %1141 = vmatmul.bf16.gmra.mxu0 %v4768_v60  ;;  %v678_v56 = vadd.f32 %v677_v53, %v589_v26 }
  0xdd   : > { %1052 = vmatmul.bf16.gmra.mxu3 %v4772_v62  ;;  %1230 = vmatmul.bf16.gmra.mxu1 %v4772_v62 }
  0xde   : > { %4189 = vxpose.xlu0.b32.cont [6/16] %v4188_v54, 128 }
  0xdf   : > { %v628_v55 = vpop.f32.mrf.mxu2 }
  0xe0   : > { %v629_v57 = vadd.f32 %v5055_v20, %v628_v55  ;;  %v717_v58 = vpop.f32.mrf.mxu3 }
  0xe1   : > { %v590_v59 = vpop.f32.mrf.mxu0 }
  0xe2   : > { %v718_v0 = vadd.f32 %v717_v58, %v629_v57  ;;  %v679_v1 = vpop.f32.mrf.mxu1  ;;  %v591_v2 = vadd.f32 %v5055_v20, %v590_v59 }
  0xe4   : > { %v4190_v3 = vpack.i.bf16 %v718_v0, %v678_v56  ;;  %v680_v5 = vadd.f32 %v679_v1, %v591_v2 }
  0xe6   : > { %4191 = vxpose.xlu0.b32.cont [7/16] %v4190_v3, 128 }
  0xe7   : > { %v630_v4 = vpop.f32.mrf.mxu2 }
  0xe8   : > { %v631_v60 = vadd.f32 %v5055_v20, %v630_v4  ;;  %v719_v12 = vpop.f32.mrf.mxu3 }
  0xe9   : > { %v593_v36 = vpop.f32.mrf.mxu0 }
  0xea   : > { %v720_v62 = vadd.f32 %v719_v12, %v631_v60  ;;  %v682_v15 = vpop.f32.mrf.mxu1  ;;  %v594_v21 = vadd.f32 %v5055_v20, %v593_v36 }
  0xec   : > { %968 = vmatmul.bf16.gmra.mxu2 %v4788_v8  ;;  %v4192_v38 = vpack.i.bf16 %v720_v62, %v680_v5  ;;  %1146 = vmatmul.bf16.gmra.mxu0 %v4788_v8  ;;  %v683_v23 = vadd.f32 %v682_v15, %v594_v21 }
  0xed   : > { %1057 = vmatmul.bf16.gmra.mxu3 %v4792_v10  ;;  %1235 = vmatmul.bf16.gmra.mxu1 %v4792_v10 }
  0xee   : > { %4193 = vxpose.xlu0.b32.cont [8/16] %v4192_v38, 128 }
  0xef   : > { %v633_v22 = vpop.f32.mrf.mxu2 }
  0xf0   : > { %v634_v28 = vadd.f32 %v5055_v20, %v633_v22  ;;  %v722_v31 = vpop.f32.mrf.mxu3 }
  0xf1   : > { %v595_v32 = vpop.f32.mrf.mxu0 }
  0xf2   : > { %v723_v33 = vadd.f32 %v722_v31, %v634_v28  ;;  %v684_v34 = vpop.f32.mrf.mxu1  ;;  %v596_v41 = vadd.f32 %v5055_v20, %v595_v32 }
  0xf4   : > { %v4194_v42 = vpack.i.bf16 %v723_v33, %v683_v23  ;;  %v685_v44 = vadd.f32 %v684_v34, %v596_v41 }
  0xf6   : > { %4195 = vxpose.xlu0.b32.cont [9/16] %v4194_v42, 128 }
  0xf7   : > { %v635_v43 = vpop.f32.mrf.mxu2 }
  0xf8   : > { %v636_v8 = vadd.f32 %v5055_v20, %v635_v43  ;;  %v724_v45 = vpop.f32.mrf.mxu3 }
  0xf9   : > { %v598_v46 = vpop.f32.mrf.mxu0 }
  0xfa   : > { %v725_v10 = vadd.f32 %v724_v45, %v636_v8  ;;  %v687_v24 = vpop.f32.mrf.mxu1  ;;  %v599_v48 = vadd.f32 %v5055_v20, %v598_v46 }
  0xfc   : > { %973 = vmatmul.bf16.gmra.mxu2 %v4880_v6  ;;  %v4196_v47 = vpack.i.bf16 %v725_v10, %v685_v44  ;;  %1151 = vmatmul.bf16.gmra.mxu0 %v4880_v6  ;;  %v688_v50 = vadd.f32 %v687_v24, %v599_v48 }
  0xfd   : > { %1062 = vmatmul.bf16.gmra.mxu3 %v4884_v13  ;;  %1240 = vmatmul.bf16.gmra.mxu1 %v4884_v13 }
  0xfe   : > { %4197 = vxpose.xlu0.b32.cont [10/16] %v4196_v47, 128 }
  0xff   : > { %v638_v52 = vpop.f32.mrf.mxu2 }
 0x100   : > { %v639_v53 = vadd.f32 %v5055_v20, %v638_v52  ;;  %v727_v26 = vpop.f32.mrf.mxu3 }
 0x101   : > { %v600_v54 = vpop.f32.mrf.mxu0 }
 0x102   : > { %v728_v55 = vadd.f32 %v727_v26, %v639_v53  ;;  %v689_v56 = vpop.f32.mrf.mxu1  ;;  %v601_v57 = vadd.f32 %v5055_v20, %v600_v54 }
 0x104   : > { %v4198_v58 = vpack.i.bf16 %v728_v55, %v688_v50  ;;  %v690_v0 = vadd.f32 %v689_v56, %v601_v57 }
 0x106   : > { %4199 = vxpose.xlu0.b32.cont [11/16] %v4198_v58, 128 }
 0x107   : > { %v640_v59 = vpop.f32.mrf.mxu2 }
 0x108   : > { %v641_v6 = vadd.f32 %v5055_v20, %v640_v59  ;;  %v729_v1 = vpop.f32.mrf.mxu3 }
 0x109   : > { %v603_v2 = vpop.f32.mrf.mxu0 }
 0x10a   : > { %v730_v13 = vadd.f32 %v729_v1, %v641_v6  ;;  %v692_v3 = vpop.f32.mrf.mxu1  ;;  %v604_v4 = vadd.f32 %v5055_v20, %v603_v2  ;;  %v4081_v2 = vld [vmem:[%s6097_s2 + $0x38] sm:$0xff] }
 0x10b   : > { %1690 = vmatpush.bf16.msra.mxu2 %v4081_v2 }
 0x10c   : > { %978 = vmatmul.bf16.gmra.mxu2 %v4987_v29  ;;  %v4200_v5 = vpack.i.bf16 %v730_v13, %v690_v0  ;;  %1156 = vmatmul.bf16.gmra.mxu0 %v4987_v29  ;;  %v693_v12 = vadd.f32 %v692_v3, %v604_v4 }
 0x10d   : > { %1067 = vmatmul.bf16.gmra.mxu3 %v5000_v35  ;;  %1245 = vmatmul.bf16.gmra.mxu1 %v5000_v35 }
 0x10e   : > { %4201 = vxpose.xlu0.b32.cont [12/16] %v4200_v5, 128 }
 0x10f   : > { %v643_v60 = vpop.f32.mrf.mxu2 }
 0x110   : > { %v644_v36 = vadd.f32 %v5055_v20, %v643_v60  ;;  %v732_v62 = vpop.f32.mrf.mxu3 }
 0x111   : > { %v605_v15 = vpop.f32.mrf.mxu0 }
 0x112   : > { %v733_v21 = vadd.f32 %v732_v62, %v644_v36  ;;  %v694_v38 = vpop.f32.mrf.mxu1  ;;  %v606_v22 = vadd.f32 %v5055_v20, %v605_v15 }
 0x114   : > { %v4202_v23 = vpack.i.bf16 %v733_v21, %v693_v12  ;;  %v695_v31 = vadd.f32 %v694_v38, %v606_v22 }
 0x116   : > { %4203 = vxpose.xlu0.b32.cont [13/16] %v4202_v23, 128 }
 0x117   : > { %v645_v28 = vpop.f32.mrf.mxu2 }
 0x118   : > { %v646_v29 = vadd.f32 %v5055_v20, %v645_v28  ;;  %v734_v32 = vpop.f32.mrf.mxu3 }
 0x119   : > { %v608_v33 = vpop.f32.mrf.mxu0 }
 0x11a   : > { %v735_v35 = vadd.f32 %v734_v32, %v646_v29  ;;  %v697_v34 = vpop.f32.mrf.mxu1  ;;  %v609_v41 = vadd.f32 %v5055_v20, %v608_v33 }
 0x11c   : > { %983 = vmatmul.bf16.gmra.mxu2 %v5040_v16  ;;  %v4204_v42 = vpack.i.bf16 %v735_v35, %v695_v31  ;;  %1161 = vmatmul.bf16.gmra.mxu0 %v5040_v16  ;;  %v698_v44 = vadd.f32 %v697_v34, %v609_v41  ;;  %v774_v16 = vld [vmem:[%s6102_s7] sm:$0x3] }
 0x11d   : > { %1072 = vmatmul.bf16.gmra.mxu3 %v5044_v18  ;;  %1250 = vmatmul.bf16.gmra.mxu1 %v5044_v18  ;;  %v5124_v26 = vperm.slane %v774_v16, 1  ;;  %v5127_v58 = vperm.slane %v774_v16, 0 }
 0x11e   : > { %4205 = vxpose.xlu0.b32.cont [14/16] %v4204_v42, 128 }
 0x11f   : > { %v648_v43 = vpop.f32.mrf.mxu2 }
 0x120   : > { %v649_v8 = vadd.f32 %v5055_v20, %v648_v43  ;;  %v737_v45 = vpop.f32.mrf.mxu3 }
 0x121   : > { %v610_v46 = vpop.f32.mrf.mxu0 }
 0x122   : > { %v738_v10 = vadd.f32 %v737_v45, %v649_v8  ;;  %v699_v24 = vpop.f32.mrf.mxu1  ;;  %v611_v48 = vadd.f32 %v5055_v20, %v610_v46 }
 0x124   : > { %v4206_v47 = vpack.i.bf16 %v738_v10, %v698_v44  ;;  %v700_v50 = vadd.f32 %v699_v24, %v611_v48 }
 0x126   : > { %4207 = vxpose.xlu0.b32.cont [15/16] %v4206_v47, 128 }
 0x127   : > { %v650_v52 = vpop.f32.mrf.mxu2 }
 0x128   : > { %v651_v18 = vadd.f32 %v5055_v20, %v650_v52  ;;  %v739_v53 = vpop.f32.mrf.mxu3 }
 0x129   : > { %v1127_v54 = vpop.f32.mrf.mxu0 }
 0x12a   : > { %v740_v55 = vadd.f32 %v739_v53, %v651_v18  ;;  %v1216_v56 = vpop.f32.mrf.mxu1  ;;  %v1128_v59 = vadd.f32 %v1127_v54, %v5124_v26 }
 0x12c   : > { %988 = vmatmul.bf16.gmra.mxu2 %v4710_v25  ;;  %v4208_v57 = vpack.i.bf16 %v740_v55, %v700_v50  ;;  %1166 = vmatmul.bf16.gmra.mxu0 %v4710_v25  ;;  %v1217_v1 = vadd.f32 %v1216_v56, %v1128_v59  ;;  %v4089_v25 = vld [vmem:[%s6097_s2 + $0x78] sm:$0xff]  ;;  %v4080_v50 = vld [vmem:[%s6097_s2 + $0x30] sm:$0xff] }
 0x12d   : > { %1077 = vmatmul.bf16.gmra.mxu3 %v4714_v27  ;;  %1255 = vmatmul.bf16.gmra.mxu1 %v4714_v27 }
 0x12e   : > { %4209 = vxpose.xlu0.b32.end [16/16] %v4208_v57, 128  ;;  %1779 = vmatpush.bf16.msra.mxu3 %v4089_v25 }
 0x12f   : > { %v949_v20 = vpop.f32.mrf.mxu2  ;;  %1691 = vmatpush.bf16.msra.mxu2 %v4080_v50 }
 0x130   : > { %v950_v0 = vadd.f32 %v949_v20, %v5127_v58  ;;  %v1038_v6 = vpop.f32.mrf.mxu3 }
 0x131   : > { %v1129_v13 = vpop.f32.mrf.mxu0 }
 0x132   : > { %v1039_v3 = vadd.f32 %v1038_v6, %v950_v0  ;;  %v1218_v4 = vpop.f32.mrf.mxu1  ;;  %v1130_v27 = vadd.f32 %v1129_v13, %v5124_v26 }
 0x134   : > { %v1392_v5 = vpack.c.bf16 %v1217_v1, %v1039_v3  ;;  %v1219_v62 = vadd.f32 %v1218_v4, %v1130_v27 }
 0x136   : > { %1424 = vst [vmem:[#allocation3] sm:$0xff] %v1392_v5 }
 0x137   : > { %v951_v60 = vpop.f32.mrf.mxu2 }
 0x138   : > { %v952_v12 = vadd.f32 %v951_v60, %v5127_v58  ;;  %v1040_v36 = vpop.f32.mrf.mxu3 }
 0x139   : > { %v1132_v15 = vpop.f32.mrf.mxu0 }
 0x13a   : > { %v1041_v21 = vadd.f32 %v1040_v36, %v952_v12  ;;  %v1221_v38 = vpop.f32.mrf.mxu1  ;;  %v1133_v23 = vadd.f32 %v1132_v15, %v5124_v26 }
 0x13c   : > { %993 = vmatmul.bf16.gmra.mxu2 %v4730_v37  ;;  %v1393_v22 = vpack.c.bf16 %v1219_v62, %v1041_v21  ;;  %1171 = vmatmul.bf16.gmra.mxu0 %v4730_v37  ;;  %v1222_v32 = vadd.f32 %v1221_v38, %v1133_v23 }
 0x13d   : > { %1082 = vmatmul.bf16.gmra.mxu3 %v4734_v39  ;;  %1260 = vmatmul.bf16.gmra.mxu1 %v4734_v39 }
 0x13e   : > { %1425 = vst [vmem:[#allocation3 + $0x8] sm:$0xff] %v1393_v22 }
 0x13f   : > { %v954_v28 = vpop.f32.mrf.mxu2 }
 0x140   : > { %v955_v31 = vadd.f32 %v954_v28, %v5127_v58  ;;  %v1043_v29 = vpop.f32.mrf.mxu3 }
 0x141   : > { %v1134_v33 = vpop.f32.mrf.mxu0 }
 0x142   : > { %v1044_v35 = vadd.f32 %v1043_v29, %v955_v31  ;;  %v1223_v34 = vpop.f32.mrf.mxu1  ;;  %v1135_v42 = vadd.f32 %v1134_v33, %v5124_v26 }
 0x144   : > { %v1394_v41 = vpack.c.bf16 %v1222_v32, %v1044_v35  ;;  %v1224_v8 = vadd.f32 %v1223_v34, %v1135_v42 }
 0x146   : > { %1426 = vst [vmem:[#allocation3 + $0x10] sm:$0xff] %v1394_v41 }
 0x147   : > { %v956_v43 = vpop.f32.mrf.mxu2 }
 0x148   : > { %v957_v37 = vadd.f32 %v956_v43, %v5127_v58  ;;  %v1045_v44 = vpop.f32.mrf.mxu3 }
 0x149   : > { %v1137_v45 = vpop.f32.mrf.mxu0 }
 0x14a   : > { %v1046_v39 = vadd.f32 %v1045_v44, %v957_v37  ;;  %v1226_v46 = vpop.f32.mrf.mxu1  ;;  %v1138_v24 = vadd.f32 %v1137_v45, %v5124_v26 }
 0x14c   : > { %998 = vmatmul.bf16.gmra.mxu2 %v4750_v49  ;;  %v1395_v10 = vpack.c.bf16 %v1224_v8, %v1046_v39  ;;  %1176 = vmatmul.bf16.gmra.mxu0 %v4750_v49  ;;  %v1227_v52 = vadd.f32 %v1226_v46, %v1138_v24  ;;  %v4088_v49 = vld [vmem:[%s6097_s2 + $0x70] sm:$0xff] }
 0x14d   : > { %1087 = vmatmul.bf16.gmra.mxu3 %v4754_v51  ;;  %1265 = vmatmul.bf16.gmra.mxu1 %v4754_v51 }
 0x14e   : > { %1427 = vst [vmem:[#allocation3 + $0x18] sm:$0xff] %v1395_v10  ;;  %1780 = vmatpush.bf16.msra.mxu3 %v4088_v49 }
 0x14f   : > { %v959_v48 = vpop.f32.mrf.mxu2 }
 0x150   : > { %v960_v47 = vadd.f32 %v959_v48, %v5127_v58  ;;  %v1048_v16 = vpop.f32.mrf.mxu3  ;;  %v4079_v48 = vld [vmem:[%s6097_s2 + $0x28] sm:$0xff] }
 0x151   : > { %v1139_v18 = vpop.f32.mrf.mxu0  ;;  %1692 = vmatpush.bf16.msra.mxu2 %v4079_v48 }
 0x152   : > { %v1049_v53 = vadd.f32 %v1048_v16, %v960_v47  ;;  %v1228_v54 = vpop.f32.mrf.mxu1  ;;  %v1140_v51 = vadd.f32 %v1139_v18, %v5124_v26 }
 0x154   : > { %v1396_v55 = vpack.c.bf16 %v1227_v52, %v1049_v53  ;;  %v1229_v20 = vadd.f32 %v1228_v54, %v1140_v51 }
 0x156   : > { %1428 = vst [vmem:[#allocation3 + $0x20] sm:$0xff] %v1396_v55 }
 0x157   : > { %v961_v56 = vpop.f32.mrf.mxu2 }
 0x158   : > { %v962_v57 = vadd.f32 %v961_v56, %v5127_v58  ;;  %v1050_v59 = vpop.f32.mrf.mxu3 }
 0x159   : > { %v1142_v0 = vpop.f32.mrf.mxu0 }
 0x15a   : > { %v1051_v6 = vadd.f32 %v1050_v59, %v962_v57  ;;  %v4210_v1 = vpop.trf.xlu0  ;;  %v1231_v2 = vpop.f32.mrf.mxu1  ;;  %v1143_v25 = vadd.f32 %v1142_v0, %v5124_v26  ;;  %v4078_v59 = vld [vmem:[%s6097_s2 + $0x20] sm:$0xff] }
 0x15b   : > { %v4214_v13 = vunpack.i.h.bf16 %v4210_v1  ;;  %v4211_v3 = vunpack.i.l.bf16 %v4210_v1  ;;  %1693 = vmatpush.bf16.msra.mxu2 %v4078_v59 }
 0x15c   : > { %1003 = vmatmul.bf16.gmra.mxu2 %v4770_v61  ;;  %v1397_v4 = vpack.c.bf16 %v1229_v20, %v1051_v6  ;;  %1181 = vmatmul.bf16.gmra.mxu0 %v4770_v61  ;;  %v1232_v36 = vadd.f32 %v1231_v2, %v1143_v25  ;;  %v4086_v20 = vld [vmem:[%s6097_s2 + $0x60] sm:$0xff] }
 0x15d   : > { %v1360_v5 = vpack.c.bf16 %v4214_v13, %v4211_v3  ;;  %1092 = vmatmul.bf16.gmra.mxu3 %v4774_v63  ;;  %1270 = vmatmul.bf16.gmra.mxu1 %v4774_v63 }
 0x15e   : > { %1429 = vst [vmem:[#allocation3 + $0x28] sm:$0xff] %v1397_v4 }
 0x15f   : > { %1376 = vst [vmem:[#allocation2] sm:$0xff] %v1360_v5  ;;  %v964_v27 = vpop.f32.mrf.mxu2  ;;  %v4077_v5 = vld [vmem:[%s6097_s2 + $0x18] sm:$0xff] }
 0x160   : > { %v965_v60 = vadd.f32 %v964_v27, %v5127_v58  ;;  %v1053_v12 = vpop.f32.mrf.mxu3  ;;  %v4085_v27 = vld [vmem:[%s6097_s2 + $0x58] sm:$0xff]  ;;  %1694 = vmatpush.bf16.msra.mxu2 %v4077_v5 }
 0x161   : > { %v1144_v62 = vpop.f32.mrf.mxu0 }
 0x162   : > { %v1054_v15 = vadd.f32 %v1053_v12, %v965_v60  ;;  %v4215_v21 = vpop.trf.xlu0  ;;  %v1233_v38 = vpop.f32.mrf.mxu1  ;;  %v1145_v61 = vadd.f32 %v1144_v62, %v5124_v26 }
 0x163   : > { %v4219_v22 = vunpack.i.h.bf16 %v4215_v21  ;;  %v4216_v23 = vunpack.i.l.bf16 %v4215_v21  ;;  %v4084_v21 = vld [vmem:[%s6097_s2 + $0x50] sm:$0xff] }
 0x164   : > { %v1398_v28 = vpack.c.bf16 %v1232_v36, %v1054_v15  ;;  %v1234_v33 = vadd.f32 %v1233_v38, %v1145_v61  ;;  %v4076_v15 = vld [vmem:[%s6097_s2 + $0x10] sm:$0xff] }
 0x165   : > { %v1361_v31 = vpack.c.bf16 %v4219_v22, %v4216_v23  ;;  %1695 = vmatpush.bf16.msra.mxu2 %v4076_v15 }
 0x166   : > { %1430 = vst [vmem:[#allocation3 + $0x30] sm:$0xff] %v1398_v28 }
 0x167   : > { %1377 = vst [vmem:[#allocation2 + $0x8] sm:$0xff] %v1361_v31  ;;  %v966_v63 = vpop.f32.mrf.mxu2 }
 0x168   : > { %v967_v29 = vadd.f32 %v966_v63, %v5127_v58  ;;  %v1055_v32 = vpop.f32.mrf.mxu3 }
 0x169   : > { %v1147_v35 = vpop.f32.mrf.mxu0 }
 0x16a   : > { %v1056_v34 = vadd.f32 %v1055_v32, %v967_v29  ;;  %v4220_v41 = vpop.trf.xlu0  ;;  %v1236_v42 = vpop.f32.mrf.mxu1  ;;  %v1148_v8 = vadd.f32 %v1147_v35, %v5124_v26  ;;  %v4075_v29 = vld [vmem:[%s6097_s2 + $0x8] sm:$0xff] }
 0x16b   : > { %v4224_v43 = vunpack.i.h.bf16 %v4220_v41  ;;  %v4221_v37 = vunpack.i.l.bf16 %v4220_v41  ;;  %v4083_v32 = vld [vmem:[%s6097_s2 + $0x48] sm:$0xff]  ;;  %1696 = vmatpush.bf16.msra.mxu2 %v4075_v29 }
 0x16c   : > { %1008 = vmatmul.bf16.gmra.mxu2 %v4790_v9  ;;  %v1399_v44 = vpack.c.bf16 %v1234_v33, %v1056_v34  ;;  %1186 = vmatmul.bf16.gmra.mxu0 %v4790_v9  ;;  %v1237_v24 = vadd.f32 %v1236_v42, %v1148_v8 }
 0x16d   : > { %v1362_v45 = vpack.c.bf16 %v4224_v43, %v4221_v37  ;;  %1097 = vmatmul.bf16.gmra.mxu3 %v4794_v11  ;;  %1275 = vmatmul.bf16.gmra.mxu1 %v4794_v11  ;;  %v4087_v11 = vld [vmem:[%s6097_s2 + $0x68] sm:$0xff]  ;;  %v4074_v43 = vld [vmem:[%s6097_s2] sm:$0xff] }
 0x16e   : > { %1431 = vst [vmem:[#allocation3 + $0x38] sm:$0xff] %v1399_v44  ;;  %1781 = vmatpush.bf16.msra.mxu3 %v4087_v11  ;;  %v4082_v37 = vld [vmem:[%s6097_s2 + $0x40] sm:$0xff] }
 0x16f   : > { %1378 = vst [vmem:[#allocation2 + $0x10] sm:$0xff] %v1362_v45  ;;  %v969_v39 = vpop.f32.mrf.mxu2  ;;  %1697 = vmatpush.bf16.msra.mxu2 %v4074_v43 }
 0x170   : > { %v970_v46 = vadd.f32 %v969_v39, %v5127_v58  ;;  %v1058_v10 = vpop.f32.mrf.mxu3 }
 0x171   : > { %v1149_v47 = vpop.f32.mrf.mxu0 }
 0x172   : > { %v1059_v16 = vadd.f32 %v1058_v10, %v970_v46  ;;  %v4225_v52 = vpop.trf.xlu0  ;;  %v1238_v9 = vpop.f32.mrf.mxu1  ;;  %v1150_v54 = vadd.f32 %v1149_v47, %v5124_v26  ;;  %1782 = vmatpush.bf16.msra.mxu3 %v4086_v20 }
 0x173   : > { %v4229_v50 = vunpack.i.h.bf16 %v4225_v52  ;;  %v4226_v18 = vunpack.i.l.bf16 %v4225_v52 }
 0x174   : > { %v1400_v53 = vpack.c.bf16 %v1237_v24, %v1059_v16  ;;  %v1239_v57 = vadd.f32 %v1238_v9, %v1150_v54 }
 0x175   : > { %v1363_v49 = vpack.c.bf16 %v4229_v50, %v4226_v18 }
 0x176   : > { %1432 = vst [vmem:[#allocation3 + $0x40] sm:$0xff] %v1400_v53  ;;  %1783 = vmatpush.bf16.msra.mxu3 %v4085_v27 }
 0x177   : > { %1379 = vst [vmem:[#allocation2 + $0x18] sm:$0xff] %v1363_v49  ;;  %v971_v55 = vpop.f32.mrf.mxu2 }
 0x178   : > { %v972_v51 = vadd.f32 %v971_v55, %v5127_v58  ;;  %v1060_v56 = vpop.f32.mrf.mxu3 }
 0x179   : > { %v1152_v0 = vpop.f32.mrf.mxu0 }
 0x17a   : > { %v1061_v6 = vadd.f32 %v1060_v56, %v972_v51  ;;  %v4230_v1 = vpop.trf.xlu0  ;;  %v1241_v2 = vpop.f32.mrf.mxu1  ;;  %v1153_v25 = vadd.f32 %v1152_v0, %v5124_v26  ;;  %1784 = vmatpush.bf16.msra.mxu3 %v4084_v21 }
 0x17b   : > { %v4234_v13 = vunpack.i.h.bf16 %v4230_v1  ;;  %v4231_v3 = vunpack.i.l.bf16 %v4230_v1 }
 0x17c   : > { %1013 = vmatmul.bf16.gmra.mxu2 %v4882_v7  ;;  %v1401_v4 = vpack.c.bf16 %v1239_v57, %v1061_v6  ;;  %1191 = vmatmul.bf16.gmra.mxu0 %v4882_v7  ;;  %v1242_v62 = vadd.f32 %v1241_v2, %v1153_v25 }
 0x17d   : > { %v1364_v60 = vpack.c.bf16 %v4234_v13, %v4231_v3  ;;  %1102 = vmatmul.bf16.gmra.mxu3 %v4886_v14  ;;  %1280 = vmatmul.bf16.gmra.mxu1 %v4886_v14 }
 0x17e   : > { %1433 = vst [vmem:[#allocation3 + $0x48] sm:$0xff] %v1401_v4  ;;  %1785 = vmatpush.bf16.msra.mxu3 %v4083_v32 }
 0x17f   : > { %1380 = vst [vmem:[#allocation2 + $0x20] sm:$0xff] %v1364_v60  ;;  %v974_v12 = vpop.f32.mrf.mxu2 }
 0x180   : > { %v975_v7 = vadd.f32 %v974_v12, %v5127_v58  ;;  %v1063_v36 = vpop.f32.mrf.mxu3 }
 0x181   : > { %v1154_v38 = vpop.f32.mrf.mxu0 }
 0x182   : > { %v1064_v22 = vadd.f32 %v1063_v36, %v975_v7  ;;  %v4235_v14 = vpop.trf.xlu0  ;;  %v1243_v23 = vpop.f32.mrf.mxu1  ;;  %v1155_v63 = vadd.f32 %v1154_v38, %v5124_v26  ;;  %1786 = vmatpush.bf16.msra.mxu3 %v4082_v37 }
 0x183   : > { %v4239_v28 = vunpack.i.h.bf16 %v4235_v14  ;;  %v4236_v61 = vunpack.i.l.bf16 %v4235_v14 }
 0x184   : > { %v1402_v31 = vpack.c.bf16 %v1242_v62, %v1064_v22  ;;  %v1244_v42 = vadd.f32 %v1243_v23, %v1155_v63  ;;  %v1462_v23 = vld [vmem:[%s4692_s22] sm:$0xff] }
 0x185   : > { %v1365_v33 = vpack.c.bf16 %v4239_v28, %v4236_v61  ;;  %v1464_v28 = vld [vmem:[%s4692_s22 + $0x10] sm:$0xff]  ;;  %v1463_v61 = vld [vmem:[%s4692_s22 + $0x8] sm:$0xff] }
 0x186   : > { %1434 = vst [vmem:[#allocation3 + $0x50] sm:$0xff] %v1402_v31  ;;  %v1465_v31 = vld [vmem:[%s4692_s22 + $0x18] sm:$0xff] }
 0x187   : > { %1381 = vst [vmem:[#allocation2 + $0x28] sm:$0xff] %v1365_v33  ;;  %v976_v35 = vpop.f32.mrf.mxu2  ;;  %v1526_v33 = vpack.c.bf16 %v1464_v28, %v1462_v23 }
 0x188   : > { %v977_v34 = vadd.f32 %v976_v35, %v5127_v58  ;;  %v1065_v41 = vpop.f32.mrf.mxu3 }
 0x189   : > { %v1157_v44 = vpop.f32.mrf.mxu0 }
 0x18a   : > { %v1066_v8 = vadd.f32 %v1065_v41, %v977_v34  ;;  %v4240_v45 = vpop.trf.xlu0  ;;  %v1246_v39 = vpop.f32.mrf.mxu1  ;;  %v1158_v48 = vadd.f32 %v1157_v44, %v5124_v26  ;;  %v1527_v34 = vpack.c.bf16 %v1465_v31, %v1463_v61  ;;  %v3928_v31 = vld [vmem:[#allocation3 + $0x40] sm:$0xf] }
 0x18b   : > { %v4244_v46 = vunpack.i.h.bf16 %v4240_v45  ;;  %v4241_v10 = vunpack.i.l.bf16 %v4240_v45 }
 0x18c   : > { %1018 = vmatmul.bf16.gmra.mxu2 %v4989_v30  ;;  %v1403_v24 = vpack.c.bf16 %v1244_v42, %v1066_v8  ;;  %1196 = vmatmul.bf16.gmra.mxu0 %v4989_v30  ;;  %v1247_v11 = vadd.f32 %v1246_v39, %v1158_v48 }
 0x18d   : > { %v1366_v47 = vpack.c.bf16 %v4244_v46, %v4241_v10  ;;  %1107 = vmatmul.bf16.gmra.mxu3 %v5002_v40  ;;  %1285 = vmatmul.bf16.gmra.mxu1 %v5002_v40 }
 0x18e   : > { %1435 = vst [vmem:[#allocation3 + $0x58] sm:$0xff] %v1403_v24 }
 0x18f   : > { %1382 = vst [vmem:[#allocation2 + $0x30] sm:$0xff] %v1366_v47  ;;  %v979_v16 = vpop.f32.mrf.mxu2 }
 0x190   : > { %v980_v52 = vadd.f32 %v979_v16, %v5127_v58  ;;  %v1068_v9 = vpop.f32.mrf.mxu3 }
 0x191   : > { %v1159_v50 = vpop.f32.mrf.mxu0 }
 0x192   : > { %v1069_v18 = vadd.f32 %v1068_v9, %v980_v52  ;;  %v4245_v53 = vpop.trf.xlu0  ;;  %v1248_v54 = vpop.f32.mrf.mxu1  ;;  %v1160_v30 = vadd.f32 %v1159_v50, %v5124_v26 }
 0x193   : > { %v4249_v49 = vunpack.i.h.bf16 %v4245_v53  ;;  %v4246_v55 = vunpack.i.l.bf16 %v4245_v53  ;;  %v1466_v53 = vld [vmem:[%s4692_s22 + $0x20] sm:$0xff] }
 0x194   : > { %v1404_v51 = vpack.c.bf16 %v1247_v11, %v1069_v18  ;;  %v1249_v20 = vadd.f32 %v1248_v54, %v1160_v30 }
 0x195   : > { %v1367_v56 = vpack.c.bf16 %v4249_v49, %v4246_v55 }
 0x196   : > { %1436 = vst [vmem:[#allocation3 + $0x60] sm:$0xff] %v1404_v51  ;;  %v1468_v51 = vld [vmem:[%s4692_s22 + $0x30] sm:$0xff] }
 0x197   : > { %1383 = vst [vmem:[#allocation2 + $0x38] sm:$0xff] %v1367_v56  ;;  %v981_v40 = vpop.f32.mrf.mxu2 }
 0x198   : > { %v982_v57 = vadd.f32 %v981_v40, %v5127_v58  ;;  %v1070_v59 = vpop.f32.mrf.mxu3  ;;  %v1467_v40 = vld [vmem:[%s4692_s22 + $0x28] sm:$0xff] }
 0x199   : > { %v1162_v0 = vpop.f32.mrf.mxu0 }
 0x19a   : > { %v1071_v6 = vadd.f32 %v1070_v59, %v982_v57  ;;  %v4250_v1 = vpop.trf.xlu0  ;;  %v1251_v2 = vpop.f32.mrf.mxu1  ;;  %v1163_v25 = vadd.f32 %v1162_v0, %v5124_v26  ;;  %v1469_v57 = vld [vmem:[%s4692_s22 + $0x38] sm:$0xff] }
 0x19b   : > { %v4254_v13 = vunpack.i.h.bf16 %v4250_v1  ;;  %v4251_v3 = vunpack.i.l.bf16 %v4250_v1 }
 0x19c   : > { %1023 = vmatmul.bf16.gmra.mxu2 %v5042_v17  ;;  %v1405_v4 = vpack.c.bf16 %v1249_v20, %v1071_v6  ;;  %1201 = vmatmul.bf16.gmra.mxu0 %v5042_v17  ;;  %v1252_v7 = vadd.f32 %v1251_v2, %v1163_v25  ;;  %v1528_v2 = vpack.c.bf16 %v1468_v51, %v1466_v53 }
 0x19d   : > { %v1368_v5 = vpack.c.bf16 %v4254_v13, %v4251_v3  ;;  %1112 = vmatmul.bf16.gmra.mxu3 %v5046_v19  ;;  %1290 = vmatmul.bf16.gmra.mxu1 %v5046_v19  ;;  %v1529_v3 = vpack.c.bf16 %v1469_v57, %v1467_v40 }
 0x19e   : > { %1437 = vst [vmem:[#allocation3 + $0x68] sm:$0xff] %v1405_v4  ;;  %v3944_v4 = vld [vmem:[#allocation3 + $0x60] sm:$0xf] }
 0x19f   : > { %1384 = vst [vmem:[#allocation2 + $0x40] sm:$0xff] %v1368_v5  ;;  %v984_v27 = vpop.f32.mrf.mxu2 }
 0x1a0   : > { %v985_v60 = vadd.f32 %v984_v27, %v5127_v58  ;;  %v1073_v12 = vpop.f32.mrf.mxu3 }
 0x1a1   : > { %v1164_v36 = vpop.f32.mrf.mxu0 }
 0x1a2   : > { %v1074_v62 = vadd.f32 %v1073_v12, %v985_v60  ;;  %v4255_v15 = vpop.trf.xlu0  ;;  %v1253_v17 = vpop.f32.mrf.mxu1  ;;  %v1165_v19 = vadd.f32 %v1164_v36, %v5124_v26 }
 0x1a3   : > { %v4259_v21 = vunpack.i.h.bf16 %v4255_v15  ;;  %v4256_v38 = vunpack.i.l.bf16 %v4255_v15 }
 0x1a4   : > { %v1406_v22 = vpack.c.bf16 %v1252_v7, %v1074_v62  ;;  %v1254_v35 = vadd.f32 %v1253_v17, %v1165_v19  ;;  %v4117_v17 = vld [vmem:[#allocation3 + $0x54] sm:$0xf0] }
 0x1a5   : > { %v1369_v14 = vpack.c.bf16 %v4259_v21, %v4256_v38  ;;  %v4119_v0 = vld [vmem:[#allocation3 + $0x64] sm:$0xf0]  ;;  %v3936_v38 = vld [vmem:[#allocation3 + $0x50] sm:$0xf] }
 0x1a6   : > { %1438 = vst [vmem:[#allocation3 + $0x70] sm:$0xff] %v1406_v22  ;;  %v3945_v60 = vor.u32 %v4119_v0, %v3944_v4  ;;  %v3937_v19 = vor.u32 %v4117_v17, %v3936_v38  ;;  %v3904_v0 = vld [vmem:[#allocation3 + $0x10] sm:$0xf]  ;;  %v1474_v38 = vld [vmem:[%s4692_s22 + $0x60] sm:$0xff] }
 0x1a7   : > { %1385 = vst [vmem:[#allocation2 + $0x48] sm:$0xff] %v1369_v14  ;;  %v986_v63 = vpop.f32.mrf.mxu2  ;;  %v4115_v14 = vld [vmem:[#allocation3 + $0x44] sm:$0xf0] }
 0x1a8   : > { %v987_v29 = vadd.f32 %v986_v63, %v5127_v58  ;;  %v1075_v32 = vpop.f32.mrf.mxu3 }
 0x1a9   : > { %v1167_v41 = vpop.f32.mrf.mxu0 }
 0x1aa   : > { %v1076_v42 = vadd.f32 %v1075_v32, %v987_v29  ;;  %v4260_v43 = vpop.trf.xlu0  ;;  %v1256_v37 = vpop.f32.mrf.mxu1  ;;  %v1168_v39 = vadd.f32 %v1167_v41, %v5124_v26 }
 0x1ab   : > { %v4264_v44 = vunpack.i.h.bf16 %v4260_v43  ;;  %v4261_v8 = vunpack.i.l.bf16 %v4260_v43 }
 0x1ac   : > { %1698 = vmatmul.bf16.vlgmr.msra.gmra.mxu2 %v1526_v33  ;;  %v1407_v45 = vpack.c.bf16 %v1254_v35, %v1076_v42  ;;  %v1257_v47 = vadd.f32 %v1256_v37, %v1168_v39  ;;  %v3929_v33 = vor.u32 %v4115_v14, %v3928_v31  ;;  %v4113_v37 = vld [vmem:[#allocation3 + $0x34] sm:$0xf0]  ;;  %v1471_v39 = vld [vmem:[%s4692_s22 + $0x48] sm:$0xff] }
 0x1ad   : > { %v1370_v46 = vpack.c.bf16 %v4264_v44, %v4261_v8  ;;  %1787 = vmatmul.bf16.vlgmr.msra.gmra.mxu3 %v1527_v34  ;;  %v3952_v30 = vld [vmem:[#allocation3 + $0x70] sm:$0xf]  ;;  %v1470_v8 = vld [vmem:[%s4692_s22 + $0x40] sm:$0xff]  ;;  %v1477_v14 = vld [vmem:[%s4692_s22 + $0x78] sm:$0xff] }
 0x1ae   : > { %1439 = vst [vmem:[#allocation3 + $0x78] sm:$0xff] %v1407_v45  ;;  %v1472_v45 = vld [vmem:[%s4692_s22 + $0x50] sm:$0xff] }
 0x1af   : > { %1386 = vst [vmem:[#allocation2 + $0x50] sm:$0xff] %v1370_v46  ;;  %v989_v10 = vpop.f32.mrf.mxu2  ;;  %v1473_v46 = vld [vmem:[%s4692_s22 + $0x58] sm:$0xff] }
 0x1b0   : > { %v990_v24 = vadd.f32 %v989_v10, %v5127_v58  ;;  %v1078_v48 = vpop.f32.mrf.mxu3  ;;  %v3920_v10 = vld [vmem:[#allocation3 + $0x30] sm:$0xf] }
 0x1b1   : > { %v1169_v16 = vpop.f32.mrf.mxu0 }
 0x1b2   : > { %v1079_v52 = vadd.f32 %v1078_v48, %v990_v24  ;;  %v4265_v9 = vpop.trf.xlu0  ;;  %v1258_v11 = vpop.f32.mrf.mxu1  ;;  %v1170_v49 = vadd.f32 %v1169_v16, %v5124_v26  ;;  %v3921_v48 = vor.u32 %v4113_v37, %v3920_v10 }
 0x1b3   : > { %v4269_v50 = vunpack.i.h.bf16 %v4265_v9  ;;  %v4266_v18 = vunpack.i.l.bf16 %v4265_v9  ;;  %v1530_v9 = vpack.c.bf16 %v1472_v45, %v1470_v8 }
 0x1b4   : > { %v1408_v54 = vpack.c.bf16 %v1257_v47, %v1079_v52  ;;  %v1259_v13 = vadd.f32 %v1258_v11, %v1170_v49  ;;  %v4111_v47 = vld [vmem:[#allocation3 + $0x24] sm:$0xf0] }
 0x1b5   : > { %v1371_v55 = vpack.c.bf16 %v4269_v50, %v4266_v18  ;;  %v4121_v56 = vld [vmem:[#allocation3 + $0x74] sm:$0xf0]  ;;  %v1531_v50 = vpack.c.bf16 %v1473_v46, %v1471_v39  ;;  %v3912_v18 = vld [vmem:[#allocation3 + $0x20] sm:$0xf] }
 0x1b6   : > { %1440 = vst [vmem:[#allocation3 + $0x80] sm:$0xff] %v1408_v54  ;;  %v3953_v59 = vor.u32 %v4121_v56, %v3952_v30 }
 0x1b7   : > { %1387 = vst [vmem:[#allocation2 + $0x58] sm:$0xff] %v1371_v55  ;;  %v991_v20 = vpop.f32.mrf.mxu2  ;;  %v3913_v55 = vor.u32 %v4111_v47, %v3912_v18 }
 0x1b8   : > { %v992_v6 = vadd.f32 %v991_v20, %v5127_v58  ;;  %v1080_v1 = vpop.f32.mrf.mxu3  ;;  %2862 = vmatpush.bf16.msrb.mxu2 %v3953_v59  ;;  %v4109_v59 = vld [vmem:[#allocation3 + $0x14] sm:$0xf0] }
 0x1b9   : > { %v1172_v25 = vpop.f32.mrf.mxu0 }
 0x1ba   : > { %v1081_v5 = vadd.f32 %v1080_v1, %v992_v6  ;;  %v4270_v27 = vpop.trf.xlu0  ;;  %v1261_v12 = vpop.f32.mrf.mxu1  ;;  %v1173_v15 = vadd.f32 %v1172_v25, %v5124_v26  ;;  %v3905_v1 = vor.u32 %v4109_v59, %v3904_v0  ;;  %v3896_v25 = vld [vmem:[#allocation3] sm:$0xf] }
 0x1bb   : > { %v4274_v7 = vunpack.i.h.bf16 %v4270_v27  ;;  %v4271_v36 = vunpack.i.l.bf16 %v4270_v27 }
 0x1bc   : > { %1703 = vmatmul.bf16.gmra.mxu2 %v1528_v2  ;;  %v1409_v62 = vpack.c.bf16 %v1259_v13, %v1081_v5  ;;  %v1262_v61 = vadd.f32 %v1261_v12, %v1173_v15  ;;  %v4107_v2 = vld [vmem:[#allocation3 + $0x4] sm:$0xf0] }
 0x1bd   : > { %v1372_v21 = vpack.c.bf16 %v4274_v7, %v4271_v36  ;;  %1792 = vmatmul.bf16.gmra.mxu3 %v1529_v3  ;;  %2863 = vmatpush.bf16.msrb.mxu2 %v3945_v60  ;;  %v3897_v12 = vor.u32 %v4107_v2, %v3896_v25  ;;  %v4098_v2 = vld [vmem:[#allocation2 + $0x44] sm:$0xf] }
 0x1be   : > { %1441 = vst [vmem:[#allocation3 + $0x88] sm:$0xff] %v1409_v62 }
 0x1bf   : > { %1388 = vst [vmem:[#allocation2 + $0x60] sm:$0xff] %v1372_v21  ;;  %v994_v22 = vpop.f32.mrf.mxu2 }
 0x1c0   : > { %v995_v23 = vadd.f32 %v994_v22, %v5127_v58  ;;  %v1083_v28 = vpop.f32.mrf.mxu3  ;;  %v1476_v22 = vld [vmem:[%s4692_s22 + $0x70] sm:$0xff] }
 0x1c1   : > { %2864 = vmatpush.bf16.msrb.mxu2 %v3937_v19  ;;  %v1174_v63 = vpop.f32.mrf.mxu0  ;;  %v1475_v19 = vld [vmem:[%s4692_s22 + $0x68] sm:$0xff]  ;;  %v1532_v31 = vpack.c.bf16 %v1476_v22, %v1474_v38 }
 0x1c2   : > { %v1084_v29 = vadd.f32 %v1083_v28, %v995_v23  ;;  %v4275_v32 = vpop.trf.xlu0  ;;  %v1263_v35 = vpop.f32.mrf.mxu1  ;;  %v1175_v43 = vadd.f32 %v1174_v63, %v5124_v26 }
 0x1c3   : > { %v4279_v34 = vunpack.i.h.bf16 %v4275_v32  ;;  %v4276_v41 = vunpack.i.l.bf16 %v4275_v32 }
 0x1c4   : > { %v1410_v42 = vpack.c.bf16 %v1262_v61, %v1084_v29  ;;  %v1264_v11 = vadd.f32 %v1263_v35, %v1175_v43  ;;  %v1533_v29 = vpack.c.bf16 %v1477_v14, %v1475_v19  ;;  %v3848_v19 = vld [vmem:[#allocation2 + $0x20] sm:$0xf] }
 0x1c5   : > { %v1373_v44 = vpack.c.bf16 %v4279_v34, %v4276_v41  ;;  %2865 = vmatpush.bf16.msrb.mxu2 %v3929_v33 }
 0x1c6   : > { %1442 = vst [vmem:[#allocation3 + $0x90] sm:$0xff] %v1410_v42  ;;  %v3880_v42 = vld [vmem:[#allocation2 + $0x60] sm:$0xf]  ;;  %v4102_v8 = vld [vmem:[#allocation2 + $0x64] sm:$0xf] }
 0x1c7   : > { %1389 = vst [vmem:[#allocation2 + $0x68] sm:$0xff] %v1373_v44  ;;  %v996_v24 = vpop.f32.mrf.mxu2 }
 0x1c8   : > { %v997_v16 = vadd.f32 %v996_v24, %v5127_v58  ;;  %v1085_v52 = vpop.f32.mrf.mxu3 }
 0x1c9   : > { %2866 = vmatpush.bf16.msrb.mxu2 %v3921_v48  ;;  %v1177_v53 = vpop.f32.mrf.mxu0 }
 0x1ca   : > { %v1086_v54 = vadd.f32 %v1085_v52, %v997_v16  ;;  %v4280_v49 = vpop.trf.xlu0  ;;  %v1266_v51 = vpop.f32.mrf.mxu1  ;;  %v1178_v57 = vadd.f32 %v1177_v53, %v5124_v26 }
 0x1cb   : > { %v4284_v30 = vunpack.i.h.bf16 %v4280_v49  ;;  %v4281_v56 = vunpack.i.l.bf16 %v4280_v49  ;;  %v4100_v49 = vld [vmem:[#allocation2 + $0x54] sm:$0xf] }
 0x1cc   : > { %1708 = vmatmul.bf16.gmra.mxu2 %v1530_v9  ;;  %v1411_v40 = vpack.c.bf16 %v1264_v11, %v1086_v54  ;;  %v1267_v4 = vadd.f32 %v1266_v51, %v1178_v57  ;;  %v4101_v54 = vld [vmem:[#allocation2 + $0x54] sm:$0xf0] }
 0x1cd   : > { %v1374_v20 = vpack.c.bf16 %v4284_v30, %v4281_v56  ;;  %1797 = vmatmul.bf16.gmra.mxu3 %v1531_v50  ;;  %2867 = vmatpush.bf16.msrb.mxu2 %v3913_v55  ;;  %v3872_v50 = vld [vmem:[#allocation2 + $0x50] sm:$0xf]  ;;  %v3874_v55 = vld [vmem:[#allocation2 + $0x58] sm:$0xf0] }
 0x1ce   : > { %1443 = vst [vmem:[#allocation3 + $0x98] sm:$0xff] %v1411_v40  ;;  %v4103_v44 = vld [vmem:[#allocation2 + $0x64] sm:$0xf0]  ;;  %v3882_v45 = vld [vmem:[#allocation2 + $0x68] sm:$0xf0]  ;;  %v3873_v40 = vor.u32 %v4101_v54, %v3872_v50  ;;  %v3877_v57 = vor.u32 %v4100_v49, %v3874_v55 }
 0x1cf   : > { %1390 = vst [vmem:[#allocation2 + $0x70] sm:$0xff] %v1374_v20  ;;  %v999_v6 = vpop.f32.mrf.mxu2  ;;  %v3881_v9 = vor.u32 %v4103_v44, %v3880_v42  ;;  %v3885_v11 = vor.u32 %v4102_v8, %v3882_v45  ;;  %v3864_v20 = vld [vmem:[#allocation2 + $0x40] sm:$0xf]  ;;  %v4093_v42 = vld [vmem:[#allocation2 + $0x14] sm:$0xf0] }
 0x1d0   : > { %v1000_v13 = vadd.f32 %v999_v6, %v5127_v58  ;;  %v1088_v3 = vpop.f32.mrf.mxu3  ;;  %v4120_v55 = vld [vmem:[#allocation3 + $0x74] sm:$0xf] }
 0x1d1   : > { %2868 = vmatpush.bf16.msrb.mxu2 %v3905_v1  ;;  %v1179_v5 = vpop.f32.mrf.mxu0  ;;  %v4099_v1 = vld [vmem:[#allocation2 + $0x44] sm:$0xf0] }
 0x1d2   : > { %v1089_v27 = vadd.f32 %v1088_v3, %v1000_v13  ;;  %v4285_v60 = vpop.trf.xlu0  ;;  %v1268_v7 = vpop.f32.mrf.mxu1  ;;  %v1180_v17 = vadd.f32 %v1179_v5, %v5124_v26  ;;  %v3866_v13 = vld [vmem:[#allocation2 + $0x48] sm:$0xf0] }
 0x1d3   : > { %v4289_v36 = vunpack.i.h.bf16 %v4285_v60  ;;  %v4286_v62 = vunpack.i.l.bf16 %v4285_v60  ;;  %v3869_v60 = vor.u32 %v4098_v2, %v3866_v13  ;;  %v3938_v2 = vld [vmem:[#allocation3 + $0x58] sm:$0xf0] }
 0x1d4   : > { %v1412_v15 = vpack.c.bf16 %v1267_v4, %v1089_v27  ;;  %v1269_v63 = vadd.f32 %v1268_v7, %v1180_v17  ;;  %v3865_v27 = vor.u32 %v4099_v1, %v3864_v20  ;;  %v4097_v7 = vld [vmem:[#allocation2 + $0x34] sm:$0xf0] }
 0x1d5   : > { %v1375_v21 = vpack.c.bf16 %v4289_v36, %v4286_v62  ;;  %2869 = vmatpush.bf16.msrb.mxu2 %v3897_v12  ;;  %v3856_v12 = vld [vmem:[#allocation2 + $0x30] sm:$0xf]  ;;  %v4096_v36 = vld [vmem:[#allocation2 + $0x34] sm:$0xf]  ;;  %v3858_v62 = vld [vmem:[#allocation2 + $0x38] sm:$0xf0] }
 0x1d6   : > { %1444 = vst [vmem:[#allocation3 + $0xa0] sm:$0xff] %v1412_v15  ;;  %v3888_v34 = vld [vmem:[#allocation2 + $0x70] sm:$0xf]  ;;  %v4104_v41 = vld [vmem:[#allocation2 + $0x74] sm:$0xf]  ;;  %v3857_v38 = vor.u32 %v4097_v7, %v3856_v12  ;;  %v3861_v22 = vor.u32 %v4096_v36, %v3858_v62  ;;  %v1478_v12 = vld [vmem:[%s4692_s22 + $0x80] sm:$0xff] }
 0x1d7   : > { %1391 = vst [vmem:[#allocation2 + $0x78] sm:$0xff] %v1375_v21  ;;  %v1001_v23 = vpop.f32.mrf.mxu2  ;;  %v1480_v7 = vld [vmem:[%s4692_s22 + $0x90] sm:$0xff]  ;;  %v3930_v36 = vld [vmem:[#allocation3 + $0x48] sm:$0xf0] }
 0x1d8   : > { %v1002_v28 = vadd.f32 %v1001_v23, %v5127_v58  ;;  %v1090_v61 = vpop.f32.mrf.mxu3  ;;  %v1534_v62 = vpack.c.bf16 %v1480_v7, %v1478_v12  ;;  %v1486_v12 = vld [vmem:[%s4692_s22 + $0xc0] sm:$0xff]  ;;  %v1488_v7 = vld [vmem:[%s4692_s22 + $0xd0] sm:$0xff] }
 0x1d9   : > { %v1182_v32 = vpop.f32.mrf.mxu0 }
 0x1da   : > { %v1091_v33 = vadd.f32 %v1090_v61, %v1002_v28  ;;  %v1271_v35 = vpop.f32.mrf.mxu1  ;;  %v1183_v37 = vadd.f32 %v1182_v32, %v5124_v26  ;;  %v4095_v28 = vld [vmem:[#allocation2 + $0x24] sm:$0xf0]  ;;  %v4094_v61 = vld [vmem:[#allocation2 + $0x24] sm:$0xf] }
 0x1dc   : > { %1713 = vmatmul.bf16.gmra.mxu2 %v1532_v31  ;;  %v1413_v43 = vpack.c.bf16 %v1269_v63, %v1091_v33  ;;  %v1272_v52 = vadd.f32 %v1271_v35, %v1183_v37  ;;  %v3850_v31 = vld [vmem:[#allocation2 + $0x28] sm:$0xf0]  ;;  %v3849_v35 = vor.u32 %v4095_v28, %v3848_v19  ;;  %v3842_v37 = vld [vmem:[#allocation2 + $0x18] sm:$0xf0] }
 0x1dd   : > { %1802 = vmatmul.bf16.gmra.mxu3 %v1533_v29 }
 0x1de   : > { %v4105_v39 = vld [vmem:[#allocation2 + $0x74] sm:$0xf0]  ;;  %v3890_v46 = vld [vmem:[#allocation2 + $0x78] sm:$0xf0]  ;;  %1445 = vst [vmem:[#allocation3 + $0xa8] sm:$0xff] %v1413_v43 }
 0x1df   : > { %v1004_v10 = vpop.f32.mrf.mxu2  ;;  %v3889_v24 = vor.u32 %v4105_v39, %v3888_v34  ;;  %v3893_v48 = vor.u32 %v4104_v41, %v3890_v46  ;;  %v3853_v34 = vor.u32 %v4094_v61, %v3850_v31  ;;  %v3840_v41 = vld [vmem:[#allocation2 + $0x10] sm:$0xf]  ;;  %v4092_v43 = vld [vmem:[#allocation2 + $0x14] sm:$0xf]  ;;  %v3922_v61 = vld [vmem:[#allocation3 + $0x38] sm:$0xf0] }
 0x1e0   : > { %v1005_v47 = vadd.f32 %v1004_v10, %v5127_v58  ;;  %v1093_v16 = vpop.f32.mrf.mxu3  ;;  %v3841_v39 = vor.u32 %v4093_v42, %v3840_v41  ;;  %v3845_v46 = vor.u32 %v4092_v43, %v3842_v37  ;;  %v3832_v10 = vld [vmem:[#allocation2] sm:$0xf]  ;;  %v3914_v41 = vld [vmem:[#allocation3 + $0x28] sm:$0xf0]  ;;  %v4110_v43 = vld [vmem:[#allocation3 + $0x24] sm:$0xf] }
 0x1e1   : > { %1980 = vmatpush.bf16.msra.mxu0 %v3889_v24  ;;  %2069 = vmatpush.bf16.msra.mxu1 %v3893_v48  ;;  %v1184_v18 = vpop.f32.mrf.mxu0 }
 0x1e2   : > { %v1094_v53 = vadd.f32 %v1093_v16, %v1005_v47  ;;  %v1273_v51 = vpop.f32.mrf.mxu1  ;;  %v1185_v56 = vadd.f32 %v1184_v18, %v5124_v26  ;;  %v4091_v47 = vld [vmem:[#allocation2 + $0x4] sm:$0xf0]  ;;  %v4090_v16 = vld [vmem:[#allocation2 + $0x4] sm:$0xf] }
 0x1e3   : > { %v3833_v54 = vor.u32 %v4091_v47, %v3832_v10 }
 0x1e4   : > { %v1414_v30 = vpack.c.bf16 %v1272_v52, %v1094_v53  ;;  %v1274_v3 = vadd.f32 %v1273_v51, %v1185_v56  ;;  %v3834_v52 = vld [vmem:[#allocation2 + $0x8] sm:$0xf0] }
 0x1e5   : > { %1981 = vmatpush.bf16.msra.mxu0 %v3881_v9  ;;  %2070 = vmatpush.bf16.msra.mxu1 %v3885_v11  ;;  %v3954_v11 = vld [vmem:[#allocation3 + $0x78] sm:$0xf0]  ;;  %v3837_v49 = vor.u32 %v4090_v16, %v3834_v52 }
 0x1e6   : > { %1446 = vst [vmem:[#allocation3 + $0xb0] sm:$0xff] %v1414_v30  ;;  %v3957_v51 = vor.u32 %v4120_v55, %v3954_v11  ;;  %v1484_v11 = vld [vmem:[%s4692_s22 + $0xb0] sm:$0xff]  ;;  %v4106_v55 = vld [vmem:[#allocation3 + $0x4] sm:$0xf] }
 0x1e7   : > { %v1006_v59 = vpop.f32.mrf.mxu2 }
 0x1e8   : > { %v1007_v0 = vadd.f32 %v1006_v59, %v5127_v58  ;;  %v1095_v6 = vpop.f32.mrf.mxu3  ;;  %v4118_v59 = vld [vmem:[#allocation3 + $0x64] sm:$0xf] }
 0x1e9   : > { %1982 = vmatpush.bf16.msra.mxu0 %v3873_v40  ;;  %2071 = vmatpush.bf16.msra.mxu1 %v3877_v57  ;;  %v1187_v4 = vpop.f32.mrf.mxu0  ;;  %v3946_v40 = vld [vmem:[#allocation3 + $0x68] sm:$0xf0] }
 0x1ea   : > { %v1096_v25 = vadd.f32 %v1095_v6, %v1007_v0  ;;  %v1276_v5 = vpop.f32.mrf.mxu1  ;;  %v1188_v17 = vadd.f32 %v1187_v4, %v5124_v26  ;;  %v3949_v6 = vor.u32 %v4118_v59, %v3946_v40 }
 0x1ec   : > { %v1415_v15 = vpack.c.bf16 %v1274_v3, %v1096_v25  ;;  %v1277_v63 = vadd.f32 %v1276_v5, %v1188_v17  ;;  %v4116_v25 = vld [vmem:[#allocation3 + $0x54] sm:$0xf]  ;;  %v1481_v17 = vld [vmem:[%s4692_s22 + $0x98] sm:$0xff]  ;;  %1718 = vmatmul.bf16.gmra.mxu2 %v1534_v62  ;;  %v1538_v62 = vpack.c.bf16 %v1488_v7, %v1486_v12  ;;  %v3978_v12 = vld [vmem:[#allocation3 + $0xa8] sm:$0xf0] }
 0x1ed   : > { %1983 = vmatpush.bf16.msra.mxu0 %v3865_v27  ;;  %2072 = vmatpush.bf16.msra.mxu1 %v3869_v60  ;;  %v3941_v5 = vor.u32 %v4116_v25, %v3938_v2 }
 0x1ee   : > { %1447 = vst [vmem:[#allocation3 + $0xb8] sm:$0xff] %v1415_v15  ;;  %v1479_v15 = vld [vmem:[%s4692_s22 + $0x88] sm:$0xff] }
 0x1ef   : > { %v1009_v21 = vpop.f32.mrf.mxu2 }
 0x1f0   : > { %v1010_v14 = vadd.f32 %v1009_v21, %v5127_v58  ;;  %v1098_v23 = vpop.f32.mrf.mxu3 }
 0x1f1   : > { %1984 = vmatpush.bf16.msra.mxu0 %v3857_v38  ;;  %2073 = vmatpush.bf16.msra.mxu1 %v3861_v22  ;;  %v1189_v29 = vpop.f32.mrf.mxu0  ;;  %v4114_v38 = vld [vmem:[#allocation3 + $0x44] sm:$0xf]  ;;  %v1535_v22 = vpack.c.bf16 %v1481_v17, %v1479_v15  ;;  %v1487_v15 = vld [vmem:[%s4692_s22 + $0xc8] sm:$0xff]  ;;  %v1489_v17 = vld [vmem:[%s4692_s22 + $0xd8] sm:$0xff] }
 0x1f2   : > { %v1099_v32 = vadd.f32 %v1098_v23, %v1010_v14  ;;  %v1278_v33 = vpop.f32.mrf.mxu1  ;;  %v1190_v8 = vadd.f32 %v1189_v29, %v5124_v26  ;;  %v3933_v23 = vor.u32 %v4114_v38, %v3930_v36  ;;  %v1539_v38 = vpack.c.bf16 %v1489_v17, %v1487_v15  ;;  %v4126_v15 = vld [vmem:[#allocation3 + $0xa4] sm:$0xf] }
 0x1f3   : > { %1807 = vmatmul.bf16.gmra.mxu3 %v1535_v22 }
 0x1f4   : > { %v1416_v44 = vpack.c.bf16 %v1277_v63, %v1099_v32  ;;  %v1279_v9 = vadd.f32 %v1278_v33, %v1190_v8  ;;  %v4112_v32 = vld [vmem:[#allocation3 + $0x34] sm:$0xf]  ;;  %v3917_v8 = vor.u32 %v4110_v43, %v3914_v41  ;;  %v1490_v41 = vld [vmem:[%s4692_s22 + $0xe0] sm:$0xff] }
 0x1f5   : > { %1985 = vmatpush.bf16.msra.mxu0 %v3849_v35  ;;  %2074 = vmatpush.bf16.msra.mxu1 %v3853_v34  ;;  %v3925_v33 = vor.u32 %v4112_v32, %v3922_v61 }
 0x1f6   : > { %1448 = vst [vmem:[#allocation3 + $0xc0] sm:$0xff] %v1416_v44 }
 0x1f7   : > { %v1011_v45 = vpop.f32.mrf.mxu2 }
 0x1f8   : > { %v1012_v24 = vadd.f32 %v1011_v45, %v5127_v58  ;;  %v1100_v48 = vpop.f32.mrf.mxu3 }
 0x1f9   : > { %1986 = vmatpush.bf16.msra.mxu0 %v3841_v39  ;;  %2075 = vmatpush.bf16.msra.mxu1 %v3845_v46  ;;  %v1192_v50 = vpop.f32.mrf.mxu0  ;;  %v3906_v39 = vld [vmem:[#allocation3 + $0x18] sm:$0xf0] }
 0x1fa   : > { %v1101_v18 = vadd.f32 %v1100_v48, %v1012_v24  ;;  %v1281_v53 = vpop.f32.mrf.mxu1  ;;  %v1193_v56 = vadd.f32 %v1192_v50, %v5124_v26  ;;  %v4108_v48 = vld [vmem:[#allocation3 + $0x14] sm:$0xf]  ;;  %v3898_v50 = vld [vmem:[#allocation3 + $0x8] sm:$0xf0] }
 0x1fb   : > { %v3909_v47 = vor.u32 %v4108_v48, %v3906_v39  ;;  %v3901_v40 = vor.u32 %v4106_v55, %v3898_v50 }
 0x1fc   : > { %v1417_v30 = vpack.c.bf16 %v1279_v9, %v1101_v18  ;;  %v1282_v1 = vadd.f32 %v1281_v53, %v1193_v56  ;;  %v1482_v9 = vld [vmem:[%s4692_s22 + $0xa0] sm:$0xff]  ;;  %v1483_v53 = vld [vmem:[%s4692_s22 + $0xa8] sm:$0xff] }
 0x1fd   : > { %1987 = vmatpush.bf16.msra.mxu0 %v3833_v54  ;;  %2076 = vmatpush.bf16.msra.mxu1 %v3837_v49  ;;  %v1536_v18 = vpack.c.bf16 %v1484_v11, %v1482_v9  ;;  %v1485_v54 = vld [vmem:[%s4692_s22 + $0xb8] sm:$0xff] }
 0x1fe   : > { %1449 = vst [vmem:[#allocation3 + $0xc8] sm:$0xff] %v1417_v30 }
 0x1ff   : > { %v1014_v57 = vpop.f32.mrf.mxu2  ;;  %1723 = vmatmul.bf16.gmra.mxu2 %v1536_v18 }
 0x200   : > { %v1015_v20 = vadd.f32 %v1014_v57, %v5127_v58  ;;  %v1103_v0 = vpop.f32.mrf.mxu3 }
 0x201   : > { %3040 = vmatpush.bf16.msrb.mxu0 %v3957_v51  ;;  %v1194_v13 = vpop.f32.mrf.mxu0  ;;  %v1537_v51 = vpack.c.bf16 %v1485_v54, %v1483_v53 }
 0x202   : > { %v1104_v3 = vadd.f32 %v1103_v0, %v1015_v20  ;;  %v1283_v4 = vpop.f32.mrf.mxu1  ;;  %v1195_v60 = vadd.f32 %v1194_v13, %v5124_v26 }
 0x203   : > { %1812 = vmatmul.bf16.gmra.mxu3 %v1537_v51 }
 0x204   : > { %v1418_v27 = vpack.c.bf16 %v1282_v1, %v1104_v3  ;;  %v1284_v28 = vadd.f32 %v1283_v4, %v1195_v60 }
 0x205   : > { %3041 = vmatpush.bf16.msrb.mxu0 %v3949_v6 }
 0x206   : > { %1450 = vst [vmem:[#allocation3 + $0xd0] sm:$0xff] %v1418_v27 }
 0x207   : > { %v1016_v21 = vpop.f32.mrf.mxu2 }
 0x208   : > { %v1017_v19 = vadd.f32 %v1016_v21, %v5127_v58  ;;  %v1105_v14 = vpop.f32.mrf.mxu3 }
 0x209   : > { %3042 = vmatpush.bf16.msrb.mxu0 %v3941_v5  ;;  %v1197_v31 = vpop.f32.mrf.mxu0 }
 0x20a   : > { %v1106_v63 = vadd.f32 %v1105_v14, %v1017_v19  ;;  %v1286_v29 = vpop.f32.mrf.mxu1  ;;  %v1198_v34 = vadd.f32 %v1197_v31, %v5124_v26  ;;  %v5303_v31 = vld [vmem:[%s6098_s3] ss:$0 sm:$0xff] }
 0x20c   : > { %v1419_v35 = vpack.c.bf16 %v1284_v28, %v1106_v63  ;;  %v1287_v45 = vadd.f32 %v1286_v29, %v1198_v34 }
 0x20d   : > { %3043 = vmatpush.bf16.msrb.mxu0 %v3933_v23  ;;  %v4000_v54 = vld [vmem:[#allocation3 + $0xd0] sm:$0xf] }
 0x20e   : > { %1451 = vst [vmem:[#allocation3 + $0xd8] sm:$0xff] %v1419_v35 }
 0x20f   : > { %v1019_v42 = vpop.f32.mrf.mxu2  ;;  %1728 = vmatmul.bf16.gmra.mxu2 %v1538_v62  ;;  %v3976_v62 = vld [vmem:[#allocation3 + $0xa0] sm:$0xf] }
 0x210   : > { %v1020_v37 = vadd.f32 %v1019_v42, %v5127_v58  ;;  %v1108_v44 = vpop.f32.mrf.mxu3  ;;  %v1492_v42 = vld [vmem:[%s4692_s22 + $0xf0] sm:$0xff] }
 0x211   : > { %3044 = vmatpush.bf16.msrb.mxu0 %v3925_v33  ;;  %v1199_v46 = vpop.f32.mrf.mxu0 }
 0x212   : > { %v1109_v10 = vadd.f32 %v1108_v44, %v1020_v37  ;;  %v1288_v24 = vpop.f32.mrf.mxu1  ;;  %v1200_v52 = vadd.f32 %v1199_v46, %v5124_v26  ;;  %v1491_v46 = vld [vmem:[%s4692_s22 + $0xe8] sm:$0xff] }
 0x213   : > { %1817 = vmatmul.bf16.gmra.mxu3 %v1539_v38 }
 0x214   : > { %v1420_v16 = vpack.c.bf16 %v1287_v45, %v1109_v10  ;;  %v1289_v57 = vadd.f32 %v1288_v24, %v1200_v52  ;;  %v1493_v10 = vld [vmem:[%s4692_s22 + $0xf8] sm:$0xff] }
 0x215   : > { %3045 = vmatpush.bf16.msrb.mxu0 %v3917_v8  ;;  %v1540_v8 = vpack.c.bf16 %v1492_v42, %v1490_v41  ;;  %v4133_v50 = vld [vmem:[#allocation3 + $0xd4] sm:$0xf0]  ;;  %v4002_v18 = vld [vmem:[#allocation3 + $0xd8] sm:$0xf0] }
 0x216   : > { %1452 = vst [vmem:[#allocation3 + $0xe0] sm:$0xff] %v1420_v16  ;;  %v4001_v55 = vor.u32 %v4133_v50, %v4000_v54  ;;  %v1497_v42 = vld [vmem:[%s4692_s22 + $0x118] sm:$0xff] }
 0x217   : > { %v1021_v49 = vpop.f32.mrf.mxu2 }
 0x218   : > { %v1022_v30 = vadd.f32 %v1021_v49, %v5127_v58  ;;  %v1110_v56 = vpop.f32.mrf.mxu3  ;;  %v4132_v49 = vld [vmem:[#allocation3 + $0xd4] sm:$0xf] }
 0x219   : > { %3046 = vmatpush.bf16.msrb.mxu0 %v3909_v47  ;;  %v1202_v59 = vpop.f32.mrf.mxu0  ;;  %v1541_v47 = vpack.c.bf16 %v1493_v10, %v1491_v46  ;;  %v4005_v51 = vor.u32 %v4132_v49, %v4002_v18 }
 0x21a   : > { %v1111_v20 = vadd.f32 %v1110_v56, %v1022_v30  ;;  %v1291_v0 = vpop.f32.mrf.mxu1  ;;  %v1203_v1 = vadd.f32 %v1202_v59, %v5124_v26  ;;  %v4131_v56 = vld [vmem:[#allocation3 + $0xc4] sm:$0xf0]  ;;  %v3992_v59 = vld [vmem:[#allocation3 + $0xc0] sm:$0xf] }
 0x21c   : > { %v1421_v6 = vpack.c.bf16 %v1289_v57, %v1111_v20  ;;  %v1292_v4 = vadd.f32 %v1291_v0, %v1203_v1  ;;  %v4130_v20 = vld [vmem:[#allocation3 + $0xc4] sm:$0xf]  ;;  %v3993_v0 = vor.u32 %v4131_v56, %v3992_v59  ;;  %v4129_v1 = vld [vmem:[#allocation3 + $0xb4] sm:$0xf0] }
 0x21d   : > { %3047 = vmatpush.bf16.msrb.mxu0 %v3901_v40  ;;  %v4008_v24 = vld [vmem:[#allocation3 + $0xe0] sm:$0xf]  ;;  %v4134_v48 = vld [vmem:[#allocation3 + $0xe4] sm:$0xf]  ;;  %v3994_v40 = vld [vmem:[#allocation3 + $0xc8] sm:$0xf0] }
 0x21e   : > { %1453 = vst [vmem:[#allocation3 + $0xe8] sm:$0xff] %v1421_v6  ;;  %v3997_v6 = vor.u32 %v4130_v20, %v3994_v40 }
 0x21f   : > { %v1024_v2 = vpop.f32.mrf.mxu2  ;;  %1733 = vmatmul.bf16.gmra.mxu2 %v1540_v8  ;;  %v4122_v8 = vld [vmem:[#allocation3 + $0x84] sm:$0xf] }
 0x220   : > { %v1025_v13 = vadd.f32 %v1024_v2, %v5127_v58  ;;  %v1113_v3 = vpop.f32.mrf.mxu3  ;;  %v3986_v2 = vld [vmem:[#allocation3 + $0xb8] sm:$0xf0] }
 0x221   : > { %v1204_v25 = vpop.f32.mrf.mxu0 }
 0x222   : > { %v1114_v5 = vadd.f32 %v1113_v3, %v1025_v13  ;;  %v1205_v60 = vadd.f32 %v1204_v25, %v5124_v26  ;;  %v1293_v36 = vpop.f32.mrf.mxu1  ;;  %v3984_v13 = vld [vmem:[#allocation3 + $0xb0] sm:$0xf]  ;;  %v4128_v3 = vld [vmem:[#allocation3 + $0xb4] sm:$0xf] }
 0x223   : > { %1822 = vmatmul.bf16.gmra.mxu3 %v1541_v47  ;;  %v3985_v25 = vor.u32 %v4129_v1, %v3984_v13 }
 0x224   : > { %v1422_v27 = vpack.c.bf16 %v1292_v4, %v1114_v5  ;;  %v1294_v14 = vadd.f32 %v1293_v36, %v1205_v60  ;;  %v3989_v5 = vor.u32 %v4128_v3, %v3986_v2  ;;  %v4127_v60 = vld [vmem:[#allocation3 + $0xa4] sm:$0xf0]  ;;  %v1498_v3 = vld [vmem:[%s4692_s22 + $0x120] sm:$0xff] }
 0x225   : > { %v4135_v37 = vld [vmem:[#allocation3 + $0xe4] sm:$0xf0]  ;;  %v4010_v44 = vld [vmem:[#allocation3 + $0xe8] sm:$0xf0]  ;;  %v3977_v38 = vor.u32 %v4127_v60, %v3976_v62 }
 0x226   : > { %1454 = vst [vmem:[#allocation3 + $0xf0] sm:$0xff] %v1422_v27  ;;  %v4009_v9 = vor.u32 %v4135_v37, %v4008_v24  ;;  %v4013_v11 = vor.u32 %v4134_v48, %v4010_v44  ;;  %v3960_v44 = vld [vmem:[#allocation3 + $0x80] sm:$0xf] }
 0x227   : > { %v1026_v21 = vpop.f32.mrf.mxu2 }
 0x228   : > { %v1027_v22 = vadd.f32 %v1026_v21, %v5127_v58  ;;  %v1115_v19 = vpop.f32.mrf.mxu3 }
 0x22a   : > { %v1116_v23 = vadd.f32 %v1115_v19, %v1027_v22  ;;  %v3981_v22 = vor.u32 %v4126_v15, %v3978_v12  ;;  %v4125_v19 = vld [vmem:[#allocation3 + $0x94] sm:$0xf0] }
 0x22c   : > { %v1423_v28 = vpack.c.bf16 %v1294_v14, %v1116_v23  ;;  %v3970_v14 = vld [vmem:[#allocation3 + $0x98] sm:$0xf0] }
 0x22d   : > { %v4016_v63 = vld [vmem:[#allocation3 + $0xf0] sm:$0xf]  ;;  %v4136_v32 = vld [vmem:[#allocation3 + $0xf4] sm:$0xf] }
 0x22e   : > { %1455 = vst [vmem:[#allocation3 + $0xf8] sm:$0xff] %v1423_v28  ;;  %v3968_v28 = vld [vmem:[#allocation3 + $0x90] sm:$0xf] }
 0x22f   : > { %v1699_v26 = vpop.f32.mrf.mxu2 }
 0x230   : > { %v1788_v61 = vpop.f32.mrf.mxu3  ;;  %v1700_v33 = vadd.f32 %v5303_v31, %v1699_v26  ;;  %v4124_v26 = vld [vmem:[#allocation3 + $0x94] sm:$0xf] }
 0x232   : > { %v1789_v16 = vadd.f32 %v1788_v61, %v1700_v33  ;;  %v3969_v61 = vor.u32 %v4125_v19, %v3968_v28  ;;  %v1502_v19 = vld [vmem:[%s4692_s22 + $0x140] sm:$0xff]  ;;  %v1503_v28 = vld [vmem:[%s4692_s22 + $0x148] sm:$0xff] }
 0x235   : > { %v4137_v29 = vld [vmem:[#allocation3 + $0xf4] sm:$0xf0]  ;;  %v4018_v58 = vld [vmem:[#allocation3 + $0xf8] sm:$0xf0] }
 0x236   : > { %v4017_v35 = vor.u32 %v4137_v29, %v4016_v63  ;;  %v4021_v34 = vor.u32 %v4136_v32, %v4018_v58  ;;  %v3973_v63 = vor.u32 %v4124_v26, %v3970_v14  ;;  %v1494_v29 = vld [vmem:[%s4692_s22 + $0x100] sm:$0xff]  ;;  %v1496_v32 = vld [vmem:[%s4692_s22 + $0x110] sm:$0xff]  ;;  %v1495_v58 = vld [vmem:[%s4692_s22 + $0x108] sm:$0xff] }
 0x237   : > { %v1701_v43 = vpop.f32.mrf.mxu2  ;;  %v1542_v41 = vpack.c.bf16 %v1496_v32, %v1494_v29  ;;  %v1543_v37 = vpack.c.bf16 %v1497_v42, %v1495_v58  ;;  %v1504_v14 = vld [vmem:[%s4692_s22 + $0x150] sm:$0xff]  ;;  %v1505_v26 = vld [vmem:[%s4692_s22 + $0x158] sm:$0xff] }
 0x238   : > { %v1702_v45 = vadd.f32 %v5303_v31, %v1701_v43  ;;  %v1790_v39 = vpop.f32.mrf.mxu3  ;;  %2951 = vmatpush.bf16.msrb.mxu3 %v4017_v35  ;;  %3129 = vmatpush.bf16.msrb.mxu1 %v4021_v34  ;;  %v4123_v35 = vld [vmem:[#allocation3 + $0x84] sm:$0xf0]  ;;  %v3962_v34 = vld [vmem:[#allocation3 + $0x88] sm:$0xf0] }
 0x239   : > { %1738 = vmatmul.bf16.gmra.mxu2 %v1542_v41  ;;  %1827 = vmatmul.bf16.gmra.mxu3 %v1543_v37 }
 0x23a   : > { %v1791_v52 = vadd.f32 %v1790_v39, %v1702_v45  ;;  %v3961_v45 = vor.u32 %v4123_v35, %v3960_v44  ;;  %v3965_v39 = vor.u32 %v4122_v8, %v3962_v34  ;;  %v1506_v8 = vld [vmem:[%s4692_s22 + $0x160] sm:$0xff] }
 0x23c   : > { %v1868_v53 = vpack.c.bf16 %v1791_v52, %v1789_v16  ;;  %2952 = vmatpush.bf16.msrb.mxu3 %v4009_v9  ;;  %3130 = vmatpush.bf16.msrb.mxu1 %v4013_v11 }
 0x23e   : > { %1988 = vmatmul.bf16.vlgmr.msra.gmra.mxu0 %v1868_v53  ;;  %2077 = vmatmul.bf16.vlgmr.msra.gmra.mxu1 %v1868_v53 }
 0x23f   : > { %v1704_v30 = vpop.f32.mrf.mxu2 }
 0x240   : > { %v1793_v57 = vpop.f32.mrf.mxu3  ;;  %2953 = vmatpush.bf16.msrb.mxu3 %v4001_v55  ;;  %3131 = vmatpush.bf16.msrb.mxu1 %v4005_v51  ;;  %v1705_v4 = vadd.f32 %v5303_v31, %v1704_v30 }
 0x242   : > { %v1794_v17 = vadd.f32 %v1793_v57, %v1705_v4  ;;  %v1500_v4 = vld [vmem:[%s4692_s22 + $0x130] sm:$0xff] }
 0x244   : > { %2954 = vmatpush.bf16.msrb.mxu3 %v3993_v0  ;;  %3132 = vmatpush.bf16.msrb.mxu1 %v3997_v6 }
 0x247   : > { %v1706_v27 = vpop.f32.mrf.mxu2 }
 0x248   : > { %v1707_v7 = vadd.f32 %v5303_v31, %v1706_v27  ;;  %v1795_v36 = vpop.f32.mrf.mxu3  ;;  %2955 = vmatpush.bf16.msrb.mxu3 %v3985_v25  ;;  %3133 = vmatpush.bf16.msrb.mxu1 %v3989_v5  ;;  %v1544_v25 = vpack.c.bf16 %v1500_v4, %v1498_v3  ;;  %v1499_v5 = vld [vmem:[%s4692_s22 + $0x128] sm:$0xff]  ;;  %v1501_v27 = vld [vmem:[%s4692_s22 + $0x138] sm:$0xff]  ;;  %v1514_v4 = vld [vmem:[%s4692_s22 + $0x1a0] sm:$0xff] }
 0x249   : > { %v1545_v60 = vpack.c.bf16 %v1501_v27, %v1499_v5  ;;  %v1515_v5 = vld [vmem:[%s4692_s22 + $0x1a8] sm:$0xff]  ;;  %v1517_v27 = vld [vmem:[%s4692_s22 + $0x1b8] sm:$0xff] }
 0x24a   : > { %v1796_v21 = vadd.f32 %v1795_v36, %v1707_v7  ;;  %1743 = vmatmul.bf16.gmra.mxu2 %v1544_v25  ;;  %v1516_v25 = vld [vmem:[%s4692_s22 + $0x1b0] sm:$0xff] }
 0x24b   : > { %1832 = vmatmul.bf16.gmra.mxu3 %v1545_v60  ;;  %v1552_v60 = vpack.c.bf16 %v1516_v25, %v1514_v4 }
 0x24c   : > { %v1869_v23 = vpack.c.bf16 %v1796_v21, %v1794_v17  ;;  %2956 = vmatpush.bf16.msrb.mxu3 %v3977_v38  ;;  %3134 = vmatpush.bf16.msrb.mxu1 %v3981_v22 }
 0x24e   : > { %1993 = vmatmul.bf16.gmra.mxu0 %v1869_v23  ;;  %2082 = vmatmul.bf16.gmra.mxu1 %v1869_v23  ;;  %v1546_v23 = vpack.c.bf16 %v1504_v14, %v1502_v19  ;;  %v1519_v19 = vld [vmem:[%s4692_s22 + $0x1c8] sm:$0xff]  ;;  %v1521_v14 = vld [vmem:[%s4692_s22 + $0x1d8] sm:$0xff] }
 0x24f   : > { %v1709_v33 = vpop.f32.mrf.mxu2 }
 0x250   : > { %v1798_v43 = vpop.f32.mrf.mxu3  ;;  %2957 = vmatpush.bf16.msrb.mxu3 %v3969_v61  ;;  %3135 = vmatpush.bf16.msrb.mxu1 %v3973_v63  ;;  %v1710_v46 = vadd.f32 %v5303_v31, %v1709_v33  ;;  %v1547_v61 = vpack.c.bf16 %v1505_v26, %v1503_v28 }
 0x252   : > { %v1799_v47 = vadd.f32 %v1798_v43, %v1710_v46  ;;  %v1507_v46 = vld [vmem:[%s4692_s22 + $0x168] sm:$0xff] }
 0x254   : > { %2958 = vmatpush.bf16.msrb.mxu3 %v3961_v45  ;;  %3136 = vmatpush.bf16.msrb.mxu1 %v3965_v39  ;;  %v1508_v45 = vld [vmem:[%s4692_s22 + $0x170] sm:$0xff] }
 0x255   : > { %v1548_v39 = vpack.c.bf16 %v1508_v45, %v1506_v8 }
 0x257   : > { %v1711_v10 = vpop.f32.mrf.mxu2 }
 0x258   : > { %v1712_v24 = vadd.f32 %v5303_v31, %v1711_v10  ;;  %v1800_v48 = vpop.f32.mrf.mxu3  ;;  %v1509_v10 = vld [vmem:[%s4692_s22 + $0x178] sm:$0xff] }
 0x25a   : > { %v1801_v16 = vadd.f32 %v1800_v48, %v1712_v24  ;;  %1748 = vmatmul.bf16.gmra.mxu2 %v1546_v23  ;;  %v1549_v24 = vpack.c.bf16 %v1509_v10, %v1507_v46 }
 0x25b   : > { %1837 = vmatmul.bf16.gmra.mxu3 %v1547_v61  ;;  %v1555_v61 = vpack.c.bf16 %v1521_v14, %v1519_v19 }
 0x25c   : > { %v1870_v52 = vpack.c.bf16 %v1801_v16, %v1799_v47 }
 0x25e   : > { %1998 = vmatmul.bf16.gmra.mxu0 %v1870_v52  ;;  %2087 = vmatmul.bf16.gmra.mxu1 %v1870_v52 }
 0x25f   : > { %v1714_v9 = vpop.f32.mrf.mxu2 }
 0x260   : > { %v1803_v11 = vpop.f32.mrf.mxu3  ;;  %v1715_v50 = vadd.f32 %v5303_v31, %v1714_v9 }
 0x262   : > { %v1804_v49 = vadd.f32 %v1803_v11, %v1715_v50 }
 0x267   : > { %v1716_v18 = vpop.f32.mrf.mxu2 }
 0x268   : > { %v1717_v53 = vadd.f32 %v5303_v31, %v1716_v18  ;;  %v1805_v54 = vpop.f32.mrf.mxu3 }
 0x26a   : > { %v1806_v55 = vadd.f32 %v1805_v54, %v1717_v53  ;;  %1753 = vmatmul.bf16.gmra.mxu2 %v1548_v39 }
 0x26b   : > { %1842 = vmatmul.bf16.gmra.mxu3 %v1549_v24 }
 0x26c   : > { %v1871_v51 = vpack.c.bf16 %v1806_v55, %v1804_v49 }
 0x26e   : > { %2003 = vmatmul.bf16.gmra.mxu0 %v1871_v51  ;;  %2092 = vmatmul.bf16.gmra.mxu1 %v1871_v51 }
 0x26f   : > { %v1719_v30 = vpop.f32.mrf.mxu2 }
 0x270   : > { %v1720_v40 = vadd.f32 %v5303_v31, %v1719_v30 }
 0x276   : > { %v1808_v56 = vpop.f32.mrf.mxu3 }
 0x277   : > { %v1721_v57 = vpop.f32.mrf.mxu2  ;;  %v1809_v59 = vadd.f32 %v1808_v56, %v1720_v40  ;;  %v1510_v40 = vld [vmem:[%s4692_s22 + $0x180] sm:$0xff] }
 0x278   : > { %v1722_v20 = vadd.f32 %v5303_v31, %v1721_v57  ;;  %v1512_v57 = vld [vmem:[%s4692_s22 + $0x190] sm:$0xff] }
 0x27e   : > { %v1810_v0 = vpop.f32.mrf.mxu3 }
 0x27f   : > { %v1811_v6 = vadd.f32 %v1810_v0, %v1722_v20  ;;  %v1550_v0 = vpack.c.bf16 %v1512_v57, %v1510_v40 }
 0x281   : > { %v1872_v1 = vpack.c.bf16 %v1811_v6, %v1809_v59  ;;  %v1511_v59 = vld [vmem:[%s4692_s22 + $0x188] sm:$0xff]  ;;  %v1513_v6 = vld [vmem:[%s4692_s22 + $0x198] sm:$0xff]  ;;  %1758 = vmatmul.bf16.gmra.mxu2 %v1550_v0 }
 0x282   : > { %v1724_v2 = vpop.f32.mrf.mxu2 }
 0x283   : > { %2008 = vmatmul.bf16.gmra.mxu0 %v1872_v1  ;;  %2097 = vmatmul.bf16.gmra.mxu1 %v1872_v1  ;;  %v1725_v7 = vadd.f32 %v5303_v31, %v1724_v2  ;;  %v1551_v1 = vpack.c.bf16 %v1513_v6, %v1511_v59 }
 0x285   : > { %1847 = vmatmul.bf16.gmra.mxu3 %v1551_v1 }
 0x286   : > { %v1813_v13 = vpop.f32.mrf.mxu3 }
 0x287   : > { %v1814_v15 = vadd.f32 %v1813_v13, %v1725_v7 }
 0x28a   : > { %v1726_v12 = vpop.f32.mrf.mxu2 }
 0x28b   : > { %v1727_v36 = vadd.f32 %v5303_v31, %v1726_v12 }
 0x28e   : > { %v1815_v62 = vpop.f32.mrf.mxu3 }
 0x28f   : > { %v1816_v17 = vadd.f32 %v1815_v62, %v1727_v36  ;;  %v1553_v36 = vpack.c.bf16 %v1517_v27, %v1515_v5 }
 0x291   : > { %v1873_v21 = vpack.c.bf16 %v1816_v17, %v1814_v15  ;;  %1763 = vmatmul.bf16.gmra.mxu2 %v1552_v60 }
 0x292   : > { %v1729_v38 = vpop.f32.mrf.mxu2 }
 0x293   : > { %2013 = vmatmul.bf16.gmra.mxu0 %v1873_v21  ;;  %2102 = vmatmul.bf16.gmra.mxu1 %v1873_v21  ;;  %v1730_v29 = vadd.f32 %v5303_v31, %v1729_v38  ;;  %v1518_v38 = vld [vmem:[%s4692_s22 + $0x1c0] sm:$0xff] }
 0x295   : > { %1852 = vmatmul.bf16.gmra.mxu3 %v1553_v36 }
 0x296   : > { %v1818_v22 = vpop.f32.mrf.mxu3 }
 0x297   : > { %v1819_v33 = vadd.f32 %v1818_v22, %v1730_v29  ;;  %v1520_v22 = vld [vmem:[%s4692_s22 + $0x1d0] sm:$0xff]  ;;  %v1522_v29 = vld [vmem:[%s4692_s22 + $0x1e0] sm:$0xff] }
 0x298   : > { %v1554_v23 = vpack.c.bf16 %v1520_v22, %v1518_v38 }
 0x29a   : > { %v1731_v63 = vpop.f32.mrf.mxu2 }
 0x29b   : > { %v1732_v32 = vadd.f32 %v5303_v31, %v1731_v63 }
 0x29e   : > { %v1820_v58 = vpop.f32.mrf.mxu3 }
 0x29f   : > { %v1821_v35 = vadd.f32 %v1820_v58, %v1732_v32  ;;  %v1524_v32 = vld [vmem:[%s4692_s22 + $0x1f0] sm:$0xff]  ;;  %v1523_v58 = vld [vmem:[%s4692_s22 + $0x1e8] sm:$0xff] }
 0x2a1   : > { %v1874_v34 = vpack.c.bf16 %v1821_v35, %v1819_v33  ;;  %1768 = vmatmul.bf16.gmra.mxu2 %v1554_v23  ;;  %v1525_v33 = vld [vmem:[%s4692_s22 + $0x1f8] sm:$0xff]  ;;  %v1556_v35 = vpack.c.bf16 %v1524_v32, %v1522_v29 }
 0x2a2   : > { %v1734_v37 = vpop.f32.mrf.mxu2 }
 0x2a3   : > { %2018 = vmatmul.bf16.gmra.mxu0 %v1874_v34  ;;  %2107 = vmatmul.bf16.gmra.mxu1 %v1874_v34  ;;  %v1735_v9 = vadd.f32 %v5303_v31, %v1734_v37  ;;  %v1557_v34 = vpack.c.bf16 %v1525_v33, %v1523_v58 }
 0x2a5   : > { %1857 = vmatmul.bf16.gmra.mxu3 %v1555_v61 }
 0x2a6   : > { %v1823_v44 = vpop.f32.mrf.mxu3 }
 0x2a7   : > { %v1824_v18 = vadd.f32 %v1823_v44, %v1735_v9 }
 0x2aa   : > { %v1736_v52 = vpop.f32.mrf.mxu2 }
 0x2ab   : > { %v1737_v11 = vadd.f32 %v5303_v31, %v1736_v52 }
 0x2ae   : > { %v1825_v50 = vpop.f32.mrf.mxu3 }
 0x2af   : > { %v1826_v53 = vadd.f32 %v1825_v50, %v1737_v11 }
 0x2b1   : > { %v1875_v54 = vpack.c.bf16 %v1826_v53, %v1824_v18  ;;  %1773 = vmatmul.bf16.gmra.mxu2 %v1556_v35 }
 0x2b3   : > { %2023 = vmatmul.bf16.gmra.mxu0 %v1875_v54  ;;  %2112 = vmatmul.bf16.gmra.mxu1 %v1875_v54 }
 0x2b5   : > { %1862 = vmatmul.bf16.gmra.mxu3 %v1557_v34 }
 0x2bb   : > { %v5335_v41 = vpop.f32.mrf.mxu0  ;;  %v5337_v42 = vpop.f32.mrf.mxu1 }
 0x2bc   : > { %v2158_v43 = vmax.f32 %v5335_v41, %v5337_v42  ;;  %v1828_v37 = vpop.f32.mrf.mxu3 }
 0x2be   : > { %2159 = vmax.xlane.f32.xlu1 %v2158_v43  ;;  %v1739_v43 = vpop.f32.mrf.mxu2 }
 0x2bf   : > { %v1740_v44 = vadd.f32 %v5303_v31, %v1739_v43 }
 0x2c1   : > { %v1829_v45 = vadd.f32 %v1828_v37, %v1740_v44 }
 0x2c3   : > { %v5345_v48 = vpop.f32.mrf.mxu0  ;;  %v5347_v47 = vpop.f32.mrf.mxu1 }
 0x2c4   : > { %v2161_v16 = vmax.f32 %v5345_v48, %v5347_v47  ;;  %v1830_v46 = vpop.f32.mrf.mxu3 }
 0x2c6   : > { %2162 = vmax.xlane.f32.xlu1 %v2161_v16  ;;  %v1741_v8 = vpop.f32.mrf.mxu2 }
 0x2c7   : > { %v1742_v39 = vadd.f32 %v5303_v31, %v1741_v8 }
 0x2c9   : > { %v1831_v10 = vadd.f32 %v1830_v46, %v1742_v39 }
 0x2cb   : > { %v5353_v49 = vpop.f32.mrf.mxu0  ;;  %v5355_v55 = vpop.f32.mrf.mxu1  ;;  %v1876_v24 = vpack.c.bf16 %v1831_v10, %v1829_v45 }
 0x2cc   : > { %v2164_v51 = vmax.f32 %v5353_v49, %v5355_v55 }
 0x2cd   : > { %2028 = vmatmul.bf16.gmra.mxu0 %v1876_v24  ;;  %2117 = vmatmul.bf16.gmra.mxu1 %v1876_v24 }
 0x2ce   : > { %2165 = vmax.xlane.f32.xlu2 %v2164_v51  ;;  %v1744_v16 = vpop.f32.mrf.mxu2  ;;  %v1833_v52 = vpop.f32.mrf.mxu3 }
 0x2cf   : > { %v1745_v9 = vadd.f32 %v5303_v31, %v1744_v16 }
 0x2d1   : > { %v1834_v50 = vadd.f32 %v1833_v52, %v1745_v9 }
 0x2d3   : > { %v5359_v30 = vpop.f32.mrf.mxu0  ;;  %v5361_v56 = vpop.f32.mrf.mxu1 }
 0x2d4   : > { %v2167_v20 = vmax.f32 %v5359_v30, %v5361_v56 }
 0x2d6   : > { %2168 = vmax.xlane.f32.xlu2 %v2167_v20  ;;  %v1746_v11 = vpop.f32.mrf.mxu2  ;;  %v1835_v53 = vpop.f32.mrf.mxu3 }
 0x2d7   : > { %v1747_v18 = vadd.f32 %v5303_v31, %v1746_v11 }
 0x2d9   : > { %v1836_v54 = vadd.f32 %v1835_v53, %v1747_v18 }
 0x2db   : > { %v5369_v2 = vpop.f32.mrf.mxu0  ;;  %v5371_v13 = vpop.f32.mrf.mxu1  ;;  %v1877_v59 = vpack.c.bf16 %v1836_v54, %v1834_v50 }
 0x2dc   : > { %v2170_v3 = vmax.f32 %v5369_v2, %v5371_v13 }
 0x2dd   : > { %2033 = vmatmul.bf16.gmra.mxu0 %v1877_v59  ;;  %2122 = vmatmul.bf16.gmra.mxu1 %v1877_v59 }
 0x2de   : > { %2171 = vmax.xlane.f32.xlu1 %v2170_v3  ;;  %v1749_v3 = vpop.f32.mrf.mxu2  ;;  %v1838_v4 = vpop.f32.mrf.mxu3 }
 0x2e3   : > { %v5379_v12 = vpop.f32.mrf.mxu0  ;;  %v5381_v7 = vpop.f32.mrf.mxu1 }
 0x2e4   : > { %v2173_v62 = vmax.f32 %v5379_v12, %v5381_v7 }
 0x2e6   : > { %2174 = vmax.xlane.f32.xlu2 %v2173_v62  ;;  %v1840_v14 = vpop.f32.mrf.mxu3 }
 0x2eb   : > { %v5385_v15 = vpop.f32.mrf.mxu0  ;;  %v5387_v17 = vpop.f32.mrf.mxu1 }
 0x2ec   : > { %v2176_v21 = vmax.f32 %v5385_v15, %v5387_v17 }
 0x2ee   : > { %2177 = vmax.xlane.f32.xlu1 %v2176_v21  ;;  %v1751_v21 = vpop.f32.mrf.mxu2 }
 0x2f3   : > { %v5395_v28 = vpop.f32.mrf.mxu0  ;;  %v5397_v26 = vpop.f32.mrf.mxu1 }
 0x2f4   : > { %v2179_v63 = vmax.f32 %v5395_v28, %v5397_v26 }
 0x2f6   : > { %2180 = vmax.xlane.f32.xlu2 %v2179_v63  ;;  %v1754_v43 = vpop.f32.mrf.mxu2 }
 0x2f7   : > { %v1755_v10 = vadd.f32 %v5303_v31, %v1754_v43 }
 0x2fe   : > { %v1756_v50 = vpop.f32.mrf.mxu2 }
 0x300   : > { %v5411_v6 = vpop.f32.mrf.mxu0  ;;  %v5413_v1 = vpop.f32.mrf.mxu1 }
 0x301   : > { %v2182_v44 = vmax.f32 %v5411_v6, %v5413_v1 }
 0x308   : > { %v5424_v22 = vpop.f32.mrf.mxu0 }
 0x331   : > { %v2160_v51 = vpop.xlane.xlu1 %2159 }
 0x332   : > { %v2254_v40 = vsub.f32 %v5335_v41, %v2160_v51  ;;  %v2255_v57 = vsub.f32 %v5337_v42, %v2160_v51  ;;  %v1750_v42 = vadd.f32 %v5303_v31, %v1749_v3 }
 0x334   : > { %v2318_v20 = vmul.f32 1.442695, %v2254_v40  ;;  %v2320_v0 = vmul.f32 1.442695, %v2255_v57  ;;  %v1839_v19 = vadd.f32 %v1838_v4, %v1750_v42  ;;  %v1759_v42 = vpop.f32.mrf.mxu2 }
 0x336   : > { %4292 = vpow2.f32 %v2318_v20 }
 0x337   : > { %4294 = vpow2.f32 %v2320_v0 }
 0x339   : > { %v2163_v25 = vpop.xlane.xlu1 %2162 }
 0x33a   : > { %v2256_v5 = vsub.f32 %v5345_v48, %v2163_v25  ;;  %v2257_v41 = vsub.f32 %v5347_v47, %v2163_v25  ;;  %v1752_v48 = vadd.f32 %v5303_v31, %v1751_v21  ;;  %v5427_v47 = vpop.f32.mrf.mxu1 }
 0x33b   : > { %v2185_v11 = vmax.f32 %v5424_v22, %v5427_v47 }
 0x33c   : > { %v5418_v27 = vpop.eup %4292  ;;  %v2322_v60 = vmul.f32 1.442695, %v2256_v5  ;;  %v2324_v36 = vmul.f32 1.442695, %v2257_v41  ;;  %v1841_v23 = vadd.f32 %v1840_v14, %v1752_v48 }
 0x33d   : > { %v5420_v62 = vpop.eup %4294 }
 0x33e   : > { %4296 = vpow2.f32 %v2322_v60  ;;  %v2446_v38 = vadd.f32 %v5420_v62, %v5418_v27  ;;  %v1878_v32 = vpack.c.bf16 %v1841_v23, %v1839_v19 }
 0x33f   : > { %4298 = vpow2.f32 %v2324_v36 }
 0x340   : > { %2447 = vadd.xlane.f32.xlu1 %v2446_v38  ;;  %2038 = vmatmul.bf16.gmra.mxu0 %v1878_v32 }
 0x341   : > { %v2166_v61 = vpop.xlane.xlu2 %2165  ;;  %2127 = vmatmul.bf16.gmra.mxu1 %v1878_v32  ;;  %v1761_v32 = vpop.f32.mrf.mxu2 }
 0x342   : > { %v2258_v63 = vsub.f32 %v5353_v49, %v2166_v61  ;;  %v2259_v29 = vsub.f32 %v5355_v55, %v2166_v61  ;;  %v1843_v49 = vpop.f32.mrf.mxu3  ;;  %v5439_v55 = vpop.f32.mrf.mxu0 }
 0x343   : > { %v5441_v45 = vpop.f32.mrf.mxu1  ;;  %v1844_v53 = vadd.f32 %v1843_v49, %v1755_v10 }
 0x344   : > { %v5431_v58 = vpop.eup %4296  ;;  %v2326_v33 = vmul.f32 1.442695, %v2258_v63  ;;  %v2328_v35 = vmul.f32 1.442695, %v2259_v29 }
 0x345   : > { %v5433_v34 = vpop.eup %4298 }
 0x346   : > { %4300 = vpow2.f32 %v2326_v33  ;;  %v2449_v37 = vadd.f32 %v5433_v34, %v5431_v58 }
 0x347   : > { %4302 = vpow2.f32 %v2328_v35 }
 0x348   : > { %2450 = vadd.xlane.f32.xlu2 %v2449_v37  ;;  %2183 = vmax.xlane.f32.xlu1 %v2182_v44  ;;  %v1762_v37 = vadd.f32 %v5303_v31, %v1761_v32 }
 0x349   : > { %v2169_v8 = vpop.xlane.xlu2 %2168 }
 0x34a   : > { %v2260_v39 = vsub.f32 %v5359_v30, %v2169_v8  ;;  %v2261_v46 = vsub.f32 %v5361_v56, %v2169_v8  ;;  %v1757_v30 = vadd.f32 %v5303_v31, %v1756_v50  ;;  %v1845_v56 = vpop.f32.mrf.mxu3  ;;  %v5457_v59 = vpop.f32.mrf.mxu0 }
 0x34b   : > { %v5459_v0 = vpop.f32.mrf.mxu1 }
 0x34c   : > { %v5446_v24 = vpop.eup %4300  ;;  %v2330_v16 = vmul.f32 1.442695, %v2260_v39  ;;  %v2332_v52 = vmul.f32 1.442695, %v2261_v46  ;;  %v1846_v54 = vadd.f32 %v1845_v56, %v1757_v30 }
 0x34d   : > { %v5448_v9 = vpop.eup %4302 }
 0x34e   : > { %4304 = vpow2.f32 %v2330_v16  ;;  %v2452_v18 = vadd.f32 %v5448_v9, %v5446_v24  ;;  %v1879_v20 = vpack.c.bf16 %v1846_v54, %v1844_v53 }
 0x34f   : > { %4306 = vpow2.f32 %v2332_v52 }
 0x350   : > { %2453 = vadd.xlane.f32.xlu1 %v2452_v18  ;;  %2186 = vmax.xlane.f32.xlu2 %v2185_v11  ;;  %v1764_v18 = vpop.f32.mrf.mxu2 }
 0x351   : > { %v2172_v51 = vpop.xlane.xlu1 %2171  ;;  %2043 = vmatmul.bf16.gmra.mxu0 %v1879_v20  ;;  %2132 = vmatmul.bf16.gmra.mxu1 %v1879_v20 }
 0x352   : > { %v2262_v40 = vsub.f32 %v5369_v2, %v2172_v51  ;;  %v2263_v57 = vsub.f32 %v5371_v13, %v2172_v51  ;;  %v2188_v2 = vmax.f32 %v5439_v55, %v5441_v45  ;;  %v1848_v21 = vpop.f32.mrf.mxu3  ;;  %v5473_v14 = vpop.f32.mrf.mxu0 }
 0x353   : > { %v5477_v61 = vpop.f32.mrf.mxu1 }
 0x354   : > { %v5461_v3 = vpop.eup %4304  ;;  %v2334_v4 = vmul.f32 1.442695, %v2262_v40  ;;  %v2336_v25 = vmul.f32 1.442695, %v2263_v57 }
 0x355   : > { %v5463_v5 = vpop.eup %4306 }
 0x356   : > { %4308 = vpow2.f32 %v2334_v4  ;;  %v2455_v41 = vadd.f32 %v5463_v5, %v5461_v3 }
 0x357   : > { %4310 = vpow2.f32 %v2336_v25  ;;  %v1765_v25 = vadd.f32 %v5303_v31, %v1764_v18 }
 0x358   : > { %2456 = vadd.xlane.f32.xlu2 %v2455_v41  ;;  %2189 = vmax.xlane.f32.xlu1 %v2188_v2  ;;  %v1766_v41 = vpop.f32.mrf.mxu2 }
 0x359   : > { %v2175_v13 = vpop.xlane.xlu2 %2174 }
 0x35a   : > { %v2264_v60 = vsub.f32 %v5379_v12, %v2175_v13  ;;  %v2265_v36 = vsub.f32 %v5381_v7, %v2175_v13  ;;  %v2191_v12 = vmax.f32 %v5457_v59, %v5459_v0  ;;  %v1760_v7 = vadd.f32 %v5303_v31, %v1759_v42  ;;  %v1850_v44 = vpop.f32.mrf.mxu3  ;;  %v5495_v52 = vpop.f32.mrf.mxu0 }
 0x35b   : > { %v1851_v46 = vadd.f32 %v1850_v44, %v1762_v37  ;;  %v5497_v11 = vpop.f32.mrf.mxu1  ;;  %v1767_v13 = vadd.f32 %v5303_v31, %v1766_v41 }
 0x35c   : > { %v5471_v38 = vpop.eup %4308  ;;  %v2338_v19 = vmul.f32 1.442695, %v2264_v60  ;;  %v2340_v48 = vmul.f32 1.442695, %v2265_v36  ;;  %v1849_v43 = vadd.f32 %v1848_v21, %v1760_v7  ;;  %v2197_v4 = vmax.f32 %v5495_v52, %v5497_v11 }
 0x35d   : > { %v5475_v23 = vpop.eup %4310 }
 0x35e   : > { %4312 = vpow2.f32 %v2338_v19  ;;  %v2458_v63 = vadd.f32 %v5475_v23, %v5471_v38 }
 0x35f   : > { %4314 = vpow2.f32 %v2340_v48 }
 0x360   : > { %2459 = vadd.xlane.f32.xlu1 %v2458_v63  ;;  %2192 = vmax.xlane.f32.xlu2 %v2191_v12  ;;  %v1769_v12 = vpop.f32.mrf.mxu2 }
 0x361   : > { %v2178_v29 = vpop.xlane.xlu1 %2177 }
 0x362   : > { %v2266_v33 = vsub.f32 %v5385_v15, %v2178_v29  ;;  %v2267_v35 = vsub.f32 %v5387_v17, %v2178_v29  ;;  %v2194_v15 = vmax.f32 %v5473_v14, %v5477_v61  ;;  %v1880_v17 = vpack.c.bf16 %v1851_v46, %v1849_v43  ;;  %v1853_v56 = vpop.f32.mrf.mxu3 }
 0x363   : > { %v1854_v2 = vadd.f32 %v1853_v56, %v1765_v25 }
 0x364   : > { %v5487_v49 = vpop.eup %4312  ;;  %v2342_v8 = vmul.f32 1.442695, %v2266_v33  ;;  %v2344_v39 = vmul.f32 1.442695, %v2267_v35  ;;  %2048 = vmatmul.bf16.gmra.mxu0 %v1880_v17  ;;  %2137 = vmatmul.bf16.gmra.mxu1 %v1880_v17  ;;  %v1770_v35 = vadd.f32 %v5303_v31, %v1769_v12 }
 0x365   : > { %v5489_v10 = vpop.eup %4314 }
 0x366   : > { %4316 = vpow2.f32 %v2342_v8  ;;  %v2461_v16 = vadd.f32 %v5489_v10, %v5487_v49 }
 0x367   : > { %4318 = vpow2.f32 %v2344_v39 }
 0x368   : > { %2462 = vadd.xlane.f32.xlu2 %v2461_v16  ;;  %2195 = vmax.xlane.f32.xlu1 %v2194_v15  ;;  %v1771_v43 = vpop.f32.mrf.mxu2 }
 0x369   : > { %v2181_v50 = vpop.xlane.xlu2 %2180  ;;  %v1772_v44 = vadd.f32 %v5303_v31, %v1771_v43 }
 0x36a   : > { %v2268_v53 = vsub.f32 %v5395_v28, %v2181_v50  ;;  %v2269_v30 = vsub.f32 %v5397_v26, %v2181_v50  ;;  %v5510_v28 = vpop.f32.mrf.mxu0  ;;  %v5512_v26 = vpop.f32.mrf.mxu1 }
 0x36b   : > { %v1855_v42 = vpop.f32.mrf.mxu3  ;;  %v2200_v48 = vmax.f32 %v5510_v28, %v5512_v26 }
 0x36c   : > { %v5501_v54 = vpop.eup %4316  ;;  %v2346_v51 = vmul.f32 1.442695, %v2268_v53  ;;  %v2348_v40 = vmul.f32 1.442695, %v2269_v30  ;;  %v1856_v36 = vadd.f32 %v1855_v42, %v1767_v13 }
 0x36d   : > { %v5503_v57 = vpop.eup %4318 }
 0x36e   : > { %4320 = vpow2.f32 %v2346_v51  ;;  %v2464_v20 = vadd.f32 %v5503_v57, %v5501_v54  ;;  %v1881_v63 = vpack.c.bf16 %v1856_v36, %v1854_v2 }
 0x36f   : > { %4322 = vpow2.f32 %v2348_v40 }
 0x370   : > { %2465 = vadd.xlane.f32.xlu1 %v2464_v20  ;;  %2198 = vmax.xlane.f32.xlu2 %v2197_v4  ;;  %v1774_v16 = vpop.f32.mrf.mxu2 }
 0x371   : > { %v1775_v17 = vadd.f32 %v5303_v31, %v1774_v16 }
 0x372   : > { %v5523_v29 = vpop.f32.mrf.mxu0  ;;  %v5525_v32 = vpop.f32.mrf.mxu1 }
 0x373   : > { %v1858_v7 = vpop.f32.mrf.mxu3  ;;  %v2203_v33 = vmax.f32 %v5523_v29, %v5525_v32 }
 0x374   : > { %v5515_v60 = vpop.eup %4320  ;;  %2053 = vmatmul.bf16.gmra.mxu0 %v1881_v63  ;;  %2142 = vmatmul.bf16.gmra.mxu1 %v1881_v63  ;;  %v1859_v37 = vadd.f32 %v1858_v7, %v1770_v35 }
 0x375   : > { %v5517_v21 = vpop.eup %4322 }
 0x376   : > { %v2467_v19 = vadd.f32 %v5517_v21, %v5515_v60 }
 0x378   : > { %2468 = vadd.xlane.f32.xlu2 %v2467_v19  ;;  %2201 = vmax.xlane.f32.xlu1 %v2200_v48  ;;  %v1776_v50 = vpop.f32.mrf.mxu2 }
 0x379   : > { %v1777_v53 = vadd.f32 %v5303_v31, %v1776_v50 }
 0x37a   : > { %v5533_v40 = vpop.f32.mrf.mxu0  ;;  %v5535_v20 = vpop.f32.mrf.mxu1 }
 0x37b   : > { %v1860_v8 = vpop.f32.mrf.mxu3 }
 0x37c   : > { %v1861_v39 = vadd.f32 %v1860_v8, %v1772_v44 }
 0x37e   : > { %v1882_v46 = vpack.c.bf16 %v1861_v39, %v1859_v37 }
 0x380   : > { %2204 = vmax.xlane.f32.xlu2 %v2203_v33 }
 0x382   : > { %v5537_v4 = vpop.f32.mrf.mxu0  ;;  %v5539_v25 = vpop.f32.mrf.mxu1 }
 0x383   : > { %v1863_v15 = vpop.f32.mrf.mxu3 }
 0x384   : > { %2058 = vmatmul.bf16.gmra.mxu0 %v1882_v46  ;;  %2147 = vmatmul.bf16.gmra.mxu1 %v1882_v46  ;;  %v1864_v18 = vadd.f32 %v1863_v15, %v1775_v17 }
 0x38a   : > { %v5541_v2 = vpop.f32.mrf.mxu0  ;;  %v5545_v19 = vpop.f32.mrf.mxu1 }
 0x38b   : > { %v1865_v30 = vpop.f32.mrf.mxu3 }
 0x38c   : > { %v1866_v56 = vadd.f32 %v1865_v30, %v1777_v53 }
 0x38e   : > { %v1883_v51 = vpack.c.bf16 %v1866_v56, %v1864_v18 }
 0x392   : > { %v5553_v39 = vpop.f32.mrf.mxu0  ;;  %v5557_v50 = vpop.f32.mrf.mxu1 }
 0x394   : > { %2063 = vmatmul.bf16.gmra.mxu0 %v1883_v51  ;;  %2152 = vmatmul.bf16.gmra.mxu1 %v1883_v51 }
 0x3b3   : > { %v2448_v41 = vpop.xlane.xlu1 %2447 }
 0x3b4   : > { %4324 = vrcp.f32 %v2448_v41 }
 0x3ba   : > { %v4325_v12 = vpop.eup %4324 }
 0x3bb   : > { %v2451_v13 = vpop.xlane.xlu2 %2450  ;;  %v2184_v42 = vpop.xlane.xlu1 %2183  ;;  %v2574_v33 = vmul.f32 %v4325_v12, %v5418_v27  ;;  %v2575_v35 = vmul.f32 %v4325_v12, %v5420_v62 }
 0x3bc   : > { %4326 = vrcp.f32 %v2451_v13  ;;  %v2270_v31 = vsub.f32 %v5411_v6, %v2184_v42  ;;  %v2271_v36 = vsub.f32 %v5413_v1, %v2184_v42 }
 0x3bd   : > { %v5567_v51 = vpop.f32.mrf.mxu0 }
 0x3be   : > { %v2350_v48 = vmul.f32 1.442695, %v2270_v31  ;;  %v2352_v63 = vmul.f32 1.442695, %v2271_v36  ;;  %v2206_v31 = vmax.f32 %v5533_v40, %v5535_v20  ;;  %v5575_v36 = vpop.f32.mrf.mxu1 }
 0x3c0   : > { %4328 = vpow2.f32 %v2350_v48 }
 0x3c1   : > { %4330 = vpow2.f32 %v2352_v63 }
 0x3c2   : > { %v4327_v7 = vpop.eup %4326 }
 0x3c3   : > { %v2576_v43 = vmul.f32 %v4327_v7, %v5431_v58  ;;  %v2577_v37 = vmul.f32 %v4327_v7, %v5433_v34  ;;  %v2454_v44 = vpop.xlane.xlu1 %2453  ;;  %v2187_v6 = vpop.xlane.xlu2 %2186 }
 0x3c4   : > { %v2272_v1 = vsub.f32 %v5424_v22, %v2187_v6  ;;  %v2273_v8 = vsub.f32 %v5427_v47, %v2187_v6 }
 0x3c5   : > { %v2638_v46 = vpack.c.bf16 %v2576_v43, %v2574_v33  ;;  %v2639_v16 = vpack.c.bf16 %v2577_v37, %v2575_v35 }
 0x3c6   : > { %v5555_v15 = vpop.eup %4328  ;;  %v2354_v17 = vmul.f32 1.442695, %v2272_v1  ;;  %v2356_v27 = vmul.f32 1.442695, %v2273_v8 }
 0x3c7   : > { %v5559_v62 = vpop.eup %4330  ;;  %2870 = vmatmul.bf16.vlgmr.msrb.gmra.mxu2 %v2638_v46  ;;  %2959 = vmatmul.bf16.vlgmr.msrb.gmra.mxu3 %v2639_v16 }
 0x3c8   : > { %4332 = vpow2.f32 %v2354_v17  ;;  %3048 = vmatmul.bf16.vlgmr.msrb.gmra.mxu0 %v2638_v46  ;;  %3137 = vmatmul.bf16.vlgmr.msrb.gmra.mxu1 %v2639_v16  ;;  %v2470_v22 = vadd.f32 %v5559_v62, %v5555_v15 }
 0x3c9   : > { %4334 = vpow2.f32 %v2356_v27 }
 0x3ca   : > { %4336 = vrcp.f32 %v2454_v44  ;;  %2471 = vadd.xlane.f32.xlu1 %v2470_v22 }
 0x3cb   : > { %v2457_v47 = vpop.xlane.xlu2 %2456  ;;  %v2190_v58 = vpop.xlane.xlu1 %2189 }
 0x3cc   : > { %4338 = vrcp.f32 %v2457_v47  ;;  %v2274_v34 = vsub.f32 %v5439_v55, %v2190_v58  ;;  %v2275_v18 = vsub.f32 %v5441_v45, %v2190_v58 }
 0x3ce   : > { %v5565_v53 = vpop.eup %4332  ;;  %v2358_v30 = vmul.f32 1.442695, %v2274_v34  ;;  %v2360_v56 = vmul.f32 1.442695, %v2275_v18 }
 0x3cf   : > { %v5569_v41 = vpop.eup %4334 }
 0x3d0   : > { %v4337_v13 = vpop.eup %4336  ;;  %4340 = vpow2.f32 %v2358_v30  ;;  %v2473_v42 = vadd.f32 %v5569_v41, %v5565_v53  ;;  %v2212_v30 = vmax.f32 %v5541_v2, %v5545_v19 }
 0x3d1   : > { %4342 = vpow2.f32 %v2360_v56  ;;  %v2578_v63 = vmul.f32 %v4337_v13, %v5446_v24  ;;  %v2579_v7 = vmul.f32 %v4337_v13, %v5448_v9  ;;  %v2209_v9 = vmax.f32 %v5537_v4, %v5539_v25 }
 0x3d2   : > { %v4339_v55 = vpop.eup %4338  ;;  %2474 = vadd.xlane.f32.xlu2 %v2473_v42  ;;  %2207 = vmax.xlane.f32.xlu1 %v2206_v31 }
 0x3d3   : > { %v2460_v45 = vpop.xlane.xlu1 %2459  ;;  %v2193_v48 = vpop.xlane.xlu2 %2192  ;;  %v2580_v12 = vmul.f32 %v4339_v55, %v5461_v3  ;;  %v2581_v33 = vmul.f32 %v4339_v55, %v5463_v5 }
 0x3d4   : > { %v2276_v35 = vsub.f32 %v5457_v59, %v2193_v48  ;;  %v2277_v43 = vsub.f32 %v5459_v0, %v2193_v48  ;;  %v5591_v59 = vpop.f32.mrf.mxu0  ;;  %v5593_v0 = vpop.f32.mrf.mxu1 }
 0x3d5   : > { %v2640_v37 = vpack.c.bf16 %v2580_v12, %v2578_v63  ;;  %v2641_v44 = vpack.c.bf16 %v2581_v33, %v2579_v7 }
 0x3d6   : > { %v5583_v6 = vpop.eup %4340  ;;  %v2362_v1 = vmul.f32 1.442695, %v2276_v35  ;;  %v2364_v8 = vmul.f32 1.442695, %v2277_v43 }
 0x3d7   : > { %v5585_v46 = vpop.eup %4342  ;;  %2875 = vmatmul.bf16.gmra.mxu2 %v2640_v37  ;;  %2964 = vmatmul.bf16.gmra.mxu3 %v2641_v44 }
 0x3d8   : > { %4344 = vpow2.f32 %v2362_v1  ;;  %3053 = vmatmul.bf16.gmra.mxu0 %v2640_v37  ;;  %3142 = vmatmul.bf16.gmra.mxu1 %v2641_v44  ;;  %v2476_v24 = vadd.f32 %v5585_v46, %v5583_v6 }
 0x3d9   : > { %4346 = vpow2.f32 %v2364_v8 }
 0x3da   : > { %4348 = vrcp.f32 %v2460_v45  ;;  %2477 = vadd.xlane.f32.xlu1 %v2476_v24  ;;  %2210 = vmax.xlane.f32.xlu2 %v2209_v9 }
 0x3db   : > { %v2463_v3 = vpop.xlane.xlu2 %2462  ;;  %v2196_v5 = vpop.xlane.xlu1 %2195 }
 0x3dc   : > { %4350 = vrcp.f32 %v2463_v3  ;;  %v2278_v16 = vsub.f32 %v5473_v14, %v2196_v5  ;;  %v2279_v17 = vsub.f32 %v5477_v61, %v2196_v5  ;;  %v5605_v14 = vpop.f32.mrf.mxu0  ;;  %v5613_v12 = vpop.f32.mrf.mxu1 }
 0x3de   : > { %v5597_v27 = vpop.eup %4344  ;;  %v2366_v22 = vmul.f32 1.442695, %v2278_v16  ;;  %v2368_v47 = vmul.f32 1.442695, %v2279_v17 }
 0x3df   : > { %v5599_v58 = vpop.eup %4346 }
 0x3e0   : > { %v4349_v34 = vpop.eup %4348  ;;  %4352 = vpow2.f32 %v2366_v22  ;;  %v2479_v18 = vadd.f32 %v5599_v58, %v5597_v27 }
 0x3e1   : > { %4354 = vpow2.f32 %v2368_v47  ;;  %v2582_v42 = vmul.f32 %v4349_v34, %v5471_v38  ;;  %v2583_v55 = vmul.f32 %v4349_v34, %v5475_v23  ;;  %v2215_v23 = vmax.f32 %v5553_v39, %v5557_v50 }
 0x3e2   : > { %v4351_v56 = vpop.eup %4350  ;;  %2480 = vadd.xlane.f32.xlu2 %v2479_v18  ;;  %2213 = vmax.xlane.f32.xlu1 %v2212_v30 }
 0x3e3   : > { %v2466_v61 = vpop.xlane.xlu1 %2465  ;;  %v2199_v13 = vpop.xlane.xlu2 %2198  ;;  %v2584_v31 = vmul.f32 %v4351_v56, %v5487_v49  ;;  %v2585_v45 = vmul.f32 %v4351_v56, %v5489_v10 }
 0x3e4   : > { %v2280_v48 = vsub.f32 %v5495_v52, %v2199_v13  ;;  %v2281_v63 = vsub.f32 %v5497_v11, %v2199_v13  ;;  %v5625_v1 = vpop.f32.mrf.mxu0  ;;  %v5629_v3 = vpop.f32.mrf.mxu1 }
 0x3e5   : > { %v2642_v7 = vpack.c.bf16 %v2584_v31, %v2582_v42  ;;  %v2643_v33 = vpack.c.bf16 %v2585_v45, %v2583_v55 }
 0x3e6   : > { %v5615_v35 = vpop.eup %4352  ;;  %v2370_v43 = vmul.f32 1.442695, %v2280_v48  ;;  %v2372_v37 = vmul.f32 1.442695, %v2281_v63 }
 0x3e7   : > { %v5617_v44 = vpop.eup %4354  ;;  %2880 = vmatmul.bf16.gmra.mxu2 %v2642_v7  ;;  %2969 = vmatmul.bf16.gmra.mxu3 %v2643_v33 }
 0x3e8   : > { %4356 = vpow2.f32 %v2370_v43  ;;  %3058 = vmatmul.bf16.gmra.mxu0 %v2642_v7  ;;  %3147 = vmatmul.bf16.gmra.mxu1 %v2643_v33  ;;  %v2482_v38 = vadd.f32 %v5617_v44, %v5615_v35  ;;  %v2224_v33 = vmax.f32 %v5605_v14, %v5613_v12 }
 0x3e9   : > { %4358 = vpow2.f32 %v2372_v37  ;;  %v2227_v37 = vmax.f32 %v5625_v1, %v5629_v3 }
 0x3ea   : > { %4360 = vrcp.f32 %v2466_v61  ;;  %2483 = vadd.xlane.f32.xlu0 %v2482_v38  ;;  %2216 = vmax.xlane.f32.xlu2 %v2215_v23 }
 0x3eb   : > { %v2469_v49 = vpop.xlane.xlu2 %2468  ;;  %v2202_v10 = vpop.xlane.xlu1 %2201 }
 0x3ec   : > { %4362 = vrcp.f32 %v2469_v49  ;;  %v2282_v52 = vsub.f32 %v5510_v28, %v2202_v10  ;;  %v2283_v11 = vsub.f32 %v5512_v26, %v2202_v10  ;;  %v2218_v28 = vmax.f32 %v5567_v51, %v5575_v36  ;;  %v5643_v31 = vpop.f32.mrf.mxu0  ;;  %v5647_v63 = vpop.f32.mrf.mxu1 }
 0x3ee   : > { %v5627_v8 = vpop.eup %4356  ;;  %v2374_v24 = vmul.f32 1.442695, %v2282_v52  ;;  %v2376_v9 = vmul.f32 1.442695, %v2283_v11 }
 0x3ef   : > { %v5631_v5 = vpop.eup %4358 }
 0x3f0   : > { %v4361_v16 = vpop.eup %4360  ;;  %4364 = vpow2.f32 %v2374_v24  ;;  %v2485_v17 = vadd.f32 %v5631_v5, %v5627_v8 }
 0x3f1   : > { %4366 = vpow2.f32 %v2376_v9  ;;  %v2586_v47 = vmul.f32 %v4361_v16, %v5501_v54  ;;  %v2587_v18 = vmul.f32 %v4361_v16, %v5503_v57 }
 0x3f2   : > { %v4363_v26 = vpop.eup %4362  ;;  %2486 = vadd.xlane.f32.xlu1 %v2485_v17  ;;  %2219 = vmax.xlane.f32.xlu2 %v2218_v28 }
 0x3f3   : > { %v2205_v22 = vpop.xlane.xlu2 %2204  ;;  %v2588_v34 = vmul.f32 %v4363_v26, %v5515_v60  ;;  %v2589_v30 = vmul.f32 %v4363_v26, %v5517_v21  ;;  %v2221_v60 = vmax.f32 %v5591_v59, %v5593_v0 }
 0x3f4   : > { %v2284_v56 = vsub.f32 %v5523_v29, %v2205_v22  ;;  %v2285_v61 = vsub.f32 %v5525_v32, %v2205_v22  ;;  %v5659_v32 = vpop.f32.mrf.mxu0  ;;  %v5665_v43 = vpop.f32.mrf.mxu1 }
 0x3f5   : > { %v2644_v13 = vpack.c.bf16 %v2588_v34, %v2586_v47  ;;  %v2645_v42 = vpack.c.bf16 %v2589_v30, %v2587_v18 }
 0x3f6   : > { %v5645_v55 = vpop.eup %4364  ;;  %v2378_v45 = vmul.f32 1.442695, %v2284_v56  ;;  %v2380_v48 = vmul.f32 1.442695, %v2285_v61  ;;  %v5693_v56 = vstv %s3218_s23 }
 0x3f7   : > { %v5649_v54 = vpop.eup %4366  ;;  %2885 = vmatmul.bf16.gmra.mxu2 %v2644_v13  ;;  %2974 = vmatmul.bf16.gmra.mxu3 %v2645_v42 }
 0x3f8   : > { %4368 = vpow2.f32 %v2378_v45  ;;  %3063 = vmatmul.bf16.gmra.mxu0 %v2644_v13  ;;  %3152 = vmatmul.bf16.gmra.mxu1 %v2645_v42  ;;  %v2488_v57 = vadd.f32 %v5649_v54, %v5645_v55 }
 0x3f9   : > { %4370 = vpow2.f32 %v2380_v48 }
 0x3fa   : > { %2489 = vadd.xlane.f32.xlu2 %v2488_v57  ;;  %2222 = vmax.xlane.f32.xlu1 %v2221_v60 }
 0x3fc   : > { %v5669_v38 = vpop.f32.mrf.mxu0  ;;  %v5671_v23 = vpop.f32.mrf.mxu1 }
 0x3fe   : > { %v5655_v21 = vpop.eup %4368 }
 0x3ff   : > { %v5657_v29 = vpop.eup %4370 }
 0x400   : > { %v2491_v7 = vadd.f32 %v5657_v29, %v5655_v21 }
 0x402   : > { %2492 = vadd.xlane.f32.xlu1 %v2491_v7  ;;  %2225 = vmax.xlane.f32.xlu2 %v2224_v33 }
 0x404   : > { %v5673_v49 = vpop.f32.mrf.mxu0  ;;  %v5675_v10 = vpop.f32.mrf.mxu1 }
 0x40a   : > { %2228 = vmax.xlane.f32.xlu1 %v2227_v37  ;;  %v4484_v37 = vld [vmem:[%s4692_s22 + $0x8] sm:$0xff] }
 0x40c   : > { %v5677_v52 = vpop.f32.mrf.mxu0  ;;  %v5679_v11 = vpop.f32.mrf.mxu1 }
 0x414   : > { %v5681_v24 = vpop.f32.mrf.mxu0  ;;  %v5683_v9 = vpop.f32.mrf.mxu1 }
 0x41c   : > { %v5685_v16 = vpop.f32.mrf.mxu0  ;;  %v5687_v17 = vpop.f32.mrf.mxu1 }
 0x41d   : > { %6107 = vst [vmem:[#allocation5_spill] sm:$0xff] %v5685_v16 }
 0x424   : > { %v5689_v28 = vpop.f32.mrf.mxu0  ;;  %v5691_v26 = vpop.f32.mrf.mxu1 }
 0x425   : > { %6108 = vst [vmem:[#allocation6_spill] sm:$0xff] %v5689_v28 }
 0x426   : > { %6109 = vst [vmem:[#allocation7_spill] sm:$0xff] %v5691_v26 }
 0x43d   : > { %v2472_v22 = vpop.xlane.xlu1 %2471 }
 0x43e   : > { %4372 = vrcp.f32 %v2472_v22 }
 0x444   : > { %v4373_v45 = vpop.eup %4372 }
 0x445   : > { %v3049_v47 = vpop.f32.mrf.mxu0  ;;  %v2475_v34 = vpop.xlane.xlu2 %2474 }
 0x446   : > { %4374 = vrcp.f32 %v2475_v34  ;;  %v2208_v18 = vpop.xlane.xlu1 %2207  ;;  %v3138_v30 = vpop.f32.mrf.mxu1 }
 0x447   : > { %v2286_v61 = vsub.f32 %v5533_v40, %v2208_v18  ;;  %v2287_v13 = vsub.f32 %v5535_v20, %v2208_v18  ;;  %v3139_v42 = vadd.f32 %v3138_v30, %v3049_v47  ;;  %v2590_v40 = vmul.f32 %v4373_v45, %v5555_v15 }
 0x449   : > { %v2382_v48 = vmul.f32 1.442695, %v2286_v61  ;;  %v2384_v57 = vmul.f32 1.442695, %v2287_v13  ;;  %v3221_v60 = vmul.f32 %v5693_v56, %v3139_v42 }
 0x44a   : > { %v2871_v7 = vpop.f32.mrf.mxu2  ;;  %v2960_v33 = vpop.f32.mrf.mxu3 }
 0x44b   : > { %4376 = vpow2.f32 %v2382_v48  ;;  %v3285_v22 = vadd.f32 %v4484_v37, %v3221_v60  ;;  %v2961_v34 = vadd.f32 %v2960_v33, %v2871_v7  ;;  %v2591_v7 = vmul.f32 %v4373_v45, %v5559_v62  ;;  %v4485_v33 = vld [vmem:[%s4692_s22] sm:$0xff]  ;;  %v4486_v45 = vld [vmem:[%s4692_s22 + $0x18] sm:$0xff] }
 0x44c   : > { %v4375_v28 = vpop.eup %4374  ;;  %4378 = vpow2.f32 %v2384_v57 }
 0x44d   : > { %v3349_v20 = vmax.f32 %v3285_v22, 0.0  ;;  %v3220_v47 = vmul.f32 %v5693_v56, %v2961_v34  ;;  %v3051_v18 = vpop.f32.mrf.mxu0  ;;  %v2211_v30 = vpop.xlane.xlu2 %2210  ;;  %v2592_v61 = vmul.f32 %v4375_v28, %v5565_v53  ;;  %v2593_v13 = vmul.f32 %v4375_v28, %v5569_v41 }
 0x44e   : > { %v2478_v42 = vpop.xlane.xlu1 %2477  ;;  %v2288_v48 = vsub.f32 %v5537_v4, %v2211_v30  ;;  %v2289_v57 = vsub.f32 %v5539_v25, %v2211_v30  ;;  %v3140_v60 = vpop.f32.mrf.mxu1 }
 0x44f   : > { %3413 = vst [vmem:[%s5704_s26 + $0x8] sm:$0xff] %v3349_v20  ;;  %v3284_v15 = vadd.f32 %v4485_v33, %v3220_v47  ;;  %v3141_v37 = vadd.f32 %v3140_v60, %v3051_v18  ;;  %v2646_v22 = vpack.c.bf16 %v2592_v61, %v2590_v40  ;;  %v2647_v53 = vpack.c.bf16 %v2593_v13, %v2591_v7  ;;  %v4487_v60 = vld [vmem:[%s4692_s22 + $0x10] sm:$0xff] }
 0x450   : > { %v2386_v34 = vmul.f32 1.442695, %v2288_v48  ;;  %v2388_v26 = vmul.f32 1.442695, %v2289_v57 }
 0x451   : > { %v5715_v16 = vpop.eup %4376  ;;  %v3348_v41 = vmax.f32 %v3284_v15, 0.0  ;;  %v3223_v4 = vmul.f32 %v5693_v56, %v3141_v37  ;;  %2890 = vmatmul.bf16.gmra.mxu2 %v2646_v22  ;;  %3068 = vmatmul.bf16.gmra.mxu0 %v2646_v22 }
 0x452   : > { %v5718_v25 = vpop.eup %4378  ;;  %4380 = vpow2.f32 %v2386_v34  ;;  %2979 = vmatmul.bf16.gmra.mxu3 %v2647_v53  ;;  %3157 = vmatmul.bf16.gmra.mxu1 %v2647_v53  ;;  %v2873_v62 = vpop.f32.mrf.mxu2 }
 0x453   : > { %v2962_v28 = vpop.f32.mrf.mxu3  ;;  %3412 = vst [vmem:[%s5704_s26] sm:$0xff] %v3348_v41  ;;  %4382 = vpow2.f32 %v2388_v26  ;;  %v3287_v40 = vadd.f32 %v4486_v45, %v3223_v4  ;;  %v2494_v47 = vadd.f32 %v5718_v25, %v5715_v16 }
 0x454   : > { %v2963_v20 = vadd.f32 %v2962_v28, %v2873_v62  ;;  %4384 = vrcp.f32 %v2478_v42 }
 0x455   : > { %v3351_v18 = vmax.f32 %v3287_v40, 0.0  ;;  %2495 = vadd.xlane.f32.xlu2 %v2494_v47  ;;  %v3054_v61 = vpop.f32.mrf.mxu0  ;;  %v2481_v13 = vpop.xlane.xlu2 %2480 }
 0x456   : > { %v3222_v30 = vmul.f32 %v5693_v56, %v2963_v20  ;;  %4386 = vrcp.f32 %v2481_v13  ;;  %v2214_v48 = vpop.xlane.xlu1 %2213  ;;  %v3143_v57 = vpop.f32.mrf.mxu1  ;;  %v2230_v20 = vmax.f32 %v5643_v31, %v5647_v63 }
 0x457   : > { %3415 = vst [vmem:[%s5704_s26 + $0x18] sm:$0xff] %v3351_v18  ;;  %v2290_v7 = vsub.f32 %v5541_v2, %v2214_v48  ;;  %v2291_v33 = vsub.f32 %v5545_v19, %v2214_v48  ;;  %v3144_v15 = vadd.f32 %v3143_v57, %v3054_v61  ;;  %v4488_v2 = vld [vmem:[%s4692_s22 + $0x28] sm:$0xff] }
 0x458   : > { %v3286_v26 = vadd.f32 %v4487_v60, %v3222_v30  ;;  %v5729_v42 = vpop.eup %4380 }
 0x459   : > { %v5731_v37 = vpop.eup %4382  ;;  %v2390_v34 = vmul.f32 1.442695, %v2290_v7  ;;  %v2392_v53 = vmul.f32 1.442695, %v2291_v33  ;;  %v3225_v41 = vmul.f32 %v5693_v56, %v3144_v15  ;;  %v4489_v33 = vld [vmem:[%s4692_s22 + $0x20] sm:$0xff] }
 0x45a   : > { %v3350_v22 = vmax.f32 %v3286_v26, 0.0  ;;  %v2876_v4 = vpop.f32.mrf.mxu2  ;;  %v2497_v28 = vadd.f32 %v5731_v37, %v5729_v42  ;;  %v4385_v45 = vpop.eup %4384 }
 0x45b   : > { %v2965_v62 = vpop.f32.mrf.mxu3  ;;  %4388 = vpow2.f32 %v2390_v34  ;;  %v3289_v19 = vadd.f32 %v4488_v2, %v3225_v41  ;;  %v2594_v26 = vmul.f32 %v4385_v45, %v5583_v6  ;;  %v2595_v7 = vmul.f32 %v4385_v45, %v5585_v46 }
 0x45c   : > { %3414 = vst [vmem:[%s5704_s26 + $0x10] sm:$0xff] %v3350_v22  ;;  %v2966_v40 = vadd.f32 %v2965_v62, %v2876_v4  ;;  %v4387_v47 = vpop.eup %4386  ;;  %4390 = vpow2.f32 %v2392_v53  ;;  %2498 = vadd.xlane.f32.xlu1 %v2497_v28 }
 0x45d   : > { %v3353_v18 = vmax.f32 %v3289_v19, 0.0  ;;  %2231 = vmax.xlane.f32.xlu2 %v2230_v20  ;;  %v3056_v61 = vpop.f32.mrf.mxu0  ;;  %v2596_v13 = vmul.f32 %v4387_v47, %v5597_v27  ;;  %v2597_v48 = vmul.f32 %v4387_v47, %v5599_v58  ;;  %v2217_v57 = vpop.xlane.xlu2 %2216  ;;  %v4490_v19 = vld [vmem:[%s4692_s22 + $0x38] sm:$0xff] }
 0x45e   : > { %v3224_v30 = vmul.f32 %v5693_v56, %v2966_v40  ;;  %v3145_v60 = vpop.f32.mrf.mxu1  ;;  %v2484_v22 = vpop.xlane.xlu0 %2483  ;;  %v2292_v34 = vsub.f32 %v5553_v39, %v2217_v57  ;;  %v2293_v53 = vsub.f32 %v5557_v50, %v2217_v57  ;;  %v2233_v50 = vmax.f32 %v5659_v32, %v5665_v43 }
 0x45f   : > { %3417 = vst [vmem:[%s5704_s26 + $0x28] sm:$0xff] %v3353_v18  ;;  %v3146_v41 = vadd.f32 %v3145_v60, %v3056_v61  ;;  %v2648_v4 = vpack.c.bf16 %v2596_v13, %v2594_v26  ;;  %v2649_v27 = vpack.c.bf16 %v2597_v48, %v2595_v7  ;;  %4392 = vrcp.f32 %v2484_v22  ;;  %v4491_v60 = vld [vmem:[%s4692_s22 + $0x30] sm:$0xff] }
 0x460   : > { %v3288_v15 = vadd.f32 %v4489_v33, %v3224_v30  ;;  %v2394_v28 = vmul.f32 1.442695, %v2292_v34  ;;  %v2396_v6 = vmul.f32 1.442695, %v2293_v53 }
 0x461   : > { %v5749_v58 = vpop.eup %4388  ;;  %v3227_v46 = vmul.f32 %v5693_v56, %v3146_v41  ;;  %2895 = vmatmul.bf16.gmra.mxu2 %v2648_v4  ;;  %3073 = vmatmul.bf16.gmra.mxu0 %v2648_v4 }
 0x462   : > { %v3352_v62 = vmax.f32 %v3288_v15, 0.0  ;;  %v5752_v45 = vpop.eup %4390  ;;  %2984 = vmatmul.bf16.gmra.mxu3 %v2649_v27  ;;  %v2878_v39 = vpop.f32.mrf.mxu2  ;;  %4394 = vpow2.f32 %v2394_v28  ;;  %3162 = vmatmul.bf16.gmra.mxu1 %v2649_v27 }
 0x463   : > { %v2967_v2 = vpop.f32.mrf.mxu3  ;;  %v3291_v40 = vadd.f32 %v4490_v19, %v3227_v46  ;;  %4396 = vpow2.f32 %v2396_v6  ;;  %v2500_v47 = vadd.f32 %v5752_v45, %v5749_v58  ;;  %v4492_v46 = vld [vmem:[%s4692_s22 + $0x48] sm:$0xff] }
 0x464   : > { %3416 = vst [vmem:[%s5704_s26 + $0x20] sm:$0xff] %v3352_v62  ;;  %v2968_v20 = vadd.f32 %v2967_v2, %v2878_v39  ;;  %2234 = vmax.xlane.f32.xlu1 %v2233_v50  ;;  %v2236_v50 = vmax.f32 %v5669_v38, %v5671_v23 }
 0x465   : > { %v3355_v18 = vmax.f32 %v3291_v40, 0.0  ;;  %v3059_v61 = vpop.f32.mrf.mxu0  ;;  %v2487_v13 = vpop.xlane.xlu1 %2486  ;;  %2501 = vadd.xlane.f32.xlu2 %v2500_v47 }
 0x466   : > { %v3226_v30 = vmul.f32 %v5693_v56, %v2968_v20  ;;  %4398 = vrcp.f32 %v2487_v13  ;;  %v2220_v48 = vpop.xlane.xlu2 %2219  ;;  %v3148_v57 = vpop.f32.mrf.mxu1 }
 0x467   : > { %3419 = vst [vmem:[%s5704_s26 + $0x38] sm:$0xff] %v3355_v18  ;;  %v2294_v7 = vsub.f32 %v5567_v51, %v2220_v48  ;;  %v2295_v33 = vsub.f32 %v5575_v36, %v2220_v48  ;;  %v3149_v15 = vadd.f32 %v3148_v57, %v3059_v61  ;;  %v4393_v22 = vpop.eup %4392 }
 0x468   : > { %v3290_v26 = vadd.f32 %v4491_v60, %v3226_v30  ;;  %v5765_v34 = vpop.eup %4394  ;;  %v2598_v19 = vmul.f32 %v4393_v22, %v5615_v35  ;;  %v4493_v35 = vld [vmem:[%s4692_s22 + $0x40] sm:$0xff] }
 0x469   : > { %v2398_v41 = vmul.f32 1.442695, %v2294_v7  ;;  %v2400_v4 = vmul.f32 1.442695, %v2295_v33  ;;  %v3229_v27 = vmul.f32 %v5693_v56, %v3149_v15  ;;  %v5768_v62 = vpop.eup %4396 }
 0x46a   : > { %v3354_v53 = vmax.f32 %v3290_v26, 0.0  ;;  %v2881_v28 = vpop.f32.mrf.mxu2  ;;  %v2503_v36 = vadd.f32 %v5768_v62, %v5765_v34  ;;  %v2599_v26 = vmul.f32 %v4393_v22, %v5617_v44 }
 0x46b   : > { %v2970_v6 = vpop.f32.mrf.mxu3  ;;  %4400 = vpow2.f32 %v2398_v41  ;;  %v3293_v39 = vadd.f32 %v4492_v46, %v3229_v27  ;;  %v2239_v27 = vmax.f32 %v5673_v49, %v5675_v10 }
 0x46c   : > { %3418 = vst [vmem:[%s5704_s26 + $0x30] sm:$0xff] %v3354_v53  ;;  %v2971_v51 = vadd.f32 %v2970_v6, %v2881_v28  ;;  %v4399_v2 = vpop.eup %4398  ;;  %4402 = vpow2.f32 %v2400_v4  ;;  %2504 = vadd.xlane.f32.xlu1 %v2503_v36  ;;  %v4494_v28 = vld [vmem:[%s4692_s22 + $0x58] sm:$0xff] }
 0x46d   : > { %v3357_v40 = vmax.f32 %v3293_v39, 0.0  ;;  %v3061_v47 = vpop.f32.mrf.mxu0  ;;  %v2223_v18 = vpop.xlane.xlu1 %2222  ;;  %v2600_v30 = vmul.f32 %v4399_v2, %v5627_v8  ;;  %v2601_v61 = vmul.f32 %v4399_v2, %v5631_v5  ;;  %2237 = vmax.xlane.f32.xlu2 %v2236_v50 }
 0x46e   : > { %v3228_v20 = vmul.f32 %v5693_v56, %v2971_v51  ;;  %v2490_v13 = vpop.xlane.xlu2 %2489  ;;  %v2296_v48 = vsub.f32 %v5591_v59, %v2223_v18  ;;  %v2297_v57 = vsub.f32 %v5593_v0, %v2223_v18  ;;  %v3150_v60 = vpop.f32.mrf.mxu1 }
 0x46f   : > { %3421 = vst [vmem:[%s5704_s26 + $0x48] sm:$0xff] %v3357_v40  ;;  %v3151_v33 = vadd.f32 %v3150_v60, %v3061_v47  ;;  %v2650_v15 = vpack.c.bf16 %v2600_v30, %v2598_v19  ;;  %v2651_v41 = vpack.c.bf16 %v2601_v61, %v2599_v26  ;;  %4404 = vrcp.f32 %v2490_v13  ;;  %v4495_v47 = vld [vmem:[%s4692_s22 + $0x50] sm:$0xff] }
 0x470   : > { %v3292_v7 = vadd.f32 %v4493_v35, %v3228_v20  ;;  %v2402_v53 = vmul.f32 1.442695, %v2296_v48  ;;  %v2404_v8 = vmul.f32 1.442695, %v2297_v57 }
 0x471   : > { %v5785_v5 = vpop.eup %4400  ;;  %v3231_v59 = vmul.f32 %v5693_v56, %v3151_v33  ;;  %2900 = vmatmul.bf16.gmra.mxu2 %v2650_v15  ;;  %3078 = vmatmul.bf16.gmra.mxu0 %v2650_v15 }
 0x472   : > { %v3356_v4 = vmax.f32 %v3292_v7, 0.0  ;;  %v5788_v0 = vpop.eup %4402  ;;  %4406 = vpow2.f32 %v2402_v53  ;;  %2989 = vmatmul.bf16.gmra.mxu3 %v2651_v41  ;;  %v2883_v44 = vpop.f32.mrf.mxu2  ;;  %3167 = vmatmul.bf16.gmra.mxu1 %v2651_v41 }
 0x473   : > { %v2972_v22 = vpop.f32.mrf.mxu3  ;;  %4408 = vpow2.f32 %v2404_v8  ;;  %v3295_v6 = vadd.f32 %v4494_v28, %v3231_v59  ;;  %v2506_v39 = vadd.f32 %v5788_v0, %v5785_v5 }
 0x474   : > { %3420 = vst [vmem:[%s5704_s26 + $0x40] sm:$0xff] %v3356_v4  ;;  %v2973_v46 = vadd.f32 %v2972_v22, %v2883_v44  ;;  %2240 = vmax.xlane.f32.xlu1 %v2239_v27  ;;  %v2242_v4 = vmax.f32 %v5677_v52, %v5679_v11 }
 0x475   : > { %v3359_v51 = vmax.f32 %v3295_v6, 0.0  ;;  %v3064_v2 = vpop.f32.mrf.mxu0  ;;  %v2493_v50 = vpop.xlane.xlu1 %2492  ;;  %2507 = vadd.xlane.f32.xlu2 %v2506_v39 }
 0x476   : > { %v3230_v36 = vmul.f32 %v5693_v56, %v2973_v46  ;;  %4410 = vrcp.f32 %v2493_v50  ;;  %v2226_v19 = vpop.xlane.xlu2 %2225  ;;  %v3153_v40 = vpop.f32.mrf.mxu1 }
 0x477   : > { %v4405_v20 = vpop.eup %4404  ;;  %3423 = vst [vmem:[%s5704_s26 + $0x58] sm:$0xff] %v3359_v51  ;;  %v2298_v30 = vsub.f32 %v5605_v14, %v2226_v19  ;;  %v2299_v61 = vsub.f32 %v5613_v12, %v2226_v19  ;;  %v3154_v13 = vadd.f32 %v3153_v40, %v3064_v2  ;;  %v4496_v14 = vld [vmem:[%s4692_s22 + $0x68] sm:$0xff] }
 0x478   : > { %v3294_v18 = vadd.f32 %v4495_v47, %v3230_v36  ;;  %v5801_v48 = vpop.eup %4406  ;;  %v2602_v59 = vmul.f32 %v4405_v20, %v5645_v55  ;;  %v2603_v44 = vmul.f32 %v4405_v20, %v5649_v54  ;;  %v4497_v55 = vld [vmem:[%s4692_s22 + $0x60] sm:$0xff] }
 0x479   : > { %v5803_v57 = vpop.eup %4408  ;;  %v2406_v26 = vmul.f32 1.442695, %v2298_v30  ;;  %v2408_v35 = vmul.f32 1.442695, %v2299_v61  ;;  %v3233_v7 = vmul.f32 %v5693_v56, %v3154_v13  ;;  %v2245_v61 = vmax.f32 %v5681_v24, %v5683_v9  ;;  %v4498_v13 = vld [vmem:[%s4692_s22 + $0x78] sm:$0xff] }
 0x47a   : > { %v3358_v60 = vmax.f32 %v3294_v18, 0.0  ;;  %v2886_v33 = vpop.f32.mrf.mxu2  ;;  %v2509_v53 = vadd.f32 %v5803_v57, %v5801_v48 }
 0x47b   : > { %v2975_v15 = vpop.f32.mrf.mxu3  ;;  %4412 = vpow2.f32 %v2406_v26  ;;  %v3297_v8 = vadd.f32 %v4496_v14, %v3233_v7 }
 0x47c   : > { %3422 = vst [vmem:[%s5704_s26 + $0x50] sm:$0xff] %v3358_v60  ;;  %v2976_v12 = vadd.f32 %v2975_v15, %v2886_v33  ;;  %v4411_v41 = vpop.eup %4410  ;;  %4414 = vpow2.f32 %v2408_v35  ;;  %2510 = vadd.xlane.f32.xlu1 %v2509_v53  ;;  %v4499_v15 = vld [vmem:[%s4692_s22 + $0x70] sm:$0xff] }
 0x47d   : > { %v3361_v22 = vmax.f32 %v3297_v8, 0.0  ;;  %v3066_v28 = vpop.f32.mrf.mxu0  ;;  %v2229_v6 = vpop.xlane.xlu1 %2228  ;;  %v2604_v46 = vmul.f32 %v4411_v41, %v5655_v21  ;;  %v2605_v39 = vmul.f32 %v4411_v41, %v5657_v29  ;;  %2243 = vmax.xlane.f32.xlu2 %v2242_v4  ;;  %v6110_v4 = vld [vmem:[#allocation5_spill] sm:$0xff] }
 0x47e   : > { %v3232_v27 = vmul.f32 %v5693_v56, %v2976_v12  ;;  %v2300_v51 = vsub.f32 %v5625_v1, %v2229_v6  ;;  %v2301_v36 = vsub.f32 %v5629_v3, %v2229_v6  ;;  %v3155_v2 = vpop.f32.mrf.mxu1 }
 0x47f   : > { %3425 = vst [vmem:[%s5704_s26 + $0x68] sm:$0xff] %v3361_v22  ;;  %v3156_v54 = vadd.f32 %v3155_v2, %v3066_v28  ;;  %v2652_v19 = vpack.c.bf16 %v2604_v46, %v2602_v59  ;;  %v2653_v40 = vpack.c.bf16 %v2605_v39, %v2603_v44  ;;  %v2248_v59 = vmax.f32 %v6110_v4, %v5687_v17  ;;  %v6111_v44 = vld [vmem:[#allocation7_spill] sm:$0xff]  ;;  %v6112_v22 = vld [vmem:[#allocation6_spill] sm:$0xff] }
 0x480   : > { %v3296_v50 = vadd.f32 %v4497_v55, %v3232_v27  ;;  %v2410_v20 = vmul.f32 1.442695, %v2300_v51  ;;  %v2412_v47 = vmul.f32 1.442695, %v2301_v36  ;;  %v2251_v27 = vmax.f32 %v6112_v22, %v6111_v44 }
 0x481   : > { %v5821_v18 = vpop.eup %4412  ;;  %v3235_v29 = vmul.f32 %v5693_v56, %v3156_v54  ;;  %2905 = vmatmul.bf16.gmra.mxu2 %v2652_v19  ;;  %3083 = vmatmul.bf16.gmra.mxu0 %v2652_v19 }
 0x482   : > { %v3360_v21 = vmax.f32 %v3296_v50, 0.0  ;;  %v5824_v30 = vpop.eup %4414  ;;  %4416 = vpow2.f32 %v2410_v20  ;;  %2994 = vmatmul.bf16.gmra.mxu3 %v2653_v40  ;;  %v2888_v1 = vpop.f32.mrf.mxu2  ;;  %3172 = vmatmul.bf16.gmra.mxu1 %v2653_v40  ;;  %v4500_v20 = vld [vmem:[%s4692_s22 + $0x88] sm:$0xff] }
 0x483   : > { %v2977_v3 = vpop.f32.mrf.mxu3  ;;  %4418 = vpow2.f32 %v2412_v47  ;;  %v3299_v60 = vadd.f32 %v4498_v13, %v3235_v29  ;;  %v2512_v35 = vadd.f32 %v5824_v30, %v5821_v18 }
 0x484   : > { %3424 = vst [vmem:[%s5704_s26 + $0x60] sm:$0xff] %v3360_v21  ;;  %v2978_v26 = vadd.f32 %v2977_v3, %v2888_v1  ;;  %2246 = vmax.xlane.f32.xlu1 %v2245_v61 }
 0x485   : > { %v3363_v7 = vmax.f32 %v3299_v60, 0.0  ;;  %2513 = vadd.xlane.f32.xlu2 %v2512_v35 }
 0x486   : > { %v3234_v33 = vmul.f32 %v5693_v56, %v2978_v26 }
 0x487   : > { %3427 = vst [vmem:[%s5704_s26 + $0x78] sm:$0xff] %v3363_v7 }
 0x488   : > { %v3298_v53 = vadd.f32 %v4499_v15, %v3234_v33  ;;  %v5835_v14 = vpop.eup %4416 }
 0x489   : > { %v5837_v8 = vpop.eup %4418 }
 0x48a   : > { %v3362_v12 = vmax.f32 %v3298_v53, 0.0  ;;  %v2515_v41 = vadd.f32 %v5837_v8, %v5835_v14 }
 0x48c   : > { %3426 = vst [vmem:[%s5704_s26 + $0x70] sm:$0xff] %v3362_v12  ;;  %2516 = vadd.xlane.f32.xlu1 %v2515_v41 }
 0x48d   : > { %2249 = vmax.xlane.f32.xlu2 %v2248_v59 }
 0x494   : > { %2252 = vmax.xlane.f32.xlu1 %v2251_v27 }
 0x4c8   : > { %v2496_v28 = vpop.xlane.xlu2 %2495 }
 0x4c9   : > { %4420 = vrcp.f32 %v2496_v28  ;;  %v4501_v28 = vld [vmem:[%s4692_s22 + $0x80] sm:$0xff] }
 0x4ce   : > { %v3069_v6 = vpop.f32.mrf.mxu0 }
 0x4cf   : > { %v2499_v46 = vpop.xlane.xlu1 %2498  ;;  %v3158_v39 = vpop.f32.mrf.mxu1 }
 0x4d0   : > { %4422 = vrcp.f32 %v2499_v46  ;;  %v2232_v51 = vpop.xlane.xlu2 %2231  ;;  %v3159_v36 = vadd.f32 %v3158_v39, %v3069_v6  ;;  %v4421_v40 = vpop.eup %4420  ;;  %v4502_v39 = vld [vmem:[%s4692_s22 + $0x98] sm:$0xff] }
 0x4d1   : > { %v2302_v2 = vsub.f32 %v5643_v31, %v2232_v51  ;;  %v2303_v55 = vsub.f32 %v5647_v63, %v2232_v51  ;;  %v2606_v63 = vmul.f32 %v4421_v40, %v5715_v16  ;;  %v2607_v35 = vmul.f32 %v4421_v40, %v5718_v25 }
 0x4d2   : > { %v3237_v50 = vmul.f32 %v5693_v56, %v3159_v36 }
 0x4d3   : > { %v2414_v54 = vmul.f32 1.442695, %v2302_v2  ;;  %v2416_v19 = vmul.f32 1.442695, %v2303_v55 }
 0x4d4   : > { %v3301_v47 = vadd.f32 %v4500_v20, %v3237_v50  ;;  %v2891_v21 = vpop.f32.mrf.mxu2 }
 0x4d5   : > { %4424 = vpow2.f32 %v2414_v54  ;;  %v2980_v29 = vpop.f32.mrf.mxu3 }
 0x4d6   : > { %v4423_v1 = vpop.eup %4422  ;;  %4426 = vpow2.f32 %v2416_v19  ;;  %v3365_v3 = vmax.f32 %v3301_v47, 0.0  ;;  %v2981_v61 = vadd.f32 %v2980_v29, %v2891_v21  ;;  %v3071_v13 = vpop.f32.mrf.mxu0  ;;  %v4503_v29 = vld [vmem:[%s4692_s22 + $0x90] sm:$0xff] }
 0x4d7   : > { %v2235_v31 = vpop.xlane.xlu1 %2234  ;;  %v3160_v60 = vpop.f32.mrf.mxu1  ;;  %v2608_v26 = vmul.f32 %v4423_v1, %v5729_v42  ;;  %v2609_v7 = vmul.f32 %v4423_v1, %v5731_v37 }
 0x4d8   : > { %3429 = vst [vmem:[%s5704_s26 + $0x88] sm:$0xff] %v3365_v3  ;;  %v3236_v33 = vmul.f32 %v5693_v56, %v2981_v61  ;;  %v2304_v15 = vsub.f32 %v5659_v32, %v2235_v31  ;;  %v2305_v53 = vsub.f32 %v5665_v43, %v2235_v31  ;;  %v3161_v12 = vadd.f32 %v3160_v60, %v3071_v13  ;;  %v2502_v41 = vpop.xlane.xlu2 %2501 }
 0x4d9   : > { %v2654_v59 = vpack.c.bf16 %v2608_v26, %v2606_v63  ;;  %v2655_v27 = vpack.c.bf16 %v2609_v7, %v2607_v35 }
 0x4da   : > { %v3300_v16 = vadd.f32 %v4501_v28, %v3236_v33  ;;  %v2418_v6 = vmul.f32 1.442695, %v2304_v15  ;;  %v2420_v42 = vmul.f32 1.442695, %v2305_v53  ;;  %v3239_v37 = vmul.f32 %v5693_v56, %v3161_v12  ;;  %v4504_v12 = vld [vmem:[%s4692_s22 + $0xa8] sm:$0xff] }
 0x4db   : > { %v5859_v25 = vpop.eup %4424  ;;  %2910 = vmatmul.bf16.gmra.mxu2 %v2654_v59  ;;  %2999 = vmatmul.bf16.gmra.mxu3 %v2655_v27 }
 0x4dc   : > { %v5862_v46 = vpop.eup %4426  ;;  %v3364_v32 = vmax.f32 %v3300_v16, 0.0  ;;  %4428 = vpow2.f32 %v2418_v6  ;;  %3088 = vmatmul.bf16.gmra.mxu0 %v2654_v59  ;;  %3177 = vmatmul.bf16.gmra.mxu1 %v2655_v27  ;;  %v2893_v43 = vpop.f32.mrf.mxu2  ;;  %v3303_v51 = vadd.f32 %v4502_v39, %v3239_v37 }
 0x4dd   : > { %4430 = vpow2.f32 %v2420_v42  ;;  %v2982_v36 = vpop.f32.mrf.mxu3  ;;  %v2518_v2 = vadd.f32 %v5862_v46, %v5859_v25 }
 0x4de   : > { %3428 = vst [vmem:[%s5704_s26 + $0x80] sm:$0xff] %v3364_v32  ;;  %4432 = vrcp.f32 %v2502_v41  ;;  %v2983_v55 = vadd.f32 %v2982_v36, %v2893_v43  ;;  %v3367_v50 = vmax.f32 %v3303_v51, 0.0  ;;  %v3074_v19 = vpop.f32.mrf.mxu0 }
 0x4df   : > { %2519 = vadd.xlane.f32.xlu2 %v2518_v2  ;;  %v2505_v40 = vpop.xlane.xlu1 %2504  ;;  %v3163_v47 = vpop.f32.mrf.mxu1  ;;  %v4505_v2 = vld [vmem:[%s4692_s22 + $0xa0] sm:$0xff] }
 0x4e0   : > { %v3238_v54 = vmul.f32 %v5693_v56, %v2983_v55  ;;  %3431 = vst [vmem:[%s5704_s26 + $0x98] sm:$0xff] %v3367_v50  ;;  %4434 = vrcp.f32 %v2505_v40  ;;  %v2238_v20 = vpop.xlane.xlu2 %2237  ;;  %v3164_v13 = vadd.f32 %v3163_v47, %v3074_v19  ;;  %v4506_v47 = vld [vmem:[%s4692_s22 + $0xb8] sm:$0xff] }
 0x4e1   : > { %v2306_v3 = vsub.f32 %v5669_v38, %v2238_v20  ;;  %v2307_v61 = vsub.f32 %v5671_v23, %v2238_v20 }
 0x4e2   : > { %v5870_v21 = vpop.eup %4428  ;;  %v3302_v1 = vadd.f32 %v4503_v29, %v3238_v54  ;;  %v3241_v7 = vmul.f32 %v5693_v56, %v3164_v13 }
 0x4e3   : > { %v5875_v31 = vpop.eup %4430  ;;  %v2422_v26 = vmul.f32 1.442695, %v2306_v3  ;;  %v2424_v35 = vmul.f32 1.442695, %v2307_v61 }
 0x4e4   : > { %v4433_v60 = vpop.eup %4432  ;;  %v3366_v63 = vmax.f32 %v3302_v1, 0.0  ;;  %v2896_v33 = vpop.f32.mrf.mxu2  ;;  %v2521_v53 = vadd.f32 %v5875_v31, %v5870_v21  ;;  %v3305_v38 = vadd.f32 %v4504_v12, %v3241_v7 }
 0x4e5   : > { %v2985_v15 = vpop.f32.mrf.mxu3  ;;  %4436 = vpow2.f32 %v2422_v26  ;;  %v2610_v59 = vmul.f32 %v4433_v60, %v5749_v58  ;;  %v2611_v36 = vmul.f32 %v4433_v60, %v5752_v45 }
 0x4e6   : > { %3430 = vst [vmem:[%s5704_s26 + $0x90] sm:$0xff] %v3366_v63  ;;  %v2986_v41 = vadd.f32 %v2985_v15, %v2896_v33  ;;  %v4435_v23 = vpop.eup %4434  ;;  %4438 = vpow2.f32 %v2424_v35  ;;  %2522 = vadd.xlane.f32.xlu1 %v2521_v53  ;;  %v3369_v27 = vmax.f32 %v3305_v38, 0.0  ;;  %v3076_v16 = vpop.f32.mrf.mxu0  ;;  %v4507_v33 = vld [vmem:[%s4692_s22 + $0xb0] sm:$0xff] }
 0x4e7   : > { %v2241_v6 = vpop.xlane.xlu1 %2240  ;;  %v2612_v42 = vmul.f32 %v4435_v23, %v5765_v34  ;;  %v2613_v37 = vmul.f32 %v4435_v23, %v5768_v62  ;;  %v3165_v51 = vpop.f32.mrf.mxu1 }
 0x4e8   : > { %v3240_v28 = vmul.f32 %v5693_v56, %v2986_v41  ;;  %v2508_v32 = vpop.xlane.xlu2 %2507  ;;  %v2308_v43 = vsub.f32 %v5673_v49, %v2241_v6  ;;  %v2309_v39 = vsub.f32 %v5675_v10, %v2241_v6  ;;  %3433 = vst [vmem:[%s5704_s26 + $0xa8] sm:$0xff] %v3369_v27  ;;  %v3166_v55 = vadd.f32 %v3165_v51, %v3076_v16 }
 0x4e9   : > { %v2656_v50 = vpack.c.bf16 %v2612_v42, %v2610_v59  ;;  %v2657_v34 = vpack.c.bf16 %v2613_v37, %v2611_v36  ;;  %4440 = vrcp.f32 %v2508_v32 }
 0x4ea   : > { %v3304_v58 = vadd.f32 %v4505_v2, %v3240_v28  ;;  %v2426_v54 = vmul.f32 1.442695, %v2308_v43  ;;  %v2428_v19 = vmul.f32 1.442695, %v2309_v39  ;;  %v3243_v49 = vmul.f32 %v5693_v56, %v3166_v55 }
 0x4eb   : > { %v5891_v40 = vpop.eup %4436  ;;  %2915 = vmatmul.bf16.gmra.mxu2 %v2656_v50  ;;  %3004 = vmatmul.bf16.gmra.mxu3 %v2657_v34 }
 0x4ec   : > { %v3368_v62 = vmax.f32 %v3304_v58, 0.0  ;;  %3093 = vmatmul.bf16.gmra.mxu0 %v2656_v50  ;;  %v5894_v10 = vpop.eup %4438  ;;  %4442 = vpow2.f32 %v2426_v54  ;;  %3182 = vmatmul.bf16.gmra.mxu1 %v2657_v34  ;;  %v2898_v45 = vpop.f32.mrf.mxu2  ;;  %v3307_v29 = vadd.f32 %v4506_v47, %v3243_v49 }
 0x4ed   : > { %v2987_v20 = vpop.f32.mrf.mxu3  ;;  %4444 = vpow2.f32 %v2428_v19  ;;  %v2524_v3 = vadd.f32 %v5894_v10, %v5891_v40 }
 0x4ee   : > { %3432 = vst [vmem:[%s5704_s26 + $0xa0] sm:$0xff] %v3368_v62  ;;  %v2988_v1 = vadd.f32 %v2987_v20, %v2898_v45  ;;  %v3371_v61 = vmax.f32 %v3307_v29, 0.0  ;;  %v3079_v60 = vpop.f32.mrf.mxu0  ;;  %v4509_v45 = vld [vmem:[%s4692_s22 + $0xc0] sm:$0xff] }
 0x4ef   : > { %2525 = vadd.xlane.f32.xlu2 %v2524_v3  ;;  %v2511_v63 = vpop.xlane.xlu1 %2510  ;;  %v3168_v35 = vpop.f32.mrf.mxu1 }
 0x4f0   : > { %v3242_v13 = vmul.f32 %v5693_v56, %v2988_v1  ;;  %4446 = vrcp.f32 %v2511_v63  ;;  %v2244_v26 = vpop.xlane.xlu2 %2243  ;;  %v4441_v7 = vpop.eup %4440  ;;  %3435 = vst [vmem:[%s5704_s26 + $0xb8] sm:$0xff] %v3371_v61  ;;  %v3169_v38 = vadd.f32 %v3168_v35, %v3079_v60 }
 0x4f1   : > { %v2310_v53 = vsub.f32 %v5677_v52, %v2244_v26  ;;  %v2311_v12 = vsub.f32 %v5679_v11, %v2244_v26  ;;  %v4508_v52 = vld [vmem:[%s4692_s22 + $0xc8] sm:$0xff]  ;;  %v2614_v39 = vmul.f32 %v4441_v7, %v5785_v5  ;;  %v2615_v49 = vmul.f32 %v4441_v7, %v5788_v0 }
 0x4f2   : > { %v3306_v15 = vadd.f32 %v4507_v33, %v3242_v13  ;;  %v5905_v41 = vpop.eup %4442  ;;  %v3245_v16 = vmul.f32 %v5693_v56, %v3169_v38  ;;  %v4510_v13 = vld [vmem:[%s4692_s22 + $0xd8] sm:$0xff] }
 0x4f3   : > { %v5907_v23 = vpop.eup %4444  ;;  %v2430_v27 = vmul.f32 1.442695, %v2310_v53  ;;  %v2432_v28 = vmul.f32 1.442695, %v2311_v12 }
 0x4f4   : > { %v3370_v59 = vmax.f32 %v3306_v15, 0.0  ;;  %v2901_v6 = vpop.f32.mrf.mxu2  ;;  %v2527_v37 = vadd.f32 %v5907_v23, %v5905_v41  ;;  %v3309_v32 = vadd.f32 %v4508_v52, %v3245_v16 }
 0x4f5   : > { %v2990_v42 = vpop.f32.mrf.mxu3  ;;  %4448 = vpow2.f32 %v2430_v27 }
 0x4f6   : > { %3434 = vst [vmem:[%s5704_s26 + $0xb0] sm:$0xff] %v3370_v59  ;;  %v2991_v11 = vadd.f32 %v2990_v42, %v2901_v6  ;;  %v4447_v43 = vpop.eup %4446  ;;  %4450 = vpow2.f32 %v2432_v28  ;;  %2528 = vadd.xlane.f32.xlu1 %v2527_v37  ;;  %v3373_v51 = vmax.f32 %v3309_v32, 0.0  ;;  %v3081_v2 = vpop.f32.mrf.mxu0  ;;  %v4511_v59 = vld [vmem:[%s4692_s22 + $0xd0] sm:$0xff] }
 0x4f7   : > { %v2247_v58 = vpop.xlane.xlu1 %2246  ;;  %v2616_v55 = vmul.f32 %v4447_v43, %v5801_v48  ;;  %v2617_v50 = vmul.f32 %v4447_v43, %v5803_v57  ;;  %v3170_v62 = vpop.f32.mrf.mxu1 }
 0x4f8   : > { %v3244_v36 = vmul.f32 %v5693_v56, %v2991_v11  ;;  %v2514_v54 = vpop.xlane.xlu2 %2513  ;;  %v2312_v19 = vsub.f32 %v5681_v24, %v2247_v58  ;;  %v2313_v34 = vsub.f32 %v5683_v9, %v2247_v58  ;;  %3437 = vst [vmem:[%s5704_s26 + $0xc8] sm:$0xff] %v3373_v51  ;;  %v3171_v20 = vadd.f32 %v3170_v62, %v3081_v2 }
 0x4f9   : > { %v2658_v47 = vpack.c.bf16 %v2616_v55, %v2614_v39  ;;  %v2659_v48 = vpack.c.bf16 %v2617_v50, %v2615_v49  ;;  %4452 = vrcp.f32 %v2514_v54 }
 0x4fa   : > { %v3308_v5 = vadd.f32 %v4509_v45, %v3244_v36  ;;  %v2434_v29 = vmul.f32 1.442695, %v2312_v19  ;;  %v2436_v1 = vmul.f32 1.442695, %v2313_v34  ;;  %v3247_v24 = vmul.f32 %v5693_v56, %v3171_v20 }
 0x4fb   : > { %v5923_v3 = vpop.eup %4448  ;;  %2920 = vmatmul.bf16.gmra.mxu2 %v2658_v47  ;;  %3009 = vmatmul.bf16.gmra.mxu3 %v2659_v48 }
 0x4fc   : > { %v3372_v57 = vmax.f32 %v3308_v5, 0.0  ;;  %3098 = vmatmul.bf16.gmra.mxu0 %v2658_v47  ;;  %v5926_v9 = vpop.eup %4450  ;;  %4454 = vpow2.f32 %v2434_v29  ;;  %3187 = vmatmul.bf16.gmra.mxu1 %v2659_v48  ;;  %v2903_v0 = vpop.f32.mrf.mxu2  ;;  %v3311_v60 = vadd.f32 %v4510_v13, %v3247_v24  ;;  %v4513_v29 = vld [vmem:[%s4692_s22 + $0xe0] sm:$0xff]  ;;  %v4514_v13 = vld [vmem:[%s4692_s22 + $0xf8] sm:$0xff] }
 0x4fd   : > { %v2992_v61 = vpop.f32.mrf.mxu3  ;;  %4456 = vpow2.f32 %v2436_v1  ;;  %v2530_v26 = vadd.f32 %v5926_v9, %v5923_v3 }
 0x4fe   : > { %3436 = vst [vmem:[%s5704_s26 + $0xc0] sm:$0xff] %v3372_v57  ;;  %v2993_v63 = vadd.f32 %v2992_v61, %v2903_v0  ;;  %v3375_v35 = vmax.f32 %v3311_v60, 0.0  ;;  %v3084_v33 = vpop.f32.mrf.mxu0 }
 0x4ff   : > { %2531 = vadd.xlane.f32.xlu2 %v2530_v26  ;;  %v2517_v15 = vpop.xlane.xlu1 %2516  ;;  %v3173_v12 = vpop.f32.mrf.mxu1 }
 0x500   : > { %v3246_v7 = vmul.f32 %v5693_v56, %v2993_v63  ;;  %4458 = vrcp.f32 %v2517_v15  ;;  %v2250_v53 = vpop.xlane.xlu2 %2249  ;;  %v4453_v38 = vpop.eup %4452  ;;  %3439 = vst [vmem:[%s5704_s26 + $0xd8] sm:$0xff] %v3375_v35  ;;  %v3174_v6 = vadd.f32 %v3173_v12, %v3084_v33  ;;  %v4515_v33 = vld [vmem:[%s4692_s22 + $0xf0] sm:$0xff] }
 0x501   : > { %v2314_v28 = vsub.f32 %v6110_v4, %v2250_v53  ;;  %v2315_v16 = vsub.f32 %v5687_v17, %v2250_v53  ;;  %v4512_v4 = vld [vmem:[%s4692_s22 + $0xe8] sm:$0xff]  ;;  %v2618_v55 = vmul.f32 %v4453_v38, %v5821_v18  ;;  %v2619_v50 = vmul.f32 %v4453_v38, %v5824_v30 }
 0x502   : > { %v3310_v27 = vadd.f32 %v4511_v59, %v3246_v7  ;;  %v5937_v42 = vpop.eup %4454  ;;  %v3249_v43 = vmul.f32 %v5693_v56, %v3174_v6 }
 0x503   : > { %v5939_v37 = vpop.eup %4456  ;;  %v2438_v32 = vmul.f32 1.442695, %v2314_v28  ;;  %v2440_v11 = vmul.f32 1.442695, %v2315_v16 }
 0x504   : > { %v3374_v52 = vmax.f32 %v3310_v27, 0.0  ;;  %v2906_v39 = vpop.f32.mrf.mxu2  ;;  %v2533_v36 = vadd.f32 %v5939_v37, %v5937_v42  ;;  %v3313_v2 = vadd.f32 %v4512_v4, %v3249_v43  ;;  %v4516_v43 = vld [vmem:[%s4692_s22 + $0x108] sm:$0xff] }
 0x505   : > { %v2995_v51 = vpop.f32.mrf.mxu3  ;;  %4460 = vpow2.f32 %v2438_v32 }
 0x506   : > { %3438 = vst [vmem:[%s5704_s26 + $0xd0] sm:$0xff] %v3374_v52  ;;  %v2996_v17 = vadd.f32 %v2995_v51, %v2906_v39  ;;  %v4459_v58 = vpop.eup %4458  ;;  %4462 = vpow2.f32 %v2440_v11  ;;  %2534 = vadd.xlane.f32.xlu1 %v2533_v36  ;;  %v3377_v54 = vmax.f32 %v3313_v2, 0.0  ;;  %v3086_v34 = vpop.f32.mrf.mxu0 }
 0x507   : > { %v2253_v62 = vpop.xlane.xlu1 %2252  ;;  %v2620_v49 = vmul.f32 %v4459_v58, %v5835_v14  ;;  %v2621_v45 = vmul.f32 %v4459_v58, %v5837_v8  ;;  %v3175_v5 = vpop.f32.mrf.mxu1 }
 0x508   : > { %v3248_v19 = vmul.f32 %v5693_v56, %v2996_v17  ;;  %v2316_v20 = vsub.f32 %v6112_v22, %v2253_v62  ;;  %v2317_v47 = vsub.f32 %v6111_v44, %v2253_v62  ;;  %3441 = vst [vmem:[%s5704_s26 + $0xe8] sm:$0xff] %v3377_v54  ;;  %v3176_v18 = vadd.f32 %v3175_v5, %v3086_v34 }
 0x509   : > { %v2660_v30 = vpack.c.bf16 %v2620_v49, %v2618_v55  ;;  %v2661_v48 = vpack.c.bf16 %v2621_v45, %v2619_v50  ;;  %v4517_v45 = vld [vmem:[%s4692_s22 + $0x100] sm:$0xff] }
 0x50a   : > { %v3312_v1 = vadd.f32 %v4513_v29, %v3248_v19  ;;  %v2442_v57 = vmul.f32 1.442695, %v2316_v20  ;;  %v2444_v24 = vmul.f32 1.442695, %v2317_v47  ;;  %v3251_v8 = vmul.f32 %v5693_v56, %v3176_v18 }
 0x50b   : > { %v5955_v0 = vpop.eup %4460  ;;  %2925 = vmatmul.bf16.gmra.mxu2 %v2660_v30  ;;  %3014 = vmatmul.bf16.gmra.mxu3 %v2661_v48 }
 0x50c   : > { %v3376_v14 = vmax.f32 %v3312_v1, 0.0  ;;  %3103 = vmatmul.bf16.gmra.mxu0 %v2660_v30  ;;  %v5958_v22 = vpop.eup %4462  ;;  %4464 = vpow2.f32 %v2442_v57  ;;  %3192 = vmatmul.bf16.gmra.mxu1 %v2661_v48  ;;  %v2908_v44 = vpop.f32.mrf.mxu2  ;;  %v3315_v60 = vadd.f32 %v4514_v13, %v3251_v8  ;;  %v4518_v30 = vld [vmem:[%s4692_s22 + $0x118] sm:$0xff] }
 0x50d   : > { %v2997_v61 = vpop.f32.mrf.mxu3  ;;  %4466 = vpow2.f32 %v2444_v24  ;;  %v2536_v26 = vadd.f32 %v5958_v22, %v5955_v0 }
 0x50e   : > { %3440 = vst [vmem:[%s5704_s26 + $0xe0] sm:$0xff] %v3376_v14  ;;  %v2998_v63 = vadd.f32 %v2997_v61, %v2908_v44  ;;  %v3379_v35 = vmax.f32 %v3315_v60, 0.0  ;;  %v4519_v44 = vld [vmem:[%s4692_s22 + $0x110] sm:$0xff] }
 0x50f   : > { %2537 = vadd.xlane.f32.xlu2 %v2536_v26 }
 0x510   : > { %v3250_v7 = vmul.f32 %v5693_v56, %v2998_v63  ;;  %3443 = vst [vmem:[%s5704_s26 + $0xf8] sm:$0xff] %v3379_v35  ;;  %v4520_v35 = vld [vmem:[%s4692_s22 + $0x128] sm:$0xff] }
 0x512   : > { %v3314_v15 = vadd.f32 %v4515_v33, %v3250_v7  ;;  %v5967_v53 = vpop.eup %4464 }
 0x513   : > { %v5969_v12 = vpop.eup %4466 }
 0x514   : > { %v3378_v38 = vmax.f32 %v3314_v15, 0.0  ;;  %v2539_v59 = vadd.f32 %v5969_v12, %v5967_v53 }
 0x516   : > { %3442 = vst [vmem:[%s5704_s26 + $0xf0] sm:$0xff] %v3378_v38  ;;  %2540 = vadd.xlane.f32.xlu0 %v2539_v59 }
 0x552   : > { %v2520_v27 = vpop.xlane.xlu2 %2519 }
 0x553   : > { %4468 = vrcp.f32 %v2520_v27 }
 0x559   : > { %v3089_v28 = vpop.f32.mrf.mxu0  ;;  %v3178_v16 = vpop.f32.mrf.mxu1 }
 0x55a   : > { %v3179_v6 = vadd.f32 %v3178_v16, %v3089_v28  ;;  %v2523_v52 = vpop.xlane.xlu1 %2522  ;;  %v4469_v11 = vpop.eup %4468 }
 0x55b   : > { %4470 = vrcp.f32 %v2523_v52  ;;  %v2622_v54 = vmul.f32 %v4469_v11, %v5859_v25  ;;  %v2623_v62 = vmul.f32 %v4469_v11, %v5862_v46 }
 0x55c   : > { %v3253_v32 = vmul.f32 %v5693_v56, %v3179_v6 }
 0x55e   : > { %v3317_v39 = vadd.f32 %v4516_v43, %v3253_v32  ;;  %v2911_v51 = vpop.f32.mrf.mxu2  ;;  %v3000_v36 = vpop.f32.mrf.mxu3 }
 0x55f   : > { %v3001_v4 = vadd.f32 %v3000_v36, %v2911_v51 }
 0x560   : > { %v3381_v2 = vmax.f32 %v3317_v39, 0.0 }
 0x561   : > { %v4471_v17 = vpop.eup %4470  ;;  %v3252_v58 = vmul.f32 %v5693_v56, %v3001_v4  ;;  %v3091_v55 = vpop.f32.mrf.mxu0  ;;  %v4521_v4 = vld [vmem:[%s4692_s22 + $0x120] sm:$0xff] }
 0x562   : > { %v3180_v50 = vpop.f32.mrf.mxu1  ;;  %3445 = vst [vmem:[%s5704_s26 + $0x108] sm:$0xff] %v3381_v2  ;;  %v2624_v34 = vmul.f32 %v4471_v17, %v5870_v21  ;;  %v2625_v49 = vmul.f32 %v4471_v17, %v5875_v31  ;;  %v2526_v18 = vpop.xlane.xlu2 %2525 }
 0x563   : > { %v3181_v19 = vadd.f32 %v3180_v50, %v3091_v55  ;;  %v3316_v5 = vadd.f32 %v4517_v45, %v3252_v58  ;;  %4472 = vrcp.f32 %v2526_v18  ;;  %v4524_v18 = vld [vmem:[%s4692_s22 + $0x148] sm:$0xff] }
 0x564   : > { %v2662_v47 = vpack.c.bf16 %v2624_v34, %v2622_v54  ;;  %v2663_v29 = vpack.c.bf16 %v2625_v49, %v2623_v62 }
 0x565   : > { %v3255_v20 = vmul.f32 %v5693_v56, %v3181_v19  ;;  %v3380_v1 = vmax.f32 %v3316_v5, 0.0  ;;  %v4523_v5 = vld [vmem:[%s4692_s22 + $0x130] sm:$0xff] }
 0x566   : > { %2930 = vmatmul.bf16.gmra.mxu2 %v2662_v47  ;;  %3019 = vmatmul.bf16.gmra.mxu3 %v2663_v29  ;;  %v2913_v21 = vpop.f32.mrf.mxu2  ;;  %v3002_v48 = vpop.f32.mrf.mxu3 }
 0x567   : > { %v3319_v25 = vadd.f32 %v4518_v30, %v3255_v20  ;;  %3444 = vst [vmem:[%s5704_s26 + $0x100] sm:$0xff] %v3380_v1  ;;  %3108 = vmatmul.bf16.gmra.mxu0 %v2662_v47  ;;  %3197 = vmatmul.bf16.gmra.mxu1 %v2663_v29  ;;  %v3003_v46 = vadd.f32 %v3002_v48, %v2913_v21 }
 0x569   : > { %v3383_v31 = vmax.f32 %v3319_v25, 0.0  ;;  %v3254_v57 = vmul.f32 %v5693_v56, %v3003_v46  ;;  %v3094_v24 = vpop.f32.mrf.mxu0  ;;  %v2529_v8 = vpop.xlane.xlu1 %2528 }
 0x56a   : > { %v3183_v14 = vpop.f32.mrf.mxu1  ;;  %4474 = vrcp.f32 %v2529_v8  ;;  %v4473_v26 = vpop.eup %4472 }
 0x56b   : > { %3447 = vst [vmem:[%s5704_s26 + $0x118] sm:$0xff] %v3383_v31  ;;  %v3318_v61 = vadd.f32 %v4519_v44, %v3254_v57  ;;  %v3184_v13 = vadd.f32 %v3183_v14, %v3094_v24  ;;  %v2626_v6 = vmul.f32 %v4473_v26, %v5891_v40  ;;  %v2627_v32 = vmul.f32 %v4473_v26, %v5894_v10 }
 0x56d   : > { %v3382_v60 = vmax.f32 %v3318_v61, 0.0  ;;  %v3257_v63 = vmul.f32 %v5693_v56, %v3184_v13 }
 0x56e   : > { %v2916_v33 = vpop.f32.mrf.mxu2  ;;  %v3005_v15 = vpop.f32.mrf.mxu3 }
 0x56f   : > { %3446 = vst [vmem:[%s5704_s26 + $0x110] sm:$0xff] %v3382_v60  ;;  %v3321_v7 = vadd.f32 %v4520_v35, %v3257_v63  ;;  %v3006_v27 = vadd.f32 %v3005_v15, %v2916_v33  ;;  %v4525_v35 = vld [vmem:[%s4692_s22 + $0x140] sm:$0xff] }
 0x570   : > { %v4475_v38 = vpop.eup %4474 }
 0x571   : > { %v3385_v59 = vmax.f32 %v3321_v7, 0.0  ;;  %v3096_v28 = vpop.f32.mrf.mxu0  ;;  %v2628_v52 = vmul.f32 %v4475_v38, %v5905_v41  ;;  %v2629_v11 = vmul.f32 %v4475_v38, %v5907_v23  ;;  %v3256_v43 = vmul.f32 %v5693_v56, %v3006_v27  ;;  %v4522_v41 = vld [vmem:[%s4692_s22 + $0x138] sm:$0xff] }
 0x572   : > { %v3185_v16 = vpop.f32.mrf.mxu1  ;;  %v2532_v58 = vpop.xlane.xlu2 %2531 }
 0x573   : > { %3449 = vst [vmem:[%s5704_s26 + $0x128] sm:$0xff] %v3385_v59  ;;  %v3186_v39 = vadd.f32 %v3185_v16, %v3096_v28  ;;  %v2664_v51 = vpack.c.bf16 %v2628_v52, %v2626_v6  ;;  %v2665_v36 = vpack.c.bf16 %v2629_v11, %v2627_v32  ;;  %v3320_v2 = vadd.f32 %v4521_v4, %v3256_v43  ;;  %v4527_v11 = vld [vmem:[%s4692_s22 + $0x150] sm:$0xff]  ;;  %v4528_v4 = vld [vmem:[%s4692_s22 + $0x168] sm:$0xff] }
 0x574   : > { %4476 = vrcp.f32 %v2532_v58 }
 0x575   : > { %v3259_v17 = vmul.f32 %v5693_v56, %v3186_v39  ;;  %v3384_v40 = vmax.f32 %v3320_v2, 0.0 }
 0x576   : > { %2935 = vmatmul.bf16.gmra.mxu2 %v2664_v51  ;;  %3024 = vmatmul.bf16.gmra.mxu3 %v2665_v36  ;;  %v2918_v23 = vpop.f32.mrf.mxu2  ;;  %v3007_v55 = vpop.f32.mrf.mxu3 }
 0x577   : > { %v3323_v10 = vadd.f32 %v4522_v41, %v3259_v17  ;;  %3113 = vmatmul.bf16.gmra.mxu0 %v2664_v51  ;;  %3202 = vmatmul.bf16.gmra.mxu1 %v2665_v36  ;;  %3448 = vst [vmem:[%s5704_s26 + $0x120] sm:$0xff] %v3384_v40  ;;  %v3008_v54 = vadd.f32 %v3007_v55, %v2918_v23 }
 0x579   : > { %v3387_v50 = vmax.f32 %v3323_v10, 0.0  ;;  %v3099_v19 = vpop.f32.mrf.mxu0  ;;  %v2535_v62 = vpop.xlane.xlu1 %2534  ;;  %v3258_v49 = vmul.f32 %v5693_v56, %v3008_v54 }
 0x57a   : > { %v3188_v34 = vpop.f32.mrf.mxu1  ;;  %4478 = vrcp.f32 %v2535_v62  ;;  %v4477_v29 = vpop.eup %4476 }
 0x57b   : > { %3451 = vst [vmem:[%s5704_s26 + $0x138] sm:$0xff] %v3387_v50  ;;  %v3189_v45 = vadd.f32 %v3188_v34, %v3099_v19  ;;  %v3322_v20 = vadd.f32 %v4523_v5, %v3258_v49  ;;  %v2630_v14 = vmul.f32 %v4477_v29, %v5923_v3  ;;  %v2631_v44 = vmul.f32 %v4477_v29, %v5926_v9 }
 0x57d   : > { %v3261_v47 = vmul.f32 %v5693_v56, %v3189_v45  ;;  %v3386_v1 = vmax.f32 %v3322_v20, 0.0  ;;  %v4529_v20 = vld [vmem:[%s4692_s22 + $0x160] sm:$0xff] }
 0x57e   : > { %v2921_v25 = vpop.f32.mrf.mxu2  ;;  %v3010_v21 = vpop.f32.mrf.mxu3 }
 0x57f   : > { %v3325_v30 = vadd.f32 %v4524_v18, %v3261_v47  ;;  %3450 = vst [vmem:[%s5704_s26 + $0x130] sm:$0xff] %v3386_v1  ;;  %v3011_v31 = vadd.f32 %v3010_v21, %v2921_v25  ;;  %v4531_v21 = vld [vmem:[%s4692_s22 + $0x170] sm:$0xff] }
 0x580   : > { %v4479_v48 = vpop.eup %4478 }
 0x581   : > { %v3389_v46 = vmax.f32 %v3325_v30, 0.0  ;;  %v3101_v57 = vpop.f32.mrf.mxu0  ;;  %v2632_v8 = vmul.f32 %v4479_v48, %v5937_v42  ;;  %v2633_v61 = vmul.f32 %v4479_v48, %v5939_v37  ;;  %v3260_v13 = vmul.f32 %v5693_v56, %v3011_v31  ;;  %v4526_v42 = vld [vmem:[%s4692_s22 + $0x158] sm:$0xff] }
 0x582   : > { %v3190_v24 = vpop.f32.mrf.mxu1  ;;  %v2538_v15 = vpop.xlane.xlu2 %2537 }
 0x583   : > { %3453 = vst [vmem:[%s5704_s26 + $0x148] sm:$0xff] %v3389_v46  ;;  %v3191_v60 = vadd.f32 %v3190_v24, %v3101_v57  ;;  %v2666_v63 = vpack.c.bf16 %v2632_v8, %v2630_v14  ;;  %v2667_v26 = vpack.c.bf16 %v2633_v61, %v2631_v44  ;;  %v3324_v7 = vadd.f32 %v4525_v35, %v3260_v13  ;;  %v4532_v8 = vld [vmem:[%s4692_s22 + $0x188] sm:$0xff] }
 0x584   : > { %4480 = vrcp.f32 %v2538_v15  ;;  %v4533_v15 = vld [vmem:[%s4692_s22 + $0x180] sm:$0xff] }
 0x585   : > { %v3263_v33 = vmul.f32 %v5693_v56, %v3191_v60  ;;  %v3388_v3 = vmax.f32 %v3324_v7, 0.0 }
 0x586   : > { %2940 = vmatmul.bf16.gmra.mxu2 %v2666_v63  ;;  %3029 = vmatmul.bf16.gmra.mxu3 %v2667_v26  ;;  %v2923_v37 = vpop.f32.mrf.mxu2  ;;  %v3012_v38 = vpop.f32.mrf.mxu3 }
 0x587   : > { %v3327_v9 = vadd.f32 %v4526_v42, %v3263_v33  ;;  %3118 = vmatmul.bf16.gmra.mxu0 %v2666_v63  ;;  %3207 = vmatmul.bf16.gmra.mxu1 %v2667_v26  ;;  %3452 = vst [vmem:[%s5704_s26 + $0x140] sm:$0xff] %v3388_v3  ;;  %v3013_v27 = vadd.f32 %v3012_v38, %v2923_v37  ;;  %v4534_v37 = vld [vmem:[%s4692_s22 + $0x198] sm:$0xff] }
 0x589   : > { %v3391_v59 = vmax.f32 %v3327_v9, 0.0  ;;  %v3104_v28 = vpop.f32.mrf.mxu0  ;;  %v2541_v6 = vpop.xlane.xlu0 %2540  ;;  %v3262_v52 = vmul.f32 %v5693_v56, %v3013_v27 }
 0x58a   : > { %v3193_v16 = vpop.f32.mrf.mxu1  ;;  %4482 = vrcp.f32 %v2541_v6  ;;  %v4481_v51 = vpop.eup %4480 }
 0x58b   : > { %3455 = vst [vmem:[%s5704_s26 + $0x158] sm:$0xff] %v3391_v59  ;;  %v3194_v32 = vadd.f32 %v3193_v16, %v3104_v28  ;;  %v3326_v43 = vadd.f32 %v4527_v11, %v3262_v52  ;;  %v2634_v50 = vmul.f32 %v4481_v51, %v5955_v0  ;;  %v2635_v19 = vmul.f32 %v4481_v51, %v5958_v22  ;;  %v4530_v22 = vld [vmem:[%s4692_s22 + $0x178] sm:$0xff] }
 0x58d   : > { %v3265_v39 = vmul.f32 %v5693_v56, %v3194_v32  ;;  %v3390_v36 = vmax.f32 %v3326_v43, 0.0  ;;  %v4535_v43 = vld [vmem:[%s4692_s22 + $0x190] sm:$0xff] }
 0x58e   : > { %v2926_v17 = vpop.f32.mrf.mxu2  ;;  %v3015_v58 = vpop.f32.mrf.mxu3 }
 0x58f   : > { %v3329_v2 = vadd.f32 %v4528_v4, %v3265_v39  ;;  %3454 = vst [vmem:[%s5704_s26 + $0x150] sm:$0xff] %v3390_v36  ;;  %v3016_v10 = vadd.f32 %v3015_v58, %v2926_v17  ;;  %v4536_v4 = vld [vmem:[%s4692_s22 + $0x1a8] sm:$0xff] }
 0x590   : > { %v4483_v40 = vpop.eup %4482 }
 0x591   : > { %v3393_v41 = vmax.f32 %v3329_v2, 0.0  ;;  %v3106_v23 = vpop.f32.mrf.mxu0  ;;  %v2636_v54 = vmul.f32 %v4483_v40, %v5967_v53  ;;  %v2637_v34 = vmul.f32 %v4483_v40, %v5969_v12  ;;  %v3264_v62 = vmul.f32 %v5693_v56, %v3016_v10 }
 0x592   : > { %v3195_v55 = vpop.f32.mrf.mxu1 }
 0x593   : > { %3457 = vst [vmem:[%s5704_s26 + $0x168] sm:$0xff] %v3393_v41  ;;  %v3196_v49 = vadd.f32 %v3195_v55, %v3106_v23  ;;  %v2668_v45 = vpack.c.bf16 %v2636_v54, %v2634_v50  ;;  %v2669_v5 = vpack.c.bf16 %v2637_v34, %v2635_v19  ;;  %v3328_v47 = vadd.f32 %v4529_v20, %v3264_v62  ;;  %v4537_v54 = vld [vmem:[%s4692_s22 + $0x1a0] sm:$0xff] }
 0x595   : > { %v3267_v29 = vmul.f32 %v5693_v56, %v3196_v49  ;;  %v3392_v0 = vmax.f32 %v3328_v47, 0.0  ;;  %v4538_v49 = vld [vmem:[%s4692_s22 + $0x1b8] sm:$0xff] }
 0x596   : > { %2945 = vmatmul.bf16.gmra.mxu2 %v2668_v45  ;;  %3034 = vmatmul.bf16.gmra.mxu3 %v2669_v5  ;;  %v2928_v12 = vpop.f32.mrf.mxu2  ;;  %v3017_v1 = vpop.f32.mrf.mxu3 }
 0x597   : > { %v3331_v53 = vadd.f32 %v4530_v22, %v3267_v29  ;;  %3123 = vmatmul.bf16.gmra.mxu0 %v2668_v45  ;;  %3212 = vmatmul.bf16.gmra.mxu1 %v2669_v5  ;;  %3456 = vst [vmem:[%s5704_s26 + $0x160] sm:$0xff] %v3392_v0  ;;  %v3018_v30 = vadd.f32 %v3017_v1, %v2928_v12  ;;  %v4539_v1 = vld [vmem:[%s4692_s22 + $0x1b0] sm:$0xff] }
 0x599   : > { %v3395_v18 = vmax.f32 %v3331_v53, 0.0  ;;  %v3266_v25 = vmul.f32 %v5693_v56, %v3018_v30 }
 0x59b   : > { %3459 = vst [vmem:[%s5704_s26 + $0x178] sm:$0xff] %v3395_v18  ;;  %v3330_v48 = vadd.f32 %v4531_v21, %v3266_v25  ;;  %v4540_v21 = vld [vmem:[%s4692_s22 + $0x1c8] sm:$0xff] }
 0x59d   : > { %v3394_v46 = vmax.f32 %v3330_v48, 0.0 }
 0x59f   : > { %3458 = vst [vmem:[%s5704_s26 + $0x170] sm:$0xff] %v3394_v46 }
 0x5e4   : > { %v3109_v31 = vpop.f32.mrf.mxu0  ;;  %v3198_v57 = vpop.f32.mrf.mxu1 }
 0x5e5   : > { %v3199_v24 = vadd.f32 %v3198_v57, %v3109_v31 }
 0x5e7   : > { %v3269_v14 = vmul.f32 %v5693_v56, %v3199_v24 }
 0x5e9   : > { %v3333_v44 = vadd.f32 %v4532_v8, %v3269_v14  ;;  %v2931_v61 = vpop.f32.mrf.mxu2  ;;  %v3020_v13 = vpop.f32.mrf.mxu3 }
 0x5ea   : > { %v3021_v60 = vadd.f32 %v3020_v13, %v2931_v61  ;;  %v4541_v13 = vld [vmem:[%s4692_s22 + $0x1c0] sm:$0xff] }
 0x5eb   : > { %v3397_v63 = vmax.f32 %v3333_v44, 0.0 }
 0x5ec   : > { %v3268_v26 = vmul.f32 %v5693_v56, %v3021_v60  ;;  %v3111_v35 = vpop.f32.mrf.mxu0  ;;  %v3200_v7 = vpop.f32.mrf.mxu1 }
 0x5ed   : > { %3461 = vst [vmem:[%s5704_s26 + $0x188] sm:$0xff] %v3397_v63  ;;  %v3201_v33 = vadd.f32 %v3200_v7, %v3111_v35  ;;  %v4542_v35 = vld [vmem:[%s4692_s22 + $0x1d8] sm:$0xff] }
 0x5ee   : > { %v3332_v3 = vadd.f32 %v4533_v15, %v3268_v26 }
 0x5ef   : > { %v3271_v42 = vmul.f32 %v5693_v56, %v3201_v33 }
 0x5f0   : > { %v3396_v9 = vmax.f32 %v3332_v3, 0.0 }
 0x5f1   : > { %v3335_v38 = vadd.f32 %v4534_v37, %v3271_v42  ;;  %v2933_v59 = vpop.f32.mrf.mxu2  ;;  %v3022_v27 = vpop.f32.mrf.mxu3 }
 0x5f2   : > { %3460 = vst [vmem:[%s5704_s26 + $0x180] sm:$0xff] %v3396_v9  ;;  %v3023_v28 = vadd.f32 %v3022_v27, %v2933_v59  ;;  %v4543_v27 = vld [vmem:[%s4692_s22 + $0x1d0] sm:$0xff] }
 0x5f3   : > { %v3399_v16 = vmax.f32 %v3335_v38, 0.0 }
 0x5f4   : > { %v3270_v6 = vmul.f32 %v5693_v56, %v3023_v28  ;;  %v3114_v52 = vpop.f32.mrf.mxu0  ;;  %v3203_v32 = vpop.f32.mrf.mxu1 }
 0x5f5   : > { %3463 = vst [vmem:[%s5704_s26 + $0x198] sm:$0xff] %v3399_v16  ;;  %v3204_v11 = vadd.f32 %v3203_v32, %v3114_v52  ;;  %v4544_v52 = vld [vmem:[%s4692_s22 + $0x1e8] sm:$0xff] }
 0x5f6   : > { %v3334_v39 = vadd.f32 %v4535_v43, %v3270_v6 }
 0x5f7   : > { %v3273_v51 = vmul.f32 %v5693_v56, %v3204_v11 }
 0x5f8   : > { %v3398_v36 = vmax.f32 %v3334_v39, 0.0 }
 0x5f9   : > { %v3337_v2 = vadd.f32 %v4536_v4, %v3273_v51  ;;  %v2936_v17 = vpop.f32.mrf.mxu2  ;;  %v3025_v58 = vpop.f32.mrf.mxu3 }
 0x5fa   : > { %3462 = vst [vmem:[%s5704_s26 + $0x190] sm:$0xff] %v3398_v36  ;;  %v3026_v40 = vadd.f32 %v3025_v58, %v2936_v17  ;;  %v4545_v58 = vld [vmem:[%s4692_s22 + $0x1e0] sm:$0xff] }
 0x5fb   : > { %v3401_v41 = vmax.f32 %v3337_v2, 0.0 }
 0x5fc   : > { %v3272_v10 = vmul.f32 %v5693_v56, %v3026_v40  ;;  %v3116_v23 = vpop.f32.mrf.mxu0  ;;  %v3205_v55 = vpop.f32.mrf.mxu1 }
 0x5fd   : > { %3465 = vst [vmem:[%s5704_s26 + $0x1a8] sm:$0xff] %v3401_v41  ;;  %v3206_v50 = vadd.f32 %v3205_v55, %v3116_v23  ;;  %v4546_v23 = vld [vmem:[%s4692_s22 + $0x1f8] sm:$0xff] }
 0x5fe   : > { %v3336_v19 = vadd.f32 %v4537_v54, %v3272_v10 }
 0x5ff   : > { %v3275_v34 = vmul.f32 %v5693_v56, %v3206_v50 }
 0x600   : > { %v3400_v62 = vmax.f32 %v3336_v19, 0.0 }
 0x601   : > { %v3339_v45 = vadd.f32 %v4538_v49, %v3275_v34  ;;  %v2938_v5 = vpop.f32.mrf.mxu2  ;;  %v3027_v20 = vpop.f32.mrf.mxu3  ;;  %v4547_v49 = vld [vmem:[%s4692_s22 + $0x1f0] sm:$0xff] }
 0x602   : > { %3464 = vst [vmem:[%s5704_s26 + $0x1a0] sm:$0xff] %v3400_v62  ;;  %v3028_v47 = vadd.f32 %v3027_v20, %v2938_v5 }
 0x603   : > { %v3403_v29 = vmax.f32 %v3339_v45, 0.0 }
 0x604   : > { %v3274_v0 = vmul.f32 %v5693_v56, %v3028_v47  ;;  %v3119_v22 = vpop.f32.mrf.mxu0  ;;  %v3208_v53 = vpop.f32.mrf.mxu1 }
 0x605   : > { %3467 = vst [vmem:[%s5704_s26 + $0x1b8] sm:$0xff] %v3403_v29  ;;  %v3209_v12 = vadd.f32 %v3208_v53, %v3119_v22 }
 0x606   : > { %v3338_v18 = vadd.f32 %v4539_v1, %v3274_v0 }
 0x607   : > { %v3277_v30 = vmul.f32 %v5693_v56, %v3209_v12 }
 0x608   : > { %v3402_v25 = vmax.f32 %v3338_v18, 0.0 }
 0x609   : > { %v3341_v48 = vadd.f32 %v4540_v21, %v3277_v30  ;;  %v2941_v46 = vpop.f32.mrf.mxu2  ;;  %v3030_v31 = vpop.f32.mrf.mxu3 }
 0x60a   : > { %3466 = vst [vmem:[%s5704_s26 + $0x1b0] sm:$0xff] %v3402_v25  ;;  %v3031_v57 = vadd.f32 %v3030_v31, %v2941_v46 }
 0x60b   : > { %v3405_v24 = vmax.f32 %v3341_v48, 0.0 }
 0x60c   : > { %v3276_v14 = vmul.f32 %v5693_v56, %v3031_v57  ;;  %v3121_v8 = vpop.f32.mrf.mxu0  ;;  %v3210_v44 = vpop.f32.mrf.mxu1 }
 0x60d   : > { %3469 = vst [vmem:[%s5704_s26 + $0x1c8] sm:$0xff] %v3405_v24  ;;  %v3211_v61 = vadd.f32 %v3210_v44, %v3121_v8 }
 0x60e   : > { %v3340_v60 = vadd.f32 %v4541_v13, %v3276_v14 }
 0x60f   : > { %v3279_v63 = vmul.f32 %v5693_v56, %v3211_v61 }
 0x610   : > { %v3404_v26 = vmax.f32 %v3340_v60, 0.0 }
 0x611   : > { %v3343_v7 = vadd.f32 %v4542_v35, %v3279_v63  ;;  %v2943_v33 = vpop.f32.mrf.mxu2  ;;  %v3032_v15 = vpop.f32.mrf.mxu3 }
 0x612   : > { %3468 = vst [vmem:[%s5704_s26 + $0x1c0] sm:$0xff] %v3404_v26  ;;  %v3033_v3 = vadd.f32 %v3032_v15, %v2943_v33 }
 0x613   : > { %v3407_v42 = vmax.f32 %v3343_v7, 0.0 }
 0x614   : > { %v3278_v9 = vmul.f32 %v5693_v56, %v3033_v3  ;;  %v3124_v37 = vpop.f32.mrf.mxu0  ;;  %v3213_v38 = vpop.f32.mrf.mxu1 }
 0x615   : > { %3471 = vst [vmem:[%s5704_s26 + $0x1d8] sm:$0xff] %v3407_v42  ;;  %v3214_v59 = vadd.f32 %v3213_v38, %v3124_v37 }
 0x616   : > { %v3342_v28 = vadd.f32 %v4543_v27, %v3278_v9 }
 0x617   : > { %v3281_v16 = vmul.f32 %v5693_v56, %v3214_v59 }
 0x618   : > { %v3406_v6 = vmax.f32 %v3342_v28, 0.0 }
 0x619   : > { %v3345_v32 = vadd.f32 %v4544_v52, %v3281_v16  ;;  %v2946_v11 = vpop.f32.mrf.mxu2  ;;  %v3035_v43 = vpop.f32.mrf.mxu3 }
 0x61a   : > { %3470 = vst [vmem:[%s5704_s26 + $0x1d0] sm:$0xff] %v3406_v6  ;;  %v3036_v39 = vadd.f32 %v3035_v43, %v2946_v11 }
 0x61b   : > { %v3409_v51 = vmax.f32 %v3345_v32, 0.0 }
 0x61c   : > { %v3280_v36 = vmul.f32 %v5693_v56, %v3036_v39  ;;  %v3126_v4 = vpop.f32.mrf.mxu0  ;;  %v3215_v2 = vpop.f32.mrf.mxu1 }
 0x61d   : > { %3473 = vst [vmem:[%s5704_s26 + $0x1e8] sm:$0xff] %v3409_v51  ;;  %v3216_v17 = vadd.f32 %v3215_v2, %v3126_v4 }
 0x61e   : > { %v3344_v40 = vadd.f32 %v4545_v58, %v3280_v36 }
 0x61f   : > { %v3283_v41 = vmul.f32 %v5693_v56, %v3216_v17 }
 0x620   : > { %v3408_v10 = vmax.f32 %v3344_v40, 0.0 }
 0x621   : > { %v3347_v55 = vadd.f32 %v4546_v23, %v3283_v41  ;;  %v2948_v50 = vpop.f32.mrf.mxu2  ;;  %v3037_v54 = vpop.f32.mrf.mxu3 }
 0x622   : > { %3472 = vst [vmem:[%s5704_s26 + $0x1e0] sm:$0xff] %v3408_v10  ;;  %v3038_v19 = vadd.f32 %v3037_v54, %v2948_v50 }
 0x623   : > { %v3411_v34 = vmax.f32 %v3347_v55, 0.0 }
 0x624   : > { %v3282_v62 = vmul.f32 %v5693_v56, %v3038_v19 }
 0x625   : > { %3475 = vst [vmem:[%s5704_s26 + $0x1f8] sm:$0xff] %v3411_v34 }
 0x626   : > { %v3346_v45 = vadd.f32 %v4547_v49, %v3282_v62 }
 0x628   : > { %v3410_v5 = vmax.f32 %v3346_v45, 0.0 }
 0x62a   : > { %3474 = vst [vmem:[%s5704_s26 + $0x1f0] sm:$0xff] %v3410_v5 }
 0x62b PF: > { %s19_s9 = sadd.s32 1, %s4570_s9   ;;  %s6113_s29 = smov %s4566_s30 }
 0x62c   : > { %p16_p5 = scmp.ge.s32.totalorder %s19_s9, 4   ;;  %s6114_s30 = smov %s6116_s0 }
 0x62e   :  { %18 = sbr.rel (!%p16_p5) target bundleno = 2 (0x2), region = 87 }

</bundles_post_ra>
